<compile_context>
chip_gen: v7x
topology: tpu7x:2x2x1
jax: 0.10.0
libtpu: 0.0.40
codegen_flags: <defaults>
</compile_context>

<pallas_src>
import jax
import jax.numpy as jnp
from jax.experimental import pallas as pl
from jax.experimental.pallas import tpu as pltpu


# --------------------------------------------------------------------------
# In-kernel helpers
# --------------------------------------------------------------------------
def _lstm_cell(x, h, c, wi, wh, bb):
    """PyTorch LSTM cell, gate order (i, f, g, o); wi/wh/bb are per-gate tuples."""
    i = jax.nn.sigmoid(jnp.dot(x, wi[0], preferred_element_type=jnp.float32)
                       + jnp.dot(h, wh[0], preferred_element_type=jnp.float32) + bb[0])
    f = jax.nn.sigmoid(jnp.dot(x, wi[1], preferred_element_type=jnp.float32)
                       + jnp.dot(h, wh[1], preferred_element_type=jnp.float32) + bb[1])
    g = jnp.tanh(jnp.dot(x, wi[2], preferred_element_type=jnp.float32)
                 + jnp.dot(h, wh[2], preferred_element_type=jnp.float32) + bb[2])
    o = jax.nn.sigmoid(jnp.dot(x, wi[3], preferred_element_type=jnp.float32)
                       + jnp.dot(h, wh[3], preferred_element_type=jnp.float32) + bb[3])
    c_new = f * c + i * g
    h_new = o * jnp.tanh(c_new)
    return h_new, c_new


def _load_gates(w_ih_ref, w_hh_ref, b_ref):
    """Load per-gate weight slices once (static leading-dim indexing, no lane shuffles)."""
    wi = tuple(w_ih_ref[k] for k in range(4))
    wh = tuple(w_hh_ref[k] for k in range(4))
    bb = tuple(b_ref[k] for k in range(4))
    return wi, wh, bb


# --------------------------------------------------------------------------
# Kernel 1: LSTM encoder (packed-sequence semantics) + ctx/h/c bridges, fused.
# --------------------------------------------------------------------------
def encoder_bridge_kernel(src_ref, lens_ref, w_ih_ref, w_hh_ref, b_ref,
                          ctx_w_ref, ctx_b_ref, hb_w_ref, hb_b_ref,
                          cb_w_ref, cb_b_ref,
                          ctx_ref, h0_ref, c0_ref):
    Ts, B, _ = src_ref.shape
    H = w_hh_ref.shape[1]

    lens = lens_ref[...]                                   # (B, 1) int32
    wi, wh, bb = _load_gates(w_ih_ref, w_hh_ref, b_ref)
    ctx_w = ctx_w_ref[...]
    ctx_b = ctx_b_ref[...]

    h = jnp.zeros((B, H), jnp.float32)
    c = jnp.zeros((B, H), jnp.float32)
    # Static unroll: one kernel invocation, state stays in vregs, no per-step grid cost.
    for t in range(Ts):
        x_t = src_ref[t]                                   # (B, E)
        h_new, c_new = _lstm_cell(x_t, h, c, wi, wh, bb)
        valid = lens > t                                   # (B, 1) bool
        h = jnp.where(valid, h_new, h)                     # freeze state past srclens
        c = jnp.where(valid, c_new, c)
        out_t = jnp.where(valid, h_new, 0.0)               # zero outputs past srclens
        # fused ctx_bridge: Linear(H -> Ht) applied per step (padded rows -> bias,
        # exactly like Linear(0-vector) in the reference; masked out in attention anyway)
        ctx_ref[t] = (jnp.dot(out_t, ctx_w, preferred_element_type=jnp.float32)
                      + ctx_b)
    # fused h/c bridges on the final state
    h0_ref[...] = (jnp.dot(h, hb_w_ref[...], preferred_element_type=jnp.float32)
                   + hb_b_ref[...])
    c0_ref[...] = (jnp.dot(c, cb_w_ref[...], preferred_element_type=jnp.float32)
                   + cb_b_ref[...])


# --------------------------------------------------------------------------
# Kernel 2: attention-LSTM decoder + output projection + softmax, fused.
# --------------------------------------------------------------------------
def decoder_project_kernel(tgt_ref, ctx_ref, padmask_ref, h0_ref, c0_ref,
                           w_ih_ref, w_hh_ref, b_ref, w_in_ref, w_out_ref,
                           out_w_ref, out_b_ref,
                           logit_ref, prob_ref):
    Tt, B, _ = tgt_ref.shape
    Ts = ctx_ref.shape[1]
    Ht = h0_ref.shape[1]

    ctx = ctx_ref[...]                                     # (B, Ts, Ht) batch-leading
    # masked_fill(-inf) -> large finite negative so fully-padded rows stay finite.
    neg = jnp.where(padmask_ref[...] > 0.5, -1e30, 0.0)    # (B, Ts), 1.0 == padding
    neg3 = jnp.reshape(neg, (B, 1, Ts))                    # (B, 1, Ts) additive mask

    wi, wh, bb = _load_gates(w_ih_ref, w_hh_ref, b_ref)
    w_in = w_in_ref[...]                                   # (Ht, Ht)
    w_out_c = w_out_ref[0]                                 # (Ht, Ht)  (acts on weighted ctx)
    w_out_h = w_out_ref[1]                                 # (Ht, Ht)  (acts on LSTM hidden)
    out_w = out_w_ref[...]                                 # (Ht, V)
    out_b = out_b_ref[...]                                 # (1, V)

    h = h0_ref[...]
    c = c0_ref[...]
    for t in range(Tt):
        x_t = tgt_ref[t]                                   # (B, E)
        h, c = _lstm_cell(x_t, h, c, wi, wh, bb)

        # Luong dot attention on the MXU (batched einsum, q-length 1, flash-attn style).
        proj = jnp.dot(h, w_in, preferred_element_type=jnp.float32)      # (B, Ht)
        proj3 = jnp.reshape(proj, (B, 1, Ht))
        scores = jnp.einsum('bqh,bkh->bqk', proj3, ctx,
                            preferred_element_type=jnp.float32) + neg3   # (B, 1, Ts)
        m = jnp.max(scores, axis=-1, keepdims=True)
        e = jnp.exp(scores - m)
        attn = e * pl.reciprocal(jnp.sum(e, axis=-1, keepdims=True), approx=True)
        weighted3 = jnp.einsum('bqk,bkh->bqh', attn, ctx,
                               preferred_element_type=jnp.float32)       # (B, 1, Ht)
        weighted = weighted3[:, 0, :]                                    # (B, Ht)

        # h_tilde = tanh(cat([weighted, h], -1) @ W_out) as two matmuls (no concat).
        h_tilde = jnp.tanh(
            jnp.dot(weighted, w_out_c, preferred_element_type=jnp.float32)
            + jnp.dot(h, w_out_h, preferred_element_type=jnp.float32))

        # fused output projection + softmax
        logits = (jnp.dot(h_tilde, out_w, preferred_element_type=jnp.float32)
                  + out_b)                                               # (B, V)
        logit_ref[t] = logits
        lm = jnp.max(logits, axis=-1, keepdims=True)
        le = jnp.exp(logits - lm)
        prob_ref[t] = le * pl.reciprocal(jnp.sum(le, axis=-1, keepdims=True),
                                         approx=True)


# --------------------------------------------------------------------------
# pallas_call wrappers
# --------------------------------------------------------------------------
def _vmem_specs(n):
    return [pl.BlockSpec(memory_space=pltpu.MemorySpace.VMEM) for _ in range(n)]


def encoder_bridge(src_emb_tm, lens, p):
    Ts, B, _ = src_emb_tm.shape
    Ht = p["ctx_w"].shape[1]
    args = (src_emb_tm, lens, p["enc_w_ih"], p["enc_w_hh"], p["enc_b"],
            p["ctx_w"], p["ctx_b"], p["h_bridge_w"], p["h_bridge_b"],
            p["c_bridge_w"], p["c_bridge_b"])
    return pl.pallas_call(
        encoder_bridge_kernel,
        out_shape=(jax.ShapeDtypeStruct((Ts, B, Ht), jnp.float32),
                   jax.ShapeDtypeStruct((B, Ht), jnp.float32),
                   jax.ShapeDtypeStruct((B, Ht), jnp.float32)),
        in_specs=_vmem_specs(len(args)),
        out_specs=_vmem_specs(3),
    )(*args)


def decoder_project(tgt_emb_tm, ctx, padmask, h0, c0, p):
    Tt, B, _ = tgt_emb_tm.shape
    V = p["out_w"].shape[1]
    args = (tgt_emb_tm, ctx, padmask, h0, c0, p["dec_w_ih"], p["dec_w_hh"],
            p["dec_b"], p["attn_w_in"], p["attn_w_out"], p["out_w"], p["out_b"])
    return pl.pallas_call(
        decoder_project_kernel,
        out_shape=(jax.ShapeDtypeStruct((Tt, B, V), jnp.float32),
                   jax.ShapeDtypeStruct((Tt, B, V), jnp.float32)),
        in_specs=_vmem_specs(len(args)),
        out_specs=_vmem_specs(2),
    )(*args)


# --------------------------------------------------------------------------
# Model: parameters + forward
# --------------------------------------------------------------------------
def init_params(key, V, E, H, Ht):
    ks = jax.random.split(key, 16)
    u = lambda k, shape, s: jax.random.uniform(k, shape, jnp.float32, -s, s)
    sH = 1.0 / (H ** 0.5)
    sHt = 1.0 / (Ht ** 0.5)
    return {
        # embeddings (init_weights: uniform(-0.1, 0.1); share_vocab=True)
        "embedding": u(ks[0], (V, E), 0.1),
        # encoder LSTM (single layer, unidirectional), gate-stacked (i, f, g, o)
        "enc_w_ih": u(ks[1], (4, E, H), sH),
        "enc_w_hh": u(ks[2], (4, H, H), sH),
        "enc_b": u(ks[3], (4, 1, H), sH),
        # ctx_bridge (default Linear init)
        "ctx_w": u(ks[4], (H, Ht), sH),
        "ctx_b": u(ks[5], (1, Ht), sH),
        # h/c bridges (bias filled with 0 per init_weights)
        "h_bridge_w": u(ks[6], (H, Ht), sH),
        "h_bridge_b": jnp.zeros((1, Ht), jnp.float32),
        "c_bridge_w": u(ks[7], (H, Ht), sH),
        "c_bridge_b": jnp.zeros((1, Ht), jnp.float32),
        # decoder (stacked attention LSTM, 1 layer) + dot attention
        "dec_w_ih": u(ks[8], (4, E, Ht), sHt),
        "dec_w_hh": u(ks[9], (4, Ht, Ht), sHt),
        "dec_b": u(ks[10], (4, 1, Ht), sHt),
        "attn_w_in": u(ks[11], (Ht, Ht), sHt),
        "attn_w_out": u(ks[12], (2, Ht, Ht), sHt),   # [0]: weighted-ctx rows, [1]: hidden rows
        # output projection (bias filled with 0 per init_weights)
        "out_w": u(ks[13], (Ht, V), sHt),
        "out_b": jnp.zeros((1, V), jnp.float32),
    }


def seq_model_forward(params, input_src, input_tgt, srcmask, srclens,
                      input_attr=None, attrlens=None, attrmask=None):
    # model_type == 'seq2seq': attribute-stream inputs accepted but unused (that branch).
    B, Ts = input_src.shape
    emb = params["embedding"]

    # TODO(synk): embedding lookup (gather) stays in XLA (jnp.take); a Pallas DMA-gather
    # adds no value at this size.
    src_emb_tm = jnp.transpose(jnp.take(emb, input_src, axis=0), (1, 0, 2))  # (Ts,B,E)
    tgt_emb_tm = jnp.transpose(jnp.take(emb, input_tgt, axis=0), (1, 0, 2))  # (Tt,B,E)

    lens = srclens.astype(jnp.int32).reshape(B, 1)
    # srcmask = (1 - srcmask).byte()  -> 1.0 marks a padding position
    padmask = 1.0 - srcmask.astype(jnp.float32)

    # fused kernel 1: encoder + ctx/h/c bridges
    ctx_tm, h0, c0 = encoder_bridge(src_emb_tm, lens, params)
    ctx = jnp.transpose(ctx_tm, (1, 0, 2))                  # (B, Ts, Ht) batch-leading

    # fused kernel 2: attention decoder + output projection + softmax
    logits_tm, probs_tm = decoder_project(tgt_emb_tm, ctx, padmask, h0, c0, params)

    decoder_logit = jnp.transpose(logits_tm, (1, 0, 2))     # (B, Tt, V)
    probs = jnp.transpose(probs_tm, (1, 0, 2))
    return decoder_logit, probs


# --------------------------------------------------------------------------
if __name__ == "__main__":
    B, Ts, Tt, E, H, Ht, V = 2, 8, 8, 32, 32, 32, 50
    key = jax.random.PRNGKey(0)
    pkey, dkey = jax.random.split(key)
    params = init_params(pkey, V, E, H, Ht)

    k1, k2 = jax.random.split(dkey)
    srclens = jnp.array([8, 6], dtype=jnp.int32)
    pos = jnp.arange(Ts)[None, :]
    srcmask = (pos < srclens[:, None]).astype(jnp.int32)    # 1 == real token
    input_src = jax.random.randint(k1, (B, Ts), 1, V)
    input_src = jnp.where(srcmask > 0, input_src, 0)        # pad_id_src = 0
    input_tgt = jax.random.randint(k2, (B, Tt), 1, V)

    # attribute-stream inputs kept for signature parity (unused with model_type='seq2seq')
    input_attr = jnp.zeros((B, Ts), jnp.int32)
    attrlens = jnp.ones((B,), jnp.int32)
    attrmask = jnp.ones((B, Ts), jnp.int32)

    fwd = jax.jit(seq_model_forward)
    logits, probs = fwd(params, input_src, input_tgt, srcmask, srclens,
                        input_attr, attrlens, attrmask)
    jax.block_until_ready((logits, probs))

    assert logits.shape == (B, Tt, V) and probs.shape == (B, Tt, V)
    assert bool(jnp.all(jnp.isfinite(probs)))
    # TODO(synk): bidirectional / multi-layer LSTM and the 'delete'/'delete_retrieve'
    # attribute branches are config paths not exercised by this seq2seq configuration.
    # TODO(synk): for production sizes (V~30k, Ht>=512) the vocab projection should be
    # tiled over (rows x vocab) with bf16 matmul inputs instead of a single VMEM block.
    print("KERNEL_OK")
</pallas_src>

<mosaic_0001>
module attributes {stable_mosaic.version = 11 : i64} {
  func.func @decoder_project_kernel(%arg0: memref<8x2x32xf32, #tpu.memory_space<vmem>>, %arg1: memref<2x8x32xf32, #tpu.memory_space<vmem>>, %arg2: memref<2x8xf32, #tpu.memory_space<vmem>>, %arg3: memref<2x32xf32, #tpu.memory_space<vmem>>, %arg4: memref<2x32xf32, #tpu.memory_space<vmem>>, %arg5: memref<4x32x32xf32, #tpu.memory_space<vmem>>, %arg6: memref<4x32x32xf32, #tpu.memory_space<vmem>>, %arg7: memref<4x1x32xf32, #tpu.memory_space<vmem>>, %arg8: memref<32x32xf32, #tpu.memory_space<vmem>>, %arg9: memref<2x32x32xf32, #tpu.memory_space<vmem>>, %arg10: memref<32x50xf32, #tpu.memory_space<vmem>>, %arg11: memref<1x50xf32, #tpu.memory_space<vmem>>, %arg12: memref<8x2x50xf32, #tpu.memory_space<vmem>>, %arg13: memref<8x2x50xf32, #tpu.memory_space<vmem>>) attributes {dimension_semantics = [], scalar_prefetch = 0 : i64, scratch_operands = 0 : i64, tpu.core_type = #tpu.core_type<tc>} {
    %c0 = arith.constant 0 : index
    %c0_0 = arith.constant 0 : index
    %c0_1 = arith.constant 0 : index
    %0 = vector.load %arg1[%c0, %c0_0, %c0_1] : memref<2x8x32xf32, #tpu.memory_space<vmem>>, vector<2x8x32xf32>
    %c0_2 = arith.constant 0 : index
    %c0_3 = arith.constant 0 : index
    %1 = vector.load %arg2[%c0_2, %c0_3] : memref<2x8xf32, #tpu.memory_space<vmem>>, vector<2x8xf32>
    %cst = arith.constant 5.000000e-01 : f32
    %2 = vector.broadcast %cst : f32 to vector<2x8xf32>
    %3 = arith.cmpf ogt, %1, %2 : vector<2x8xf32>
    %cst_4 = arith.constant -1.000000e+30 : f32
    %cst_5 = arith.constant 0.000000e+00 : f32
    %4 = vector.broadcast %cst_4 : f32 to vector<2x8xf32>
    %5 = vector.broadcast %cst_5 : f32 to vector<2x8xf32>
    %6 = arith.select %3, %4, %5 : vector<2x8xi1>, vector<2x8xf32>
    %7 = vector.shape_cast %6 : vector<2x8xf32> to vector<2x1x8xf32>
    %c0_6 = arith.constant 0 : index
    %c0_7 = arith.constant 0 : index
    %c0_8 = arith.constant 0 : index
    %8 = vector.load %arg5[%c0_6, %c0_7, %c0_8] : memref<4x32x32xf32, #tpu.memory_space<vmem>>, vector<1x32x32xf32>
    %9 = vector.shape_cast %8 : vector<1x32x32xf32> to vector<32x32xf32>
    %c1 = arith.constant 1 : index
    %c0_9 = arith.constant 0 : index
    %c0_10 = arith.constant 0 : index
    %10 = vector.load %arg5[%c1, %c0_9, %c0_10] : memref<4x32x32xf32, #tpu.memory_space<vmem>>, vector<1x32x32xf32>
    %11 = vector.shape_cast %10 : vector<1x32x32xf32> to vector<32x32xf32>
    %c2 = arith.constant 2 : index
    %c0_11 = arith.constant 0 : index
    %c0_12 = arith.constant 0 : index
    %12 = vector.load %arg5[%c2, %c0_11, %c0_12] : memref<4x32x32xf32, #tpu.memory_space<vmem>>, vector<1x32x32xf32>
    %13 = vector.shape_cast %12 : vector<1x32x32xf32> to vector<32x32xf32>
    %c3 = arith.constant 3 : index
    %c0_13 = arith.constant 0 : index
    %c0_14 = arith.constant 0 : index
    %14 = vector.load %arg5[%c3, %c0_13, %c0_14] : memref<4x32x32xf32, #tpu.memory_space<vmem>>, vector<1x32x32xf32>
    %15 = vector.shape_cast %14 : vector<1x32x32xf32> to vector<32x32xf32>
    %c0_15 = arith.constant 0 : index
    %c0_16 = arith.constant 0 : index
    %c0_17 = arith.constant 0 : index
    %16 = vector.load %arg6[%c0_15, %c0_16, %c0_17] : memref<4x32x32xf32, #tpu.memory_space<vmem>>, vector<1x32x32xf32>
    %17 = vector.shape_cast %16 : vector<1x32x32xf32> to vector<32x32xf32>
    %c1_18 = arith.constant 1 : index
    %c0_19 = arith.constant 0 : index
    %c0_20 = arith.constant 0 : index
    %18 = vector.load %arg6[%c1_18, %c0_19, %c0_20] : memref<4x32x32xf32, #tpu.memory_space<vmem>>, vector<1x32x32xf32>
    %19 = vector.shape_cast %18 : vector<1x32x32xf32> to vector<32x32xf32>
    %c2_21 = arith.constant 2 : index
    %c0_22 = arith.constant 0 : index
    %c0_23 = arith.constant 0 : index
    %20 = vector.load %arg6[%c2_21, %c0_22, %c0_23] : memref<4x32x32xf32, #tpu.memory_space<vmem>>, vector<1x32x32xf32>
    %21 = vector.shape_cast %20 : vector<1x32x32xf32> to vector<32x32xf32>
    %c3_24 = arith.constant 3 : index
    %c0_25 = arith.constant 0 : index
    %c0_26 = arith.constant 0 : index
    %22 = vector.load %arg6[%c3_24, %c0_25, %c0_26] : memref<4x32x32xf32, #tpu.memory_space<vmem>>, vector<1x32x32xf32>
    %23 = vector.shape_cast %22 : vector<1x32x32xf32> to vector<32x32xf32>
    %c0_27 = arith.constant 0 : index
    %c0_28 = arith.constant 0 : index
    %c0_29 = arith.constant 0 : index
    %24 = vector.load %arg7[%c0_27, %c0_28, %c0_29] : memref<4x1x32xf32, #tpu.memory_space<vmem>>, vector<1x1x32xf32>
    %25 = vector.shape_cast %24 : vector<1x1x32xf32> to vector<1x32xf32>
    %c1_30 = arith.constant 1 : index
    %c0_31 = arith.constant 0 : index
    %c0_32 = arith.constant 0 : index
    %26 = vector.load %arg7[%c1_30, %c0_31, %c0_32] : memref<4x1x32xf32, #tpu.memory_space<vmem>>, vector<1x1x32xf32>
    %27 = vector.shape_cast %26 : vector<1x1x32xf32> to vector<1x32xf32>
    %c2_33 = arith.constant 2 : index
    %c0_34 = arith.constant 0 : index
    %c0_35 = arith.constant 0 : index
    %28 = vector.load %arg7[%c2_33, %c0_34, %c0_35] : memref<4x1x32xf32, #tpu.memory_space<vmem>>, vector<1x1x32xf32>
    %29 = vector.shape_cast %28 : vector<1x1x32xf32> to vector<1x32xf32>
    %c3_36 = arith.constant 3 : index
    %c0_37 = arith.constant 0 : index
    %c0_38 = arith.constant 0 : index
    %30 = vector.load %arg7[%c3_36, %c0_37, %c0_38] : memref<4x1x32xf32, #tpu.memory_space<vmem>>, vector<1x1x32xf32>
    %31 = vector.shape_cast %30 : vector<1x1x32xf32> to vector<1x32xf32>
    %c0_39 = arith.constant 0 : index
    %c0_40 = arith.constant 0 : index
    %32 = vector.load %arg8[%c0_39, %c0_40] : memref<32x32xf32, #tpu.memory_space<vmem>>, vector<32x32xf32>
    %c0_41 = arith.constant 0 : index
    %c0_42 = arith.constant 0 : index
    %c0_43 = arith.constant 0 : index
    %33 = vector.load %arg9[%c0_41, %c0_42, %c0_43] : memref<2x32x32xf32, #tpu.memory_space<vmem>>, vector<1x32x32xf32>
    %34 = vector.shape_cast %33 : vector<1x32x32xf32> to vector<32x32xf32>
    %c1_44 = arith.constant 1 : index
    %c0_45 = arith.constant 0 : index
    %c0_46 = arith.constant 0 : index
    %35 = vector.load %arg9[%c1_44, %c0_45, %c0_46] : memref<2x32x32xf32, #tpu.memory_space<vmem>>, vector<1x32x32xf32>
    %36 = vector.shape_cast %35 : vector<1x32x32xf32> to vector<32x32xf32>
    %c0_47 = arith.constant 0 : index
    %c0_48 = arith.constant 0 : index
    %37 = vector.load %arg10[%c0_47, %c0_48] : memref<32x50xf32, #tpu.memory_space<vmem>>, vector<32x50xf32>
    %c0_49 = arith.constant 0 : index
    %c0_50 = arith.constant 0 : index
    %38 = vector.load %arg11[%c0_49, %c0_50] : memref<1x50xf32, #tpu.memory_space<vmem>>, vector<1x50xf32>
    %c0_51 = arith.constant 0 : index
    %c0_52 = arith.constant 0 : index
    %39 = vector.load %arg3[%c0_51, %c0_52] : memref<2x32xf32, #tpu.memory_space<vmem>>, vector<2x32xf32>
    %c0_53 = arith.constant 0 : index
    %c0_54 = arith.constant 0 : index
    %40 = vector.load %arg4[%c0_53, %c0_54] : memref<2x32xf32, #tpu.memory_space<vmem>>, vector<2x32xf32>
    %c0_55 = arith.constant 0 : index
    %c0_56 = arith.constant 0 : index
    %c0_57 = arith.constant 0 : index
    %41 = vector.load %arg0[%c0_55, %c0_56, %c0_57] : memref<8x2x32xf32, #tpu.memory_space<vmem>>, vector<1x2x32xf32>
    %42 = vector.shape_cast %41 : vector<1x2x32xf32> to vector<2x32xf32>
    %cst_58 = arith.constant dense<0.000000e+00> : vector<2x32xf32>
    %43 = tpu.matmul %42, %9, %cst_58 {dimension_numbers = #tpu.dot_dimension_numbers<[1], [0], [0], [1], [0, 0, 1, 1], [], []>} : vector<2x32xf32>, vector<32x32xf32>, vector<2x32xf32> -> vector<2x32xf32>
    %cst_59 = arith.constant dense<0.000000e+00> : vector<2x32xf32>
    %44 = tpu.matmul %39, %17, %cst_59 {dimension_numbers = #tpu.dot_dimension_numbers<[1], [0], [0], [1], [0, 0, 1, 1], [], []>} : vector<2x32xf32>, vector<32x32xf32>, vector<2x32xf32> -> vector<2x32xf32>
    %45 = arith.addf %43, %44 : vector<2x32xf32>
    %46 = vector.broadcast %25 : vector<1x32xf32> to vector<2x32xf32>
    %47 = arith.addf %45, %46 : vector<2x32xf32>
    %48 = arith.negf %47 : vector<2x32xf32>
    %49 = math.exp %48 : vector<2x32xf32>
    %cst_60 = arith.constant 1.000000e+00 : f32
    %50 = vector.broadcast %cst_60 : f32 to vector<2x32xf32>
    %51 = arith.addf %50, %49 : vector<2x32xf32>
    %52 = arith.divf %50, %51 : vector<2x32xf32>
    %cst_61 = arith.constant dense<0.000000e+00> : vector<2x32xf32>
    %53 = tpu.matmul %42, %11, %cst_61 {dimension_numbers = #tpu.dot_dimension_numbers<[1], [0], [0], [1], [0, 0, 1, 1], [], []>} : vector<2x32xf32>, vector<32x32xf32>, vector<2x32xf32> -> vector<2x32xf32>
    %cst_62 = arith.constant dense<0.000000e+00> : vector<2x32xf32>
    %54 = tpu.matmul %39, %19, %cst_62 {dimension_numbers = #tpu.dot_dimension_numbers<[1], [0], [0], [1], [0, 0, 1, 1], [], []>} : vector<2x32xf32>, vector<32x32xf32>, vector<2x32xf32> -> vector<2x32xf32>
    %55 = arith.addf %53, %54 : vector<2x32xf32>
    %56 = vector.broadcast %27 : vector<1x32xf32> to vector<2x32xf32>
    %57 = arith.addf %55, %56 : vector<2x32xf32>
    %58 = arith.negf %57 : vector<2x32xf32>
    %59 = math.exp %58 : vector<2x32xf32>
    %cst_63 = arith.constant 1.000000e+00 : f32
    %60 = vector.broadcast %cst_63 : f32 to vector<2x32xf32>
    %61 = arith.addf %60, %59 : vector<2x32xf32>
    %62 = arith.divf %60, %61 : vector<2x32xf32>
    %cst_64 = arith.constant dense<0.000000e+00> : vector<2x32xf32>
    %63 = tpu.matmul %42, %13, %cst_64 {dimension_numbers = #tpu.dot_dimension_numbers<[1], [0], [0], [1], [0, 0, 1, 1], [], []>} : vector<2x32xf32>, vector<32x32xf32>, vector<2x32xf32> -> vector<2x32xf32>
    %cst_65 = arith.constant dense<0.000000e+00> : vector<2x32xf32>
    %64 = tpu.matmul %39, %21, %cst_65 {dimension_numbers = #tpu.dot_dimension_numbers<[1], [0], [0], [1], [0, 0, 1, 1], [], []>} : vector<2x32xf32>, vector<32x32xf32>, vector<2x32xf32> -> vector<2x32xf32>
    %65 = arith.addf %63, %64 : vector<2x32xf32>
    %66 = vector.broadcast %29 : vector<1x32xf32> to vector<2x32xf32>
    %67 = arith.addf %65, %66 : vector<2x32xf32>
    %68 = math.tanh %67 : vector<2x32xf32>
    %cst_66 = arith.constant dense<0.000000e+00> : vector<2x32xf32>
    %69 = tpu.matmul %42, %15, %cst_66 {dimension_numbers = #tpu.dot_dimension_numbers<[1], [0], [0], [1], [0, 0, 1, 1], [], []>} : vector<2x32xf32>, vector<32x32xf32>, vector<2x32xf32> -> vector<2x32xf32>
    %cst_67 = arith.constant dense<0.000000e+00> : vector<2x32xf32>
    %70 = tpu.matmul %39, %23, %cst_67 {dimension_numbers = #tpu.dot_dimension_numbers<[1], [0], [0], [1], [0, 0, 1, 1], [], []>} : vector<2x32xf32>, vector<32x32xf32>, vector<2x32xf32> -> vector<2x32xf32>
    %71 = arith.addf %69, %70 : vector<2x32xf32>
    %72 = vector.broadcast %31 : vector<1x32xf32> to vector<2x32xf32>
    %73 = arith.addf %71, %72 : vector<2x32xf32>
    %74 = arith.negf %73 : vector<2x32xf32>
    %75 = math.exp %74 : vector<2x32xf32>
    %cst_68 = arith.constant 1.000000e+00 : f32
    %76 = vector.broadcast %cst_68 : f32 to vector<2x32xf32>
    %77 = arith.addf %76, %75 : vector<2x32xf32>
    %78 = arith.divf %76, %77 : vector<2x32xf32>
    %79 = arith.mulf %62, %40 : vector<2x32xf32>
    %80 = arith.mulf %52, %68 : vector<2x32xf32>
    %81 = arith.addf %79, %80 : vector<2x32xf32>
    %82 = math.tanh %81 : vector<2x32xf32>
    %83 = arith.mulf %78, %82 : vector<2x32xf32>
    %cst_69 = arith.constant dense<0.000000e+00> : vector<2x32xf32>
    %84 = tpu.matmul %83, %32, %cst_69 {dimension_numbers = #tpu.dot_dimension_numbers<[1], [0], [0], [1], [0, 0, 1, 1], [], []>} : vector<2x32xf32>, vector<32x32xf32>, vector<2x32xf32> -> vector<2x32xf32>
    %85 = vector.shape_cast %84 : vector<2x32xf32> to vector<2x1x32xf32>
    "tpu.trace_start"() <{level = 10 : i32, message = "bqh,bkh->bqk"}> : () -> ()
    %cst_70 = arith.constant dense<0.000000e+00> : vector<2x1x8xf32>
    %86 = tpu.matmul %85, %0, %cst_70 {dimension_numbers = #tpu.dot_dimension_numbers<[2], [2], [1], [1], [0, 0, 0, 1, 1, 1], [0], [0]>} : vector<2x1x32xf32>, vector<2x8x32xf32>, vector<2x1x8xf32> -> vector<2x1x8xf32>
    "tpu.trace_stop"() : () -> ()
    %87 = arith.addf %86, %7 : vector<2x1x8xf32>
    %cst_71 = arith.constant dense<0xFF800000> : vector<2x1xf32>
    %88 = vector.multi_reduction <maximumf>, %87, %cst_71 [2] : vector<2x1x8xf32> to vector<2x1xf32>
    %89 = vector.shape_cast %88 : vector<2x1xf32> to vector<2x1x1xf32>
    %90 = vector.broadcast %89 : vector<2x1x1xf32> to vector<2x1x8xf32>
    %91 = arith.subf %87, %90 : vector<2x1x8xf32>
    %92 = math.exp %91 : vector<2x1x8xf32>
    %cst_72 = arith.constant dense<0.000000e+00> : vector<2x1xf32>
    %93 = vector.multi_reduction <add>, %92, %cst_72 [2] : vector<2x1x8xf32> to vector<2x1xf32>
    %94 = vector.shape_cast %93 : vector<2x1xf32> to vector<2x1x1xf32>
    %95 = tpu.reciprocal %94 {approx = true} : vector<2x1x1xf32> -> vector<2x1x1xf32>
    %96 = vector.broadcast %95 : vector<2x1x1xf32> to vector<2x1x8xf32>
    %97 = arith.mulf %92, %96 : vector<2x1x8xf32>
    "tpu.trace_start"() <{level = 10 : i32, message = "bqk,bkh->bqh"}> : () -> ()
    %cst_73 = arith.constant dense<0.000000e+00> : vector<2x1x32xf32>
    %98 = tpu.matmul %97, %0, %cst_73 {dimension_numbers = #tpu.dot_dimension_numbers<[2], [1], [1], [2], [0, 0, 0, 1, 1, 2], [0], [0]>} : vector<2x1x8xf32>, vector<2x8x32xf32>, vector<2x1x32xf32> -> vector<2x1x32xf32>
    "tpu.trace_stop"() : () -> ()
    %99 = vector.shape_cast %98 : vector<2x1x32xf32> to vector<2x32xf32>
    %cst_74 = arith.constant dense<0.000000e+00> : vector<2x32xf32>
    %100 = tpu.matmul %99, %34, %cst_74 {dimension_numbers = #tpu.dot_dimension_numbers<[1], [0], [0], [1], [0, 0, 1, 1], [], []>} : vector<2x32xf32>, vector<32x32xf32>, vector<2x32xf32> -> vector<2x32xf32>
    %cst_75 = arith.constant dense<0.000000e+00> : vector<2x32xf32>
    %101 = tpu.matmul %83, %36, %cst_75 {dimension_numbers = #tpu.dot_dimension_numbers<[1], [0], [0], [1], [0, 0, 1, 1], [], []>} : vector<2x32xf32>, vector<32x32xf32>, vector<2x32xf32> -> vector<2x32xf32>
    %102 = arith.addf %100, %101 : vector<2x32xf32>
    %103 = math.tanh %102 : vector<2x32xf32>
    %cst_76 = arith.constant dense<0.000000e+00> : vector<2x50xf32>
    %104 = tpu.matmul %103, %37, %cst_76 {dimension_numbers = #tpu.dot_dimension_numbers<[1], [0], [0], [1], [0, 0, 1, 1], [], []>} : vector<2x32xf32>, vector<32x50xf32>, vector<2x50xf32> -> vector<2x50xf32>
    %105 = vector.broadcast %38 : vector<1x50xf32> to vector<2x50xf32>
    %106 = arith.addf %104, %105 : vector<2x50xf32>
    %c0_77 = arith.constant 0 : index
    %c0_78 = arith.constant 0 : index
    %c0_79 = arith.constant 0 : index
    %107 = vector.load %arg12[%c0_77, %c0_78, %c0_79] : memref<8x2x50xf32, #tpu.memory_space<vmem>>, vector<1x2x50xf32>
    %108 = vector.shape_cast %107 : vector<1x2x50xf32> to vector<2x50xf32>
    %109 = vector.shape_cast %106 : vector<2x50xf32> to vector<1x2x50xf32>
    tpu.vector_store %arg12[%c0_77, %c0_78, %c0_79], %109 {strides = array<i32>} : memref<8x2x50xf32, #tpu.memory_space<vmem>>, vector<1x2x50xf32>,
    %cst_80 = arith.constant dense<0xFF800000> : vector<2xf32>
    %110 = vector.multi_reduction <maximumf>, %106, %cst_80 [1] : vector<2x50xf32> to vector<2xf32>
    %111 = vector.shape_cast %110 : vector<2xf32> to vector<2x1xf32>
    %112 = vector.broadcast %111 : vector<2x1xf32> to vector<2x50xf32>
    %113 = arith.subf %106, %112 : vector<2x50xf32>
    %114 = math.exp %113 : vector<2x50xf32>
    %cst_81 = arith.constant dense<0.000000e+00> : vector<2xf32>
    %115 = vector.multi_reduction <add>, %114, %cst_81 [1] : vector<2x50xf32> to vector<2xf32>
    %116 = vector.shape_cast %115 : vector<2xf32> to vector<2x1xf32>
    %117 = tpu.reciprocal %116 {approx = true} : vector<2x1xf32> -> vector<2x1xf32>
    %118 = vector.broadcast %117 : vector<2x1xf32> to vector<2x50xf32>
    %119 = arith.mulf %114, %118 : vector<2x50xf32>
    %c0_82 = arith.constant 0 : index
    %c0_83 = arith.constant 0 : index
    %c0_84 = arith.constant 0 : index
    %120 = vector.load %arg13[%c0_82, %c0_83, %c0_84] : memref<8x2x50xf32, #tpu.memory_space<vmem>>, vector<1x2x50xf32>
    %121 = vector.shape_cast %120 : vector<1x2x50xf32> to vector<2x50xf32>
    %122 = vector.shape_cast %119 : vector<2x50xf32> to vector<1x2x50xf32>
    tpu.vector_store %arg13[%c0_82, %c0_83, %c0_84], %122 {strides = array<i32>} : memref<8x2x50xf32, #tpu.memory_space<vmem>>, vector<1x2x50xf32>,
    %c1_85 = arith.constant 1 : index
    %c0_86 = arith.constant 0 : index
    %c0_87 = arith.constant 0 : index
    %123 = vector.load %arg0[%c1_85, %c0_86, %c0_87] : memref<8x2x32xf32, #tpu.memory_space<vmem>>, vector<1x2x32xf32>
    %124 = vector.shape_cast %123 : vector<1x2x32xf32> to vector<2x32xf32>
    %cst_88 = arith.constant dense<0.000000e+00> : vector<2x32xf32>
    %125 = tpu.matmul %124, %9, %cst_88 {dimension_numbers = #tpu.dot_dimension_numbers<[1], [0], [0], [1], [0, 0, 1, 1], [], []>} : vector<2x32xf32>, vector<32x32xf32>, vector<2x32xf32> -> vector<2x32xf32>
    %cst_89 = arith.constant dense<0.000000e+00> : vector<2x32xf32>
    %126 = tpu.matmul %83, %17, %cst_89 {dimension_numbers = #tpu.dot_dimension_numbers<[1], [0], [0], [1], [0, 0, 1, 1], [], []>} : vector<2x32xf32>, vector<32x32xf32>, vector<2x32xf32> -> vector<2x32xf32>
    %127 = arith.addf %125, %126 : vector<2x32xf32>
    %128 = vector.broadcast %25 : vector<1x32xf32> to vector<2x32xf32>
    %129 = arith.addf %127, %128 : vector<2x32xf32>
    %130 = arith.negf %129 : vector<2x32xf32>
    %131 = math.exp %130 : vector<2x32xf32>
    %cst_90 = arith.constant 1.000000e+00 : f32
    %132 = vector.broadcast %cst_90 : f32 to vector<2x32xf32>
    %133 = arith.addf %132, %131 : vector<2x32xf32>
    %134 = arith.divf %132, %133 : vector<2x32xf32>
    %cst_91 = arith.constant dense<0.000000e+00> : vector<2x32xf32>
    %135 = tpu.matmul %124, %11, %cst_91 {dimension_numbers = #tpu.dot_dimension_numbers<[1], [0], [0], [1], [0, 0, 1, 1], [], []>} : vector<2x32xf32>, vector<32x32xf32>, vector<2x32xf32> -> vector<2x32xf32>
    %cst_92 = arith.constant dense<0.000000e+00> : vector<2x32xf32>
    %136 = tpu.matmul %83, %19, %cst_92 {dimension_numbers = #tpu.dot_dimension_numbers<[1], [0], [0], [1], [0, 0, 1, 1], [], []>} : vector<2x32xf32>, vector<32x32xf32>, vector<2x32xf32> -> vector<2x32xf32>
    %137 = arith.addf %135, %136 : vector<2x32xf32>
    %138 = vector.broadcast %27 : vector<1x32xf32> to vector<2x32xf32>
    %139 = arith.addf %137, %138 : vector<2x32xf32>
    %140 = arith.negf %139 : vector<2x32xf32>
    %141 = math.exp %140 : vector<2x32xf32>
    %cst_93 = arith.constant 1.000000e+00 : f32
    %142 = vector.broadcast %cst_93 : f32 to vector<2x32xf32>
    %143 = arith.addf %142, %141 : vector<2x32xf32>
    %144 = arith.divf %142, %143 : vector<2x32xf32>
    %cst_94 = arith.constant dense<0.000000e+00> : vector<2x32xf32>
    %145 = tpu.matmul %124, %13, %cst_94 {dimension_numbers = #tpu.dot_dimension_numbers<[1], [0], [0], [1], [0, 0, 1, 1], [], []>} : vector<2x32xf32>, vector<32x32xf32>, vector<2x32xf32> -> vector<2x32xf32>
    %cst_95 = arith.constant dense<0.000000e+00> : vector<2x32xf32>
    %146 = tpu.matmul %83, %21, %cst_95 {dimension_numbers = #tpu.dot_dimension_numbers<[1], [0], [0], [1], [0, 0, 1, 1], [], []>} : vector<2x32xf32>, vector<32x32xf32>, vector<2x32xf32> -> vector<2x32xf32>
    %147 = arith.addf %145, %146 : vector<2x32xf32>
    %148 = vector.broadcast %29 : vector<1x32xf32> to vector<2x32xf32>
    %149 = arith.addf %147, %148 : vector<2x32xf32>
    %150 = math.tanh %149 : vector<2x32xf32>
    %cst_96 = arith.constant dense<0.000000e+00> : vector<2x32xf32>
    %151 = tpu.matmul %124, %15, %cst_96 {dimension_numbers = #tpu.dot_dimension_numbers<[1], [0], [0], [1], [0, 0, 1, 1], [], []>} : vector<2x32xf32>, vector<32x32xf32>, vector<2x32xf32> -> vector<2x32xf32>
    %cst_97 = arith.constant dense<0.000000e+00> : vector<2x32xf32>
    %152 = tpu.matmul %83, %23, %cst_97 {dimension_numbers = #tpu.dot_dimension_numbers<[1], [0], [0], [1], [0, 0, 1, 1], [], []>} : vector<2x32xf32>, vector<32x32xf32>, vector<2x32xf32> -> vector<2x32xf32>
    %153 = arith.addf %151, %152 : vector<2x32xf32>
    %154 = vector.broadcast %31 : vector<1x32xf32> to vector<2x32xf32>
    %155 = arith.addf %153, %154 : vector<2x32xf32>
    %156 = arith.negf %155 : vector<2x32xf32>
    %157 = math.exp %156 : vector<2x32xf32>
    %cst_98 = arith.constant 1.000000e+00 : f32
    %158 = vector.broadcast %cst_98 : f32 to vector<2x32xf32>
    %159 = arith.addf %158, %157 : vector<2x32xf32>
    %160 = arith.divf %158, %159 : vector<2x32xf32>
    %161 = arith.mulf %144, %81 : vector<2x32xf32>
    %162 = arith.mulf %134, %150 : vector<2x32xf32>
    %163 = arith.addf %161, %162 : vector<2x32xf32>
    %164 = math.tanh %163 : vector<2x32xf32>
    %165 = arith.mulf %160, %164 : vector<2x32xf32>
    %cst_99 = arith.constant dense<0.000000e+00> : vector<2x32xf32>
    %166 = tpu.matmul %165, %32, %cst_99 {dimension_numbers = #tpu.dot_dimension_numbers<[1], [0], [0], [1], [0, 0, 1, 1], [], []>} : vector<2x32xf32>, vector<32x32xf32>, vector<2x32xf32> -> vector<2x32xf32>
    %167 = vector.shape_cast %166 : vector<2x32xf32> to vector<2x1x32xf32>
    "tpu.trace_start"() <{level = 10 : i32, message = "bqh,bkh->bqk"}> : () -> ()
    %cst_100 = arith.constant dense<0.000000e+00> : vector<2x1x8xf32>
    %168 = tpu.matmul %167, %0, %cst_100 {dimension_numbers = #tpu.dot_dimension_numbers<[2], [2], [1], [1], [0, 0, 0, 1, 1, 1], [0], [0]>} : vector<2x1x32xf32>, vector<2x8x32xf32>, vector<2x1x8xf32> -> vector<2x1x8xf32>
    "tpu.trace_stop"() : () -> ()
    %169 = arith.addf %168, %7 : vector<2x1x8xf32>
    %cst_101 = arith.constant dense<0xFF800000> : vector<2x1xf32>
    %170 = vector.multi_reduction <maximumf>, %169, %cst_101 [2] : vector<2x1x8xf32> to vector<2x1xf32>
    %171 = vector.shape_cast %170 : vector<2x1xf32> to vector<2x1x1xf32>
    %172 = vector.broadcast %171 : vector<2x1x1xf32> to vector<2x1x8xf32>
    %173 = arith.subf %169, %172 : vector<2x1x8xf32>
    %174 = math.exp %173 : vector<2x1x8xf32>
    %cst_102 = arith.constant dense<0.000000e+00> : vector<2x1xf32>
    %175 = vector.multi_reduction <add>, %174, %cst_102 [2] : vector<2x1x8xf32> to vector<2x1xf32>
    %176 = vector.shape_cast %175 : vector<2x1xf32> to vector<2x1x1xf32>
    %177 = tpu.reciprocal %176 {approx = true} : vector<2x1x1xf32> -> vector<2x1x1xf32>
    %178 = vector.broadcast %177 : vector<2x1x1xf32> to vector<2x1x8xf32>
    %179 = arith.mulf %174, %178 : vector<2x1x8xf32>
    "tpu.trace_start"() <{level = 10 : i32, message = "bqk,bkh->bqh"}> : () -> ()
    %cst_103 = arith.constant dense<0.000000e+00> : vector<2x1x32xf32>
    %180 = tpu.matmul %179, %0, %cst_103 {dimension_numbers = #tpu.dot_dimension_numbers<[2], [1], [1], [2], [0, 0, 0, 1, 1, 2], [0], [0]>} : vector<2x1x8xf32>, vector<2x8x32xf32>, vector<2x1x32xf32> -> vector<2x1x32xf32>
    "tpu.trace_stop"() : () -> ()
    %181 = vector.shape_cast %180 : vector<2x1x32xf32> to vector<2x32xf32>
    %cst_104 = arith.constant dense<0.000000e+00> : vector<2x32xf32>
    %182 = tpu.matmul %181, %34, %cst_104 {dimension_numbers = #tpu.dot_dimension_numbers<[1], [0], [0], [1], [0, 0, 1, 1], [], []>} : vector<2x32xf32>, vector<32x32xf32>, vector<2x32xf32> -> vector<2x32xf32>
    %cst_105 = arith.constant dense<0.000000e+00> : vector<2x32xf32>
    %183 = tpu.matmul %165, %36, %cst_105 {dimension_numbers = #tpu.dot_dimension_numbers<[1], [0], [0], [1], [0, 0, 1, 1], [], []>} : vector<2x32xf32>, vector<32x32xf32>, vector<2x32xf32> -> vector<2x32xf32>
    %184 = arith.addf %182, %183 : vector<2x32xf32>
    %185 = math.tanh %184 : vector<2x32xf32>
    %cst_106 = arith.constant dense<0.000000e+00> : vector<2x50xf32>
    %186 = tpu.matmul %185, %37, %cst_106 {dimension_numbers = #tpu.dot_dimension_numbers<[1], [0], [0], [1], [0, 0, 1, 1], [], []>} : vector<2x32xf32>, vector<32x50xf32>, vector<2x50xf32> -> vector<2x50xf32>
    %187 = vector.broadcast %38 : vector<1x50xf32> to vector<2x50xf32>
    %188 = arith.addf %186, %187 : vector<2x50xf32>
    %c1_107 = arith.constant 1 : index
    %c0_108 = arith.constant 0 : index
    %c0_109 = arith.constant 0 : index
    %189 = vector.load %arg12[%c1_107, %c0_108, %c0_109] : memref<8x2x50xf32, #tpu.memory_space<vmem>>, vector<1x2x50xf32>
    %190 = vector.shape_cast %189 : vector<1x2x50xf32> to vector<2x50xf32>
    %191 = vector.shape_cast %188 : vector<2x50xf32> to vector<1x2x50xf32>
    tpu.vector_store %arg12[%c1_107, %c0_108, %c0_109], %191 {strides = array<i32>} : memref<8x2x50xf32, #tpu.memory_space<vmem>>, vector<1x2x50xf32>,
    %cst_110 = arith.constant dense<0xFF800000> : vector<2xf32>
    %192 = vector.multi_reduction <maximumf>, %188, %cst_110 [1] : vector<2x50xf32> to vector<2xf32>
    %193 = vector.shape_cast %192 : vector<2xf32> to vector<2x1xf32>
    %194 = vector.broadcast %193 : vector<2x1xf32> to vector<2x50xf32>
    %195 = arith.subf %188, %194 : vector<2x50xf32>
    %196 = math.exp %195 : vector<2x50xf32>
    %cst_111 = arith.constant dense<0.000000e+00> : vector<2xf32>
    %197 = vector.multi_reduction <add>, %196, %cst_111 [1] : vector<2x50xf32> to vector<2xf32>
    %198 = vector.shape_cast %197 : vector<2xf32> to vector<2x1xf32>
    %199 = tpu.reciprocal %198 {approx = true} : vector<2x1xf32> -> vector<2x1xf32>
    %200 = vector.broadcast %199 : vector<2x1xf32> to vector<2x50xf32>
    %201 = arith.mulf %196, %200 : vector<2x50xf32>
    %c1_112 = arith.constant 1 : index
    %c0_113 = arith.constant 0 : index
    %c0_114 = arith.constant 0 : index
    %202 = vector.load %arg13[%c1_112, %c0_113, %c0_114] : memref<8x2x50xf32, #tpu.memory_space<vmem>>, vector<1x2x50xf32>
    %203 = vector.shape_cast %202 : vector<1x2x50xf32> to vector<2x50xf32>
    %204 = vector.shape_cast %201 : vector<2x50xf32> to vector<1x2x50xf32>
    tpu.vector_store %arg13[%c1_112, %c0_113, %c0_114], %204 {strides = array<i32>} : memref<8x2x50xf32, #tpu.memory_space<vmem>>, vector<1x2x50xf32>,
    %c2_115 = arith.constant 2 : index
    %c0_116 = arith.constant 0 : index
    %c0_117 = arith.constant 0 : index
    %205 = vector.load %arg0[%c2_115, %c0_116, %c0_117] : memref<8x2x32xf32, #tpu.memory_space<vmem>>, vector<1x2x32xf32>
    %206 = vector.shape_cast %205 : vector<1x2x32xf32> to vector<2x32xf32>
    %cst_118 = arith.constant dense<0.000000e+00> : vector<2x32xf32>
    %207 = tpu.matmul %206, %9, %cst_118 {dimension_numbers = #tpu.dot_dimension_numbers<[1], [0], [0], [1], [0, 0, 1, 1], [], []>} : vector<2x32xf32>, vector<32x32xf32>, vector<2x32xf32> -> vector<2x32xf32>
    %cst_119 = arith.constant dense<0.000000e+00> : vector<2x32xf32>
    %208 = tpu.matmul %165, %17, %cst_119 {dimension_numbers = #tpu.dot_dimension_numbers<[1], [0], [0], [1], [0, 0, 1, 1], [], []>} : vector<2x32xf32>, vector<32x32xf32>, vector<2x32xf32> -> vector<2x32xf32>
    %209 = arith.addf %207, %208 : vector<2x32xf32>
    %210 = vector.broadcast %25 : vector<1x32xf32> to vector<2x32xf32>
    %211 = arith.addf %209, %210 : vector<2x32xf32>
    %212 = arith.negf %211 : vector<2x32xf32>
    %213 = math.exp %212 : vector<2x32xf32>
    %cst_120 = arith.constant 1.000000e+00 : f32
    %214 = vector.broadcast %cst_120 : f32 to vector<2x32xf32>
    %215 = arith.addf %214, %213 : vector<2x32xf32>
    %216 = arith.divf %214, %215 : vector<2x32xf32>
    %cst_121 = arith.constant dense<0.000000e+00> : vector<2x32xf32>
    %217 = tpu.matmul %206, %11, %cst_121 {dimension_numbers = #tpu.dot_dimension_numbers<[1], [0], [0], [1], [0, 0, 1, 1], [], []>} : vector<2x32xf32>, vector<32x32xf32>, vector<2x32xf32> -> vector<2x32xf32>
    %cst_122 = arith.constant dense<0.000000e+00> : vector<2x32xf32>
    %218 = tpu.matmul %165, %19, %cst_122 {dimension_numbers = #tpu.dot_dimension_numbers<[1], [0], [0], [1], [0, 0, 1, 1], [], []>} : vector<2x32xf32>, vector<32x32xf32>, vector<2x32xf32> -> vector<2x32xf32>
    %219 = arith.addf %217, %218 : vector<2x32xf32>
    %220 = vector.broadcast %27 : vector<1x32xf32> to vector<2x32xf32>
    %221 = arith.addf %219, %220 : vector<2x32xf32>
    %222 = arith.negf %221 : vector<2x32xf32>
    %223 = math.exp %222 : vector<2x32xf32>
    %cst_123 = arith.constant 1.000000e+00 : f32
    %224 = vector.broadcast %cst_123 : f32 to vector<2x32xf32>
    %225 = arith.addf %224, %223 : vector<2x32xf32>
    %226 = arith.divf %224, %225 : vector<2x32xf32>
    %cst_124 = arith.constant dense<0.000000e+00> : vector<2x32xf32>
    %227 = tpu.matmul %206, %13, %cst_124 {dimension_numbers = #tpu.dot_dimension_numbers<[1], [0], [0], [1], [0, 0, 1, 1], [], []>} : vector<2x32xf32>, vector<32x32xf32>, vector<2x32xf32> -> vector<2x32xf32>
    %cst_125 = arith.constant dense<0.000000e+00> : vector<2x32xf32>
    %228 = tpu.matmul %165, %21, %cst_125 {dimension_numbers = #tpu.dot_dimension_numbers<[1], [0], [0], [1], [0, 0, 1, 1], [], []>} : vector<2x32xf32>, vector<32x32xf32>, vector<2x32xf32> -> vector<2x32xf32>
    %229 = arith.addf %227, %228 : vector<2x32xf32>
    %230 = vector.broadcast %29 : vector<1x32xf32> to vector<2x32xf32>
    %231 = arith.addf %229, %230 : vector<2x32xf32>
    %232 = math.tanh %231 : vector<2x32xf32>
    %cst_126 = arith.constant dense<0.000000e+00> : vector<2x32xf32>
    %233 = tpu.matmul %206, %15, %cst_126 {dimension_numbers = #tpu.dot_dimension_numbers<[1], [0], [0], [1], [0, 0, 1, 1], [], []>} : vector<2x32xf32>, vector<32x32xf32>, vector<2x32xf32> -> vector<2x32xf32>
    %cst_127 = arith.constant dense<0.000000e+00> : vector<2x32xf32>
    %234 = tpu.matmul %165, %23, %cst_127 {dimension_numbers = #tpu.dot_dimension_numbers<[1], [0], [0], [1], [0, 0, 1, 1], [], []>} : vector<2x32xf32>, vector<32x32xf32>, vector<2x32xf32> -> vector<2x32xf32>
    %235 = arith.addf %233, %234 : vector<2x32xf32>
    %236 = vector.broadcast %31 : vector<1x32xf32> to vector<2x32xf32>
    %237 = arith.addf %235, %236 : vector<2x32xf32>
    %238 = arith.negf %237 : vector<2x32xf32>
    %239 = math.exp %238 : vector<2x32xf32>
    %cst_128 = arith.constant 1.000000e+00 : f32
    %240 = vector.broadcast %cst_128 : f32 to vector<2x32xf32>
    %241 = arith.addf %240, %239 : vector<2x32xf32>
    %242 = arith.divf %240, %241 : vector<2x32xf32>
    %243 = arith.mulf %226, %163 : vector<2x32xf32>
    %244 = arith.mulf %216, %232 : vector<2x32xf32>
    %245 = arith.addf %243, %244 : vector<2x32xf32>
    %246 = math.tanh %245 : vector<2x32xf32>
    %247 = arith.mulf %242, %246 : vector<2x32xf32>
    %cst_129 = arith.constant dense<0.000000e+00> : vector<2x32xf32>
    %248 = tpu.matmul %247, %32, %cst_129 {dimension_numbers = #tpu.dot_dimension_numbers<[1], [0], [0], [1], [0, 0, 1, 1], [], []>} : vector<2x32xf32>, vector<32x32xf32>, vector<2x32xf32> -> vector<2x32xf32>
    %249 = vector.shape_cast %248 : vector<2x32xf32> to vector<2x1x32xf32>
    "tpu.trace_start"() <{level = 10 : i32, message = "bqh,bkh->bqk"}> : () -> ()
    %cst_130 = arith.constant dense<0.000000e+00> : vector<2x1x8xf32>
    %250 = tpu.matmul %249, %0, %cst_130 {dimension_numbers = #tpu.dot_dimension_numbers<[2], [2], [1], [1], [0, 0, 0, 1, 1, 1], [0], [0]>} : vector<2x1x32xf32>, vector<2x8x32xf32>, vector<2x1x8xf32> -> vector<2x1x8xf32>
    "tpu.trace_stop"() : () -> ()
    %251 = arith.addf %250, %7 : vector<2x1x8xf32>
    %cst_131 = arith.constant dense<0xFF800000> : vector<2x1xf32>
    %252 = vector.multi_reduction <maximumf>, %251, %cst_131 [2] : vector<2x1x8xf32> to vector<2x1xf32>
    %253 = vector.shape_cast %252 : vector<2x1xf32> to vector<2x1x1xf32>
    %254 = vector.broadcast %253 : vector<2x1x1xf32> to vector<2x1x8xf32>
    %255 = arith.subf %251, %254 : vector<2x1x8xf32>
    %256 = math.exp %255 : vector<2x1x8xf32>
    %cst_132 = arith.constant dense<0.000000e+00> : vector<2x1xf32>
    %257 = vector.multi_reduction <add>, %256, %cst_132 [2] : vector<2x1x8xf32> to vector<2x1xf32>
    %258 = vector.shape_cast %257 : vector<2x1xf32> to vector<2x1x1xf32>
    %259 = tpu.reciprocal %258 {approx = true} : vector<2x1x1xf32> -> vector<2x1x1xf32>
    %260 = vector.broadcast %259 : vector<2x1x1xf32> to vector<2x1x8xf32>
    %261 = arith.mulf %256, %260 : vector<2x1x8xf32>
    "tpu.trace_start"() <{level = 10 : i32, message = "bqk,bkh->bqh"}> : () -> ()
    %cst_133 = arith.constant dense<0.000000e+00> : vector<2x1x32xf32>
    %262 = tpu.matmul %261, %0, %cst_133 {dimension_numbers = #tpu.dot_dimension_numbers<[2], [1], [1], [2], [0, 0, 0, 1, 1, 2], [0], [0]>} : vector<2x1x8xf32>, vector<2x8x32xf32>, vector<2x1x32xf32> -> vector<2x1x32xf32>
    "tpu.trace_stop"() : () -> ()
    %263 = vector.shape_cast %262 : vector<2x1x32xf32> to vector<2x32xf32>
    %cst_134 = arith.constant dense<0.000000e+00> : vector<2x32xf32>
    %264 = tpu.matmul %263, %34, %cst_134 {dimension_numbers = #tpu.dot_dimension_numbers<[1], [0], [0], [1], [0, 0, 1, 1], [], []>} : vector<2x32xf32>, vector<32x32xf32>, vector<2x32xf32> -> vector<2x32xf32>
    %cst_135 = arith.constant dense<0.000000e+00> : vector<2x32xf32>
    %265 = tpu.matmul %247, %36, %cst_135 {dimension_numbers = #tpu.dot_dimension_numbers<[1], [0], [0], [1], [0, 0, 1, 1], [], []>} : vector<2x32xf32>, vector<32x32xf32>, vector<2x32xf32> -> vector<2x32xf32>
    %266 = arith.addf %264, %265 : vector<2x32xf32>
    %267 = math.tanh %266 : vector<2x32xf32>
    %cst_136 = arith.constant dense<0.000000e+00> : vector<2x50xf32>
    %268 = tpu.matmul %267, %37, %cst_136 {dimension_numbers = #tpu.dot_dimension_numbers<[1], [0], [0], [1], [0, 0, 1, 1], [], []>} : vector<2x32xf32>, vector<32x50xf32>, vector<2x50xf32> -> vector<2x50xf32>
    %269 = vector.broadcast %38 : vector<1x50xf32> to vector<2x50xf32>
    %270 = arith.addf %268, %269 : vector<2x50xf32>
    %c2_137 = arith.constant 2 : index
    %c0_138 = arith.constant 0 : index
    %c0_139 = arith.constant 0 : index
    %271 = vector.load %arg12[%c2_137, %c0_138, %c0_139] : memref<8x2x50xf32, #tpu.memory_space<vmem>>, vector<1x2x50xf32>
    %272 = vector.shape_cast %271 : vector<1x2x50xf32> to vector<2x50xf32>
    %273 = vector.shape_cast %270 : vector<2x50xf32> to vector<1x2x50xf32>
    tpu.vector_store %arg12[%c2_137, %c0_138, %c0_139], %273 {strides = array<i32>} : memref<8x2x50xf32, #tpu.memory_space<vmem>>, vector<1x2x50xf32>,
    %cst_140 = arith.constant dense<0xFF800000> : vector<2xf32>
    %274 = vector.multi_reduction <maximumf>, %270, %cst_140 [1] : vector<2x50xf32> to vector<2xf32>
    %275 = vector.shape_cast %274 : vector<2xf32> to vector<2x1xf32>
    %276 = vector.broadcast %275 : vector<2x1xf32> to vector<2x50xf32>
    %277 = arith.subf %270, %276 : vector<2x50xf32>
    %278 = math.exp %277 : vector<2x50xf32>
    %cst_141 = arith.constant dense<0.000000e+00> : vector<2xf32>
    %279 = vector.multi_reduction <add>, %278, %cst_141 [1] : vector<2x50xf32> to vector<2xf32>
    %280 = vector.shape_cast %279 : vector<2xf32> to vector<2x1xf32>
    %281 = tpu.reciprocal %280 {approx = true} : vector<2x1xf32> -> vector<2x1xf32>
    %282 = vector.broadcast %281 : vector<2x1xf32> to vector<2x50xf32>
    %283 = arith.mulf %278, %282 : vector<2x50xf32>
    %c2_142 = arith.constant 2 : index
    %c0_143 = arith.constant 0 : index
    %c0_144 = arith.constant 0 : index
    %284 = vector.load %arg13[%c2_142, %c0_143, %c0_144] : memref<8x2x50xf32, #tpu.memory_space<vmem>>, vector<1x2x50xf32>
    %285 = vector.shape_cast %284 : vector<1x2x50xf32> to vector<2x50xf32>
    %286 = vector.shape_cast %283 : vector<2x50xf32> to vector<1x2x50xf32>
    tpu.vector_store %arg13[%c2_142, %c0_143, %c0_144], %286 {strides = array<i32>} : memref<8x2x50xf32, #tpu.memory_space<vmem>>, vector<1x2x50xf32>,
    %c3_145 = arith.constant 3 : index
    %c0_146 = arith.constant 0 : index
    %c0_147 = arith.constant 0 : index
    %287 = vector.load %arg0[%c3_145, %c0_146, %c0_147] : memref<8x2x32xf32, #tpu.memory_space<vmem>>, vector<1x2x32xf32>
    %288 = vector.shape_cast %287 : vector<1x2x32xf32> to vector<2x32xf32>
    %cst_148 = arith.constant dense<0.000000e+00> : vector<2x32xf32>
    %289 = tpu.matmul %288, %9, %cst_148 {dimension_numbers = #tpu.dot_dimension_numbers<[1], [0], [0], [1], [0, 0, 1, 1], [], []>} : vector<2x32xf32>, vector<32x32xf32>, vector<2x32xf32> -> vector<2x32xf32>
    %cst_149 = arith.constant dense<0.000000e+00> : vector<2x32xf32>
    %290 = tpu.matmul %247, %17, %cst_149 {dimension_numbers = #tpu.dot_dimension_numbers<[1], [0], [0], [1], [0, 0, 1, 1], [], []>} : vector<2x32xf32>, vector<32x32xf32>, vector<2x32xf32> -> vector<2x32xf32>
    %291 = arith.addf %289, %290 : vector<2x32xf32>
    %292 = vector.broadcast %25 : vector<1x32xf32> to vector<2x32xf32>
    %293 = arith.addf %291, %292 : vector<2x32xf32>
    %294 = arith.negf %293 : vector<2x32xf32>
    %295 = math.exp %294 : vector<2x32xf32>
    %cst_150 = arith.constant 1.000000e+00 : f32
    %296 = vector.broadcast %cst_150 : f32 to vector<2x32xf32>
    %297 = arith.addf %296, %295 : vector<2x32xf32>
    %298 = arith.divf %296, %297 : vector<2x32xf32>
    %cst_151 = arith.constant dense<0.000000e+00> : vector<2x32xf32>
    %299 = tpu.matmul %288, %11, %cst_151 {dimension_numbers = #tpu.dot_dimension_numbers<[1], [0], [0], [1], [0, 0, 1, 1], [], []>} : vector<2x32xf32>, vector<32x32xf32>, vector<2x32xf32> -> vector<2x32xf32>
    %cst_152 = arith.constant dense<0.000000e+00> : vector<2x32xf32>
    %300 = tpu.matmul %247, %19, %cst_152 {dimension_numbers = #tpu.dot_dimension_numbers<[1], [0], [0], [1], [0, 0, 1, 1], [], []>} : vector<2x32xf32>, vector<32x32xf32>, vector<2x32xf32> -> vector<2x32xf32>
    %301 = arith.addf %299, %300 : vector<2x32xf32>
    %302 = vector.broadcast %27 : vector<1x32xf32> to vector<2x32xf32>
    %303 = arith.addf %301, %302 : vector<2x32xf32>
    %304 = arith.negf %303 : vector<2x32xf32>
    %305 = math.exp %304 : vector<2x32xf32>
    %cst_153 = arith.constant 1.000000e+00 : f32
    %306 = vector.broadcast %cst_153 : f32 to vector<2x32xf32>
    %307 = arith.addf %306, %305 : vector<2x32xf32>
    %308 = arith.divf %306, %307 : vector<2x32xf32>
    %cst_154 = arith.constant dense<0.000000e+00> : vector<2x32xf32>
    %309 = tpu.matmul %288, %13, %cst_154 {dimension_numbers = #tpu.dot_dimension_numbers<[1], [0], [0], [1], [0, 0, 1, 1], [], []>} : vector<2x32xf32>, vector<32x32xf32>, vector<2x32xf32> -> vector<2x32xf32>
    %cst_155 = arith.constant dense<0.000000e+00> : vector<2x32xf32>
    %310 = tpu.matmul %247, %21, %cst_155 {dimension_numbers = #tpu.dot_dimension_numbers<[1], [0], [0], [1], [0, 0, 1, 1], [], []>} : vector<2x32xf32>, vector<32x32xf32>, vector<2x32xf32> -> vector<2x32xf32>
    %311 = arith.addf %309, %310 : vector<2x32xf32>
    %312 = vector.broadcast %29 : vector<1x32xf32> to vector<2x32xf32>
    %313 = arith.addf %311, %312 : vector<2x32xf32>
    %314 = math.tanh %313 : vector<2x32xf32>
    %cst_156 = arith.constant dense<0.000000e+00> : vector<2x32xf32>
    %315 = tpu.matmul %288, %15, %cst_156 {dimension_numbers = #tpu.dot_dimension_numbers<[1], [0], [0], [1], [0, 0, 1, 1], [], []>} : vector<2x32xf32>, vector<32x32xf32>, vector<2x32xf32> -> vector<2x32xf32>
    %cst_157 = arith.constant dense<0.000000e+00> : vector<2x32xf32>
    %316 = tpu.matmul %247, %23, %cst_157 {dimension_numbers = #tpu.dot_dimension_numbers<[1], [0], [0], [1], [0, 0, 1, 1], [], []>} : vector<2x32xf32>, vector<32x32xf32>, vector<2x32xf32> -> vector<2x32xf32>
    %317 = arith.addf %315, %316 : vector<2x32xf32>
    %318 = vector.broadcast %31 : vector<1x32xf32> to vector<2x32xf32>
    %319 = arith.addf %317, %318 : vector<2x32xf32>
    %320 = arith.negf %319 : vector<2x32xf32>
    %321 = math.exp %320 : vector<2x32xf32>
    %cst_158 = arith.constant 1.000000e+00 : f32
    %322 = vector.broadcast %cst_158 : f32 to vector<2x32xf32>
    %323 = arith.addf %322, %321 : vector<2x32xf32>
    %324 = arith.divf %322, %323 : vector<2x32xf32>
    %325 = arith.mulf %308, %245 : vector<2x32xf32>
    %326 = arith.mulf %298, %314 : vector<2x32xf32>
    %327 = arith.addf %325, %326 : vector<2x32xf32>
    %328 = math.tanh %327 : vector<2x32xf32>
    %329 = arith.mulf %324, %328 : vector<2x32xf32>
    %cst_159 = arith.constant dense<0.000000e+00> : vector<2x32xf32>
    %330 = tpu.matmul %329, %32, %cst_159 {dimension_numbers = #tpu.dot_dimension_numbers<[1], [0], [0], [1], [0, 0, 1, 1], [], []>} : vector<2x32xf32>, vector<32x32xf32>, vector<2x32xf32> -> vector<2x32xf32>
    %331 = vector.shape_cast %330 : vector<2x32xf32> to vector<2x1x32xf32>
    "tpu.trace_start"() <{level = 10 : i32, message = "bqh,bkh->bqk"}> : () -> ()
    %cst_160 = arith.constant dense<0.000000e+00> : vector<2x1x8xf32>
    %332 = tpu.matmul %331, %0, %cst_160 {dimension_numbers = #tpu.dot_dimension_numbers<[2], [2], [1], [1], [0, 0, 0, 1, 1, 1], [0], [0]>} : vector<2x1x32xf32>, vector<2x8x32xf32>, vector<2x1x8xf32> -> vector<2x1x8xf32>
    "tpu.trace_stop"() : () -> ()
    %333 = arith.addf %332, %7 : vector<2x1x8xf32>
    %cst_161 = arith.constant dense<0xFF800000> : vector<2x1xf32>
    %334 = vector.multi_reduction <maximumf>, %333, %cst_161 [2] : vector<2x1x8xf32> to vector<2x1xf32>
    %335 = vector.shape_cast %334 : vector<2x1xf32> to vector<2x1x1xf32>
    %336 = vector.broadcast %335 : vector<2x1x1xf32> to vector<2x1x8xf32>
    %337 = arith.subf %333, %336 : vector<2x1x8xf32>
    %338 = math.exp %337 : vector<2x1x8xf32>
    %cst_162 = arith.constant dense<0.000000e+00> : vector<2x1xf32>
    %339 = vector.multi_reduction <add>, %338, %cst_162 [2] : vector<2x1x8xf32> to vector<2x1xf32>
    %340 = vector.shape_cast %339 : vector<2x1xf32> to vector<2x1x1xf32>
    %341 = tpu.reciprocal %340 {approx = true} : vector<2x1x1xf32> -> vector<2x1x1xf32>
    %342 = vector.broadcast %341 : vector<2x1x1xf32> to vector<2x1x8xf32>
    %343 = arith.mulf %338, %342 : vector<2x1x8xf32>
    "tpu.trace_start"() <{level = 10 : i32, message = "bqk,bkh->bqh"}> : () -> ()
    %cst_163 = arith.constant dense<0.000000e+00> : vector<2x1x32xf32>
    %344 = tpu.matmul %343, %0, %cst_163 {dimension_numbers = #tpu.dot_dimension_numbers<[2], [1], [1], [2], [0, 0, 0, 1, 1, 2], [0], [0]>} : vector<2x1x8xf32>, vector<2x8x32xf32>, vector<2x1x32xf32> -> vector<2x1x32xf32>
    "tpu.trace_stop"() : () -> ()
    %345 = vector.shape_cast %344 : vector<2x1x32xf32> to vector<2x32xf32>
    %cst_164 = arith.constant dense<0.000000e+00> : vector<2x32xf32>
    %346 = tpu.matmul %345, %34, %cst_164 {dimension_numbers = #tpu.dot_dimension_numbers<[1], [0], [0], [1], [0, 0, 1, 1], [], []>} : vector<2x32xf32>, vector<32x32xf32>, vector<2x32xf32> -> vector<2x32xf32>
    %cst_165 = arith.constant dense<0.000000e+00> : vector<2x32xf32>
    %347 = tpu.matmul %329, %36, %cst_165 {dimension_numbers = #tpu.dot_dimension_numbers<[1], [0], [0], [1], [0, 0, 1, 1], [], []>} : vector<2x32xf32>, vector<32x32xf32>, vector<2x32xf32> -> vector<2x32xf32>
    %348 = arith.addf %346, %347 : vector<2x32xf32>
    %349 = math.tanh %348 : vector<2x32xf32>
    %cst_166 = arith.constant dense<0.000000e+00> : vector<2x50xf32>
    %350 = tpu.matmul %349, %37, %cst_166 {dimension_numbers = #tpu.dot_dimension_numbers<[1], [0], [0], [1], [0, 0, 1, 1], [], []>} : vector<2x32xf32>, vector<32x50xf32>, vector<2x50xf32> -> vector<2x50xf32>
    %351 = vector.broadcast %38 : vector<1x50xf32> to vector<2x50xf32>
    %352 = arith.addf %350, %351 : vector<2x50xf32>
    %c3_167 = arith.constant 3 : index
    %c0_168 = arith.constant 0 : index
    %c0_169 = arith.constant 0 : index
    %353 = vector.load %arg12[%c3_167, %c0_168, %c0_169] : memref<8x2x50xf32, #tpu.memory_space<vmem>>, vector<1x2x50xf32>
    %354 = vector.shape_cast %353 : vector<1x2x50xf32> to vector<2x50xf32>
    %355 = vector.shape_cast %352 : vector<2x50xf32> to vector<1x2x50xf32>
    tpu.vector_store %arg12[%c3_167, %c0_168, %c0_169], %355 {strides = array<i32>} : memref<8x2x50xf32, #tpu.memory_space<vmem>>, vector<1x2x50xf32>,
    %cst_170 = arith.constant dense<0xFF800000> : vector<2xf32>
    %356 = vector.multi_reduction <maximumf>, %352, %cst_170 [1] : vector<2x50xf32> to vector<2xf32>
    %357 = vector.shape_cast %356 : vector<2xf32> to vector<2x1xf32>
    %358 = vector.broadcast %357 : vector<2x1xf32> to vector<2x50xf32>
    %359 = arith.subf %352, %358 : vector<2x50xf32>
    %360 = math.exp %359 : vector<2x50xf32>
    %cst_171 = arith.constant dense<0.000000e+00> : vector<2xf32>
    %361 = vector.multi_reduction <add>, %360, %cst_171 [1] : vector<2x50xf32> to vector<2xf32>
    %362 = vector.shape_cast %361 : vector<2xf32> to vector<2x1xf32>
    %363 = tpu.reciprocal %362 {approx = true} : vector<2x1xf32> -> vector<2x1xf32>
    %364 = vector.broadcast %363 : vector<2x1xf32> to vector<2x50xf32>
    %365 = arith.mulf %360, %364 : vector<2x50xf32>
    %c3_172 = arith.constant 3 : index
    %c0_173 = arith.constant 0 : index
    %c0_174 = arith.constant 0 : index
    %366 = vector.load %arg13[%c3_172, %c0_173, %c0_174] : memref<8x2x50xf32, #tpu.memory_space<vmem>>, vector<1x2x50xf32>
    %367 = vector.shape_cast %366 : vector<1x2x50xf32> to vector<2x50xf32>
    %368 = vector.shape_cast %365 : vector<2x50xf32> to vector<1x2x50xf32>
    tpu.vector_store %arg13[%c3_172, %c0_173, %c0_174], %368 {strides = array<i32>} : memref<8x2x50xf32, #tpu.memory_space<vmem>>, vector<1x2x50xf32>,
    %c4 = arith.constant 4 : index
    %c0_175 = arith.constant 0 : index
    %c0_176 = arith.constant 0 : index
    %369 = vector.load %arg0[%c4, %c0_175, %c0_176] : memref<8x2x32xf32, #tpu.memory_space<vmem>>, vector<1x2x32xf32>
    %370 = vector.shape_cast %369 : vector<1x2x32xf32> to vector<2x32xf32>
    %cst_177 = arith.constant dense<0.000000e+00> : vector<2x32xf32>
    %371 = tpu.matmul %370, %9, %cst_177 {dimension_numbers = #tpu.dot_dimension_numbers<[1], [0], [0], [1], [0, 0, 1, 1], [], []>} : vector<2x32xf32>, vector<32x32xf32>, vector<2x32xf32> -> vector<2x32xf32>
    %cst_178 = arith.constant dense<0.000000e+00> : vector<2x32xf32>
    %372 = tpu.matmul %329, %17, %cst_178 {dimension_numbers = #tpu.dot_dimension_numbers<[1], [0], [0], [1], [0, 0, 1, 1], [], []>} : vector<2x32xf32>, vector<32x32xf32>, vector<2x32xf32> -> vector<2x32xf32>
    %373 = arith.addf %371, %372 : vector<2x32xf32>
    %374 = vector.broadcast %25 : vector<1x32xf32> to vector<2x32xf32>
    %375 = arith.addf %373, %374 : vector<2x32xf32>
    %376 = arith.negf %375 : vector<2x32xf32>
    %377 = math.exp %376 : vector<2x32xf32>
    %cst_179 = arith.constant 1.000000e+00 : f32
    %378 = vector.broadcast %cst_179 : f32 to vector<2x32xf32>
    %379 = arith.addf %378, %377 : vector<2x32xf32>
    %380 = arith.divf %378, %379 : vector<2x32xf32>
    %cst_180 = arith.constant dense<0.000000e+00> : vector<2x32xf32>
    %381 = tpu.matmul %370, %11, %cst_180 {dimension_numbers = #tpu.dot_dimension_numbers<[1], [0], [0], [1], [0, 0, 1, 1], [], []>} : vector<2x32xf32>, vector<32x32xf32>, vector<2x32xf32> -> vector<2x32xf32>
    %cst_181 = arith.constant dense<0.000000e+00> : vector<2x32xf32>
    %382 = tpu.matmul %329, %19, %cst_181 {dimension_numbers = #tpu.dot_dimension_numbers<[1], [0], [0], [1], [0, 0, 1, 1], [], []>} : vector<2x32xf32>, vector<32x32xf32>, vector<2x32xf32> -> vector<2x32xf32>
    %383 = arith.addf %381, %382 : vector<2x32xf32>
    %384 = vector.broadcast %27 : vector<1x32xf32> to vector<2x32xf32>
    %385 = arith.addf %383, %384 : vector<2x32xf32>
    %386 = arith.negf %385 : vector<2x32xf32>
    %387 = math.exp %386 : vector<2x32xf32>
    %cst_182 = arith.constant 1.000000e+00 : f32
    %388 = vector.broadcast %cst_182 : f32 to vector<2x32xf32>
    %389 = arith.addf %388, %387 : vector<2x32xf32>
    %390 = arith.divf %388, %389 : vector<2x32xf32>
    %cst_183 = arith.constant dense<0.000000e+00> : vector<2x32xf32>
    %391 = tpu.matmul %370, %13, %cst_183 {dimension_numbers = #tpu.dot_dimension_numbers<[1], [0], [0], [1], [0, 0, 1, 1], [], []>} : vector<2x32xf32>, vector<32x32xf32>, vector<2x32xf32> -> vector<2x32xf32>
    %cst_184 = arith.constant dense<0.000000e+00> : vector<2x32xf32>
    %392 = tpu.matmul %329, %21, %cst_184 {dimension_numbers = #tpu.dot_dimension_numbers<[1], [0], [0], [1], [0, 0, 1, 1], [], []>} : vector<2x32xf32>, vector<32x32xf32>, vector<2x32xf32> -> vector<2x32xf32>
    %393 = arith.addf %391, %392 : vector<2x32xf32>
    %394 = vector.broadcast %29 : vector<1x32xf32> to vector<2x32xf32>
    %395 = arith.addf %393, %394 : vector<2x32xf32>
    %396 = math.tanh %395 : vector<2x32xf32>
    %cst_185 = arith.constant dense<0.000000e+00> : vector<2x32xf32>
    %397 = tpu.matmul %370, %15, %cst_185 {dimension_numbers = #tpu.dot_dimension_numbers<[1], [0], [0], [1], [0, 0, 1, 1], [], []>} : vector<2x32xf32>, vector<32x32xf32>, vector<2x32xf32> -> vector<2x32xf32>
    %cst_186 = arith.constant dense<0.000000e+00> : vector<2x32xf32>
    %398 = tpu.matmul %329, %23, %cst_186 {dimension_numbers = #tpu.dot_dimension_numbers<[1], [0], [0], [1], [0, 0, 1, 1], [], []>} : vector<2x32xf32>, vector<32x32xf32>, vector<2x32xf32> -> vector<2x32xf32>
    %399 = arith.addf %397, %398 : vector<2x32xf32>
    %400 = vector.broadcast %31 : vector<1x32xf32> to vector<2x32xf32>
    %401 = arith.addf %399, %400 : vector<2x32xf32>
    %402 = arith.negf %401 : vector<2x32xf32>
    %403 = math.exp %402 : vector<2x32xf32>
    %cst_187 = arith.constant 1.000000e+00 : f32
    %404 = vector.broadcast %cst_187 : f32 to vector<2x32xf32>
    %405 = arith.addf %404, %403 : vector<2x32xf32>
    %406 = arith.divf %404, %405 : vector<2x32xf32>
    %407 = arith.mulf %390, %327 : vector<2x32xf32>
    %408 = arith.mulf %380, %396 : vector<2x32xf32>
    %409 = arith.addf %407, %408 : vector<2x32xf32>
    %410 = math.tanh %409 : vector<2x32xf32>
    %411 = arith.mulf %406, %410 : vector<2x32xf32>
    %cst_188 = arith.constant dense<0.000000e+00> : vector<2x32xf32>
    %412 = tpu.matmul %411, %32, %cst_188 {dimension_numbers = #tpu.dot_dimension_numbers<[1], [0], [0], [1], [0, 0, 1, 1], [], []>} : vector<2x32xf32>, vector<32x32xf32>, vector<2x32xf32> -> vector<2x32xf32>
    %413 = vector.shape_cast %412 : vector<2x32xf32> to vector<2x1x32xf32>
    "tpu.trace_start"() <{level = 10 : i32, message = "bqh,bkh->bqk"}> : () -> ()
    %cst_189 = arith.constant dense<0.000000e+00> : vector<2x1x8xf32>
    %414 = tpu.matmul %413, %0, %cst_189 {dimension_numbers = #tpu.dot_dimension_numbers<[2], [2], [1], [1], [0, 0, 0, 1, 1, 1], [0], [0]>} : vector<2x1x32xf32>, vector<2x8x32xf32>, vector<2x1x8xf32> -> vector<2x1x8xf32>
    "tpu.trace_stop"() : () -> ()
    %415 = arith.addf %414, %7 : vector<2x1x8xf32>
    %cst_190 = arith.constant dense<0xFF800000> : vector<2x1xf32>
    %416 = vector.multi_reduction <maximumf>, %415, %cst_190 [2] : vector<2x1x8xf32> to vector<2x1xf32>
    %417 = vector.shape_cast %416 : vector<2x1xf32> to vector<2x1x1xf32>
    %418 = vector.broadcast %417 : vector<2x1x1xf32> to vector<2x1x8xf32>
    %419 = arith.subf %415, %418 : vector<2x1x8xf32>
    %420 = math.exp %419 : vector<2x1x8xf32>
    %cst_191 = arith.constant dense<0.000000e+00> : vector<2x1xf32>
    %421 = vector.multi_reduction <add>, %420, %cst_191 [2] : vector<2x1x8xf32> to vector<2x1xf32>
    %422 = vector.shape_cast %421 : vector<2x1xf32> to vector<2x1x1xf32>
    %423 = tpu.reciprocal %422 {approx = true} : vector<2x1x1xf32> -> vector<2x1x1xf32>
    %424 = vector.broadcast %423 : vector<2x1x1xf32> to vector<2x1x8xf32>
    %425 = arith.mulf %420, %424 : vector<2x1x8xf32>
    "tpu.trace_start"() <{level = 10 : i32, message = "bqk,bkh->bqh"}> : () -> ()
    %cst_192 = arith.constant dense<0.000000e+00> : vector<2x1x32xf32>
    %426 = tpu.matmul %425, %0, %cst_192 {dimension_numbers = #tpu.dot_dimension_numbers<[2], [1], [1], [2], [0, 0, 0, 1, 1, 2], [0], [0]>} : vector<2x1x8xf32>, vector<2x8x32xf32>, vector<2x1x32xf32> -> vector<2x1x32xf32>
    "tpu.trace_stop"() : () -> ()
    %427 = vector.shape_cast %426 : vector<2x1x32xf32> to vector<2x32xf32>
    %cst_193 = arith.constant dense<0.000000e+00> : vector<2x32xf32>
    %428 = tpu.matmul %427, %34, %cst_193 {dimension_numbers = #tpu.dot_dimension_numbers<[1], [0], [0], [1], [0, 0, 1, 1], [], []>} : vector<2x32xf32>, vector<32x32xf32>, vector<2x32xf32> -> vector<2x32xf32>
    %cst_194 = arith.constant dense<0.000000e+00> : vector<2x32xf32>
    %429 = tpu.matmul %411, %36, %cst_194 {dimension_numbers = #tpu.dot_dimension_numbers<[1], [0], [0], [1], [0, 0, 1, 1], [], []>} : vector<2x32xf32>, vector<32x32xf32>, vector<2x32xf32> -> vector<2x32xf32>
    %430 = arith.addf %428, %429 : vector<2x32xf32>
    %431 = math.tanh %430 : vector<2x32xf32>
    %cst_195 = arith.constant dense<0.000000e+00> : vector<2x50xf32>
    %432 = tpu.matmul %431, %37, %cst_195 {dimension_numbers = #tpu.dot_dimension_numbers<[1], [0], [0], [1], [0, 0, 1, 1], [], []>} : vector<2x32xf32>, vector<32x50xf32>, vector<2x50xf32> -> vector<2x50xf32>
    %433 = vector.broadcast %38 : vector<1x50xf32> to vector<2x50xf32>
    %434 = arith.addf %432, %433 : vector<2x50xf32>
    %c4_196 = arith.constant 4 : index
    %c0_197 = arith.constant 0 : index
    %c0_198 = arith.constant 0 : index
    %435 = vector.load %arg12[%c4_196, %c0_197, %c0_198] : memref<8x2x50xf32, #tpu.memory_space<vmem>>, vector<1x2x50xf32>
    %436 = vector.shape_cast %435 : vector<1x2x50xf32> to vector<2x50xf32>
    %437 = vector.shape_cast %434 : vector<2x50xf32> to vector<1x2x50xf32>
    tpu.vector_store %arg12[%c4_196, %c0_197, %c0_198], %437 {strides = array<i32>} : memref<8x2x50xf32, #tpu.memory_space<vmem>>, vector<1x2x50xf32>,
    %cst_199 = arith.constant dense<0xFF800000> : vector<2xf32>
    %438 = vector.multi_reduction <maximumf>, %434, %cst_199 [1] : vector<2x50xf32> to vector<2xf32>
    %439 = vector.shape_cast %438 : vector<2xf32> to vector<2x1xf32>
    %440 = vector.broadcast %439 : vector<2x1xf32> to vector<2x50xf32>
    %441 = arith.subf %434, %440 : vector<2x50xf32>
    %442 = math.exp %441 : vector<2x50xf32>
    %cst_200 = arith.constant dense<0.000000e+00> : vector<2xf32>
    %443 = vector.multi_reduction <add>, %442, %cst_200 [1] : vector<2x50xf32> to vector<2xf32>
    %444 = vector.shape_cast %443 : vector<2xf32> to vector<2x1xf32>
    %445 = tpu.reciprocal %444 {approx = true} : vector<2x1xf32> -> vector<2x1xf32>
    %446 = vector.broadcast %445 : vector<2x1xf32> to vector<2x50xf32>
    %447 = arith.mulf %442, %446 : vector<2x50xf32>
    %c4_201 = arith.constant 4 : index
    %c0_202 = arith.constant 0 : index
    %c0_203 = arith.constant 0 : index
    %448 = vector.load %arg13[%c4_201, %c0_202, %c0_203] : memref<8x2x50xf32, #tpu.memory_space<vmem>>, vector<1x2x50xf32>
    %449 = vector.shape_cast %448 : vector<1x2x50xf32> to vector<2x50xf32>
    %450 = vector.shape_cast %447 : vector<2x50xf32> to vector<1x2x50xf32>
    tpu.vector_store %arg13[%c4_201, %c0_202, %c0_203], %450 {strides = array<i32>} : memref<8x2x50xf32, #tpu.memory_space<vmem>>, vector<1x2x50xf32>,
    %c5 = arith.constant 5 : index
    %c0_204 = arith.constant 0 : index
    %c0_205 = arith.constant 0 : index
    %451 = vector.load %arg0[%c5, %c0_204, %c0_205] : memref<8x2x32xf32, #tpu.memory_space<vmem>>, vector<1x2x32xf32>
    %452 = vector.shape_cast %451 : vector<1x2x32xf32> to vector<2x32xf32>
    %cst_206 = arith.constant dense<0.000000e+00> : vector<2x32xf32>
    %453 = tpu.matmul %452, %9, %cst_206 {dimension_numbers = #tpu.dot_dimension_numbers<[1], [0], [0], [1], [0, 0, 1, 1], [], []>} : vector<2x32xf32>, vector<32x32xf32>, vector<2x32xf32> -> vector<2x32xf32>
    %cst_207 = arith.constant dense<0.000000e+00> : vector<2x32xf32>
    %454 = tpu.matmul %411, %17, %cst_207 {dimension_numbers = #tpu.dot_dimension_numbers<[1], [0], [0], [1], [0, 0, 1, 1], [], []>} : vector<2x32xf32>, vector<32x32xf32>, vector<2x32xf32> -> vector<2x32xf32>
    %455 = arith.addf %453, %454 : vector<2x32xf32>
    %456 = vector.broadcast %25 : vector<1x32xf32> to vector<2x32xf32>
    %457 = arith.addf %455, %456 : vector<2x32xf32>
    %458 = arith.negf %457 : vector<2x32xf32>
    %459 = math.exp %458 : vector<2x32xf32>
    %cst_208 = arith.constant 1.000000e+00 : f32
    %460 = vector.broadcast %cst_208 : f32 to vector<2x32xf32>
    %461 = arith.addf %460, %459 : vector<2x32xf32>
    %462 = arith.divf %460, %461 : vector<2x32xf32>
    %cst_209 = arith.constant dense<0.000000e+00> : vector<2x32xf32>
    %463 = tpu.matmul %452, %11, %cst_209 {dimension_numbers = #tpu.dot_dimension_numbers<[1], [0], [0], [1], [0, 0, 1, 1], [], []>} : vector<2x32xf32>, vector<32x32xf32>, vector<2x32xf32> -> vector<2x32xf32>
    %cst_210 = arith.constant dense<0.000000e+00> : vector<2x32xf32>
    %464 = tpu.matmul %411, %19, %cst_210 {dimension_numbers = #tpu.dot_dimension_numbers<[1], [0], [0], [1], [0, 0, 1, 1], [], []>} : vector<2x32xf32>, vector<32x32xf32>, vector<2x32xf32> -> vector<2x32xf32>
    %465 = arith.addf %463, %464 : vector<2x32xf32>
    %466 = vector.broadcast %27 : vector<1x32xf32> to vector<2x32xf32>
    %467 = arith.addf %465, %466 : vector<2x32xf32>
    %468 = arith.negf %467 : vector<2x32xf32>
    %469 = math.exp %468 : vector<2x32xf32>
    %cst_211 = arith.constant 1.000000e+00 : f32
    %470 = vector.broadcast %cst_211 : f32 to vector<2x32xf32>
    %471 = arith.addf %470, %469 : vector<2x32xf32>
    %472 = arith.divf %470, %471 : vector<2x32xf32>
    %cst_212 = arith.constant dense<0.000000e+00> : vector<2x32xf32>
    %473 = tpu.matmul %452, %13, %cst_212 {dimension_numbers = #tpu.dot_dimension_numbers<[1], [0], [0], [1], [0, 0, 1, 1], [], []>} : vector<2x32xf32>, vector<32x32xf32>, vector<2x32xf32> -> vector<2x32xf32>
    %cst_213 = arith.constant dense<0.000000e+00> : vector<2x32xf32>
    %474 = tpu.matmul %411, %21, %cst_213 {dimension_numbers = #tpu.dot_dimension_numbers<[1], [0], [0], [1], [0, 0, 1, 1], [], []>} : vector<2x32xf32>, vector<32x32xf32>, vector<2x32xf32> -> vector<2x32xf32>
    %475 = arith.addf %473, %474 : vector<2x32xf32>
    %476 = vector.broadcast %29 : vector<1x32xf32> to vector<2x32xf32>
    %477 = arith.addf %475, %476 : vector<2x32xf32>
    %478 = math.tanh %477 : vector<2x32xf32>
    %cst_214 = arith.constant dense<0.000000e+00> : vector<2x32xf32>
    %479 = tpu.matmul %452, %15, %cst_214 {dimension_numbers = #tpu.dot_dimension_numbers<[1], [0], [0], [1], [0, 0, 1, 1], [], []>} : vector<2x32xf32>, vector<32x32xf32>, vector<2x32xf32> -> vector<2x32xf32>
    %cst_215 = arith.constant dense<0.000000e+00> : vector<2x32xf32>
    %480 = tpu.matmul %411, %23, %cst_215 {dimension_numbers = #tpu.dot_dimension_numbers<[1], [0], [0], [1], [0, 0, 1, 1], [], []>} : vector<2x32xf32>, vector<32x32xf32>, vector<2x32xf32> -> vector<2x32xf32>
    %481 = arith.addf %479, %480 : vector<2x32xf32>
    %482 = vector.broadcast %31 : vector<1x32xf32> to vector<2x32xf32>
    %483 = arith.addf %481, %482 : vector<2x32xf32>
    %484 = arith.negf %483 : vector<2x32xf32>
    %485 = math.exp %484 : vector<2x32xf32>
    %cst_216 = arith.constant 1.000000e+00 : f32
    %486 = vector.broadcast %cst_216 : f32 to vector<2x32xf32>
    %487 = arith.addf %486, %485 : vector<2x32xf32>
    %488 = arith.divf %486, %487 : vector<2x32xf32>
    %489 = arith.mulf %472, %409 : vector<2x32xf32>
    %490 = arith.mulf %462, %478 : vector<2x32xf32>
    %491 = arith.addf %489, %490 : vector<2x32xf32>
    %492 = math.tanh %491 : vector<2x32xf32>
    %493 = arith.mulf %488, %492 : vector<2x32xf32>
    %cst_217 = arith.constant dense<0.000000e+00> : vector<2x32xf32>
    %494 = tpu.matmul %493, %32, %cst_217 {dimension_numbers = #tpu.dot_dimension_numbers<[1], [0], [0], [1], [0, 0, 1, 1], [], []>} : vector<2x32xf32>, vector<32x32xf32>, vector<2x32xf32> -> vector<2x32xf32>
    %495 = vector.shape_cast %494 : vector<2x32xf32> to vector<2x1x32xf32>
    "tpu.trace_start"() <{level = 10 : i32, message = "bqh,bkh->bqk"}> : () -> ()
    %cst_218 = arith.constant dense<0.000000e+00> : vector<2x1x8xf32>
    %496 = tpu.matmul %495, %0, %cst_218 {dimension_numbers = #tpu.dot_dimension_numbers<[2], [2], [1], [1], [0, 0, 0, 1, 1, 1], [0], [0]>} : vector<2x1x32xf32>, vector<2x8x32xf32>, vector<2x1x8xf32> -> vector<2x1x8xf32>
    "tpu.trace_stop"() : () -> ()
    %497 = arith.addf %496, %7 : vector<2x1x8xf32>
    %cst_219 = arith.constant dense<0xFF800000> : vector<2x1xf32>
    %498 = vector.multi_reduction <maximumf>, %497, %cst_219 [2] : vector<2x1x8xf32> to vector<2x1xf32>
    %499 = vector.shape_cast %498 : vector<2x1xf32> to vector<2x1x1xf32>
    %500 = vector.broadcast %499 : vector<2x1x1xf32> to vector<2x1x8xf32>
    %501 = arith.subf %497, %500 : vector<2x1x8xf32>
    %502 = math.exp %501 : vector<2x1x8xf32>
    %cst_220 = arith.constant dense<0.000000e+00> : vector<2x1xf32>
    %503 = vector.multi_reduction <add>, %502, %cst_220 [2] : vector<2x1x8xf32> to vector<2x1xf32>
    %504 = vector.shape_cast %503 : vector<2x1xf32> to vector<2x1x1xf32>
    %505 = tpu.reciprocal %504 {approx = true} : vector<2x1x1xf32> -> vector<2x1x1xf32>
    %506 = vector.broadcast %505 : vector<2x1x1xf32> to vector<2x1x8xf32>
    %507 = arith.mulf %502, %506 : vector<2x1x8xf32>
    "tpu.trace_start"() <{level = 10 : i32, message = "bqk,bkh->bqh"}> : () -> ()
    %cst_221 = arith.constant dense<0.000000e+00> : vector<2x1x32xf32>
    %508 = tpu.matmul %507, %0, %cst_221 {dimension_numbers = #tpu.dot_dimension_numbers<[2], [1], [1], [2], [0, 0, 0, 1, 1, 2], [0], [0]>} : vector<2x1x8xf32>, vector<2x8x32xf32>, vector<2x1x32xf32> -> vector<2x1x32xf32>
    "tpu.trace_stop"() : () -> ()
    %509 = vector.shape_cast %508 : vector<2x1x32xf32> to vector<2x32xf32>
    %cst_222 = arith.constant dense<0.000000e+00> : vector<2x32xf32>
    %510 = tpu.matmul %509, %34, %cst_222 {dimension_numbers = #tpu.dot_dimension_numbers<[1], [0], [0], [1], [0, 0, 1, 1], [], []>} : vector<2x32xf32>, vector<32x32xf32>, vector<2x32xf32> -> vector<2x32xf32>
    %cst_223 = arith.constant dense<0.000000e+00> : vector<2x32xf32>
    %511 = tpu.matmul %493, %36, %cst_223 {dimension_numbers = #tpu.dot_dimension_numbers<[1], [0], [0], [1], [0, 0, 1, 1], [], []>} : vector<2x32xf32>, vector<32x32xf32>, vector<2x32xf32> -> vector<2x32xf32>
    %512 = arith.addf %510, %511 : vector<2x32xf32>
    %513 = math.tanh %512 : vector<2x32xf32>
    %cst_224 = arith.constant dense<0.000000e+00> : vector<2x50xf32>
    %514 = tpu.matmul %513, %37, %cst_224 {dimension_numbers = #tpu.dot_dimension_numbers<[1], [0], [0], [1], [0, 0, 1, 1], [], []>} : vector<2x32xf32>, vector<32x50xf32>, vector<2x50xf32> -> vector<2x50xf32>
    %515 = vector.broadcast %38 : vector<1x50xf32> to vector<2x50xf32>
    %516 = arith.addf %514, %515 : vector<2x50xf32>
    %c5_225 = arith.constant 5 : index
    %c0_226 = arith.constant 0 : index
    %c0_227 = arith.constant 0 : index
    %517 = vector.load %arg12[%c5_225, %c0_226, %c0_227] : memref<8x2x50xf32, #tpu.memory_space<vmem>>, vector<1x2x50xf32>
    %518 = vector.shape_cast %517 : vector<1x2x50xf32> to vector<2x50xf32>
    %519 = vector.shape_cast %516 : vector<2x50xf32> to vector<1x2x50xf32>
    tpu.vector_store %arg12[%c5_225, %c0_226, %c0_227], %519 {strides = array<i32>} : memref<8x2x50xf32, #tpu.memory_space<vmem>>, vector<1x2x50xf32>,
    %cst_228 = arith.constant dense<0xFF800000> : vector<2xf32>
    %520 = vector.multi_reduction <maximumf>, %516, %cst_228 [1] : vector<2x50xf32> to vector<2xf32>
    %521 = vector.shape_cast %520 : vector<2xf32> to vector<2x1xf32>
    %522 = vector.broadcast %521 : vector<2x1xf32> to vector<2x50xf32>
    %523 = arith.subf %516, %522 : vector<2x50xf32>
    %524 = math.exp %523 : vector<2x50xf32>
    %cst_229 = arith.constant dense<0.000000e+00> : vector<2xf32>
    %525 = vector.multi_reduction <add>, %524, %cst_229 [1] : vector<2x50xf32> to vector<2xf32>
    %526 = vector.shape_cast %525 : vector<2xf32> to vector<2x1xf32>
    %527 = tpu.reciprocal %526 {approx = true} : vector<2x1xf32> -> vector<2x1xf32>
    %528 = vector.broadcast %527 : vector<2x1xf32> to vector<2x50xf32>
    %529 = arith.mulf %524, %528 : vector<2x50xf32>
    %c5_230 = arith.constant 5 : index
    %c0_231 = arith.constant 0 : index
    %c0_232 = arith.constant 0 : index
    %530 = vector.load %arg13[%c5_230, %c0_231, %c0_232] : memref<8x2x50xf32, #tpu.memory_space<vmem>>, vector<1x2x50xf32>
    %531 = vector.shape_cast %530 : vector<1x2x50xf32> to vector<2x50xf32>
    %532 = vector.shape_cast %529 : vector<2x50xf32> to vector<1x2x50xf32>
    tpu.vector_store %arg13[%c5_230, %c0_231, %c0_232], %532 {strides = array<i32>} : memref<8x2x50xf32, #tpu.memory_space<vmem>>, vector<1x2x50xf32>,
    %c6 = arith.constant 6 : index
    %c0_233 = arith.constant 0 : index
    %c0_234 = arith.constant 0 : index
    %533 = vector.load %arg0[%c6, %c0_233, %c0_234] : memref<8x2x32xf32, #tpu.memory_space<vmem>>, vector<1x2x32xf32>
    %534 = vector.shape_cast %533 : vector<1x2x32xf32> to vector<2x32xf32>
    %cst_235 = arith.constant dense<0.000000e+00> : vector<2x32xf32>
    %535 = tpu.matmul %534, %9, %cst_235 {dimension_numbers = #tpu.dot_dimension_numbers<[1], [0], [0], [1], [0, 0, 1, 1], [], []>} : vector<2x32xf32>, vector<32x32xf32>, vector<2x32xf32> -> vector<2x32xf32>
    %cst_236 = arith.constant dense<0.000000e+00> : vector<2x32xf32>
    %536 = tpu.matmul %493, %17, %cst_236 {dimension_numbers = #tpu.dot_dimension_numbers<[1], [0], [0], [1], [0, 0, 1, 1], [], []>} : vector<2x32xf32>, vector<32x32xf32>, vector<2x32xf32> -> vector<2x32xf32>
    %537 = arith.addf %535, %536 : vector<2x32xf32>
    %538 = vector.broadcast %25 : vector<1x32xf32> to vector<2x32xf32>
    %539 = arith.addf %537, %538 : vector<2x32xf32>
    %540 = arith.negf %539 : vector<2x32xf32>
    %541 = math.exp %540 : vector<2x32xf32>
    %cst_237 = arith.constant 1.000000e+00 : f32
    %542 = vector.broadcast %cst_237 : f32 to vector<2x32xf32>
    %543 = arith.addf %542, %541 : vector<2x32xf32>
    %544 = arith.divf %542, %543 : vector<2x32xf32>
    %cst_238 = arith.constant dense<0.000000e+00> : vector<2x32xf32>
    %545 = tpu.matmul %534, %11, %cst_238 {dimension_numbers = #tpu.dot_dimension_numbers<[1], [0], [0], [1], [0, 0, 1, 1], [], []>} : vector<2x32xf32>, vector<32x32xf32>, vector<2x32xf32> -> vector<2x32xf32>
    %cst_239 = arith.constant dense<0.000000e+00> : vector<2x32xf32>
    %546 = tpu.matmul %493, %19, %cst_239 {dimension_numbers = #tpu.dot_dimension_numbers<[1], [0], [0], [1], [0, 0, 1, 1], [], []>} : vector<2x32xf32>, vector<32x32xf32>, vector<2x32xf32> -> vector<2x32xf32>
    %547 = arith.addf %545, %546 : vector<2x32xf32>
    %548 = vector.broadcast %27 : vector<1x32xf32> to vector<2x32xf32>
    %549 = arith.addf %547, %548 : vector<2x32xf32>
    %550 = arith.negf %549 : vector<2x32xf32>
    %551 = math.exp %550 : vector<2x32xf32>
    %cst_240 = arith.constant 1.000000e+00 : f32
    %552 = vector.broadcast %cst_240 : f32 to vector<2x32xf32>
    %553 = arith.addf %552, %551 : vector<2x32xf32>
    %554 = arith.divf %552, %553 : vector<2x32xf32>
    %cst_241 = arith.constant dense<0.000000e+00> : vector<2x32xf32>
    %555 = tpu.matmul %534, %13, %cst_241 {dimension_numbers = #tpu.dot_dimension_numbers<[1], [0], [0], [1], [0, 0, 1, 1], [], []>} : vector<2x32xf32>, vector<32x32xf32>, vector<2x32xf32> -> vector<2x32xf32>
    %cst_242 = arith.constant dense<0.000000e+00> : vector<2x32xf32>
    %556 = tpu.matmul %493, %21, %cst_242 {dimension_numbers = #tpu.dot_dimension_numbers<[1], [0], [0], [1], [0, 0, 1, 1], [], []>} : vector<2x32xf32>, vector<32x32xf32>, vector<2x32xf32> -> vector<2x32xf32>
    %557 = arith.addf %555, %556 : vector<2x32xf32>
    %558 = vector.broadcast %29 : vector<1x32xf32> to vector<2x32xf32>
    %559 = arith.addf %557, %558 : vector<2x32xf32>
    %560 = math.tanh %559 : vector<2x32xf32>
    %cst_243 = arith.constant dense<0.000000e+00> : vector<2x32xf32>
    %561 = tpu.matmul %534, %15, %cst_243 {dimension_numbers = #tpu.dot_dimension_numbers<[1], [0], [0], [1], [0, 0, 1, 1], [], []>} : vector<2x32xf32>, vector<32x32xf32>, vector<2x32xf32> -> vector<2x32xf32>
    %cst_244 = arith.constant dense<0.000000e+00> : vector<2x32xf32>
    %562 = tpu.matmul %493, %23, %cst_244 {dimension_numbers = #tpu.dot_dimension_numbers<[1], [0], [0], [1], [0, 0, 1, 1], [], []>} : vector<2x32xf32>, vector<32x32xf32>, vector<2x32xf32> -> vector<2x32xf32>
    %563 = arith.addf %561, %562 : vector<2x32xf32>
    %564 = vector.broadcast %31 : vector<1x32xf32> to vector<2x32xf32>
    %565 = arith.addf %563, %564 : vector<2x32xf32>
    %566 = arith.negf %565 : vector<2x32xf32>
    %567 = math.exp %566 : vector<2x32xf32>
    %cst_245 = arith.constant 1.000000e+00 : f32
    %568 = vector.broadcast %cst_245 : f32 to vector<2x32xf32>
    %569 = arith.addf %568, %567 : vector<2x32xf32>
    %570 = arith.divf %568, %569 : vector<2x32xf32>
    %571 = arith.mulf %554, %491 : vector<2x32xf32>
    %572 = arith.mulf %544, %560 : vector<2x32xf32>
    %573 = arith.addf %571, %572 : vector<2x32xf32>
    %574 = math.tanh %573 : vector<2x32xf32>
    %575 = arith.mulf %570, %574 : vector<2x32xf32>
    %cst_246 = arith.constant dense<0.000000e+00> : vector<2x32xf32>
    %576 = tpu.matmul %575, %32, %cst_246 {dimension_numbers = #tpu.dot_dimension_numbers<[1], [0], [0], [1], [0, 0, 1, 1], [], []>} : vector<2x32xf32>, vector<32x32xf32>, vector<2x32xf32> -> vector<2x32xf32>
    %577 = vector.shape_cast %576 : vector<2x32xf32> to vector<2x1x32xf32>
    "tpu.trace_start"() <{level = 10 : i32, message = "bqh,bkh->bqk"}> : () -> ()
    %cst_247 = arith.constant dense<0.000000e+00> : vector<2x1x8xf32>
    %578 = tpu.matmul %577, %0, %cst_247 {dimension_numbers = #tpu.dot_dimension_numbers<[2], [2], [1], [1], [0, 0, 0, 1, 1, 1], [0], [0]>} : vector<2x1x32xf32>, vector<2x8x32xf32>, vector<2x1x8xf32> -> vector<2x1x8xf32>
    "tpu.trace_stop"() : () -> ()
    %579 = arith.addf %578, %7 : vector<2x1x8xf32>
    %cst_248 = arith.constant dense<0xFF800000> : vector<2x1xf32>
    %580 = vector.multi_reduction <maximumf>, %579, %cst_248 [2] : vector<2x1x8xf32> to vector<2x1xf32>
    %581 = vector.shape_cast %580 : vector<2x1xf32> to vector<2x1x1xf32>
    %582 = vector.broadcast %581 : vector<2x1x1xf32> to vector<2x1x8xf32>
    %583 = arith.subf %579, %582 : vector<2x1x8xf32>
    %584 = math.exp %583 : vector<2x1x8xf32>
    %cst_249 = arith.constant dense<0.000000e+00> : vector<2x1xf32>
    %585 = vector.multi_reduction <add>, %584, %cst_249 [2] : vector<2x1x8xf32> to vector<2x1xf32>
    %586 = vector.shape_cast %585 : vector<2x1xf32> to vector<2x1x1xf32>
    %587 = tpu.reciprocal %586 {approx = true} : vector<2x1x1xf32> -> vector<2x1x1xf32>
    %588 = vector.broadcast %587 : vector<2x1x1xf32> to vector<2x1x8xf32>
    %589 = arith.mulf %584, %588 : vector<2x1x8xf32>
    "tpu.trace_start"() <{level = 10 : i32, message = "bqk,bkh->bqh"}> : () -> ()
    %cst_250 = arith.constant dense<0.000000e+00> : vector<2x1x32xf32>
    %590 = tpu.matmul %589, %0, %cst_250 {dimension_numbers = #tpu.dot_dimension_numbers<[2], [1], [1], [2], [0, 0, 0, 1, 1, 2], [0], [0]>} : vector<2x1x8xf32>, vector<2x8x32xf32>, vector<2x1x32xf32> -> vector<2x1x32xf32>
    "tpu.trace_stop"() : () -> ()
    %591 = vector.shape_cast %590 : vector<2x1x32xf32> to vector<2x32xf32>
    %cst_251 = arith.constant dense<0.000000e+00> : vector<2x32xf32>
    %592 = tpu.matmul %591, %34, %cst_251 {dimension_numbers = #tpu.dot_dimension_numbers<[1], [0], [0], [1], [0, 0, 1, 1], [], []>} : vector<2x32xf32>, vector<32x32xf32>, vector<2x32xf32> -> vector<2x32xf32>
    %cst_252 = arith.constant dense<0.000000e+00> : vector<2x32xf32>
    %593 = tpu.matmul %575, %36, %cst_252 {dimension_numbers = #tpu.dot_dimension_numbers<[1], [0], [0], [1], [0, 0, 1, 1], [], []>} : vector<2x32xf32>, vector<32x32xf32>, vector<2x32xf32> -> vector<2x32xf32>
    %594 = arith.addf %592, %593 : vector<2x32xf32>
    %595 = math.tanh %594 : vector<2x32xf32>
    %cst_253 = arith.constant dense<0.000000e+00> : vector<2x50xf32>
    %596 = tpu.matmul %595, %37, %cst_253 {dimension_numbers = #tpu.dot_dimension_numbers<[1], [0], [0], [1], [0, 0, 1, 1], [], []>} : vector<2x32xf32>, vector<32x50xf32>, vector<2x50xf32> -> vector<2x50xf32>
    %597 = vector.broadcast %38 : vector<1x50xf32> to vector<2x50xf32>
    %598 = arith.addf %596, %597 : vector<2x50xf32>
    %c6_254 = arith.constant 6 : index
    %c0_255 = arith.constant 0 : index
    %c0_256 = arith.constant 0 : index
    %599 = vector.load %arg12[%c6_254, %c0_255, %c0_256] : memref<8x2x50xf32, #tpu.memory_space<vmem>>, vector<1x2x50xf32>
    %600 = vector.shape_cast %599 : vector<1x2x50xf32> to vector<2x50xf32>
    %601 = vector.shape_cast %598 : vector<2x50xf32> to vector<1x2x50xf32>
    tpu.vector_store %arg12[%c6_254, %c0_255, %c0_256], %601 {strides = array<i32>} : memref<8x2x50xf32, #tpu.memory_space<vmem>>, vector<1x2x50xf32>,
    %cst_257 = arith.constant dense<0xFF800000> : vector<2xf32>
    %602 = vector.multi_reduction <maximumf>, %598, %cst_257 [1] : vector<2x50xf32> to vector<2xf32>
    %603 = vector.shape_cast %602 : vector<2xf32> to vector<2x1xf32>
    %604 = vector.broadcast %603 : vector<2x1xf32> to vector<2x50xf32>
    %605 = arith.subf %598, %604 : vector<2x50xf32>
    %606 = math.exp %605 : vector<2x50xf32>
    %cst_258 = arith.constant dense<0.000000e+00> : vector<2xf32>
    %607 = vector.multi_reduction <add>, %606, %cst_258 [1] : vector<2x50xf32> to vector<2xf32>
    %608 = vector.shape_cast %607 : vector<2xf32> to vector<2x1xf32>
    %609 = tpu.reciprocal %608 {approx = true} : vector<2x1xf32> -> vector<2x1xf32>
    %610 = vector.broadcast %609 : vector<2x1xf32> to vector<2x50xf32>
    %611 = arith.mulf %606, %610 : vector<2x50xf32>
    %c6_259 = arith.constant 6 : index
    %c0_260 = arith.constant 0 : index
    %c0_261 = arith.constant 0 : index
    %612 = vector.load %arg13[%c6_259, %c0_260, %c0_261] : memref<8x2x50xf32, #tpu.memory_space<vmem>>, vector<1x2x50xf32>
    %613 = vector.shape_cast %612 : vector<1x2x50xf32> to vector<2x50xf32>
    %614 = vector.shape_cast %611 : vector<2x50xf32> to vector<1x2x50xf32>
    tpu.vector_store %arg13[%c6_259, %c0_260, %c0_261], %614 {strides = array<i32>} : memref<8x2x50xf32, #tpu.memory_space<vmem>>, vector<1x2x50xf32>,
    %c7 = arith.constant 7 : index
    %c0_262 = arith.constant 0 : index
    %c0_263 = arith.constant 0 : index
    %615 = vector.load %arg0[%c7, %c0_262, %c0_263] : memref<8x2x32xf32, #tpu.memory_space<vmem>>, vector<1x2x32xf32>
    %616 = vector.shape_cast %615 : vector<1x2x32xf32> to vector<2x32xf32>
    %cst_264 = arith.constant dense<0.000000e+00> : vector<2x32xf32>
    %617 = tpu.matmul %616, %9, %cst_264 {dimension_numbers = #tpu.dot_dimension_numbers<[1], [0], [0], [1], [0, 0, 1, 1], [], []>} : vector<2x32xf32>, vector<32x32xf32>, vector<2x32xf32> -> vector<2x32xf32>
    %cst_265 = arith.constant dense<0.000000e+00> : vector<2x32xf32>
    %618 = tpu.matmul %575, %17, %cst_265 {dimension_numbers = #tpu.dot_dimension_numbers<[1], [0], [0], [1], [0, 0, 1, 1], [], []>} : vector<2x32xf32>, vector<32x32xf32>, vector<2x32xf32> -> vector<2x32xf32>
    %619 = arith.addf %617, %618 : vector<2x32xf32>
    %620 = vector.broadcast %25 : vector<1x32xf32> to vector<2x32xf32>
    %621 = arith.addf %619, %620 : vector<2x32xf32>
    %622 = arith.negf %621 : vector<2x32xf32>
    %623 = math.exp %622 : vector<2x32xf32>
    %cst_266 = arith.constant 1.000000e+00 : f32
    %624 = vector.broadcast %cst_266 : f32 to vector<2x32xf32>
    %625 = arith.addf %624, %623 : vector<2x32xf32>
    %626 = arith.divf %624, %625 : vector<2x32xf32>
    %cst_267 = arith.constant dense<0.000000e+00> : vector<2x32xf32>
    %627 = tpu.matmul %616, %11, %cst_267 {dimension_numbers = #tpu.dot_dimension_numbers<[1], [0], [0], [1], [0, 0, 1, 1], [], []>} : vector<2x32xf32>, vector<32x32xf32>, vector<2x32xf32> -> vector<2x32xf32>
    %cst_268 = arith.constant dense<0.000000e+00> : vector<2x32xf32>
    %628 = tpu.matmul %575, %19, %cst_268 {dimension_numbers = #tpu.dot_dimension_numbers<[1], [0], [0], [1], [0, 0, 1, 1], [], []>} : vector<2x32xf32>, vector<32x32xf32>, vector<2x32xf32> -> vector<2x32xf32>
    %629 = arith.addf %627, %628 : vector<2x32xf32>
    %630 = vector.broadcast %27 : vector<1x32xf32> to vector<2x32xf32>
    %631 = arith.addf %629, %630 : vector<2x32xf32>
    %632 = arith.negf %631 : vector<2x32xf32>
    %633 = math.exp %632 : vector<2x32xf32>
    %cst_269 = arith.constant 1.000000e+00 : f32
    %634 = vector.broadcast %cst_269 : f32 to vector<2x32xf32>
    %635 = arith.addf %634, %633 : vector<2x32xf32>
    %636 = arith.divf %634, %635 : vector<2x32xf32>
    %cst_270 = arith.constant dense<0.000000e+00> : vector<2x32xf32>
    %637 = tpu.matmul %616, %13, %cst_270 {dimension_numbers = #tpu.dot_dimension_numbers<[1], [0], [0], [1], [0, 0, 1, 1], [], []>} : vector<2x32xf32>, vector<32x32xf32>, vector<2x32xf32> -> vector<2x32xf32>
    %cst_271 = arith.constant dense<0.000000e+00> : vector<2x32xf32>
    %638 = tpu.matmul %575, %21, %cst_271 {dimension_numbers = #tpu.dot_dimension_numbers<[1], [0], [0], [1], [0, 0, 1, 1], [], []>} : vector<2x32xf32>, vector<32x32xf32>, vector<2x32xf32> -> vector<2x32xf32>
    %639 = arith.addf %637, %638 : vector<2x32xf32>
    %640 = vector.broadcast %29 : vector<1x32xf32> to vector<2x32xf32>
    %641 = arith.addf %639, %640 : vector<2x32xf32>
    %642 = math.tanh %641 : vector<2x32xf32>
    %cst_272 = arith.constant dense<0.000000e+00> : vector<2x32xf32>
    %643 = tpu.matmul %616, %15, %cst_272 {dimension_numbers = #tpu.dot_dimension_numbers<[1], [0], [0], [1], [0, 0, 1, 1], [], []>} : vector<2x32xf32>, vector<32x32xf32>, vector<2x32xf32> -> vector<2x32xf32>
    %cst_273 = arith.constant dense<0.000000e+00> : vector<2x32xf32>
    %644 = tpu.matmul %575, %23, %cst_273 {dimension_numbers = #tpu.dot_dimension_numbers<[1], [0], [0], [1], [0, 0, 1, 1], [], []>} : vector<2x32xf32>, vector<32x32xf32>, vector<2x32xf32> -> vector<2x32xf32>
    %645 = arith.addf %643, %644 : vector<2x32xf32>
    %646 = vector.broadcast %31 : vector<1x32xf32> to vector<2x32xf32>
    %647 = arith.addf %645, %646 : vector<2x32xf32>
    %648 = arith.negf %647 : vector<2x32xf32>
    %649 = math.exp %648 : vector<2x32xf32>
    %cst_274 = arith.constant 1.000000e+00 : f32
    %650 = vector.broadcast %cst_274 : f32 to vector<2x32xf32>
    %651 = arith.addf %650, %649 : vector<2x32xf32>
    %652 = arith.divf %650, %651 : vector<2x32xf32>
    %653 = arith.mulf %636, %573 : vector<2x32xf32>
    %654 = arith.mulf %626, %642 : vector<2x32xf32>
    %655 = arith.addf %653, %654 : vector<2x32xf32>
    %656 = math.tanh %655 : vector<2x32xf32>
    %657 = arith.mulf %652, %656 : vector<2x32xf32>
    %cst_275 = arith.constant dense<0.000000e+00> : vector<2x32xf32>
    %658 = tpu.matmul %657, %32, %cst_275 {dimension_numbers = #tpu.dot_dimension_numbers<[1], [0], [0], [1], [0, 0, 1, 1], [], []>} : vector<2x32xf32>, vector<32x32xf32>, vector<2x32xf32> -> vector<2x32xf32>
    %659 = vector.shape_cast %658 : vector<2x32xf32> to vector<2x1x32xf32>
    "tpu.trace_start"() <{level = 10 : i32, message = "bqh,bkh->bqk"}> : () -> ()
    %cst_276 = arith.constant dense<0.000000e+00> : vector<2x1x8xf32>
    %660 = tpu.matmul %659, %0, %cst_276 {dimension_numbers = #tpu.dot_dimension_numbers<[2], [2], [1], [1], [0, 0, 0, 1, 1, 1], [0], [0]>} : vector<2x1x32xf32>, vector<2x8x32xf32>, vector<2x1x8xf32> -> vector<2x1x8xf32>
    "tpu.trace_stop"() : () -> ()
    %661 = arith.addf %660, %7 : vector<2x1x8xf32>
    %cst_277 = arith.constant dense<0xFF800000> : vector<2x1xf32>
    %662 = vector.multi_reduction <maximumf>, %661, %cst_277 [2] : vector<2x1x8xf32> to vector<2x1xf32>
    %663 = vector.shape_cast %662 : vector<2x1xf32> to vector<2x1x1xf32>
    %664 = vector.broadcast %663 : vector<2x1x1xf32> to vector<2x1x8xf32>
    %665 = arith.subf %661, %664 : vector<2x1x8xf32>
    %666 = math.exp %665 : vector<2x1x8xf32>
    %cst_278 = arith.constant dense<0.000000e+00> : vector<2x1xf32>
    %667 = vector.multi_reduction <add>, %666, %cst_278 [2] : vector<2x1x8xf32> to vector<2x1xf32>
    %668 = vector.shape_cast %667 : vector<2x1xf32> to vector<2x1x1xf32>
    %669 = tpu.reciprocal %668 {approx = true} : vector<2x1x1xf32> -> vector<2x1x1xf32>
    %670 = vector.broadcast %669 : vector<2x1x1xf32> to vector<2x1x8xf32>
    %671 = arith.mulf %666, %670 : vector<2x1x8xf32>
    "tpu.trace_start"() <{level = 10 : i32, message = "bqk,bkh->bqh"}> : () -> ()
    %cst_279 = arith.constant dense<0.000000e+00> : vector<2x1x32xf32>
    %672 = tpu.matmul %671, %0, %cst_279 {dimension_numbers = #tpu.dot_dimension_numbers<[2], [1], [1], [2], [0, 0, 0, 1, 1, 2], [0], [0]>} : vector<2x1x8xf32>, vector<2x8x32xf32>, vector<2x1x32xf32> -> vector<2x1x32xf32>
    "tpu.trace_stop"() : () -> ()
    %673 = vector.shape_cast %672 : vector<2x1x32xf32> to vector<2x32xf32>
    %cst_280 = arith.constant dense<0.000000e+00> : vector<2x32xf32>
    %674 = tpu.matmul %673, %34, %cst_280 {dimension_numbers = #tpu.dot_dimension_numbers<[1], [0], [0], [1], [0, 0, 1, 1], [], []>} : vector<2x32xf32>, vector<32x32xf32>, vector<2x32xf32> -> vector<2x32xf32>
    %cst_281 = arith.constant dense<0.000000e+00> : vector<2x32xf32>
    %675 = tpu.matmul %657, %36, %cst_281 {dimension_numbers = #tpu.dot_dimension_numbers<[1], [0], [0], [1], [0, 0, 1, 1], [], []>} : vector<2x32xf32>, vector<32x32xf32>, vector<2x32xf32> -> vector<2x32xf32>
    %676 = arith.addf %674, %675 : vector<2x32xf32>
    %677 = math.tanh %676 : vector<2x32xf32>
    %cst_282 = arith.constant dense<0.000000e+00> : vector<2x50xf32>
    %678 = tpu.matmul %677, %37, %cst_282 {dimension_numbers = #tpu.dot_dimension_numbers<[1], [0], [0], [1], [0, 0, 1, 1], [], []>} : vector<2x32xf32>, vector<32x50xf32>, vector<2x50xf32> -> vector<2x50xf32>
    %679 = vector.broadcast %38 : vector<1x50xf32> to vector<2x50xf32>
    %680 = arith.addf %678, %679 : vector<2x50xf32>
    %c7_283 = arith.constant 7 : index
    %c0_284 = arith.constant 0 : index
    %c0_285 = arith.constant 0 : index
    %681 = vector.load %arg12[%c7_283, %c0_284, %c0_285] : memref<8x2x50xf32, #tpu.memory_space<vmem>>, vector<1x2x50xf32>
    %682 = vector.shape_cast %681 : vector<1x2x50xf32> to vector<2x50xf32>
    %683 = vector.shape_cast %680 : vector<2x50xf32> to vector<1x2x50xf32>
    tpu.vector_store %arg12[%c7_283, %c0_284, %c0_285], %683 {strides = array<i32>} : memref<8x2x50xf32, #tpu.memory_space<vmem>>, vector<1x2x50xf32>,
    %cst_286 = arith.constant dense<0xFF800000> : vector<2xf32>
    %684 = vector.multi_reduction <maximumf>, %680, %cst_286 [1] : vector<2x50xf32> to vector<2xf32>
    %685 = vector.shape_cast %684 : vector<2xf32> to vector<2x1xf32>
    %686 = vector.broadcast %685 : vector<2x1xf32> to vector<2x50xf32>
    %687 = arith.subf %680, %686 : vector<2x50xf32>
    %688 = math.exp %687 : vector<2x50xf32>
    %cst_287 = arith.constant dense<0.000000e+00> : vector<2xf32>
    %689 = vector.multi_reduction <add>, %688, %cst_287 [1] : vector<2x50xf32> to vector<2xf32>
    %690 = vector.shape_cast %689 : vector<2xf32> to vector<2x1xf32>
    %691 = tpu.reciprocal %690 {approx = true} : vector<2x1xf32> -> vector<2x1xf32>
    %692 = vector.broadcast %691 : vector<2x1xf32> to vector<2x50xf32>
    %693 = arith.mulf %688, %692 : vector<2x50xf32>
    %c7_288 = arith.constant 7 : index
    %c0_289 = arith.constant 0 : index
    %c0_290 = arith.constant 0 : index
    %694 = vector.load %arg13[%c7_288, %c0_289, %c0_290] : memref<8x2x50xf32, #tpu.memory_space<vmem>>, vector<1x2x50xf32>
    %695 = vector.shape_cast %694 : vector<1x2x50xf32> to vector<2x50xf32>
    %696 = vector.shape_cast %693 : vector<2x50xf32> to vector<1x2x50xf32>
    tpu.vector_store %arg13[%c7_288, %c0_289, %c0_290], %696 {strides = array<i32>} : memref<8x2x50xf32, #tpu.memory_space<vmem>>, vector<1x2x50xf32>,
    return
  }
}

module attributes {stable_mosaic.version = 11 : i64} {
  func.func @encoder_bridge_kernel(%arg0: memref<8x2x32xf32, #tpu.memory_space<vmem>>, %arg1: memref<2x1xi32, #tpu.memory_space<vmem>>, %arg2: memref<4x32x32xf32, #tpu.memory_space<vmem>>, %arg3: memref<4x32x32xf32, #tpu.memory_space<vmem>>, %arg4: memref<4x1x32xf32, #tpu.memory_space<vmem>>, %arg5: memref<32x32xf32, #tpu.memory_space<vmem>>, %arg6: memref<1x32xf32, #tpu.memory_space<vmem>>, %arg7: memref<32x32xf32, #tpu.memory_space<vmem>>, %arg8: memref<1x32xf32, #tpu.memory_space<vmem>>, %arg9: memref<32x32xf32, #tpu.memory_space<vmem>>, %arg10: memref<1x32xf32, #tpu.memory_space<vmem>>, %arg11: memref<8x2x32xf32, #tpu.memory_space<vmem>>, %arg12: memref<2x32xf32, #tpu.memory_space<vmem>>, %arg13: memref<2x32xf32, #tpu.memory_space<vmem>>) attributes {dimension_semantics = [], scalar_prefetch = 0 : i64, scratch_operands = 0 : i64, tpu.core_type = #tpu.core_type<tc>} {
    %c0 = arith.constant 0 : index
    %c0_0 = arith.constant 0 : index
    %0 = vector.load %arg1[%c0, %c0_0] : memref<2x1xi32, #tpu.memory_space<vmem>>, vector<2x1xi32>
    %c0_1 = arith.constant 0 : index
    %c0_2 = arith.constant 0 : index
    %c0_3 = arith.constant 0 : index
    %1 = vector.load %arg2[%c0_1, %c0_2, %c0_3] : memref<4x32x32xf32, #tpu.memory_space<vmem>>, vector<1x32x32xf32>
    %2 = vector.shape_cast %1 : vector<1x32x32xf32> to vector<32x32xf32>
    %c1 = arith.constant 1 : index
    %c0_4 = arith.constant 0 : index
    %c0_5 = arith.constant 0 : index
    %3 = vector.load %arg2[%c1, %c0_4, %c0_5] : memref<4x32x32xf32, #tpu.memory_space<vmem>>, vector<1x32x32xf32>
    %4 = vector.shape_cast %3 : vector<1x32x32xf32> to vector<32x32xf32>
    %c2 = arith.constant 2 : index
    %c0_6 = arith.constant 0 : index
    %c0_7 = arith.constant 0 : index
    %5 = vector.load %arg2[%c2, %c0_6, %c0_7] : memref<4x32x32xf32, #tpu.memory_space<vmem>>, vector<1x32x32xf32>
    %6 = vector.shape_cast %5 : vector<1x32x32xf32> to vector<32x32xf32>
    %c3 = arith.constant 3 : index
    %c0_8 = arith.constant 0 : index
    %c0_9 = arith.constant 0 : index
    %7 = vector.load %arg2[%c3, %c0_8, %c0_9] : memref<4x32x32xf32, #tpu.memory_space<vmem>>, vector<1x32x32xf32>
    %8 = vector.shape_cast %7 : vector<1x32x32xf32> to vector<32x32xf32>
    %c0_10 = arith.constant 0 : index
    %c0_11 = arith.constant 0 : index
    %c0_12 = arith.constant 0 : index
    %9 = vector.load %arg3[%c0_10, %c0_11, %c0_12] : memref<4x32x32xf32, #tpu.memory_space<vmem>>, vector<1x32x32xf32>
    %10 = vector.shape_cast %9 : vector<1x32x32xf32> to vector<32x32xf32>
    %c1_13 = arith.constant 1 : index
    %c0_14 = arith.constant 0 : index
    %c0_15 = arith.constant 0 : index
    %11 = vector.load %arg3[%c1_13, %c0_14, %c0_15] : memref<4x32x32xf32, #tpu.memory_space<vmem>>, vector<1x32x32xf32>
    %12 = vector.shape_cast %11 : vector<1x32x32xf32> to vector<32x32xf32>
    %c2_16 = arith.constant 2 : index
    %c0_17 = arith.constant 0 : index
    %c0_18 = arith.constant 0 : index
    %13 = vector.load %arg3[%c2_16, %c0_17, %c0_18] : memref<4x32x32xf32, #tpu.memory_space<vmem>>, vector<1x32x32xf32>
    %14 = vector.shape_cast %13 : vector<1x32x32xf32> to vector<32x32xf32>
    %c3_19 = arith.constant 3 : index
    %c0_20 = arith.constant 0 : index
    %c0_21 = arith.constant 0 : index
    %15 = vector.load %arg3[%c3_19, %c0_20, %c0_21] : memref<4x32x32xf32, #tpu.memory_space<vmem>>, vector<1x32x32xf32>
    %16 = vector.shape_cast %15 : vector<1x32x32xf32> to vector<32x32xf32>
    %c0_22 = arith.constant 0 : index
    %c0_23 = arith.constant 0 : index
    %c0_24 = arith.constant 0 : index
    %17 = vector.load %arg4[%c0_22, %c0_23, %c0_24] : memref<4x1x32xf32, #tpu.memory_space<vmem>>, vector<1x1x32xf32>
    %18 = vector.shape_cast %17 : vector<1x1x32xf32> to vector<1x32xf32>
    %c1_25 = arith.constant 1 : index
    %c0_26 = arith.constant 0 : index
    %c0_27 = arith.constant 0 : index
    %19 = vector.load %arg4[%c1_25, %c0_26, %c0_27] : memref<4x1x32xf32, #tpu.memory_space<vmem>>, vector<1x1x32xf32>
    %20 = vector.shape_cast %19 : vector<1x1x32xf32> to vector<1x32xf32>
    %c2_28 = arith.constant 2 : index
    %c0_29 = arith.constant 0 : index
    %c0_30 = arith.constant 0 : index
    %21 = vector.load %arg4[%c2_28, %c0_29, %c0_30] : memref<4x1x32xf32, #tpu.memory_space<vmem>>, vector<1x1x32xf32>
    %22 = vector.shape_cast %21 : vector<1x1x32xf32> to vector<1x32xf32>
    %c3_31 = arith.constant 3 : index
    %c0_32 = arith.constant 0 : index
    %c0_33 = arith.constant 0 : index
    %23 = vector.load %arg4[%c3_31, %c0_32, %c0_33] : memref<4x1x32xf32, #tpu.memory_space<vmem>>, vector<1x1x32xf32>
    %24 = vector.shape_cast %23 : vector<1x1x32xf32> to vector<1x32xf32>
    %c0_34 = arith.constant 0 : index
    %c0_35 = arith.constant 0 : index
    %25 = vector.load %arg5[%c0_34, %c0_35] : memref<32x32xf32, #tpu.memory_space<vmem>>, vector<32x32xf32>
    %c0_36 = arith.constant 0 : index
    %c0_37 = arith.constant 0 : index
    %26 = vector.load %arg6[%c0_36, %c0_37] : memref<1x32xf32, #tpu.memory_space<vmem>>, vector<1x32xf32>
    %cst = arith.constant 0.000000e+00 : f32
    %27 = vector.broadcast %cst : f32 to vector<2x32xf32>
    %cst_38 = arith.constant 0.000000e+00 : f32
    %28 = vector.broadcast %cst_38 : f32 to vector<2x32xf32>
    %c0_39 = arith.constant 0 : index
    %c0_40 = arith.constant 0 : index
    %c0_41 = arith.constant 0 : index
    %29 = vector.load %arg0[%c0_39, %c0_40, %c0_41] : memref<8x2x32xf32, #tpu.memory_space<vmem>>, vector<1x2x32xf32>
    %30 = vector.shape_cast %29 : vector<1x2x32xf32> to vector<2x32xf32>
    %cst_42 = arith.constant dense<0.000000e+00> : vector<2x32xf32>
    %31 = tpu.matmul %30, %2, %cst_42 {dimension_numbers = #tpu.dot_dimension_numbers<[1], [0], [0], [1], [0, 0, 1, 1], [], []>} : vector<2x32xf32>, vector<32x32xf32>, vector<2x32xf32> -> vector<2x32xf32>
    %cst_43 = arith.constant dense<0.000000e+00> : vector<2x32xf32>
    %32 = tpu.matmul %27, %10, %cst_43 {dimension_numbers = #tpu.dot_dimension_numbers<[1], [0], [0], [1], [0, 0, 1, 1], [], []>} : vector<2x32xf32>, vector<32x32xf32>, vector<2x32xf32> -> vector<2x32xf32>
    %33 = arith.addf %31, %32 : vector<2x32xf32>
    %34 = vector.broadcast %18 : vector<1x32xf32> to vector<2x32xf32>
    %35 = arith.addf %33, %34 : vector<2x32xf32>
    %36 = arith.negf %35 : vector<2x32xf32>
    %37 = math.exp %36 : vector<2x32xf32>
    %cst_44 = arith.constant 1.000000e+00 : f32
    %38 = vector.broadcast %cst_44 : f32 to vector<2x32xf32>
    %39 = arith.addf %38, %37 : vector<2x32xf32>
    %40 = arith.divf %38, %39 : vector<2x32xf32>
    %cst_45 = arith.constant dense<0.000000e+00> : vector<2x32xf32>
    %41 = tpu.matmul %30, %4, %cst_45 {dimension_numbers = #tpu.dot_dimension_numbers<[1], [0], [0], [1], [0, 0, 1, 1], [], []>} : vector<2x32xf32>, vector<32x32xf32>, vector<2x32xf32> -> vector<2x32xf32>
    %cst_46 = arith.constant dense<0.000000e+00> : vector<2x32xf32>
    %42 = tpu.matmul %27, %12, %cst_46 {dimension_numbers = #tpu.dot_dimension_numbers<[1], [0], [0], [1], [0, 0, 1, 1], [], []>} : vector<2x32xf32>, vector<32x32xf32>, vector<2x32xf32> -> vector<2x32xf32>
    %43 = arith.addf %41, %42 : vector<2x32xf32>
    %44 = vector.broadcast %20 : vector<1x32xf32> to vector<2x32xf32>
    %45 = arith.addf %43, %44 : vector<2x32xf32>
    %46 = arith.negf %45 : vector<2x32xf32>
    %47 = math.exp %46 : vector<2x32xf32>
    %cst_47 = arith.constant 1.000000e+00 : f32
    %48 = vector.broadcast %cst_47 : f32 to vector<2x32xf32>
    %49 = arith.addf %48, %47 : vector<2x32xf32>
    %50 = arith.divf %48, %49 : vector<2x32xf32>
    %cst_48 = arith.constant dense<0.000000e+00> : vector<2x32xf32>
    %51 = tpu.matmul %30, %6, %cst_48 {dimension_numbers = #tpu.dot_dimension_numbers<[1], [0], [0], [1], [0, 0, 1, 1], [], []>} : vector<2x32xf32>, vector<32x32xf32>, vector<2x32xf32> -> vector<2x32xf32>
    %cst_49 = arith.constant dense<0.000000e+00> : vector<2x32xf32>
    %52 = tpu.matmul %27, %14, %cst_49 {dimension_numbers = #tpu.dot_dimension_numbers<[1], [0], [0], [1], [0, 0, 1, 1], [], []>} : vector<2x32xf32>, vector<32x32xf32>, vector<2x32xf32> -> vector<2x32xf32>
    %53 = arith.addf %51, %52 : vector<2x32xf32>
    %54 = vector.broadcast %22 : vector<1x32xf32> to vector<2x32xf32>
    %55 = arith.addf %53, %54 : vector<2x32xf32>
    %56 = math.tanh %55 : vector<2x32xf32>
    %cst_50 = arith.constant dense<0.000000e+00> : vector<2x32xf32>
    %57 = tpu.matmul %30, %8, %cst_50 {dimension_numbers = #tpu.dot_dimension_numbers<[1], [0], [0], [1], [0, 0, 1, 1], [], []>} : vector<2x32xf32>, vector<32x32xf32>, vector<2x32xf32> -> vector<2x32xf32>
    %cst_51 = arith.constant dense<0.000000e+00> : vector<2x32xf32>
    %58 = tpu.matmul %27, %16, %cst_51 {dimension_numbers = #tpu.dot_dimension_numbers<[1], [0], [0], [1], [0, 0, 1, 1], [], []>} : vector<2x32xf32>, vector<32x32xf32>, vector<2x32xf32> -> vector<2x32xf32>
    %59 = arith.addf %57, %58 : vector<2x32xf32>
    %60 = vector.broadcast %24 : vector<1x32xf32> to vector<2x32xf32>
    %61 = arith.addf %59, %60 : vector<2x32xf32>
    %62 = arith.negf %61 : vector<2x32xf32>
    %63 = math.exp %62 : vector<2x32xf32>
    %cst_52 = arith.constant 1.000000e+00 : f32
    %64 = vector.broadcast %cst_52 : f32 to vector<2x32xf32>
    %65 = arith.addf %64, %63 : vector<2x32xf32>
    %66 = arith.divf %64, %65 : vector<2x32xf32>
    %67 = arith.mulf %50, %28 : vector<2x32xf32>
    %68 = arith.mulf %40, %56 : vector<2x32xf32>
    %69 = arith.addf %67, %68 : vector<2x32xf32>
    %70 = math.tanh %69 : vector<2x32xf32>
    %71 = arith.mulf %66, %70 : vector<2x32xf32>
    %c0_i32 = arith.constant 0 : i32
    %72 = vector.broadcast %c0_i32 : i32 to vector<2x1xi32>
    %73 = arith.cmpi sgt, %0, %72 : vector<2x1xi32>
    %74 = vector.shape_cast %73 : vector<2x1xi1> to vector<2x1xi1>
    %75 = vector.broadcast %74 : vector<2x1xi1> to vector<2x32xi1>
    %76 = arith.select %75, %71, %27 : vector<2x32xi1>, vector<2x32xf32>
    %77 = vector.shape_cast %73 : vector<2x1xi1> to vector<2x1xi1>
    %78 = vector.broadcast %77 : vector<2x1xi1> to vector<2x32xi1>
    %79 = arith.select %78, %69, %28 : vector<2x32xi1>, vector<2x32xf32>
    %cst_53 = arith.constant 0.000000e+00 : f32
    %80 = vector.shape_cast %73 : vector<2x1xi1> to vector<2x1xi1>
    %81 = vector.broadcast %80 : vector<2x1xi1> to vector<2x32xi1>
    %82 = vector.broadcast %cst_53 : f32 to vector<2x32xf32>
    %83 = arith.select %81, %71, %82 : vector<2x32xi1>, vector<2x32xf32>
    %cst_54 = arith.constant dense<0.000000e+00> : vector<2x32xf32>
    %84 = tpu.matmul %83, %25, %cst_54 {dimension_numbers = #tpu.dot_dimension_numbers<[1], [0], [0], [1], [0, 0, 1, 1], [], []>} : vector<2x32xf32>, vector<32x32xf32>, vector<2x32xf32> -> vector<2x32xf32>
    %85 = vector.broadcast %26 : vector<1x32xf32> to vector<2x32xf32>
    %86 = arith.addf %84, %85 : vector<2x32xf32>
    %c0_55 = arith.constant 0 : index
    %c0_56 = arith.constant 0 : index
    %c0_57 = arith.constant 0 : index
    %87 = vector.load %arg11[%c0_55, %c0_56, %c0_57] : memref<8x2x32xf32, #tpu.memory_space<vmem>>, vector<1x2x32xf32>
    %88 = vector.shape_cast %87 : vector<1x2x32xf32> to vector<2x32xf32>
    %89 = vector.shape_cast %86 : vector<2x32xf32> to vector<1x2x32xf32>
    tpu.vector_store %arg11[%c0_55, %c0_56, %c0_57], %89 {strides = array<i32>} : memref<8x2x32xf32, #tpu.memory_space<vmem>>, vector<1x2x32xf32>,
    %c1_58 = arith.constant 1 : index
    %c0_59 = arith.constant 0 : index
    %c0_60 = arith.constant 0 : index
    %90 = vector.load %arg0[%c1_58, %c0_59, %c0_60] : memref<8x2x32xf32, #tpu.memory_space<vmem>>, vector<1x2x32xf32>
    %91 = vector.shape_cast %90 : vector<1x2x32xf32> to vector<2x32xf32>
    %cst_61 = arith.constant dense<0.000000e+00> : vector<2x32xf32>
    %92 = tpu.matmul %91, %2, %cst_61 {dimension_numbers = #tpu.dot_dimension_numbers<[1], [0], [0], [1], [0, 0, 1, 1], [], []>} : vector<2x32xf32>, vector<32x32xf32>, vector<2x32xf32> -> vector<2x32xf32>
    %cst_62 = arith.constant dense<0.000000e+00> : vector<2x32xf32>
    %93 = tpu.matmul %76, %10, %cst_62 {dimension_numbers = #tpu.dot_dimension_numbers<[1], [0], [0], [1], [0, 0, 1, 1], [], []>} : vector<2x32xf32>, vector<32x32xf32>, vector<2x32xf32> -> vector<2x32xf32>
    %94 = arith.addf %92, %93 : vector<2x32xf32>
    %95 = vector.broadcast %18 : vector<1x32xf32> to vector<2x32xf32>
    %96 = arith.addf %94, %95 : vector<2x32xf32>
    %97 = arith.negf %96 : vector<2x32xf32>
    %98 = math.exp %97 : vector<2x32xf32>
    %cst_63 = arith.constant 1.000000e+00 : f32
    %99 = vector.broadcast %cst_63 : f32 to vector<2x32xf32>
    %100 = arith.addf %99, %98 : vector<2x32xf32>
    %101 = arith.divf %99, %100 : vector<2x32xf32>
    %cst_64 = arith.constant dense<0.000000e+00> : vector<2x32xf32>
    %102 = tpu.matmul %91, %4, %cst_64 {dimension_numbers = #tpu.dot_dimension_numbers<[1], [0], [0], [1], [0, 0, 1, 1], [], []>} : vector<2x32xf32>, vector<32x32xf32>, vector<2x32xf32> -> vector<2x32xf32>
    %cst_65 = arith.constant dense<0.000000e+00> : vector<2x32xf32>
    %103 = tpu.matmul %76, %12, %cst_65 {dimension_numbers = #tpu.dot_dimension_numbers<[1], [0], [0], [1], [0, 0, 1, 1], [], []>} : vector<2x32xf32>, vector<32x32xf32>, vector<2x32xf32> -> vector<2x32xf32>
    %104 = arith.addf %102, %103 : vector<2x32xf32>
    %105 = vector.broadcast %20 : vector<1x32xf32> to vector<2x32xf32>
    %106 = arith.addf %104, %105 : vector<2x32xf32>
    %107 = arith.negf %106 : vector<2x32xf32>
    %108 = math.exp %107 : vector<2x32xf32>
    %cst_66 = arith.constant 1.000000e+00 : f32
    %109 = vector.broadcast %cst_66 : f32 to vector<2x32xf32>
    %110 = arith.addf %109, %108 : vector<2x32xf32>
    %111 = arith.divf %109, %110 : vector<2x32xf32>
    %cst_67 = arith.constant dense<0.000000e+00> : vector<2x32xf32>
    %112 = tpu.matmul %91, %6, %cst_67 {dimension_numbers = #tpu.dot_dimension_numbers<[1], [0], [0], [1], [0, 0, 1, 1], [], []>} : vector<2x32xf32>, vector<32x32xf32>, vector<2x32xf32> -> vector<2x32xf32>
    %cst_68 = arith.constant dense<0.000000e+00> : vector<2x32xf32>
    %113 = tpu.matmul %76, %14, %cst_68 {dimension_numbers = #tpu.dot_dimension_numbers<[1], [0], [0], [1], [0, 0, 1, 1], [], []>} : vector<2x32xf32>, vector<32x32xf32>, vector<2x32xf32> -> vector<2x32xf32>
    %114 = arith.addf %112, %113 : vector<2x32xf32>
    %115 = vector.broadcast %22 : vector<1x32xf32> to vector<2x32xf32>
    %116 = arith.addf %114, %115 : vector<2x32xf32>
    %117 = math.tanh %116 : vector<2x32xf32>
    %cst_69 = arith.constant dense<0.000000e+00> : vector<2x32xf32>
    %118 = tpu.matmul %91, %8, %cst_69 {dimension_numbers = #tpu.dot_dimension_numbers<[1], [0], [0], [1], [0, 0, 1, 1], [], []>} : vector<2x32xf32>, vector<32x32xf32>, vector<2x32xf32> -> vector<2x32xf32>
    %cst_70 = arith.constant dense<0.000000e+00> : vector<2x32xf32>
    %119 = tpu.matmul %76, %16, %cst_70 {dimension_numbers = #tpu.dot_dimension_numbers<[1], [0], [0], [1], [0, 0, 1, 1], [], []>} : vector<2x32xf32>, vector<32x32xf32>, vector<2x32xf32> -> vector<2x32xf32>
    %120 = arith.addf %118, %119 : vector<2x32xf32>
    %121 = vector.broadcast %24 : vector<1x32xf32> to vector<2x32xf32>
    %122 = arith.addf %120, %121 : vector<2x32xf32>
    %123 = arith.negf %122 : vector<2x32xf32>
    %124 = math.exp %123 : vector<2x32xf32>
    %cst_71 = arith.constant 1.000000e+00 : f32
    %125 = vector.broadcast %cst_71 : f32 to vector<2x32xf32>
    %126 = arith.addf %125, %124 : vector<2x32xf32>
    %127 = arith.divf %125, %126 : vector<2x32xf32>
    %128 = arith.mulf %111, %79 : vector<2x32xf32>
    %129 = arith.mulf %101, %117 : vector<2x32xf32>
    %130 = arith.addf %128, %129 : vector<2x32xf32>
    %131 = math.tanh %130 : vector<2x32xf32>
    %132 = arith.mulf %127, %131 : vector<2x32xf32>
    %c1_i32 = arith.constant 1 : i32
    %133 = vector.broadcast %c1_i32 : i32 to vector<2x1xi32>
    %134 = arith.cmpi sgt, %0, %133 : vector<2x1xi32>
    %135 = vector.shape_cast %134 : vector<2x1xi1> to vector<2x1xi1>
    %136 = vector.broadcast %135 : vector<2x1xi1> to vector<2x32xi1>
    %137 = arith.select %136, %132, %76 : vector<2x32xi1>, vector<2x32xf32>
    %138 = vector.shape_cast %134 : vector<2x1xi1> to vector<2x1xi1>
    %139 = vector.broadcast %138 : vector<2x1xi1> to vector<2x32xi1>
    %140 = arith.select %139, %130, %79 : vector<2x32xi1>, vector<2x32xf32>
    %cst_72 = arith.constant 0.000000e+00 : f32
    %141 = vector.shape_cast %134 : vector<2x1xi1> to vector<2x1xi1>
    %142 = vector.broadcast %141 : vector<2x1xi1> to vector<2x32xi1>
    %143 = vector.broadcast %cst_72 : f32 to vector<2x32xf32>
    %144 = arith.select %142, %132, %143 : vector<2x32xi1>, vector<2x32xf32>
    %cst_73 = arith.constant dense<0.000000e+00> : vector<2x32xf32>
    %145 = tpu.matmul %144, %25, %cst_73 {dimension_numbers = #tpu.dot_dimension_numbers<[1], [0], [0], [1], [0, 0, 1, 1], [], []>} : vector<2x32xf32>, vector<32x32xf32>, vector<2x32xf32> -> vector<2x32xf32>
    %146 = vector.broadcast %26 : vector<1x32xf32> to vector<2x32xf32>
    %147 = arith.addf %145, %146 : vector<2x32xf32>
    %c1_74 = arith.constant 1 : index
    %c0_75 = arith.constant 0 : index
    %c0_76 = arith.constant 0 : index
    %148 = vector.load %arg11[%c1_74, %c0_75, %c0_76] : memref<8x2x32xf32, #tpu.memory_space<vmem>>, vector<1x2x32xf32>
    %149 = vector.shape_cast %148 : vector<1x2x32xf32> to vector<2x32xf32>
    %150 = vector.shape_cast %147 : vector<2x32xf32> to vector<1x2x32xf32>
    tpu.vector_store %arg11[%c1_74, %c0_75, %c0_76], %150 {strides = array<i32>} : memref<8x2x32xf32, #tpu.memory_space<vmem>>, vector<1x2x32xf32>,
    %c2_77 = arith.constant 2 : index
    %c0_78 = arith.constant 0 : index
    %c0_79 = arith.constant 0 : index
    %151 = vector.load %arg0[%c2_77, %c0_78, %c0_79] : memref<8x2x32xf32, #tpu.memory_space<vmem>>, vector<1x2x32xf32>
    %152 = vector.shape_cast %151 : vector<1x2x32xf32> to vector<2x32xf32>
    %cst_80 = arith.constant dense<0.000000e+00> : vector<2x32xf32>
    %153 = tpu.matmul %152, %2, %cst_80 {dimension_numbers = #tpu.dot_dimension_numbers<[1], [0], [0], [1], [0, 0, 1, 1], [], []>} : vector<2x32xf32>, vector<32x32xf32>, vector<2x32xf32> -> vector<2x32xf32>
    %cst_81 = arith.constant dense<0.000000e+00> : vector<2x32xf32>
    %154 = tpu.matmul %137, %10, %cst_81 {dimension_numbers = #tpu.dot_dimension_numbers<[1], [0], [0], [1], [0, 0, 1, 1], [], []>} : vector<2x32xf32>, vector<32x32xf32>, vector<2x32xf32> -> vector<2x32xf32>
    %155 = arith.addf %153, %154 : vector<2x32xf32>
    %156 = vector.broadcast %18 : vector<1x32xf32> to vector<2x32xf32>
    %157 = arith.addf %155, %156 : vector<2x32xf32>
    %158 = arith.negf %157 : vector<2x32xf32>
    %159 = math.exp %158 : vector<2x32xf32>
    %cst_82 = arith.constant 1.000000e+00 : f32
    %160 = vector.broadcast %cst_82 : f32 to vector<2x32xf32>
    %161 = arith.addf %160, %159 : vector<2x32xf32>
    %162 = arith.divf %160, %161 : vector<2x32xf32>
    %cst_83 = arith.constant dense<0.000000e+00> : vector<2x32xf32>
    %163 = tpu.matmul %152, %4, %cst_83 {dimension_numbers = #tpu.dot_dimension_numbers<[1], [0], [0], [1], [0, 0, 1, 1], [], []>} : vector<2x32xf32>, vector<32x32xf32>, vector<2x32xf32> -> vector<2x32xf32>
    %cst_84 = arith.constant dense<0.000000e+00> : vector<2x32xf32>
    %164 = tpu.matmul %137, %12, %cst_84 {dimension_numbers = #tpu.dot_dimension_numbers<[1], [0], [0], [1], [0, 0, 1, 1], [], []>} : vector<2x32xf32>, vector<32x32xf32>, vector<2x32xf32> -> vector<2x32xf32>
    %165 = arith.addf %163, %164 : vector<2x32xf32>
    %166 = vector.broadcast %20 : vector<1x32xf32> to vector<2x32xf32>
    %167 = arith.addf %165, %166 : vector<2x32xf32>
    %168 = arith.negf %167 : vector<2x32xf32>
    %169 = math.exp %168 : vector<2x32xf32>
    %cst_85 = arith.constant 1.000000e+00 : f32
    %170 = vector.broadcast %cst_85 : f32 to vector<2x32xf32>
    %171 = arith.addf %170, %169 : vector<2x32xf32>
    %172 = arith.divf %170, %171 : vector<2x32xf32>
    %cst_86 = arith.constant dense<0.000000e+00> : vector<2x32xf32>
    %173 = tpu.matmul %152, %6, %cst_86 {dimension_numbers = #tpu.dot_dimension_numbers<[1], [0], [0], [1], [0, 0, 1, 1], [], []>} : vector<2x32xf32>, vector<32x32xf32>, vector<2x32xf32> -> vector<2x32xf32>
    %cst_87 = arith.constant dense<0.000000e+00> : vector<2x32xf32>
    %174 = tpu.matmul %137, %14, %cst_87 {dimension_numbers = #tpu.dot_dimension_numbers<[1], [0], [0], [1], [0, 0, 1, 1], [], []>} : vector<2x32xf32>, vector<32x32xf32>, vector<2x32xf32> -> vector<2x32xf32>
    %175 = arith.addf %173, %174 : vector<2x32xf32>
    %176 = vector.broadcast %22 : vector<1x32xf32> to vector<2x32xf32>
    %177 = arith.addf %175, %176 : vector<2x32xf32>
    %178 = math.tanh %177 : vector<2x32xf32>
    %cst_88 = arith.constant dense<0.000000e+00> : vector<2x32xf32>
    %179 = tpu.matmul %152, %8, %cst_88 {dimension_numbers = #tpu.dot_dimension_numbers<[1], [0], [0], [1], [0, 0, 1, 1], [], []>} : vector<2x32xf32>, vector<32x32xf32>, vector<2x32xf32> -> vector<2x32xf32>
    %cst_89 = arith.constant dense<0.000000e+00> : vector<2x32xf32>
    %180 = tpu.matmul %137, %16, %cst_89 {dimension_numbers = #tpu.dot_dimension_numbers<[1], [0], [0], [1], [0, 0, 1, 1], [], []>} : vector<2x32xf32>, vector<32x32xf32>, vector<2x32xf32> -> vector<2x32xf32>
    %181 = arith.addf %179, %180 : vector<2x32xf32>
    %182 = vector.broadcast %24 : vector<1x32xf32> to vector<2x32xf32>
    %183 = arith.addf %181, %182 : vector<2x32xf32>
    %184 = arith.negf %183 : vector<2x32xf32>
    %185 = math.exp %184 : vector<2x32xf32>
    %cst_90 = arith.constant 1.000000e+00 : f32
    %186 = vector.broadcast %cst_90 : f32 to vector<2x32xf32>
    %187 = arith.addf %186, %185 : vector<2x32xf32>
    %188 = arith.divf %186, %187 : vector<2x32xf32>
    %189 = arith.mulf %172, %140 : vector<2x32xf32>
    %190 = arith.mulf %162, %178 : vector<2x32xf32>
    %191 = arith.addf %189, %190 : vector<2x32xf32>
    %192 = math.tanh %191 : vector<2x32xf32>
    %193 = arith.mulf %188, %192 : vector<2x32xf32>
    %c2_i32 = arith.constant 2 : i32
    %194 = vector.broadcast %c2_i32 : i32 to vector<2x1xi32>
    %195 = arith.cmpi sgt, %0, %194 : vector<2x1xi32>
    %196 = vector.shape_cast %195 : vector<2x1xi1> to vector<2x1xi1>
    %197 = vector.broadcast %196 : vector<2x1xi1> to vector<2x32xi1>
    %198 = arith.select %197, %193, %137 : vector<2x32xi1>, vector<2x32xf32>
    %199 = vector.shape_cast %195 : vector<2x1xi1> to vector<2x1xi1>
    %200 = vector.broadcast %199 : vector<2x1xi1> to vector<2x32xi1>
    %201 = arith.select %200, %191, %140 : vector<2x32xi1>, vector<2x32xf32>
    %cst_91 = arith.constant 0.000000e+00 : f32
    %202 = vector.shape_cast %195 : vector<2x1xi1> to vector<2x1xi1>
    %203 = vector.broadcast %202 : vector<2x1xi1> to vector<2x32xi1>
    %204 = vector.broadcast %cst_91 : f32 to vector<2x32xf32>
    %205 = arith.select %203, %193, %204 : vector<2x32xi1>, vector<2x32xf32>
    %cst_92 = arith.constant dense<0.000000e+00> : vector<2x32xf32>
    %206 = tpu.matmul %205, %25, %cst_92 {dimension_numbers = #tpu.dot_dimension_numbers<[1], [0], [0], [1], [0, 0, 1, 1], [], []>} : vector<2x32xf32>, vector<32x32xf32>, vector<2x32xf32> -> vector<2x32xf32>
    %207 = vector.broadcast %26 : vector<1x32xf32> to vector<2x32xf32>
    %208 = arith.addf %206, %207 : vector<2x32xf32>
    %c2_93 = arith.constant 2 : index
    %c0_94 = arith.constant 0 : index
    %c0_95 = arith.constant 0 : index
    %209 = vector.load %arg11[%c2_93, %c0_94, %c0_95] : memref<8x2x32xf32, #tpu.memory_space<vmem>>, vector<1x2x32xf32>
    %210 = vector.shape_cast %209 : vector<1x2x32xf32> to vector<2x32xf32>
    %211 = vector.shape_cast %208 : vector<2x32xf32> to vector<1x2x32xf32>
    tpu.vector_store %arg11[%c2_93, %c0_94, %c0_95], %211 {strides = array<i32>} : memref<8x2x32xf32, #tpu.memory_space<vmem>>, vector<1x2x32xf32>,
    %c3_96 = arith.constant 3 : index
    %c0_97 = arith.constant 0 : index
    %c0_98 = arith.constant 0 : index
    %212 = vector.load %arg0[%c3_96, %c0_97, %c0_98] : memref<8x2x32xf32, #tpu.memory_space<vmem>>, vector<1x2x32xf32>
    %213 = vector.shape_cast %212 : vector<1x2x32xf32> to vector<2x32xf32>
    %cst_99 = arith.constant dense<0.000000e+00> : vector<2x32xf32>
    %214 = tpu.matmul %213, %2, %cst_99 {dimension_numbers = #tpu.dot_dimension_numbers<[1], [0], [0], [1], [0, 0, 1, 1], [], []>} : vector<2x32xf32>, vector<32x32xf32>, vector<2x32xf32> -> vector<2x32xf32>
    %cst_100 = arith.constant dense<0.000000e+00> : vector<2x32xf32>
    %215 = tpu.matmul %198, %10, %cst_100 {dimension_numbers = #tpu.dot_dimension_numbers<[1], [0], [0], [1], [0, 0, 1, 1], [], []>} : vector<2x32xf32>, vector<32x32xf32>, vector<2x32xf32> -> vector<2x32xf32>
    %216 = arith.addf %214, %215 : vector<2x32xf32>
    %217 = vector.broadcast %18 : vector<1x32xf32> to vector<2x32xf32>
    %218 = arith.addf %216, %217 : vector<2x32xf32>
    %219 = arith.negf %218 : vector<2x32xf32>
    %220 = math.exp %219 : vector<2x32xf32>
    %cst_101 = arith.constant 1.000000e+00 : f32
    %221 = vector.broadcast %cst_101 : f32 to vector<2x32xf32>
    %222 = arith.addf %221, %220 : vector<2x32xf32>
    %223 = arith.divf %221, %222 : vector<2x32xf32>
    %cst_102 = arith.constant dense<0.000000e+00> : vector<2x32xf32>
    %224 = tpu.matmul %213, %4, %cst_102 {dimension_numbers = #tpu.dot_dimension_numbers<[1], [0], [0], [1], [0, 0, 1, 1], [], []>} : vector<2x32xf32>, vector<32x32xf32>, vector<2x32xf32> -> vector<2x32xf32>
    %cst_103 = arith.constant dense<0.000000e+00> : vector<2x32xf32>
    %225 = tpu.matmul %198, %12, %cst_103 {dimension_numbers = #tpu.dot_dimension_numbers<[1], [0], [0], [1], [0, 0, 1, 1], [], []>} : vector<2x32xf32>, vector<32x32xf32>, vector<2x32xf32> -> vector<2x32xf32>
    %226 = arith.addf %224, %225 : vector<2x32xf32>
    %227 = vector.broadcast %20 : vector<1x32xf32> to vector<2x32xf32>
    %228 = arith.addf %226, %227 : vector<2x32xf32>
    %229 = arith.negf %228 : vector<2x32xf32>
    %230 = math.exp %229 : vector<2x32xf32>
    %cst_104 = arith.constant 1.000000e+00 : f32
    %231 = vector.broadcast %cst_104 : f32 to vector<2x32xf32>
    %232 = arith.addf %231, %230 : vector<2x32xf32>
    %233 = arith.divf %231, %232 : vector<2x32xf32>
    %cst_105 = arith.constant dense<0.000000e+00> : vector<2x32xf32>
    %234 = tpu.matmul %213, %6, %cst_105 {dimension_numbers = #tpu.dot_dimension_numbers<[1], [0], [0], [1], [0, 0, 1, 1], [], []>} : vector<2x32xf32>, vector<32x32xf32>, vector<2x32xf32> -> vector<2x32xf32>
    %cst_106 = arith.constant dense<0.000000e+00> : vector<2x32xf32>
    %235 = tpu.matmul %198, %14, %cst_106 {dimension_numbers = #tpu.dot_dimension_numbers<[1], [0], [0], [1], [0, 0, 1, 1], [], []>} : vector<2x32xf32>, vector<32x32xf32>, vector<2x32xf32> -> vector<2x32xf32>
    %236 = arith.addf %234, %235 : vector<2x32xf32>
    %237 = vector.broadcast %22 : vector<1x32xf32> to vector<2x32xf32>
    %238 = arith.addf %236, %237 : vector<2x32xf32>
    %239 = math.tanh %238 : vector<2x32xf32>
    %cst_107 = arith.constant dense<0.000000e+00> : vector<2x32xf32>
    %240 = tpu.matmul %213, %8, %cst_107 {dimension_numbers = #tpu.dot_dimension_numbers<[1], [0], [0], [1], [0, 0, 1, 1], [], []>} : vector<2x32xf32>, vector<32x32xf32>, vector<2x32xf32> -> vector<2x32xf32>
    %cst_108 = arith.constant dense<0.000000e+00> : vector<2x32xf32>
    %241 = tpu.matmul %198, %16, %cst_108 {dimension_numbers = #tpu.dot_dimension_numbers<[1], [0], [0], [1], [0, 0, 1, 1], [], []>} : vector<2x32xf32>, vector<32x32xf32>, vector<2x32xf32> -> vector<2x32xf32>
    %242 = arith.addf %240, %241 : vector<2x32xf32>
    %243 = vector.broadcast %24 : vector<1x32xf32> to vector<2x32xf32>
    %244 = arith.addf %242, %243 : vector<2x32xf32>
    %245 = arith.negf %244 : vector<2x32xf32>
    %246 = math.exp %245 : vector<2x32xf32>
    %cst_109 = arith.constant 1.000000e+00 : f32
    %247 = vector.broadcast %cst_109 : f32 to vector<2x32xf32>
    %248 = arith.addf %247, %246 : vector<2x32xf32>
    %249 = arith.divf %247, %248 : vector<2x32xf32>
    %250 = arith.mulf %233, %201 : vector<2x32xf32>
    %251 = arith.mulf %223, %239 : vector<2x32xf32>
    %252 = arith.addf %250, %251 : vector<2x32xf32>
    %253 = math.tanh %252 : vector<2x32xf32>
    %254 = arith.mulf %249, %253 : vector<2x32xf32>
    %c3_i32 = arith.constant 3 : i32
    %255 = vector.broadcast %c3_i32 : i32 to vector<2x1xi32>
    %256 = arith.cmpi sgt, %0, %255 : vector<2x1xi32>
    %257 = vector.shape_cast %256 : vector<2x1xi1> to vector<2x1xi1>
    %258 = vector.broadcast %257 : vector<2x1xi1> to vector<2x32xi1>
    %259 = arith.select %258, %254, %198 : vector<2x32xi1>, vector<2x32xf32>
    %260 = vector.shape_cast %256 : vector<2x1xi1> to vector<2x1xi1>
    %261 = vector.broadcast %260 : vector<2x1xi1> to vector<2x32xi1>
    %262 = arith.select %261, %252, %201 : vector<2x32xi1>, vector<2x32xf32>
    %cst_110 = arith.constant 0.000000e+00 : f32
    %263 = vector.shape_cast %256 : vector<2x1xi1> to vector<2x1xi1>
    %264 = vector.broadcast %263 : vector<2x1xi1> to vector<2x32xi1>
    %265 = vector.broadcast %cst_110 : f32 to vector<2x32xf32>
    %266 = arith.select %264, %254, %265 : vector<2x32xi1>, vector<2x32xf32>
    %cst_111 = arith.constant dense<0.000000e+00> : vector<2x32xf32>
    %267 = tpu.matmul %266, %25, %cst_111 {dimension_numbers = #tpu.dot_dimension_numbers<[1], [0], [0], [1], [0, 0, 1, 1], [], []>} : vector<2x32xf32>, vector<32x32xf32>, vector<2x32xf32> -> vector<2x32xf32>
    %268 = vector.broadcast %26 : vector<1x32xf32> to vector<2x32xf32>
    %269 = arith.addf %267, %268 : vector<2x32xf32>
    %c3_112 = arith.constant 3 : index
    %c0_113 = arith.constant 0 : index
    %c0_114 = arith.constant 0 : index
    %270 = vector.load %arg11[%c3_112, %c0_113, %c0_114] : memref<8x2x32xf32, #tpu.memory_space<vmem>>, vector<1x2x32xf32>
    %271 = vector.shape_cast %270 : vector<1x2x32xf32> to vector<2x32xf32>
    %272 = vector.shape_cast %269 : vector<2x32xf32> to vector<1x2x32xf32>
    tpu.vector_store %arg11[%c3_112, %c0_113, %c0_114], %272 {strides = array<i32>} : memref<8x2x32xf32, #tpu.memory_space<vmem>>, vector<1x2x32xf32>,
    %c4 = arith.constant 4 : index
    %c0_115 = arith.constant 0 : index
    %c0_116 = arith.constant 0 : index
    %273 = vector.load %arg0[%c4, %c0_115, %c0_116] : memref<8x2x32xf32, #tpu.memory_space<vmem>>, vector<1x2x32xf32>
    %274 = vector.shape_cast %273 : vector<1x2x32xf32> to vector<2x32xf32>
    %cst_117 = arith.constant dense<0.000000e+00> : vector<2x32xf32>
    %275 = tpu.matmul %274, %2, %cst_117 {dimension_numbers = #tpu.dot_dimension_numbers<[1], [0], [0], [1], [0, 0, 1, 1], [], []>} : vector<2x32xf32>, vector<32x32xf32>, vector<2x32xf32> -> vector<2x32xf32>
    %cst_118 = arith.constant dense<0.000000e+00> : vector<2x32xf32>
    %276 = tpu.matmul %259, %10, %cst_118 {dimension_numbers = #tpu.dot_dimension_numbers<[1], [0], [0], [1], [0, 0, 1, 1], [], []>} : vector<2x32xf32>, vector<32x32xf32>, vector<2x32xf32> -> vector<2x32xf32>
    %277 = arith.addf %275, %276 : vector<2x32xf32>
    %278 = vector.broadcast %18 : vector<1x32xf32> to vector<2x32xf32>
    %279 = arith.addf %277, %278 : vector<2x32xf32>
    %280 = arith.negf %279 : vector<2x32xf32>
    %281 = math.exp %280 : vector<2x32xf32>
    %cst_119 = arith.constant 1.000000e+00 : f32
    %282 = vector.broadcast %cst_119 : f32 to vector<2x32xf32>
    %283 = arith.addf %282, %281 : vector<2x32xf32>
    %284 = arith.divf %282, %283 : vector<2x32xf32>
    %cst_120 = arith.constant dense<0.000000e+00> : vector<2x32xf32>
    %285 = tpu.matmul %274, %4, %cst_120 {dimension_numbers = #tpu.dot_dimension_numbers<[1], [0], [0], [1], [0, 0, 1, 1], [], []>} : vector<2x32xf32>, vector<32x32xf32>, vector<2x32xf32> -> vector<2x32xf32>
    %cst_121 = arith.constant dense<0.000000e+00> : vector<2x32xf32>
    %286 = tpu.matmul %259, %12, %cst_121 {dimension_numbers = #tpu.dot_dimension_numbers<[1], [0], [0], [1], [0, 0, 1, 1], [], []>} : vector<2x32xf32>, vector<32x32xf32>, vector<2x32xf32> -> vector<2x32xf32>
    %287 = arith.addf %285, %286 : vector<2x32xf32>
    %288 = vector.broadcast %20 : vector<1x32xf32> to vector<2x32xf32>
    %289 = arith.addf %287, %288 : vector<2x32xf32>
    %290 = arith.negf %289 : vector<2x32xf32>
    %291 = math.exp %290 : vector<2x32xf32>
    %cst_122 = arith.constant 1.000000e+00 : f32
    %292 = vector.broadcast %cst_122 : f32 to vector<2x32xf32>
    %293 = arith.addf %292, %291 : vector<2x32xf32>
    %294 = arith.divf %292, %293 : vector<2x32xf32>
    %cst_123 = arith.constant dense<0.000000e+00> : vector<2x32xf32>
    %295 = tpu.matmul %274, %6, %cst_123 {dimension_numbers = #tpu.dot_dimension_numbers<[1], [0], [0], [1], [0, 0, 1, 1], [], []>} : vector<2x32xf32>, vector<32x32xf32>, vector<2x32xf32> -> vector<2x32xf32>
    %cst_124 = arith.constant dense<0.000000e+00> : vector<2x32xf32>
    %296 = tpu.matmul %259, %14, %cst_124 {dimension_numbers = #tpu.dot_dimension_numbers<[1], [0], [0], [1], [0, 0, 1, 1], [], []>} : vector<2x32xf32>, vector<32x32xf32>, vector<2x32xf32> -> vector<2x32xf32>
    %297 = arith.addf %295, %296 : vector<2x32xf32>
    %298 = vector.broadcast %22 : vector<1x32xf32> to vector<2x32xf32>
    %299 = arith.addf %297, %298 : vector<2x32xf32>
    %300 = math.tanh %299 : vector<2x32xf32>
    %cst_125 = arith.constant dense<0.000000e+00> : vector<2x32xf32>
    %301 = tpu.matmul %274, %8, %cst_125 {dimension_numbers = #tpu.dot_dimension_numbers<[1], [0], [0], [1], [0, 0, 1, 1], [], []>} : vector<2x32xf32>, vector<32x32xf32>, vector<2x32xf32> -> vector<2x32xf32>
    %cst_126 = arith.constant dense<0.000000e+00> : vector<2x32xf32>
    %302 = tpu.matmul %259, %16, %cst_126 {dimension_numbers = #tpu.dot_dimension_numbers<[1], [0], [0], [1], [0, 0, 1, 1], [], []>} : vector<2x32xf32>, vector<32x32xf32>, vector<2x32xf32> -> vector<2x32xf32>
    %303 = arith.addf %301, %302 : vector<2x32xf32>
    %304 = vector.broadcast %24 : vector<1x32xf32> to vector<2x32xf32>
    %305 = arith.addf %303, %304 : vector<2x32xf32>
    %306 = arith.negf %305 : vector<2x32xf32>
    %307 = math.exp %306 : vector<2x32xf32>
    %cst_127 = arith.constant 1.000000e+00 : f32
    %308 = vector.broadcast %cst_127 : f32 to vector<2x32xf32>
    %309 = arith.addf %308, %307 : vector<2x32xf32>
    %310 = arith.divf %308, %309 : vector<2x32xf32>
    %311 = arith.mulf %294, %262 : vector<2x32xf32>
    %312 = arith.mulf %284, %300 : vector<2x32xf32>
    %313 = arith.addf %311, %312 : vector<2x32xf32>
    %314 = math.tanh %313 : vector<2x32xf32>
    %315 = arith.mulf %310, %314 : vector<2x32xf32>
    %c4_i32 = arith.constant 4 : i32
    %316 = vector.broadcast %c4_i32 : i32 to vector<2x1xi32>
    %317 = arith.cmpi sgt, %0, %316 : vector<2x1xi32>
    %318 = vector.shape_cast %317 : vector<2x1xi1> to vector<2x1xi1>
    %319 = vector.broadcast %318 : vector<2x1xi1> to vector<2x32xi1>
    %320 = arith.select %319, %315, %259 : vector<2x32xi1>, vector<2x32xf32>
    %321 = vector.shape_cast %317 : vector<2x1xi1> to vector<2x1xi1>
    %322 = vector.broadcast %321 : vector<2x1xi1> to vector<2x32xi1>
    %323 = arith.select %322, %313, %262 : vector<2x32xi1>, vector<2x32xf32>
    %cst_128 = arith.constant 0.000000e+00 : f32
    %324 = vector.shape_cast %317 : vector<2x1xi1> to vector<2x1xi1>
    %325 = vector.broadcast %324 : vector<2x1xi1> to vector<2x32xi1>
    %326 = vector.broadcast %cst_128 : f32 to vector<2x32xf32>
    %327 = arith.select %325, %315, %326 : vector<2x32xi1>, vector<2x32xf32>
    %cst_129 = arith.constant dense<0.000000e+00> : vector<2x32xf32>
    %328 = tpu.matmul %327, %25, %cst_129 {dimension_numbers = #tpu.dot_dimension_numbers<[1], [0], [0], [1], [0, 0, 1, 1], [], []>} : vector<2x32xf32>, vector<32x32xf32>, vector<2x32xf32> -> vector<2x32xf32>
    %329 = vector.broadcast %26 : vector<1x32xf32> to vector<2x32xf32>
    %330 = arith.addf %328, %329 : vector<2x32xf32>
    %c4_130 = arith.constant 4 : index
    %c0_131 = arith.constant 0 : index
    %c0_132 = arith.constant 0 : index
    %331 = vector.load %arg11[%c4_130, %c0_131, %c0_132] : memref<8x2x32xf32, #tpu.memory_space<vmem>>, vector<1x2x32xf32>
    %332 = vector.shape_cast %331 : vector<1x2x32xf32> to vector<2x32xf32>
    %333 = vector.shape_cast %330 : vector<2x32xf32> to vector<1x2x32xf32>
    tpu.vector_store %arg11[%c4_130, %c0_131, %c0_132], %333 {strides = array<i32>} : memref<8x2x32xf32, #tpu.memory_space<vmem>>, vector<1x2x32xf32>,
    %c5 = arith.constant 5 : index
    %c0_133 = arith.constant 0 : index
    %c0_134 = arith.constant 0 : index
    %334 = vector.load %arg0[%c5, %c0_133, %c0_134] : memref<8x2x32xf32, #tpu.memory_space<vmem>>, vector<1x2x32xf32>
    %335 = vector.shape_cast %334 : vector<1x2x32xf32> to vector<2x32xf32>
    %cst_135 = arith.constant dense<0.000000e+00> : vector<2x32xf32>
    %336 = tpu.matmul %335, %2, %cst_135 {dimension_numbers = #tpu.dot_dimension_numbers<[1], [0], [0], [1], [0, 0, 1, 1], [], []>} : vector<2x32xf32>, vector<32x32xf32>, vector<2x32xf32> -> vector<2x32xf32>
    %cst_136 = arith.constant dense<0.000000e+00> : vector<2x32xf32>
    %337 = tpu.matmul %320, %10, %cst_136 {dimension_numbers = #tpu.dot_dimension_numbers<[1], [0], [0], [1], [0, 0, 1, 1], [], []>} : vector<2x32xf32>, vector<32x32xf32>, vector<2x32xf32> -> vector<2x32xf32>
    %338 = arith.addf %336, %337 : vector<2x32xf32>
    %339 = vector.broadcast %18 : vector<1x32xf32> to vector<2x32xf32>
    %340 = arith.addf %338, %339 : vector<2x32xf32>
    %341 = arith.negf %340 : vector<2x32xf32>
    %342 = math.exp %341 : vector<2x32xf32>
    %cst_137 = arith.constant 1.000000e+00 : f32
    %343 = vector.broadcast %cst_137 : f32 to vector<2x32xf32>
    %344 = arith.addf %343, %342 : vector<2x32xf32>
    %345 = arith.divf %343, %344 : vector<2x32xf32>
    %cst_138 = arith.constant dense<0.000000e+00> : vector<2x32xf32>
    %346 = tpu.matmul %335, %4, %cst_138 {dimension_numbers = #tpu.dot_dimension_numbers<[1], [0], [0], [1], [0, 0, 1, 1], [], []>} : vector<2x32xf32>, vector<32x32xf32>, vector<2x32xf32> -> vector<2x32xf32>
    %cst_139 = arith.constant dense<0.000000e+00> : vector<2x32xf32>
    %347 = tpu.matmul %320, %12, %cst_139 {dimension_numbers = #tpu.dot_dimension_numbers<[1], [0], [0], [1], [0, 0, 1, 1], [], []>} : vector<2x32xf32>, vector<32x32xf32>, vector<2x32xf32> -> vector<2x32xf32>
    %348 = arith.addf %346, %347 : vector<2x32xf32>
    %349 = vector.broadcast %20 : vector<1x32xf32> to vector<2x32xf32>
    %350 = arith.addf %348, %349 : vector<2x32xf32>
    %351 = arith.negf %350 : vector<2x32xf32>
    %352 = math.exp %351 : vector<2x32xf32>
    %cst_140 = arith.constant 1.000000e+00 : f32
    %353 = vector.broadcast %cst_140 : f32 to vector<2x32xf32>
    %354 = arith.addf %353, %352 : vector<2x32xf32>
    %355 = arith.divf %353, %354 : vector<2x32xf32>
    %cst_141 = arith.constant dense<0.000000e+00> : vector<2x32xf32>
    %356 = tpu.matmul %335, %6, %cst_141 {dimension_numbers = #tpu.dot_dimension_numbers<[1], [0], [0], [1], [0, 0, 1, 1], [], []>} : vector<2x32xf32>, vector<32x32xf32>, vector<2x32xf32> -> vector<2x32xf32>
    %cst_142 = arith.constant dense<0.000000e+00> : vector<2x32xf32>
    %357 = tpu.matmul %320, %14, %cst_142 {dimension_numbers = #tpu.dot_dimension_numbers<[1], [0], [0], [1], [0, 0, 1, 1], [], []>} : vector<2x32xf32>, vector<32x32xf32>, vector<2x32xf32> -> vector<2x32xf32>
    %358 = arith.addf %356, %357 : vector<2x32xf32>
    %359 = vector.broadcast %22 : vector<1x32xf32> to vector<2x32xf32>
    %360 = arith.addf %358, %359 : vector<2x32xf32>
    %361 = math.tanh %360 : vector<2x32xf32>
    %cst_143 = arith.constant dense<0.000000e+00> : vector<2x32xf32>
    %362 = tpu.matmul %335, %8, %cst_143 {dimension_numbers = #tpu.dot_dimension_numbers<[1], [0], [0], [1], [0, 0, 1, 1], [], []>} : vector<2x32xf32>, vector<32x32xf32>, vector<2x32xf32> -> vector<2x32xf32>
    %cst_144 = arith.constant dense<0.000000e+00> : vector<2x32xf32>
    %363 = tpu.matmul %320, %16, %cst_144 {dimension_numbers = #tpu.dot_dimension_numbers<[1], [0], [0], [1], [0, 0, 1, 1], [], []>} : vector<2x32xf32>, vector<32x32xf32>, vector<2x32xf32> -> vector<2x32xf32>
    %364 = arith.addf %362, %363 : vector<2x32xf32>
    %365 = vector.broadcast %24 : vector<1x32xf32> to vector<2x32xf32>
    %366 = arith.addf %364, %365 : vector<2x32xf32>
    %367 = arith.negf %366 : vector<2x32xf32>
    %368 = math.exp %367 : vector<2x32xf32>
    %cst_145 = arith.constant 1.000000e+00 : f32
    %369 = vector.broadcast %cst_145 : f32 to vector<2x32xf32>
    %370 = arith.addf %369, %368 : vector<2x32xf32>
    %371 = arith.divf %369, %370 : vector<2x32xf32>
    %372 = arith.mulf %355, %323 : vector<2x32xf32>
    %373 = arith.mulf %345, %361 : vector<2x32xf32>
    %374 = arith.addf %372, %373 : vector<2x32xf32>
    %375 = math.tanh %374 : vector<2x32xf32>
    %376 = arith.mulf %371, %375 : vector<2x32xf32>
    %c5_i32 = arith.constant 5 : i32
    %377 = vector.broadcast %c5_i32 : i32 to vector<2x1xi32>
    %378 = arith.cmpi sgt, %0, %377 : vector<2x1xi32>
    %379 = vector.shape_cast %378 : vector<2x1xi1> to vector<2x1xi1>
    %380 = vector.broadcast %379 : vector<2x1xi1> to vector<2x32xi1>
    %381 = arith.select %380, %376, %320 : vector<2x32xi1>, vector<2x32xf32>
    %382 = vector.shape_cast %378 : vector<2x1xi1> to vector<2x1xi1>
    %383 = vector.broadcast %382 : vector<2x1xi1> to vector<2x32xi1>
    %384 = arith.select %383, %374, %323 : vector<2x32xi1>, vector<2x32xf32>
    %cst_146 = arith.constant 0.000000e+00 : f32
    %385 = vector.shape_cast %378 : vector<2x1xi1> to vector<2x1xi1>
    %386 = vector.broadcast %385 : vector<2x1xi1> to vector<2x32xi1>
    %387 = vector.broadcast %cst_146 : f32 to vector<2x32xf32>
    %388 = arith.select %386, %376, %387 : vector<2x32xi1>, vector<2x32xf32>
    %cst_147 = arith.constant dense<0.000000e+00> : vector<2x32xf32>
    %389 = tpu.matmul %388, %25, %cst_147 {dimension_numbers = #tpu.dot_dimension_numbers<[1], [0], [0], [1], [0, 0, 1, 1], [], []>} : vector<2x32xf32>, vector<32x32xf32>, vector<2x32xf32> -> vector<2x32xf32>
    %390 = vector.broadcast %26 : vector<1x32xf32> to vector<2x32xf32>
    %391 = arith.addf %389, %390 : vector<2x32xf32>
    %c5_148 = arith.constant 5 : index
    %c0_149 = arith.constant 0 : index
    %c0_150 = arith.constant 0 : index
    %392 = vector.load %arg11[%c5_148, %c0_149, %c0_150] : memref<8x2x32xf32, #tpu.memory_space<vmem>>, vector<1x2x32xf32>
    %393 = vector.shape_cast %392 : vector<1x2x32xf32> to vector<2x32xf32>
    %394 = vector.shape_cast %391 : vector<2x32xf32> to vector<1x2x32xf32>
    tpu.vector_store %arg11[%c5_148, %c0_149, %c0_150], %394 {strides = array<i32>} : memref<8x2x32xf32, #tpu.memory_space<vmem>>, vector<1x2x32xf32>,
    %c6 = arith.constant 6 : index
    %c0_151 = arith.constant 0 : index
    %c0_152 = arith.constant 0 : index
    %395 = vector.load %arg0[%c6, %c0_151, %c0_152] : memref<8x2x32xf32, #tpu.memory_space<vmem>>, vector<1x2x32xf32>
    %396 = vector.shape_cast %395 : vector<1x2x32xf32> to vector<2x32xf32>
    %cst_153 = arith.constant dense<0.000000e+00> : vector<2x32xf32>
    %397 = tpu.matmul %396, %2, %cst_153 {dimension_numbers = #tpu.dot_dimension_numbers<[1], [0], [0], [1], [0, 0, 1, 1], [], []>} : vector<2x32xf32>, vector<32x32xf32>, vector<2x32xf32> -> vector<2x32xf32>
    %cst_154 = arith.constant dense<0.000000e+00> : vector<2x32xf32>
    %398 = tpu.matmul %381, %10, %cst_154 {dimension_numbers = #tpu.dot_dimension_numbers<[1], [0], [0], [1], [0, 0, 1, 1], [], []>} : vector<2x32xf32>, vector<32x32xf32>, vector<2x32xf32> -> vector<2x32xf32>
    %399 = arith.addf %397, %398 : vector<2x32xf32>
    %400 = vector.broadcast %18 : vector<1x32xf32> to vector<2x32xf32>
    %401 = arith.addf %399, %400 : vector<2x32xf32>
    %402 = arith.negf %401 : vector<2x32xf32>
    %403 = math.exp %402 : vector<2x32xf32>
    %cst_155 = arith.constant 1.000000e+00 : f32
    %404 = vector.broadcast %cst_155 : f32 to vector<2x32xf32>
    %405 = arith.addf %404, %403 : vector<2x32xf32>
    %406 = arith.divf %404, %405 : vector<2x32xf32>
    %cst_156 = arith.constant dense<0.000000e+00> : vector<2x32xf32>
    %407 = tpu.matmul %396, %4, %cst_156 {dimension_numbers = #tpu.dot_dimension_numbers<[1], [0], [0], [1], [0, 0, 1, 1], [], []>} : vector<2x32xf32>, vector<32x32xf32>, vector<2x32xf32> -> vector<2x32xf32>
    %cst_157 = arith.constant dense<0.000000e+00> : vector<2x32xf32>
    %408 = tpu.matmul %381, %12, %cst_157 {dimension_numbers = #tpu.dot_dimension_numbers<[1], [0], [0], [1], [0, 0, 1, 1], [], []>} : vector<2x32xf32>, vector<32x32xf32>, vector<2x32xf32> -> vector<2x32xf32>
    %409 = arith.addf %407, %408 : vector<2x32xf32>
    %410 = vector.broadcast %20 : vector<1x32xf32> to vector<2x32xf32>
    %411 = arith.addf %409, %410 : vector<2x32xf32>
    %412 = arith.negf %411 : vector<2x32xf32>
    %413 = math.exp %412 : vector<2x32xf32>
    %cst_158 = arith.constant 1.000000e+00 : f32
    %414 = vector.broadcast %cst_158 : f32 to vector<2x32xf32>
    %415 = arith.addf %414, %413 : vector<2x32xf32>
    %416 = arith.divf %414, %415 : vector<2x32xf32>
    %cst_159 = arith.constant dense<0.000000e+00> : vector<2x32xf32>
    %417 = tpu.matmul %396, %6, %cst_159 {dimension_numbers = #tpu.dot_dimension_numbers<[1], [0], [0], [1], [0, 0, 1, 1], [], []>} : vector<2x32xf32>, vector<32x32xf32>, vector<2x32xf32> -> vector<2x32xf32>
    %cst_160 = arith.constant dense<0.000000e+00> : vector<2x32xf32>
    %418 = tpu.matmul %381, %14, %cst_160 {dimension_numbers = #tpu.dot_dimension_numbers<[1], [0], [0], [1], [0, 0, 1, 1], [], []>} : vector<2x32xf32>, vector<32x32xf32>, vector<2x32xf32> -> vector<2x32xf32>
    %419 = arith.addf %417, %418 : vector<2x32xf32>
    %420 = vector.broadcast %22 : vector<1x32xf32> to vector<2x32xf32>
    %421 = arith.addf %419, %420 : vector<2x32xf32>
    %422 = math.tanh %421 : vector<2x32xf32>
    %cst_161 = arith.constant dense<0.000000e+00> : vector<2x32xf32>
    %423 = tpu.matmul %396, %8, %cst_161 {dimension_numbers = #tpu.dot_dimension_numbers<[1], [0], [0], [1], [0, 0, 1, 1], [], []>} : vector<2x32xf32>, vector<32x32xf32>, vector<2x32xf32> -> vector<2x32xf32>
    %cst_162 = arith.constant dense<0.000000e+00> : vector<2x32xf32>
    %424 = tpu.matmul %381, %16, %cst_162 {dimension_numbers = #tpu.dot_dimension_numbers<[1], [0], [0], [1], [0, 0, 1, 1], [], []>} : vector<2x32xf32>, vector<32x32xf32>, vector<2x32xf32> -> vector<2x32xf32>
    %425 = arith.addf %423, %424 : vector<2x32xf32>
    %426 = vector.broadcast %24 : vector<1x32xf32> to vector<2x32xf32>
    %427 = arith.addf %425, %426 : vector<2x32xf32>
    %428 = arith.negf %427 : vector<2x32xf32>
    %429 = math.exp %428 : vector<2x32xf32>
    %cst_163 = arith.constant 1.000000e+00 : f32
    %430 = vector.broadcast %cst_163 : f32 to vector<2x32xf32>
    %431 = arith.addf %430, %429 : vector<2x32xf32>
    %432 = arith.divf %430, %431 : vector<2x32xf32>
    %433 = arith.mulf %416, %384 : vector<2x32xf32>
    %434 = arith.mulf %406, %422 : vector<2x32xf32>
    %435 = arith.addf %433, %434 : vector<2x32xf32>
    %436 = math.tanh %435 : vector<2x32xf32>
    %437 = arith.mulf %432, %436 : vector<2x32xf32>
    %c6_i32 = arith.constant 6 : i32
    %438 = vector.broadcast %c6_i32 : i32 to vector<2x1xi32>
    %439 = arith.cmpi sgt, %0, %438 : vector<2x1xi32>
    %440 = vector.shape_cast %439 : vector<2x1xi1> to vector<2x1xi1>
    %441 = vector.broadcast %440 : vector<2x1xi1> to vector<2x32xi1>
    %442 = arith.select %441, %437, %381 : vector<2x32xi1>, vector<2x32xf32>
    %443 = vector.shape_cast %439 : vector<2x1xi1> to vector<2x1xi1>
    %444 = vector.broadcast %443 : vector<2x1xi1> to vector<2x32xi1>
    %445 = arith.select %444, %435, %384 : vector<2x32xi1>, vector<2x32xf32>
    %cst_164 = arith.constant 0.000000e+00 : f32
    %446 = vector.shape_cast %439 : vector<2x1xi1> to vector<2x1xi1>
    %447 = vector.broadcast %446 : vector<2x1xi1> to vector<2x32xi1>
    %448 = vector.broadcast %cst_164 : f32 to vector<2x32xf32>
    %449 = arith.select %447, %437, %448 : vector<2x32xi1>, vector<2x32xf32>
    %cst_165 = arith.constant dense<0.000000e+00> : vector<2x32xf32>
    %450 = tpu.matmul %449, %25, %cst_165 {dimension_numbers = #tpu.dot_dimension_numbers<[1], [0], [0], [1], [0, 0, 1, 1], [], []>} : vector<2x32xf32>, vector<32x32xf32>, vector<2x32xf32> -> vector<2x32xf32>
    %451 = vector.broadcast %26 : vector<1x32xf32> to vector<2x32xf32>
    %452 = arith.addf %450, %451 : vector<2x32xf32>
    %c6_166 = arith.constant 6 : index
    %c0_167 = arith.constant 0 : index
    %c0_168 = arith.constant 0 : index
    %453 = vector.load %arg11[%c6_166, %c0_167, %c0_168] : memref<8x2x32xf32, #tpu.memory_space<vmem>>, vector<1x2x32xf32>
    %454 = vector.shape_cast %453 : vector<1x2x32xf32> to vector<2x32xf32>
    %455 = vector.shape_cast %452 : vector<2x32xf32> to vector<1x2x32xf32>
    tpu.vector_store %arg11[%c6_166, %c0_167, %c0_168], %455 {strides = array<i32>} : memref<8x2x32xf32, #tpu.memory_space<vmem>>, vector<1x2x32xf32>,
    %c7 = arith.constant 7 : index
    %c0_169 = arith.constant 0 : index
    %c0_170 = arith.constant 0 : index
    %456 = vector.load %arg0[%c7, %c0_169, %c0_170] : memref<8x2x32xf32, #tpu.memory_space<vmem>>, vector<1x2x32xf32>
    %457 = vector.shape_cast %456 : vector<1x2x32xf32> to vector<2x32xf32>
    %cst_171 = arith.constant dense<0.000000e+00> : vector<2x32xf32>
    %458 = tpu.matmul %457, %2, %cst_171 {dimension_numbers = #tpu.dot_dimension_numbers<[1], [0], [0], [1], [0, 0, 1, 1], [], []>} : vector<2x32xf32>, vector<32x32xf32>, vector<2x32xf32> -> vector<2x32xf32>
    %cst_172 = arith.constant dense<0.000000e+00> : vector<2x32xf32>
    %459 = tpu.matmul %442, %10, %cst_172 {dimension_numbers = #tpu.dot_dimension_numbers<[1], [0], [0], [1], [0, 0, 1, 1], [], []>} : vector<2x32xf32>, vector<32x32xf32>, vector<2x32xf32> -> vector<2x32xf32>
    %460 = arith.addf %458, %459 : vector<2x32xf32>
    %461 = vector.broadcast %18 : vector<1x32xf32> to vector<2x32xf32>
    %462 = arith.addf %460, %461 : vector<2x32xf32>
    %463 = arith.negf %462 : vector<2x32xf32>
    %464 = math.exp %463 : vector<2x32xf32>
    %cst_173 = arith.constant 1.000000e+00 : f32
    %465 = vector.broadcast %cst_173 : f32 to vector<2x32xf32>
    %466 = arith.addf %465, %464 : vector<2x32xf32>
    %467 = arith.divf %465, %466 : vector<2x32xf32>
    %cst_174 = arith.constant dense<0.000000e+00> : vector<2x32xf32>
    %468 = tpu.matmul %457, %4, %cst_174 {dimension_numbers = #tpu.dot_dimension_numbers<[1], [0], [0], [1], [0, 0, 1, 1], [], []>} : vector<2x32xf32>, vector<32x32xf32>, vector<2x32xf32> -> vector<2x32xf32>
    %cst_175 = arith.constant dense<0.000000e+00> : vector<2x32xf32>
    %469 = tpu.matmul %442, %12, %cst_175 {dimension_numbers = #tpu.dot_dimension_numbers<[1], [0], [0], [1], [0, 0, 1, 1], [], []>} : vector<2x32xf32>, vector<32x32xf32>, vector<2x32xf32> -> vector<2x32xf32>
    %470 = arith.addf %468, %469 : vector<2x32xf32>
    %471 = vector.broadcast %20 : vector<1x32xf32> to vector<2x32xf32>
    %472 = arith.addf %470, %471 : vector<2x32xf32>
    %473 = arith.negf %472 : vector<2x32xf32>
    %474 = math.exp %473 : vector<2x32xf32>
    %cst_176 = arith.constant 1.000000e+00 : f32
    %475 = vector.broadcast %cst_176 : f32 to vector<2x32xf32>
    %476 = arith.addf %475, %474 : vector<2x32xf32>
    %477 = arith.divf %475, %476 : vector<2x32xf32>
    %cst_177 = arith.constant dense<0.000000e+00> : vector<2x32xf32>
    %478 = tpu.matmul %457, %6, %cst_177 {dimension_numbers = #tpu.dot_dimension_numbers<[1], [0], [0], [1], [0, 0, 1, 1], [], []>} : vector<2x32xf32>, vector<32x32xf32>, vector<2x32xf32> -> vector<2x32xf32>
    %cst_178 = arith.constant dense<0.000000e+00> : vector<2x32xf32>
    %479 = tpu.matmul %442, %14, %cst_178 {dimension_numbers = #tpu.dot_dimension_numbers<[1], [0], [0], [1], [0, 0, 1, 1], [], []>} : vector<2x32xf32>, vector<32x32xf32>, vector<2x32xf32> -> vector<2x32xf32>
    %480 = arith.addf %478, %479 : vector<2x32xf32>
    %481 = vector.broadcast %22 : vector<1x32xf32> to vector<2x32xf32>
    %482 = arith.addf %480, %481 : vector<2x32xf32>
    %483 = math.tanh %482 : vector<2x32xf32>
    %cst_179 = arith.constant dense<0.000000e+00> : vector<2x32xf32>
    %484 = tpu.matmul %457, %8, %cst_179 {dimension_numbers = #tpu.dot_dimension_numbers<[1], [0], [0], [1], [0, 0, 1, 1], [], []>} : vector<2x32xf32>, vector<32x32xf32>, vector<2x32xf32> -> vector<2x32xf32>
    %cst_180 = arith.constant dense<0.000000e+00> : vector<2x32xf32>
    %485 = tpu.matmul %442, %16, %cst_180 {dimension_numbers = #tpu.dot_dimension_numbers<[1], [0], [0], [1], [0, 0, 1, 1], [], []>} : vector<2x32xf32>, vector<32x32xf32>, vector<2x32xf32> -> vector<2x32xf32>
    %486 = arith.addf %484, %485 : vector<2x32xf32>
    %487 = vector.broadcast %24 : vector<1x32xf32> to vector<2x32xf32>
    %488 = arith.addf %486, %487 : vector<2x32xf32>
    %489 = arith.negf %488 : vector<2x32xf32>
    %490 = math.exp %489 : vector<2x32xf32>
    %cst_181 = arith.constant 1.000000e+00 : f32
    %491 = vector.broadcast %cst_181 : f32 to vector<2x32xf32>
    %492 = arith.addf %491, %490 : vector<2x32xf32>
    %493 = arith.divf %491, %492 : vector<2x32xf32>
    %494 = arith.mulf %477, %445 : vector<2x32xf32>
    %495 = arith.mulf %467, %483 : vector<2x32xf32>
    %496 = arith.addf %494, %495 : vector<2x32xf32>
    %497 = math.tanh %496 : vector<2x32xf32>
    %498 = arith.mulf %493, %497 : vector<2x32xf32>
    %c7_i32 = arith.constant 7 : i32
    %499 = vector.broadcast %c7_i32 : i32 to vector<2x1xi32>
    %500 = arith.cmpi sgt, %0, %499 : vector<2x1xi32>
    %501 = vector.shape_cast %500 : vector<2x1xi1> to vector<2x1xi1>
    %502 = vector.broadcast %501 : vector<2x1xi1> to vector<2x32xi1>
    %503 = arith.select %502, %498, %442 : vector<2x32xi1>, vector<2x32xf32>
    %504 = vector.shape_cast %500 : vector<2x1xi1> to vector<2x1xi1>
    %505 = vector.broadcast %504 : vector<2x1xi1> to vector<2x32xi1>
    %506 = arith.select %505, %496, %445 : vector<2x32xi1>, vector<2x32xf32>
    %cst_182 = arith.constant 0.000000e+00 : f32
    %507 = vector.shape_cast %500 : vector<2x1xi1> to vector<2x1xi1>
    %508 = vector.broadcast %507 : vector<2x1xi1> to vector<2x32xi1>
    %509 = vector.broadcast %cst_182 : f32 to vector<2x32xf32>
    %510 = arith.select %508, %498, %509 : vector<2x32xi1>, vector<2x32xf32>
    %cst_183 = arith.constant dense<0.000000e+00> : vector<2x32xf32>
    %511 = tpu.matmul %510, %25, %cst_183 {dimension_numbers = #tpu.dot_dimension_numbers<[1], [0], [0], [1], [0, 0, 1, 1], [], []>} : vector<2x32xf32>, vector<32x32xf32>, vector<2x32xf32> -> vector<2x32xf32>
    %512 = vector.broadcast %26 : vector<1x32xf32> to vector<2x32xf32>
    %513 = arith.addf %511, %512 : vector<2x32xf32>
    %c7_184 = arith.constant 7 : index
    %c0_185 = arith.constant 0 : index
    %c0_186 = arith.constant 0 : index
    %514 = vector.load %arg11[%c7_184, %c0_185, %c0_186] : memref<8x2x32xf32, #tpu.memory_space<vmem>>, vector<1x2x32xf32>
    %515 = vector.shape_cast %514 : vector<1x2x32xf32> to vector<2x32xf32>
    %516 = vector.shape_cast %513 : vector<2x32xf32> to vector<1x2x32xf32>
    tpu.vector_store %arg11[%c7_184, %c0_185, %c0_186], %516 {strides = array<i32>} : memref<8x2x32xf32, #tpu.memory_space<vmem>>, vector<1x2x32xf32>,
    %c0_187 = arith.constant 0 : index
    %c0_188 = arith.constant 0 : index
    %517 = vector.load %arg7[%c0_187, %c0_188] : memref<32x32xf32, #tpu.memory_space<vmem>>, vector<32x32xf32>
    %cst_189 = arith.constant dense<0.000000e+00> : vector<2x32xf32>
    %518 = tpu.matmul %503, %517, %cst_189 {dimension_numbers = #tpu.dot_dimension_numbers<[1], [0], [0], [1], [0, 0, 1, 1], [], []>} : vector<2x32xf32>, vector<32x32xf32>, vector<2x32xf32> -> vector<2x32xf32>
    %c0_190 = arith.constant 0 : index
    %c0_191 = arith.constant 0 : index
    %519 = vector.load %arg8[%c0_190, %c0_191] : memref<1x32xf32, #tpu.memory_space<vmem>>, vector<1x32xf32>
    %520 = vector.broadcast %519 : vector<1x32xf32> to vector<2x32xf32>
    %521 = arith.addf %518, %520 : vector<2x32xf32>
    %c0_192 = arith.constant 0 : index
    %c0_193 = arith.constant 0 : index
    %522 = vector.load %arg12[%c0_192, %c0_193] : memref<2x32xf32, #tpu.memory_space<vmem>>, vector<2x32xf32>
    tpu.vector_store %arg12[%c0_192, %c0_193], %521 {strides = array<i32>} : memref<2x32xf32, #tpu.memory_space<vmem>>, vector<2x32xf32>,
    %c0_194 = arith.constant 0 : index
    %c0_195 = arith.constant 0 : index
    %523 = vector.load %arg9[%c0_194, %c0_195] : memref<32x32xf32, #tpu.memory_space<vmem>>, vector<32x32xf32>
    %cst_196 = arith.constant dense<0.000000e+00> : vector<2x32xf32>
    %524 = tpu.matmul %506, %523, %cst_196 {dimension_numbers = #tpu.dot_dimension_numbers<[1], [0], [0], [1], [0, 0, 1, 1], [], []>} : vector<2x32xf32>, vector<32x32xf32>, vector<2x32xf32> -> vector<2x32xf32>
    %c0_197 = arith.constant 0 : index
    %c0_198 = arith.constant 0 : index
    %525 = vector.load %arg10[%c0_197, %c0_198] : memref<1x32xf32, #tpu.memory_space<vmem>>, vector<1x32xf32>
    %526 = vector.broadcast %525 : vector<1x32xf32> to vector<2x32xf32>
    %527 = arith.addf %524, %526 : vector<2x32xf32>
    %c0_199 = arith.constant 0 : index
    %c0_200 = arith.constant 0 : index
    %528 = vector.load %arg13[%c0_199, %c0_200] : memref<2x32xf32, #tpu.memory_space<vmem>>, vector<2x32xf32>
    tpu.vector_store %arg13[%c0_199, %c0_200], %527 {strides = array<i32>} : memref<2x32xf32, #tpu.memory_space<vmem>>, vector<2x32xf32>,
    return
  }
}

</mosaic_0001>

<bundles_post_ra>
// kernel: seq_model_forward.2
= control target key start
LH: loop header
LB: loop body
LE: loop exit
PB: predicated region body
PF: predicated region fallthrough
CT: control target
= control target key end

     0   :  { %v7649_v0 = vmov 0.0|0.0   ;;  %vm7650_vm0 = vmmov 0   ;;  %v7651_v8 = vmov 0.0   ;;  %v7652_v12 = vmov 0   ;;  %s8672_s3 = inlined_call_operand.vmem [shape: f32[4,32,32], index: 3, kind: input, shape index: {}]   ;;  %s8673_s2 = inlined_call_operand.vmem [shape: f32[4,32,32], index: 2, kind: input, shape index: {}]   ;;  %s8674_s0 = inlined_call_operand.vmem [shape: f32[8,2,32], index: 0, kind: input, shape index: {}]   ;;  %s8675_s1 = inlined_call_operand.vmem [shape: s32[2,1], index: 1, kind: input, shape index: {}]   ;;  %s8676_s5 = inlined_call_operand.vmem [shape: f32[32,32], index: 5, kind: input, shape index: {}]   ;;  %s8677_s4 = inlined_call_operand.vmem [shape: f32[4,1,32], index: 4, kind: input, shape index: {}]   ;;  %s8678_s6 = inlined_call_operand.vmem [shape: f32[1,32], index: 6, kind: input, shape index: {}]   ;;  %s8679_s11 = inlined_call_operand.vmem [shape: f32[8,2,32], index: 11, kind: output, shape index: {0}]   ;;  %s8680_s7 = inlined_call_operand.vmem [shape: f32[32,32], index: 7, kind: input, shape index: {}]   ;;  %s8681_s9 = inlined_call_operand.vmem [shape: f32[32,32], index: 9, kind: input, shape index: {}]   ;;  %s8682_s8 = inlined_call_operand.vmem [shape: f32[1,32], index: 8, kind: input, shape index: {}]   ;;  %s8683_s12 = inlined_call_operand.vmem [shape: f32[2,32], index: 12, kind: output, shape index: {1}]   ;;  %s8684_s10 = inlined_call_operand.vmem [shape: f32[1,32], index: 10, kind: input, shape index: {}]   ;;  %s8685_s13 = inlined_call_operand.vmem [shape: f32[2,32], index: 13, kind: output, shape index: {2}]  }
   0x1   :  { %7066 = vmatprep.subr.bf16.mxu0 %v7649_v0  ;;  %7072 = vmatprep.subr.bf16.mxu1 %v7649_v0  ;;  %v61_v1 = vld [vmem:[%s8672_s3] sm:$0xff]  ;;  %v62_v2 = vld [vmem:[%s8672_s3 + $0x8] sm:$0xff]  ;;  %v63_v6 = vld [vmem:[%s8672_s3 + $0x10] sm:$0xff]  ;;  %vm93_vm1 = vcmask 261120   ;;  %vm799_vm11 = vcmask 254976  }
   0x2   :  { %v42_v3 = vld [vmem:[%s8673_s2] sm:$0xff]  ;;  %v7734_v4 = vpack.c.bf16 %v62_v2, %v61_v1  ;;  %v43_v5 = vld [vmem:[%s8673_s2 + $0x8] sm:$0xff]  ;;  %v64_v7 = vld [vmem:[%s8672_s3 + $0x18] sm:$0xff]  ;;  %6260 = vmatprep.mubr.msk.f32.mxu0 %vm7650_vm0, %v7651_v8  ;;  %6271 = vmatprep.mubr.msk.f32.mxu1 %vm7650_vm0, %v7651_v8 }
   0x3   :  { %v7749_v9 = vpack.c.bf16 %v43_v5, %v42_v3  ;;  %v44_v10 = vld [vmem:[%s8673_s2 + $0x10] sm:$0xff]  ;;  %v45_v11 = vld [vmem:[%s8673_s2 + $0x18] sm:$0xff]  ;;  %7514 = vset.pattern.permute.xlu0 %v7652_v12  ;;  %7515 = vset.pattern.permute.xlu1 %v7652_v12  ;;  %v7760_v13 = vpack.c.bf16 %v64_v7, %v63_v6  ;;  %v5752_v15 = vld [vmem:[%s8672_s3 + $0x20] sm:$0xff] }
   0x4   :  { %7068 = vmatpush3.bf16.msra.mxu0 %v7734_v4  ;;  %v7764_v14 = vpack.c.bf16 %v45_v11, %v44_v10  ;;  %v5753_v16 = vld [vmem:[%s8672_s3 + $0x28] sm:$0xff]  ;;  %v5740_v17 = vld [vmem:[%s8673_s2 + $0x20] sm:$0xff]  ;;  %v5754_v22 = vld [vmem:[%s8672_s3 + $0x30] sm:$0xff] }
   0x5   :  { %7074 = vmatpush3.bf16.msra.mxu1 %v7749_v9  ;;  %7069 = vmatprep.subr.bf16.mxu0 %v7649_v0  ;;  %v5741_v18 = vld [vmem:[%s8673_s2 + $0x28] sm:$0xff]  ;;  %v7780_v19 = vpack.c.bf16 %v5753_v16, %v5752_v15  ;;  %v7786_v20 = vld [vmem:[%s8674_s0] sm:$0x3]  ;;  %v5755_v23 = vld [vmem:[%s8672_s3 + $0x38] sm:$0xff] }
   0x6   :  { %7075 = vmatprep.subr.bf16.mxu1 %v7649_v0  ;;  %v7789_v21 = vpack.c.bf16 %v5741_v18, %v5740_v17  ;;  %v5742_v24 = vld [vmem:[%s8673_s2 + $0x30] sm:$0xff]  ;;  %v5743_v25 = vld [vmem:[%s8673_s2 + $0x38] sm:$0xff]  ;;  %v7808_v26 = vpack.c.bf16 %v5755_v23, %v5754_v22  ;;  %v7813_v27 = vld [vmem:[%s8675_s1] sm:$0x3] }
   0x7   :  { %v7817_v28 = vpack.c.bf16 %v5743_v25, %v5742_v24  ;;  %v5756_v29 = vld [vmem:[%s8672_s3 + $0x40] sm:$0xff]  ;;  %v5757_v30 = vld [vmem:[%s8672_s3 + $0x48] sm:$0xff]  ;;  %vm712_vm2 = vcmp.gt.s32.totalorder %v7813_v27, 0  ;;  %vm1394_vm3 = vcmp.gt.s32.totalorder %v7813_v27, 1  ;;  %v5758_v37 = vld [vmem:[%s8672_s3 + $0x50] sm:$0xff]  ;;  %vm3434_vm4 = vcmp.gt.s32.totalorder %v7813_v27, 4 }
   0x8   :  { %7071 = vmatpush3.bf16.msra.mxu0 %v7760_v13  ;;  %v5744_v31 = vld [vmem:[%s8673_s2 + $0x40] sm:$0xff]  ;;  %v5745_v32 = vld [vmem:[%s8673_s2 + $0x48] sm:$0xff]  ;;  %v713_v33 = vsel %vm712_vm2, 1, %v7652_v12  ;;  %v7840_v34 = vpack.c.bf16 %v5757_v30, %v5756_v29  ;;  %v1395_v35 = vsel %vm1394_vm3, 1, %v7652_v12  ;;  %v5759_v38 = vld [vmem:[%s8672_s3 + $0x58] sm:$0xff]  ;;  %v3435_v42 = vsel %vm3434_vm4, 1, %v7652_v12 }
   0x9   :  { %7077 = vmatpush3.bf16.msra.mxu1 %v7764_v14  ;;  %7078 = vmatprep.subr.bf16.mxu0 %v7649_v0  ;;  %v7845_v36 = vpack.c.bf16 %v5745_v32, %v5744_v31  ;;  %v5746_v39 = vld [vmem:[%s8673_s2 + $0x50] sm:$0xff]  ;;  %v5747_v40 = vld [vmem:[%s8673_s2 + $0x58] sm:$0xff]  ;;  %v7865_v41 = vpack.c.bf16 %v5759_v38, %v5758_v37  ;;  %v5760_v44 = vld [vmem:[%s8672_s3 + $0x60] sm:$0xff]  ;;  %vm4794_vm5 = vcmp.gt.s32.totalorder %v7813_v27, 6  ;;  %vm2074_vm7 = vcmp.gt.s32.totalorder %v7813_v27, 2 }
   0xa   :  { %7084 = vmatprep.subr.bf16.mxu1 %v7649_v0  ;;  %715 = vperm.xlu0 %7514, %v713_v33   ;;  %v7870_v43 = vpack.c.bf16 %v5747_v40, %v5746_v39  ;;  %v5761_v45 = vld [vmem:[%s8672_s3 + $0x68] sm:$0xff]  ;;  %v5748_v46 = vld [vmem:[%s8673_s2 + $0x60] sm:$0xff]  ;;  %v4795_v49 = vsel %vm4794_vm5, 1, %v7652_v12  ;;  %v5762_v51 = vld [vmem:[%s8672_s3 + $0x70] sm:$0xff]  ;;  %vm2754_vm8 = vcmp.gt.s32.totalorder %v7813_v27, 3  ;;  %vm4114_vm9 = vcmp.gt.s32.totalorder %v7813_v27, 5 }
   0xb   :  { %6261 = vmatmul.mubr.f32.vlgmr.msra.gmra.mrb[0].mxu0 %v7651_v8  ;;  %v5749_v47 = vld [vmem:[%s8673_s2 + $0x68] sm:$0xff]  ;;  %v7891_v48 = vpack.c.bf16 %v5761_v45, %v5760_v44  ;;  %v5763_v52 = vld [vmem:[%s8672_s3 + $0x78] sm:$0xff]  ;;  %v5750_v53 = vld [vmem:[%s8673_s2 + $0x70] sm:$0xff]  ;;  %vm5474_vm10 = vcmp.gt.s32.totalorder %v7813_v27, 7 }
   0xc   :  { %6272 = vmatmul.mubr.msk.f32.vlgmr.msra.gmra.mrb[0].mxu1 %vm93_vm1, %v7786_v20  ;;  %7080 = vmatpush3.bf16.msra.mxu0 %v7780_v19  ;;  %v7896_v50 = vpack.c.bf16 %v5749_v47, %v5748_v46  ;;  %v5751_v54 = vld [vmem:[%s8673_s2 + $0x78] sm:$0xff]  ;;  %v7915_v55 = vpack.c.bf16 %v5763_v52, %v5762_v51  ;;  %v87_v57 = vld [vmem:[%s8676_s5] sm:$0xff]  ;;  %v88_v58 = vld [vmem:[%s8676_s5 + $0x8] sm:$0xff] }
   0xd   :  { %7086 = vmatpush3.bf16.msra.mxu1 %v7789_v21  ;;  %7081 = vmatprep.subr.bf16.mxu0 %v7649_v0  ;;  %v7919_v56 = vpack.c.bf16 %v5751_v54, %v5750_v53  ;;  %v7947_v59 = vpack.c.bf16 %v88_v58, %v87_v57  ;;  %v89_v60 = vld [vmem:[%s8676_s5 + $0x10] sm:$0xff]  ;;  %v90_v61 = vld [vmem:[%s8676_s5 + $0x18] sm:$0xff]  ;;  %v7964_v1 = vld [vmem:[%s8677_s4] ss:$0 sm:$0xff] }
   0xe   :  { %7087 = vmatprep.subr.bf16.mxu1 %v7649_v0  ;;  %6282 = vmatprep.mubr.msk.f32.mxu0 %vm7650_vm0, %v7651_v8  ;;  %v7957_v62 = vpack.c.bf16 %v90_v61, %v89_v60  ;;  %v7970_v15 = vld [vmem:[%s8677_s4 + $0x1] ss:$0 sm:$0xff]  ;;  %v7976_v25 = vld [vmem:[%s8677_s4 + $0x2] ss:$0 sm:$0xff]  ;;  %v7982_v39 = vld [vmem:[%s8677_s4 + $0x3] ss:$0 sm:$0xff] }
   0xf   :  { %6293 = vmatprep.mubr.msk.f32.mxu1 %vm7650_vm0, %v7651_v8  ;;  %1397 = vperm.xlu0 %7514, %v1395_v35  }
  0x10   :  { %7083 = vmatpush3.bf16.msra.mxu0 %v7808_v26 }
  0x11   :  { %7089 = vmatpush3.bf16.msra.mxu1 %v7817_v28  ;;  %7090 = vmatprep.subr.bf16.mxu0 %v7649_v0 }
  0x12   :  { %7096 = vmatprep.subr.bf16.mxu1 %v7649_v0 }
  0x13   :  { %6283 = vmatmul.mubr.f32.vlgmr.msra.gmra.mrb[2].mxu0 %v7651_v8  ;;  %3437 = vperm.xlu0 %7514, %v3435_v42  }
  0x14   :  { %6294 = vmatmul.mubr.msk.f32.vlgmr.msra.gmra.mrb[2].mxu1 %vm93_vm1, %v7786_v20  ;;  %7092 = vmatpush3.bf16.msra.mxu0 %v7840_v34 }
  0x15   :  { %7098 = vmatpush3.bf16.msra.mxu1 %v7845_v36  ;;  %7093 = vmatprep.subr.bf16.mxu0 %v7649_v0 }
  0x16   :  { %7099 = vmatprep.subr.bf16.mxu1 %v7649_v0  ;;  %6304 = vmatprep.mubr.msk.f32.mxu0 %vm7650_vm0, %v7651_v8 }
  0x17   :  { %6315 = vmatprep.mubr.msk.f32.mxu1 %vm7650_vm0, %v7651_v8  ;;  %4797 = vperm.xlu0 %7514, %v4795_v49  }
  0x18   :  { %7095 = vmatpush3.bf16.msra.mxu0 %v7865_v41 }
  0x19   :  { %7101 = vmatpush3.bf16.msra.mxu1 %v7870_v43  ;;  %7102 = vmatprep.subr.bf16.mxu0 %v7649_v0 }
  0x1a   :  { %7108 = vmatprep.subr.bf16.mxu1 %v7649_v0 }
  0x1b   :  { %6305 = vmatmul.mubr.f32.vlgmr.msra.gmra.mrb[4].mxu0 %v7651_v8 }
  0x1c   :  { %6316 = vmatmul.mubr.msk.f32.vlgmr.msra.gmra.mrb[4].mxu1 %vm93_vm1, %v7786_v20  ;;  %7104 = vmatpush3.bf16.msra.mxu0 %v7891_v48 }
  0x1d   :  { %7110 = vmatpush3.bf16.msra.mxu1 %v7896_v50  ;;  %7105 = vmatprep.subr.bf16.mxu0 %v7649_v0 }
  0x1e   :  { %7111 = vmatprep.subr.bf16.mxu1 %v7649_v0  ;;  %6326 = vmatprep.mubr.msk.f32.mxu0 %vm7650_vm0, %v7651_v8 }
  0x1f   :  { %6337 = vmatprep.mubr.msk.f32.mxu1 %vm7650_vm0, %v7651_v8 }
  0x20   :  { %7107 = vmatpush3.bf16.msra.mxu0 %v7915_v55 }
  0x21   :  { %7113 = vmatpush3.bf16.msra.mxu1 %v7919_v56  ;;  %7114 = vmatprep.subr.bf16.mxu0 %v7649_v0 }
  0x22   :  { %7120 = vmatprep.subr.bf16.mxu1 %v7649_v0 }
  0x23   :  { %6327 = vmatmul.mubr.f32.vlgmr.msra.gmra.mrb[6].mxu0 %v7651_v8 }
  0x24   :  { %6338 = vmatmul.mubr.msk.f32.vlgmr.msra.gmra.mrb[6].mxu1 %vm93_vm1, %v7786_v20  ;;  %6348 = vmatprep.mubr.msk.f32.mxu0 %vm7650_vm0, %v7651_v8 }
  0x25   :  { %7122 = vmatpush3.bf16.msra.mxu1 %v7734_v4  ;;  %6359 = vmatprep.mubr.msk.f32.mxu1 %vm7650_vm0, %v7651_v8 }
  0x26   :  { %7123 = vmatprep.subr.bf16.mxu1 %v7649_v0  ;;  %7116 = vmatpush3.bf16.msra.mxu0 %v7947_v59 }
  0x27   :  { %7117 = vmatprep.subr.bf16.mxu0 %v7649_v0 }
  0x29   :  { %7125 = vmatpush3.bf16.msra.mxu1 %v7760_v13 }
  0x2a   :  { %7132 = vmatprep.subr.bf16.mxu1 %v7649_v0  ;;  %7119 = vmatpush3.bf16.msra.mxu0 %v7957_v62 }
  0x2b   :  { %7126 = vmatprep.subr.bf16.mxu0 %v7649_v0 }
  0x89   :  { %v716_v57 = vpop.permute.xlu0 %715 }
  0x8a   :  { %vm717_vm6 = vcmp.eq.s32.totalorder %v716_v57, 1 }
  0xde   :  { %v163_v63 = vpop.f32.mrb[0].mxu0 }
  0xdf   :  { %v236_v2 = vpop.f32.mrb[0].mxu1  ;;  %v6262_v3 = vpop.f32.mrb[1].mxu0 }
  0xe0   :  { %v237_v5 = vadd.f32 %v236_v2, %v163_v63  ;;  %v6273_v6 = vpop.f32.mrb[1].mxu1 }
  0xe2   :  { %v246_v7 = vadd.f32 %v7964_v1, %v237_v5 }
  0xe4   :  { %v5769_v10 = vmul.f32 -1.442695, %v246_v7 }
  0xe6   :  { %7516 = vpow2.f32 %v5769_v10  ;;  %v319_v11 = vpop.f32.mrb[2].mxu0 }
  0xe7   :  { %v389_v16 = vpop.f32.mrb[2].mxu1  ;;  %v6284_v17 = vpop.f32.mrb[3].mxu0 }
  0xe8   :  { %v390_v18 = vadd.f32 %v389_v16, %v319_v11  ;;  %v6295_v20 = vpop.f32.mrb[3].mxu1  ;;  %v5780_v11 = vld [vmem:[%s8674_s0 + $0x2] sm:$0x3]  ;;  %v2075_v16 = vsel %vm2074_vm7, 1, %v7652_v12  ;;  %v2755_v17 = vsel %vm2754_vm8, 1, %v7652_v12 }
  0xe9   :  { %2077 = vperm.xlu1 %7515, %v2075_v16   ;;  %v5475_v20 = vsel %vm5474_vm10, 1, %v7652_v12 }
  0xea   :  { %v399_v22 = vadd.f32 %v7970_v15, %v390_v18  ;;  %v4115_v18 = vsel %vm4114_vm9, 1, %v7652_v12 }
  0xec   :  { %v5772_v23 = vmul.f32 -1.442695, %v399_v22  ;;  %v8071_v22 = vld [vmem:[%s8678_s6] ss:$0 sm:$0xff] }
  0xed   :  { %2757 = vperm.xlu1 %7515, %v2755_v17  }
  0xee   :  { %7518 = vpow2.f32 %v5772_v23  ;;  %v472_v24 = vpop.f32.mrb[4].mxu0 }
  0xef   :  { %v542_v29 = vpop.f32.mrb[4].mxu1  ;;  %v6306_v30 = vpop.f32.mrb[5].mxu0 }
  0xf0   :  { %v7517_v31 = vpop.eup %7516  ;;  %v543_v32 = vadd.f32 %v542_v29, %v472_v24  ;;  %v6317_v33 = vpop.f32.mrb[5].mxu1 }
  0xf1   :  { %v250_v35 = vadd.f32 1.0, %v7517_v31  ;;  %4117 = vperm.xlu1 %7515, %v4115_v18  }
  0xf2   :  { %v552_v37 = vadd.f32 %v7976_v25, %v543_v32 }
  0xf3   :  { %7520 = vrcp.f32 %v250_v35 }
  0xf4   :  { %7522 = vtanh.f32 %v552_v37 }
  0xf5   :  { %5477 = vperm.xlu1 %7515, %v5475_v20  }
  0xf6   :  { %v620_v38 = vpop.f32.mrb[6].mxu0 }
  0xf7   :  { %v690_v40 = vpop.f32.mrb[6].mxu1  ;;  %v6328_v42 = vpop.f32.mrb[7].mxu0 }
  0xf8   :  { %v7519_v44 = vpop.eup %7518  ;;  %v691_v45 = vadd.f32 %v690_v40, %v620_v38  ;;  %v6339_v46 = vpop.f32.mrb[7].mxu1 }
  0xf9   :  { %v403_v47 = vadd.f32 1.0, %v7519_v44 }
  0xfa   :  { %v700_v49 = vadd.f32 %v7982_v39, %v691_v45 }
  0xfb   :  { %7524 = vrcp.f32 %v403_v47 }
  0xfc   :  { %v5777_v51 = vmul.f32 -1.442695, %v700_v49 }
  0xfd   :  { %v7521_v52 = vpop.eup %7520 }
  0xfe   :  { %v7523_v53 = vpop.eup %7522  ;;  %7526 = vpow2.f32 %v5777_v51 }
  0xff   :  { %v708_v54 = vmul.f32 %v7523_v53, %v7521_v52 }
 0x105   :  { %v7525_v58 = vpop.eup %7524 }
 0x106   :  { %v707_v60 = vmul.f32 0.0, %v7525_v58 }
 0x108   :  { %v7527_v61 = vpop.eup %7526  ;;  %v709_v63 = vadd.f32 %v708_v54, %v707_v60 }
 0x109   :  { %v704_v2 = vadd.f32 1.0, %v7527_v61 }
 0x10a   :  { %7528 = vtanh.f32 %v709_v63  ;;  %v7985_v3 = vsel %vm717_vm6, %v709_v63, 0.0 }
 0x10b   :  { %7530 = vrcp.f32 %v704_v2 }
 0x114   :  { %v7529_v5 = vpop.eup %7528 }
 0x115   :  { %v7531_v6 = vpop.eup %7530 }
 0x116   :  { %v711_v7 = vmul.f32 %v7531_v6, %v7529_v5 }
 0x118   :  { %v7987_v10 = vsel %vm717_vm6, %v711_v7, 0.0 }
 0x119   :  { %6349 = vmatmul.mubr.msk.f32.vlgmr.msra.gmra.mrb[8].mxu0 %vm93_vm1, %v7987_v10  ;;  %6360 = vmatmul.mubr.msk.f32.vlgmr.msra.gmra.mrb[8].mxu1 %vm93_vm1, %v7987_v10 }
 0x11a   :  { %7128 = vmatpush3.bf16.msra.mxu0 %v7749_v9  ;;  %7134 = vmatpush3.bf16.msra.mxu1 %v7780_v19 }
 0x11b   :  { %7129 = vmatprep.subr.bf16.mxu0 %v7649_v0  ;;  %7135 = vmatprep.subr.bf16.mxu1 %v7649_v0 }
 0x11c   :  { %6370 = vmatprep.mubr.msk.f32.mxu0 %vm7650_vm0, %v7651_v8  ;;  %6381 = vmatprep.mubr.msk.f32.mxu1 %vm7650_vm0, %v7651_v8 }
 0x11e   :  { %7131 = vmatpush3.bf16.msra.mxu0 %v7764_v14  ;;  %7137 = vmatpush3.bf16.msra.mxu1 %v7808_v26 }
 0x11f   :  { %7138 = vmatprep.subr.bf16.mxu0 %v7649_v0  ;;  %7144 = vmatprep.subr.bf16.mxu1 %v7649_v0 }
 0x121   :  { %6371 = vmatmul.mubr.msk.f32.vlgmr.msra.gmra.mrb[10].mxu0 %vm93_vm1, %v5780_v11  ;;  %6382 = vmatmul.mubr.msk.f32.vlgmr.msra.gmra.mrb[10].mxu1 %vm93_vm1, %v7987_v10 }
 0x122   :  { %7140 = vmatpush3.bf16.msra.mxu0 %v7789_v21  ;;  %7146 = vmatpush3.bf16.msra.mxu1 %v7840_v34 }
 0x123   :  { %7141 = vmatprep.subr.bf16.mxu0 %v7649_v0  ;;  %7147 = vmatprep.subr.bf16.mxu1 %v7649_v0 }
 0x124   :  { %6392 = vmatprep.mubr.msk.f32.mxu0 %vm7650_vm0, %v7651_v8  ;;  %6403 = vmatprep.mubr.msk.f32.mxu1 %vm7650_vm0, %v7651_v8 }
 0x126   :  { %7143 = vmatpush3.bf16.msra.mxu0 %v7817_v28  ;;  %7149 = vmatpush3.bf16.msra.mxu1 %v7865_v41 }
 0x127   :  { %7150 = vmatprep.subr.bf16.mxu0 %v7649_v0  ;;  %7156 = vmatprep.subr.bf16.mxu1 %v7649_v0 }
 0x129   :  { %6393 = vmatmul.mubr.msk.f32.vlgmr.msra.gmra.mrb[12].mxu0 %vm93_vm1, %v5780_v11  ;;  %6404 = vmatmul.mubr.msk.f32.vlgmr.msra.gmra.mrb[12].mxu1 %vm93_vm1, %v7987_v10 }
 0x12a   :  { %7152 = vmatpush3.bf16.msra.mxu0 %v7845_v36  ;;  %7158 = vmatpush3.bf16.msra.mxu1 %v7891_v48 }
 0x12b   :  { %7153 = vmatprep.subr.bf16.mxu0 %v7649_v0  ;;  %7159 = vmatprep.subr.bf16.mxu1 %v7649_v0 }
 0x12c   :  { %6414 = vmatprep.mubr.msk.f32.mxu0 %vm7650_vm0, %v7651_v8  ;;  %6425 = vmatprep.mubr.msk.f32.mxu1 %vm7650_vm0, %v7651_v8 }
 0x12e   :  { %7155 = vmatpush3.bf16.msra.mxu0 %v7870_v43  ;;  %7161 = vmatpush3.bf16.msra.mxu1 %v7915_v55 }
 0x12f   :  { %7162 = vmatprep.subr.bf16.mxu0 %v7649_v0  ;;  %7168 = vmatprep.subr.bf16.mxu1 %v7649_v0 }
 0x131   :  { %6415 = vmatmul.mubr.msk.f32.vlgmr.msra.gmra.mrb[14].mxu0 %vm93_vm1, %v5780_v11  ;;  %6426 = vmatmul.mubr.msk.f32.vlgmr.msra.gmra.mrb[14].mxu1 %vm93_vm1, %v7987_v10 }
 0x132   :  { %7164 = vmatpush3.bf16.msra.mxu0 %v7896_v50  ;;  %6436 = vmatprep.mubr.msk.f32.mxu0 %vm7650_vm0, %v7651_v8 }
 0x133   :  { %7165 = vmatprep.subr.bf16.mxu0 %v7649_v0  ;;  %7170 = vmatpush3.bf16.msra.mxu1 %v7947_v59 }
 0x134   :  { %7171 = vmatprep.subr.bf16.mxu1 %v7649_v0  ;;  %6447 = vmatprep.mubr.msk.f32.mxu1 %vm7650_vm0, %v7651_v8 }
 0x136   :  { %7167 = vmatpush3.bf16.msra.mxu0 %v7919_v56 }
 0x137   :  { %7174 = vmatprep.subr.bf16.mxu0 %v7649_v0  ;;  %7173 = vmatpush3.bf16.msra.mxu1 %v7957_v62 }
 0x138   :  { %7180 = vmatprep.subr.bf16.mxu1 %v7649_v0 }
 0x139   :  { %6437 = vmatmul.mubr.msk.f32.vlgmr.msra.gmra.mrb[16].mxu0 %vm93_vm1, %v5780_v11 }
 0x13a   :  { %7176 = vmatpush3.bf16.msra.mxu0 %v7734_v4  ;;  %6458 = vmatprep.mubr.msk.f32.mxu0 %vm7650_vm0, %v7651_v8 }
 0x13b   :  { %7177 = vmatprep.subr.bf16.mxu0 %v7649_v0 }
 0x13e   :  { %7179 = vmatpush3.bf16.msra.mxu0 %v7760_v13 }
 0x13f   :  { %7186 = vmatprep.subr.bf16.mxu0 %v7649_v0 }
 0x1ec   :  { %v795_v23 = vpop.f32.mrb[8].mxu0  ;;  %v869_v24 = vpop.f32.mrb[8].mxu1 }
 0x1ed   :  { %v796_v29 = vadd.f32 %v8071_v22, %v795_v23  ;;  %v6350_v30 = vpop.f32.mrb[9].mxu0  ;;  %v6361_v31 = vpop.f32.mrb[9].mxu1 }
 0x1ee   :  { %v1398_v30 = vpop.permute.xlu0 %1397 }
 0x1ef   :  { %800 = vst.msk [vmem:[%s8679_s11] sm:$0x3] %vm799_vm11, %v796_v29  ;;  %vm1399_vm12 = vcmp.eq.s32.totalorder %v1398_v30, 1 }
 0x1f4   :  { %v942_v27 = vpop.f32.mrb[10].mxu0  ;;  %v1019_v12 = vpop.f32.mrb[10].mxu1 }
 0x1f5   :  { %v943_v32 = vadd.f32 %v942_v27, %v869_v24  ;;  %v6372_v33 = vpop.f32.mrb[11].mxu0  ;;  %v6383_v35 = vpop.f32.mrb[11].mxu1 }
 0x1f7   :  { %v946_v37 = vadd.f32 %v7964_v1, %v943_v32 }
 0x1f9   :  { %v5783_v38 = vmul.f32 -1.442695, %v946_v37 }
 0x1fb   :  { %7532 = vpow2.f32 %v5783_v38 }
 0x1fc   :  { %v1089_v40 = vpop.f32.mrb[12].mxu0  ;;  %v1166_v42 = vpop.f32.mrb[12].mxu1 }
 0x1fd   :  { %v1090_v44 = vadd.f32 %v1089_v40, %v1019_v12  ;;  %v6394_v45 = vpop.f32.mrb[13].mxu0  ;;  %v6405_v46 = vpop.f32.mrb[13].mxu1 }
 0x1ff   :  { %v1093_v47 = vadd.f32 %v7970_v15, %v1090_v44 }
 0x201   :  { %v5786_v49 = vmul.f32 -1.442695, %v1093_v47 }
 0x203   :  { %7534 = vpow2.f32 %v5786_v49 }
 0x204   :  { %v1236_v51 = vpop.f32.mrb[14].mxu0  ;;  %v1308_v52 = vpop.f32.mrb[14].mxu1 }
 0x205   :  { %v7533_v53 = vpop.eup %7532  ;;  %v1237_v54 = vadd.f32 %v1236_v51, %v1166_v42  ;;  %v6416_v57 = vpop.f32.mrb[15].mxu0 }
 0x206   :  { %v6427_v58 = vpop.f32.mrb[15].mxu1  ;;  %v950_v60 = vadd.f32 1.0, %v7533_v53 }
 0x207   :  { %v1240_v61 = vadd.f32 %v7976_v25, %v1237_v54 }
 0x208   :  { %7536 = vrcp.f32 %v950_v60 }
 0x209   :  { %7538 = vtanh.f32 %v1240_v61 }
 0x20c   :  { %v1378_v63 = vpop.f32.mrb[16].mxu0 }
 0x20d   :  { %v7535_v2 = vpop.eup %7534  ;;  %v1379_v5 = vadd.f32 %v1378_v63, %v1308_v52  ;;  %v6438_v6 = vpop.f32.mrb[17].mxu0 }
 0x20e   :  { %v1097_v7 = vadd.f32 1.0, %v7535_v2 }
 0x20f   :  { %v1382_v11 = vadd.f32 %v7982_v39, %v1379_v5 }
 0x210   :  { %7540 = vrcp.f32 %v1097_v7 }
 0x211   :  { %v5791_v16 = vmul.f32 -1.442695, %v1382_v11 }
 0x212   :  { %v7537_v17 = vpop.eup %7536 }
 0x213   :  { %v7539_v18 = vpop.eup %7538  ;;  %7542 = vpow2.f32 %v5791_v16 }
 0x214   :  { %v1390_v20 = vmul.f32 %v7539_v18, %v7537_v17 }
 0x21a   :  { %v7541_v23 = vpop.eup %7540 }
 0x21b   :  { %v1389_v24 = vmul.f32 %v7541_v23, %v7985_v3 }
 0x21d   :  { %v7543_v29 = vpop.eup %7542  ;;  %v1391_v31 = vadd.f32 %v1390_v20, %v1389_v24 }
 0x21e   :  { %v1386_v27 = vadd.f32 1.0, %v7543_v29 }
 0x21f   :  { %7544 = vtanh.f32 %v1391_v31  ;;  %v8084_v12 = vsel %vm1399_vm12, %v1391_v31, %v7985_v3  ;;  %v5794_v3 = vld [vmem:[%s8674_s0 + $0x4] sm:$0x3] }
 0x220   :  { %7546 = vrcp.f32 %v1386_v27 }
 0x229   :  { %v7545_v32 = vpop.eup %7544 }
 0x22a   :  { %v7547_v33 = vpop.eup %7546 }
 0x22b   :  { %v1393_v35 = vmul.f32 %v7547_v33, %v7545_v32 }
 0x22d   :  { %v1402_v37 = vsel %vm1399_vm12, %v1393_v35, 0.0  ;;  %v8087_v38 = vsel %vm1399_vm12, %v1393_v35, %v7987_v10 }
 0x22e   :  { %6448 = vmatmul.mubr.msk.f32.vlgmr.msra.gmra.mrb[16].mxu1 %vm93_vm1, %v1402_v37  ;;  %6459 = vmatmul.mubr.msk.f32.vlgmr.msra.gmra.mrb[18].mxu0 %vm93_vm1, %v8087_v38 }
 0x22f   :  { %7182 = vmatpush3.bf16.msra.mxu1 %v7749_v9  ;;  %7188 = vmatpush3.bf16.msra.mxu0 %v7780_v19 }
 0x230   :  { %7183 = vmatprep.subr.bf16.mxu1 %v7649_v0  ;;  %7189 = vmatprep.subr.bf16.mxu0 %v7649_v0 }
 0x231   :  { %6469 = vmatprep.mubr.msk.f32.mxu1 %vm7650_vm0, %v7651_v8  ;;  %6480 = vmatprep.mubr.msk.f32.mxu0 %vm7650_vm0, %v7651_v8 }
 0x233   :  { %7185 = vmatpush3.bf16.msra.mxu1 %v7764_v14  ;;  %7191 = vmatpush3.bf16.msra.mxu0 %v7808_v26 }
 0x234   :  { %7192 = vmatprep.subr.bf16.mxu1 %v7649_v0  ;;  %7198 = vmatprep.subr.bf16.mxu0 %v7649_v0 }
 0x236   :  { %6470 = vmatmul.mubr.msk.f32.vlgmr.msra.gmra.mrb[18].mxu1 %vm93_vm1, %v5794_v3  ;;  %6481 = vmatmul.mubr.msk.f32.vlgmr.msra.gmra.mrb[20].mxu0 %vm93_vm1, %v8087_v38 }
 0x237   :  { %7194 = vmatpush3.bf16.msra.mxu1 %v7789_v21  ;;  %7200 = vmatpush3.bf16.msra.mxu0 %v7840_v34 }
 0x238   :  { %7195 = vmatprep.subr.bf16.mxu1 %v7649_v0  ;;  %7201 = vmatprep.subr.bf16.mxu0 %v7649_v0 }
 0x239   :  { %6491 = vmatprep.mubr.msk.f32.mxu1 %vm7650_vm0, %v7651_v8  ;;  %6502 = vmatprep.mubr.msk.f32.mxu0 %vm7650_vm0, %v7651_v8 }
 0x23b   :  { %7197 = vmatpush3.bf16.msra.mxu1 %v7817_v28  ;;  %7203 = vmatpush3.bf16.msra.mxu0 %v7865_v41 }
 0x23c   :  { %7204 = vmatprep.subr.bf16.mxu1 %v7649_v0  ;;  %7210 = vmatprep.subr.bf16.mxu0 %v7649_v0 }
 0x23e   :  { %6492 = vmatmul.mubr.msk.f32.vlgmr.msra.gmra.mrb[20].mxu1 %vm93_vm1, %v5794_v3  ;;  %6503 = vmatmul.mubr.msk.f32.vlgmr.msra.gmra.mrb[22].mxu0 %vm93_vm1, %v8087_v38 }
 0x23f   :  { %7206 = vmatpush3.bf16.msra.mxu1 %v7845_v36  ;;  %7212 = vmatpush3.bf16.msra.mxu0 %v7891_v48 }
 0x240   :  { %7207 = vmatprep.subr.bf16.mxu1 %v7649_v0  ;;  %7213 = vmatprep.subr.bf16.mxu0 %v7649_v0 }
 0x241   :  { %6513 = vmatprep.mubr.msk.f32.mxu1 %vm7650_vm0, %v7651_v8  ;;  %6524 = vmatprep.mubr.msk.f32.mxu0 %vm7650_vm0, %v7651_v8 }
 0x243   :  { %7209 = vmatpush3.bf16.msra.mxu1 %v7870_v43  ;;  %7215 = vmatpush3.bf16.msra.mxu0 %v7915_v55 }
 0x244   :  { %7216 = vmatprep.subr.bf16.mxu1 %v7649_v0  ;;  %7222 = vmatprep.subr.bf16.mxu0 %v7649_v0 }
 0x246   :  { %6514 = vmatmul.mubr.msk.f32.vlgmr.msra.gmra.mrb[22].mxu1 %vm93_vm1, %v5794_v3  ;;  %6525 = vmatmul.mubr.msk.f32.vlgmr.msra.gmra.mrb[24].mxu0 %vm93_vm1, %v8087_v38 }
 0x247   :  { %7218 = vmatpush3.bf16.msra.mxu1 %v7896_v50  ;;  %6535 = vmatprep.mubr.msk.f32.mxu1 %vm7650_vm0, %v7651_v8 }
 0x248   :  { %7219 = vmatprep.subr.bf16.mxu1 %v7649_v0  ;;  %7224 = vmatpush3.bf16.msra.mxu0 %v7947_v59 }
 0x249   :  { %7225 = vmatprep.subr.bf16.mxu0 %v7649_v0  ;;  %6546 = vmatprep.mubr.msk.f32.mxu0 %vm7650_vm0, %v7651_v8 }
 0x24b   :  { %7221 = vmatpush3.bf16.msra.mxu1 %v7919_v56 }
 0x24c   :  { %7228 = vmatprep.subr.bf16.mxu1 %v7649_v0  ;;  %7227 = vmatpush3.bf16.msra.mxu0 %v7957_v62 }
 0x24d   :  { %7234 = vmatprep.subr.bf16.mxu0 %v7649_v0 }
 0x24e   :  { %6536 = vmatmul.mubr.msk.f32.vlgmr.msra.gmra.mrb[24].mxu1 %vm93_vm1, %v5794_v3 }
 0x24f   :  { %7230 = vmatpush3.bf16.msra.mxu1 %v7734_v4  ;;  %6557 = vmatprep.mubr.msk.f32.mxu1 %vm7650_vm0, %v7651_v8 }
 0x250   :  { %7231 = vmatprep.subr.bf16.mxu1 %v7649_v0 }
 0x253   :  { %7233 = vmatpush3.bf16.msra.mxu1 %v7760_v13 }
 0x254   :  { %7240 = vmatprep.subr.bf16.mxu1 %v7649_v0 }
 0x301   :  { %v1472_v10 = vpop.f32.mrb[16].mxu1  ;;  %v1549_v40 = vpop.f32.mrb[18].mxu0 }
 0x302   :  { %v1473_v42 = vadd.f32 %v8071_v22, %v1472_v10  ;;  %v6449_v44 = vpop.f32.mrb[17].mxu1  ;;  %v6460_v45 = vpop.f32.mrb[19].mxu0 }
 0x303   :  { %v2078_v10 = vpop.permute.xlu1 %2077 }
 0x304   :  { %5793 = vst.msk [vmem:[%s8679_s11 + $0x2] sm:$0x3] %vm799_vm11, %v1473_v42  ;;  %vm2079_vm13 = vcmp.eq.s32.totalorder %v2078_v10, 1 }
 0x309   :  { %v1622_v46 = vpop.f32.mrb[18].mxu1  ;;  %v1699_v47 = vpop.f32.mrb[20].mxu0 }
 0x30a   :  { %v1623_v49 = vadd.f32 %v1622_v46, %v1549_v40  ;;  %v6471_v51 = vpop.f32.mrb[19].mxu1  ;;  %v6482_v52 = vpop.f32.mrb[21].mxu0 }
 0x30c   :  { %v1626_v53 = vadd.f32 %v7964_v1, %v1623_v49 }
 0x30e   :  { %v5797_v54 = vmul.f32 -1.442695, %v1626_v53 }
 0x310   :  { %7548 = vpow2.f32 %v5797_v54 }
 0x311   :  { %v1769_v57 = vpop.f32.mrb[20].mxu1  ;;  %v1846_v58 = vpop.f32.mrb[22].mxu0 }
 0x312   :  { %v1770_v60 = vadd.f32 %v1769_v57, %v1699_v47  ;;  %v6493_v61 = vpop.f32.mrb[21].mxu1  ;;  %v6504_v63 = vpop.f32.mrb[23].mxu0 }
 0x314   :  { %v1773_v2 = vadd.f32 %v7970_v15, %v1770_v60 }
 0x316   :  { %v5800_v5 = vmul.f32 -1.442695, %v1773_v2 }
 0x318   :  { %7550 = vpow2.f32 %v5800_v5 }
 0x319   :  { %v1916_v6 = vpop.f32.mrb[22].mxu1  ;;  %v1988_v7 = vpop.f32.mrb[24].mxu0 }
 0x31a   :  { %v7549_v11 = vpop.eup %7548  ;;  %v1917_v16 = vadd.f32 %v1916_v6, %v1846_v58  ;;  %v6515_v17 = vpop.f32.mrb[23].mxu1 }
 0x31b   :  { %v6526_v18 = vpop.f32.mrb[25].mxu0  ;;  %v1630_v20 = vadd.f32 1.0, %v7549_v11 }
 0x31c   :  { %v1920_v23 = vadd.f32 %v7976_v25, %v1917_v16 }
 0x31d   :  { %7552 = vrcp.f32 %v1630_v20 }
 0x31e   :  { %7554 = vtanh.f32 %v1920_v23 }
 0x321   :  { %v2058_v24 = vpop.f32.mrb[24].mxu1 }
 0x322   :  { %v7551_v29 = vpop.eup %7550  ;;  %v2059_v30 = vadd.f32 %v2058_v24, %v1988_v7  ;;  %v6537_v31 = vpop.f32.mrb[25].mxu1 }
 0x323   :  { %v1777_v27 = vadd.f32 1.0, %v7551_v29 }
 0x324   :  { %v2062_v32 = vadd.f32 %v7982_v39, %v2059_v30 }
 0x325   :  { %7556 = vrcp.f32 %v1777_v27 }
 0x326   :  { %v5805_v33 = vmul.f32 -1.442695, %v2062_v32 }
 0x327   :  { %v7553_v35 = vpop.eup %7552 }
 0x328   :  { %v7555_v37 = vpop.eup %7554  ;;  %7558 = vpow2.f32 %v5805_v33 }
 0x329   :  { %v2070_v3 = vmul.f32 %v7555_v37, %v7553_v35 }
 0x32f   :  { %v7557_v40 = vpop.eup %7556 }
 0x330   :  { %v2069_v42 = vmul.f32 %v7557_v40, %v8084_v12 }
 0x332   :  { %v7559_v44 = vpop.eup %7558  ;;  %v2071_v45 = vadd.f32 %v2070_v3, %v2069_v42 }
 0x333   :  { %v2066_v46 = vadd.f32 1.0, %v7559_v44 }
 0x334   :  { %7560 = vtanh.f32 %v2071_v45  ;;  %v8170_v47 = vsel %vm2079_vm13, %v2071_v45, %v8084_v12  ;;  %v5808_v12 = vld [vmem:[%s8674_s0 + $0x6] sm:$0x3] }
 0x335   :  { %7562 = vrcp.f32 %v2066_v46 }
 0x33e   :  { %v7561_v49 = vpop.eup %7560 }
 0x33f   :  { %v7563_v51 = vpop.eup %7562 }
 0x340   :  { %v2073_v52 = vmul.f32 %v7563_v51, %v7561_v49 }
 0x342   :  { %v8173_v53 = vsel %vm2079_vm13, %v2073_v52, %v8087_v38  ;;  %v2082_v54 = vsel %vm2079_vm13, %v2073_v52, 0.0 }
 0x343   :  { %6547 = vmatmul.mubr.msk.f32.vlgmr.msra.gmra.mrb[26].mxu0 %vm93_vm1, %v2082_v54  ;;  %6558 = vmatmul.mubr.msk.f32.vlgmr.msra.gmra.mrb[26].mxu1 %vm93_vm1, %v8173_v53 }
 0x344   :  { %7236 = vmatpush3.bf16.msra.mxu0 %v7749_v9  ;;  %7242 = vmatpush3.bf16.msra.mxu1 %v7780_v19 }
 0x345   :  { %7237 = vmatprep.subr.bf16.mxu0 %v7649_v0  ;;  %7243 = vmatprep.subr.bf16.mxu1 %v7649_v0 }
 0x346   :  { %6568 = vmatprep.mubr.msk.f32.mxu0 %vm7650_vm0, %v7651_v8  ;;  %6579 = vmatprep.mubr.msk.f32.mxu1 %vm7650_vm0, %v7651_v8 }
 0x348   :  { %7239 = vmatpush3.bf16.msra.mxu0 %v7764_v14  ;;  %7245 = vmatpush3.bf16.msra.mxu1 %v7808_v26 }
 0x349   :  { %7246 = vmatprep.subr.bf16.mxu0 %v7649_v0  ;;  %7252 = vmatprep.subr.bf16.mxu1 %v7649_v0 }
 0x34b   :  { %6569 = vmatmul.mubr.msk.f32.vlgmr.msra.gmra.mrb[28].mxu0 %vm93_vm1, %v5808_v12  ;;  %6580 = vmatmul.mubr.msk.f32.vlgmr.msra.gmra.mrb[28].mxu1 %vm93_vm1, %v8173_v53 }
 0x34c   :  { %7248 = vmatpush3.bf16.msra.mxu0 %v7789_v21  ;;  %7254 = vmatpush3.bf16.msra.mxu1 %v7840_v34 }
 0x34d   :  { %7249 = vmatprep.subr.bf16.mxu0 %v7649_v0  ;;  %7255 = vmatprep.subr.bf16.mxu1 %v7649_v0 }
 0x34e   :  { %6590 = vmatprep.mubr.msk.f32.mxu0 %vm7650_vm0, %v7651_v8  ;;  %6601 = vmatprep.mubr.msk.f32.mxu1 %vm7650_vm0, %v7651_v8 }
 0x350   :  { %7251 = vmatpush3.bf16.msra.mxu0 %v7817_v28  ;;  %7257 = vmatpush3.bf16.msra.mxu1 %v7865_v41 }
 0x351   :  { %7258 = vmatprep.subr.bf16.mxu0 %v7649_v0  ;;  %7264 = vmatprep.subr.bf16.mxu1 %v7649_v0 }
 0x353   :  { %6591 = vmatmul.mubr.msk.f32.vlgmr.msra.gmra.mrb[30].mxu0 %vm93_vm1, %v5808_v12  ;;  %6602 = vmatmul.mubr.msk.f32.vlgmr.msra.gmra.mrb[30].mxu1 %vm93_vm1, %v8173_v53 }
 0x354   :  { %7260 = vmatpush3.bf16.msra.mxu0 %v7845_v36  ;;  %7266 = vmatpush3.bf16.msra.mxu1 %v7891_v48 }
 0x355   :  { %7261 = vmatprep.subr.bf16.mxu0 %v7649_v0  ;;  %7267 = vmatprep.subr.bf16.mxu1 %v7649_v0 }
 0x356   :  { %6612 = vmatprep.mubr.msk.f32.mxu0 %vm7650_vm0, %v7651_v8  ;;  %6623 = vmatprep.mubr.msk.f32.mxu1 %vm7650_vm0, %v7651_v8 }
 0x358   :  { %7263 = vmatpush3.bf16.msra.mxu0 %v7870_v43  ;;  %7269 = vmatpush3.bf16.msra.mxu1 %v7915_v55 }
 0x359   :  { %7270 = vmatprep.subr.bf16.mxu0 %v7649_v0  ;;  %7276 = vmatprep.subr.bf16.mxu1 %v7649_v0 }
 0x35b   :  { %6613 = vmatmul.mubr.msk.f32.vlgmr.msra.gmra.mrb[32].mxu0 %vm93_vm1, %v5808_v12  ;;  %6624 = vmatmul.mubr.msk.f32.vlgmr.msra.gmra.mrb[32].mxu1 %vm93_vm1, %v8173_v53 }
 0x35c   :  { %7272 = vmatpush3.bf16.msra.mxu0 %v7896_v50  ;;  %6634 = vmatprep.mubr.msk.f32.mxu0 %vm7650_vm0, %v7651_v8 }
 0x35d   :  { %7273 = vmatprep.subr.bf16.mxu0 %v7649_v0  ;;  %7278 = vmatpush3.bf16.msra.mxu1 %v7947_v59 }
 0x35e   :  { %7279 = vmatprep.subr.bf16.mxu1 %v7649_v0  ;;  %6645 = vmatprep.mubr.msk.f32.mxu1 %vm7650_vm0, %v7651_v8 }
 0x360   :  { %7275 = vmatpush3.bf16.msra.mxu0 %v7919_v56 }
 0x361   :  { %7282 = vmatprep.subr.bf16.mxu0 %v7649_v0  ;;  %7281 = vmatpush3.bf16.msra.mxu1 %v7957_v62 }
 0x362   :  { %7288 = vmatprep.subr.bf16.mxu1 %v7649_v0 }
 0x363   :  { %6635 = vmatmul.mubr.msk.f32.vlgmr.msra.gmra.mrb[34].mxu0 %vm93_vm1, %v5808_v12 }
 0x364   :  { %7284 = vmatpush3.bf16.msra.mxu0 %v7734_v4  ;;  %6656 = vmatprep.mubr.msk.f32.mxu0 %vm7650_vm0, %v7651_v8 }
 0x365   :  { %7285 = vmatprep.subr.bf16.mxu0 %v7649_v0 }
 0x368   :  { %7287 = vmatpush3.bf16.msra.mxu0 %v7760_v13 }
 0x369   :  { %7294 = vmatprep.subr.bf16.mxu0 %v7649_v0 }
 0x416   :  { %v2152_v38 = vpop.f32.mrb[26].mxu0  ;;  %v2229_v57 = vpop.f32.mrb[26].mxu1 }
 0x417   :  { %v2153_v58 = vadd.f32 %v8071_v22, %v2152_v38  ;;  %v6548_v60 = vpop.f32.mrb[27].mxu0  ;;  %v6559_v61 = vpop.f32.mrb[27].mxu1 }
 0x418   :  { %v2758_v60 = vpop.permute.xlu1 %2757 }
 0x419   :  { %5807 = vst.msk [vmem:[%s8679_s11 + $0x4] sm:$0x3] %vm799_vm11, %v2153_v58  ;;  %vm2759_vm14 = vcmp.eq.s32.totalorder %v2758_v60, 1 }
 0x41e   :  { %v2302_v63 = vpop.f32.mrb[28].mxu0  ;;  %v2379_v2 = vpop.f32.mrb[28].mxu1 }
 0x41f   :  { %v2303_v5 = vadd.f32 %v2302_v63, %v2229_v57  ;;  %v6570_v6 = vpop.f32.mrb[29].mxu0  ;;  %v6581_v7 = vpop.f32.mrb[29].mxu1 }
 0x421   :  { %v2306_v11 = vadd.f32 %v7964_v1, %v2303_v5 }
 0x423   :  { %v5811_v16 = vmul.f32 -1.442695, %v2306_v11 }
 0x425   :  { %7564 = vpow2.f32 %v5811_v16 }
 0x426   :  { %v2449_v17 = vpop.f32.mrb[30].mxu0  ;;  %v2526_v18 = vpop.f32.mrb[30].mxu1 }
 0x427   :  { %v2450_v20 = vadd.f32 %v2449_v17, %v2379_v2  ;;  %v6592_v23 = vpop.f32.mrb[31].mxu0  ;;  %v6603_v24 = vpop.f32.mrb[31].mxu1 }
 0x429   :  { %v2453_v29 = vadd.f32 %v7970_v15, %v2450_v20 }
 0x42b   :  { %v5814_v30 = vmul.f32 -1.442695, %v2453_v29 }
 0x42d   :  { %7566 = vpow2.f32 %v5814_v30 }
 0x42e   :  { %v2596_v31 = vpop.f32.mrb[32].mxu0  ;;  %v2668_v27 = vpop.f32.mrb[32].mxu1 }
 0x42f   :  { %v7565_v32 = vpop.eup %7564  ;;  %v2597_v33 = vadd.f32 %v2596_v31, %v2526_v18  ;;  %v6614_v35 = vpop.f32.mrb[33].mxu0 }
 0x430   :  { %v6625_v37 = vpop.f32.mrb[33].mxu1  ;;  %v2310_v3 = vadd.f32 1.0, %v7565_v32 }
 0x431   :  { %v2600_v10 = vadd.f32 %v7976_v25, %v2597_v33 }
 0x432   :  { %7568 = vrcp.f32 %v2310_v3 }
 0x433   :  { %7570 = vtanh.f32 %v2600_v10 }
 0x436   :  { %v2738_v40 = vpop.f32.mrb[34].mxu0 }
 0x437   :  { %v7567_v42 = vpop.eup %7566  ;;  %v2739_v44 = vadd.f32 %v2738_v40, %v2668_v27  ;;  %v6636_v45 = vpop.f32.mrb[35].mxu0 }
 0x438   :  { %v2457_v46 = vadd.f32 1.0, %v7567_v42 }
 0x439   :  { %v2742_v49 = vadd.f32 %v7982_v39, %v2739_v44 }
 0x43a   :  { %7572 = vrcp.f32 %v2457_v46 }
 0x43b   :  { %v5819_v51 = vmul.f32 -1.442695, %v2742_v49 }
 0x43c   :  { %v7569_v52 = vpop.eup %7568 }
 0x43d   :  { %v7571_v54 = vpop.eup %7570  ;;  %7574 = vpow2.f32 %v5819_v51 }
 0x43e   :  { %v2750_v12 = vmul.f32 %v7571_v54, %v7569_v52 }
 0x444   :  { %v7573_v38 = vpop.eup %7572 }
 0x445   :  { %v2749_v57 = vmul.f32 %v7573_v38, %v8170_v47 }
 0x447   :  { %v7575_v58 = vpop.eup %7574  ;;  %v2751_v61 = vadd.f32 %v2750_v12, %v2749_v57 }
 0x448   :  { %v2746_v63 = vadd.f32 1.0, %v7575_v58 }
 0x449   :  { %7576 = vtanh.f32 %v2751_v61  ;;  %v8256_v2 = vsel %vm2759_vm14, %v2751_v61, %v8170_v47  ;;  %v5822_v47 = vld [vmem:[%s8674_s0 + $0x8] sm:$0x3] }
 0x44a   :  { %7578 = vrcp.f32 %v2746_v63 }
 0x453   :  { %v7577_v5 = vpop.eup %7576 }
 0x454   :  { %v7579_v6 = vpop.eup %7578 }
 0x455   :  { %v2753_v7 = vmul.f32 %v7579_v6, %v7577_v5 }
 0x457   :  { %v2762_v11 = vsel %vm2759_vm14, %v2753_v7, 0.0  ;;  %v8259_v16 = vsel %vm2759_vm14, %v2753_v7, %v8173_v53 }
 0x458   :  { %6646 = vmatmul.mubr.msk.f32.vlgmr.msra.gmra.mrb[34].mxu1 %vm93_vm1, %v2762_v11  ;;  %6657 = vmatmul.mubr.msk.f32.vlgmr.msra.gmra.mrb[36].mxu0 %vm93_vm1, %v8259_v16 }
 0x459   :  { %7290 = vmatpush3.bf16.msra.mxu1 %v7749_v9  ;;  %7296 = vmatpush3.bf16.msra.mxu0 %v7780_v19 }
 0x45a   :  { %7291 = vmatprep.subr.bf16.mxu1 %v7649_v0  ;;  %7297 = vmatprep.subr.bf16.mxu0 %v7649_v0 }
 0x45b   :  { %6667 = vmatprep.mubr.msk.f32.mxu1 %vm7650_vm0, %v7651_v8  ;;  %6678 = vmatprep.mubr.msk.f32.mxu0 %vm7650_vm0, %v7651_v8 }
 0x45d   :  { %7293 = vmatpush3.bf16.msra.mxu1 %v7764_v14  ;;  %7299 = vmatpush3.bf16.msra.mxu0 %v7808_v26 }
 0x45e   :  { %7300 = vmatprep.subr.bf16.mxu1 %v7649_v0  ;;  %7306 = vmatprep.subr.bf16.mxu0 %v7649_v0 }
 0x460   :  { %6668 = vmatmul.mubr.msk.f32.vlgmr.msra.gmra.mrb[36].mxu1 %vm93_vm1, %v5822_v47  ;;  %6679 = vmatmul.mubr.msk.f32.vlgmr.msra.gmra.mrb[38].mxu0 %vm93_vm1, %v8259_v16 }
 0x461   :  { %7302 = vmatpush3.bf16.msra.mxu1 %v7789_v21  ;;  %7308 = vmatpush3.bf16.msra.mxu0 %v7840_v34 }
 0x462   :  { %7303 = vmatprep.subr.bf16.mxu1 %v7649_v0  ;;  %7309 = vmatprep.subr.bf16.mxu0 %v7649_v0 }
 0x463   :  { %6689 = vmatprep.mubr.msk.f32.mxu1 %vm7650_vm0, %v7651_v8  ;;  %6700 = vmatprep.mubr.msk.f32.mxu0 %vm7650_vm0, %v7651_v8 }
 0x465   :  { %7305 = vmatpush3.bf16.msra.mxu1 %v7817_v28  ;;  %7311 = vmatpush3.bf16.msra.mxu0 %v7865_v41 }
 0x466   :  { %7312 = vmatprep.subr.bf16.mxu1 %v7649_v0  ;;  %7318 = vmatprep.subr.bf16.mxu0 %v7649_v0 }
 0x468   :  { %6690 = vmatmul.mubr.msk.f32.vlgmr.msra.gmra.mrb[38].mxu1 %vm93_vm1, %v5822_v47  ;;  %6701 = vmatmul.mubr.msk.f32.vlgmr.msra.gmra.mrb[40].mxu0 %vm93_vm1, %v8259_v16 }
 0x469   :  { %7314 = vmatpush3.bf16.msra.mxu1 %v7845_v36  ;;  %7320 = vmatpush3.bf16.msra.mxu0 %v7891_v48 }
 0x46a   :  { %7315 = vmatprep.subr.bf16.mxu1 %v7649_v0  ;;  %7321 = vmatprep.subr.bf16.mxu0 %v7649_v0 }
 0x46b   :  { %6711 = vmatprep.mubr.msk.f32.mxu1 %vm7650_vm0, %v7651_v8  ;;  %6722 = vmatprep.mubr.msk.f32.mxu0 %vm7650_vm0, %v7651_v8 }
 0x46d   :  { %7317 = vmatpush3.bf16.msra.mxu1 %v7870_v43  ;;  %7323 = vmatpush3.bf16.msra.mxu0 %v7915_v55 }
 0x46e   :  { %7324 = vmatprep.subr.bf16.mxu1 %v7649_v0  ;;  %7330 = vmatprep.subr.bf16.mxu0 %v7649_v0 }
 0x470   :  { %6712 = vmatmul.mubr.msk.f32.vlgmr.msra.gmra.mrb[40].mxu1 %vm93_vm1, %v5822_v47  ;;  %6723 = vmatmul.mubr.msk.f32.vlgmr.msra.gmra.mrb[42].mxu0 %vm93_vm1, %v8259_v16 }
 0x471   :  { %7326 = vmatpush3.bf16.msra.mxu1 %v7896_v50  ;;  %6733 = vmatprep.mubr.msk.f32.mxu1 %vm7650_vm0, %v7651_v8 }
 0x472   :  { %7327 = vmatprep.subr.bf16.mxu1 %v7649_v0  ;;  %7332 = vmatpush3.bf16.msra.mxu0 %v7947_v59 }
 0x473   :  { %7333 = vmatprep.subr.bf16.mxu0 %v7649_v0  ;;  %6744 = vmatprep.mubr.msk.f32.mxu0 %vm7650_vm0, %v7651_v8 }
 0x475   :  { %7329 = vmatpush3.bf16.msra.mxu1 %v7919_v56 }
 0x476   :  { %7336 = vmatprep.subr.bf16.mxu1 %v7649_v0  ;;  %7335 = vmatpush3.bf16.msra.mxu0 %v7957_v62 }
 0x477   :  { %7342 = vmatprep.subr.bf16.mxu0 %v7649_v0 }
 0x478   :  { %6734 = vmatmul.mubr.msk.f32.vlgmr.msra.gmra.mrb[42].mxu1 %vm93_vm1, %v5822_v47 }
 0x479   :  { %7338 = vmatpush3.bf16.msra.mxu1 %v7734_v4  ;;  %6755 = vmatprep.mubr.msk.f32.mxu1 %vm7650_vm0, %v7651_v8 }
 0x47a   :  { %7339 = vmatprep.subr.bf16.mxu1 %v7649_v0 }
 0x47d   :  { %7341 = vmatpush3.bf16.msra.mxu1 %v7760_v13 }
 0x47e   :  { %7348 = vmatprep.subr.bf16.mxu1 %v7649_v0 }
 0x52b   :  { %v2832_v53 = vpop.f32.mrb[34].mxu1  ;;  %v2909_v17 = vpop.f32.mrb[36].mxu0 }
 0x52c   :  { %v2833_v18 = vadd.f32 %v8071_v22, %v2832_v53  ;;  %v6647_v20 = vpop.f32.mrb[35].mxu1  ;;  %v6658_v23 = vpop.f32.mrb[37].mxu0 }
 0x52e   :  { %5821 = vst.msk [vmem:[%s8679_s11 + $0x6] sm:$0x3] %vm799_vm11, %v2833_v18 }
 0x533   :  { %v2982_v24 = vpop.f32.mrb[36].mxu1  ;;  %v3059_v29 = vpop.f32.mrb[38].mxu0 }
 0x534   :  { %v2983_v30 = vadd.f32 %v2982_v24, %v2909_v17  ;;  %v6669_v31 = vpop.f32.mrb[37].mxu1  ;;  %v6680_v27 = vpop.f32.mrb[39].mxu0 }
 0x536   :  { %v2986_v32 = vadd.f32 %v7964_v1, %v2983_v30 }
 0x538   :  { %v5825_v33 = vmul.f32 -1.442695, %v2986_v32 }
 0x53a   :  { %7580 = vpow2.f32 %v5825_v33 }
 0x53b   :  { %v3129_v35 = vpop.f32.mrb[38].mxu1  ;;  %v3206_v37 = vpop.f32.mrb[40].mxu0 }
 0x53c   :  { %v3130_v3 = vadd.f32 %v3129_v35, %v3059_v29  ;;  %v6691_v10 = vpop.f32.mrb[39].mxu1  ;;  %v6702_v40 = vpop.f32.mrb[41].mxu0 }
 0x53e   :  { %v3133_v42 = vadd.f32 %v7970_v15, %v3130_v3 }
 0x540   :  { %v5828_v44 = vmul.f32 -1.442695, %v3133_v42  ;;  %v8425_v42 = vld [vmem:[%s8677_s4] ss:$0 sm:$0xff] }
 0x542   :  { %7582 = vpow2.f32 %v5828_v44 }
 0x543   :  { %v3276_v45 = vpop.f32.mrb[40].mxu1  ;;  %v3348_v46 = vpop.f32.mrb[42].mxu0 }
 0x544   :  { %v7581_v49 = vpop.eup %7580  ;;  %v3277_v51 = vadd.f32 %v3276_v45, %v3206_v37  ;;  %v6713_v52 = vpop.f32.mrb[41].mxu1 }
 0x545   :  { %v6724_v54 = vpop.f32.mrb[43].mxu0  ;;  %v2990_v12 = vadd.f32 1.0, %v7581_v49 }
 0x546   :  { %v3280_v1 = vadd.f32 %v7976_v25, %v3277_v51  ;;  %v3438_v25 = vpop.permute.xlu0 %3437  ;;  %v8431_v54 = vld [vmem:[%s8677_s4 + $0x1] ss:$0 sm:$0xff] }
 0x547   :  { %7584 = vrcp.f32 %v2990_v12  ;;  %vm3439_vm15 = vcmp.eq.s32.totalorder %v3438_v25, 1 }
 0x548   :  { %7586 = vtanh.f32 %v3280_v1 }
 0x54b   :  { %v3418_v38 = vpop.f32.mrb[42].mxu1 }
 0x54c   :  { %v7583_v57 = vpop.eup %7582  ;;  %v3419_v58 = vadd.f32 %v3418_v38, %v3348_v46  ;;  %v6735_v60 = vpop.f32.mrb[43].mxu1 }
 0x54d   :  { %v3137_v61 = vadd.f32 1.0, %v7583_v57 }
 0x54e   :  { %v3422_v15 = vadd.f32 %v7982_v39, %v3419_v58 }
 0x54f   :  { %7588 = vrcp.f32 %v3137_v61 }
 0x550   :  { %v5833_v63 = vmul.f32 -1.442695, %v3422_v15 }
 0x551   :  { %v7585_v5 = vpop.eup %7584 }
 0x552   :  { %v7587_v6 = vpop.eup %7586  ;;  %7590 = vpow2.f32 %v5833_v63 }
 0x553   :  { %v3430_v7 = vmul.f32 %v7587_v6, %v7585_v5  ;;  %v8437_v5 = vld [vmem:[%s8677_s4 + $0x2] ss:$0 sm:$0xff] }
 0x559   :  { %v7589_v11 = vpop.eup %7588 }
 0x55a   :  { %v3429_v47 = vmul.f32 %v7589_v11, %v8256_v2 }
 0x55c   :  { %v7591_v53 = vpop.eup %7590  ;;  %v3431_v17 = vadd.f32 %v3430_v7, %v3429_v47 }
 0x55d   :  { %v3426_v18 = vadd.f32 1.0, %v7591_v53 }
 0x55e   :  { %7592 = vtanh.f32 %v3431_v17  ;;  %v8342_v20 = vsel %vm3439_vm15, %v3431_v17, %v8256_v2  ;;  %v5836_v2 = vld [vmem:[%s8674_s0 + $0xa] sm:$0x3]  ;;  %v8443_v17 = vld [vmem:[%s8677_s4 + $0x3] ss:$0 sm:$0xff] }
 0x55f   :  { %7594 = vrcp.f32 %v3426_v18 }
 0x568   :  { %v7593_v39 = vpop.eup %7592 }
 0x569   :  { %v7595_v23 = vpop.eup %7594 }
 0x56a   :  { %v3433_v24 = vmul.f32 %v7595_v23, %v7593_v39 }
 0x56c   :  { %v3442_v29 = vsel %vm3439_vm15, %v3433_v24, 0.0  ;;  %v8345_v30 = vsel %vm3439_vm15, %v3433_v24, %v8259_v16 }
 0x56d   :  { %6745 = vmatmul.mubr.msk.f32.vlgmr.msra.gmra.mrb[44].mxu0 %vm93_vm1, %v3442_v29  ;;  %6756 = vmatmul.mubr.msk.f32.vlgmr.msra.gmra.mrb[44].mxu1 %vm93_vm1, %v8345_v30 }
 0x56e   :  { %7344 = vmatpush3.bf16.msra.mxu0 %v7749_v9  ;;  %7350 = vmatpush3.bf16.msra.mxu1 %v7780_v19 }
 0x56f   :  { %7345 = vmatprep.subr.bf16.mxu0 %v7649_v0  ;;  %7351 = vmatprep.subr.bf16.mxu1 %v7649_v0 }
 0x570   :  { %6766 = vmatprep.mubr.msk.f32.mxu0 %vm7650_vm0, %v7651_v8  ;;  %6777 = vmatprep.mubr.msk.f32.mxu1 %vm7650_vm0, %v7651_v8 }
 0x572   :  { %7347 = vmatpush3.bf16.msra.mxu0 %v7764_v14  ;;  %7353 = vmatpush3.bf16.msra.mxu1 %v7808_v26 }
 0x573   :  { %7354 = vmatprep.subr.bf16.mxu0 %v7649_v0  ;;  %7360 = vmatprep.subr.bf16.mxu1 %v7649_v0 }
 0x575   :  { %6767 = vmatmul.mubr.msk.f32.vlgmr.msra.gmra.mrb[46].mxu0 %vm93_vm1, %v5836_v2  ;;  %6778 = vmatmul.mubr.msk.f32.vlgmr.msra.gmra.mrb[46].mxu1 %vm93_vm1, %v8345_v30 }
 0x576   :  { %7356 = vmatpush3.bf16.msra.mxu0 %v7789_v21  ;;  %7362 = vmatpush3.bf16.msra.mxu1 %v7840_v34 }
 0x577   :  { %7357 = vmatprep.subr.bf16.mxu0 %v7649_v0  ;;  %7363 = vmatprep.subr.bf16.mxu1 %v7649_v0 }
 0x578   :  { %6788 = vmatprep.mubr.msk.f32.mxu0 %vm7650_vm0, %v7651_v8  ;;  %6799 = vmatprep.mubr.msk.f32.mxu1 %vm7650_vm0, %v7651_v8 }
 0x57a   :  { %7359 = vmatpush3.bf16.msra.mxu0 %v7817_v28  ;;  %7365 = vmatpush3.bf16.msra.mxu1 %v7865_v41 }
 0x57b   :  { %7366 = vmatprep.subr.bf16.mxu0 %v7649_v0  ;;  %7372 = vmatprep.subr.bf16.mxu1 %v7649_v0 }
 0x57d   :  { %6789 = vmatmul.mubr.msk.f32.vlgmr.msra.gmra.mrb[48].mxu0 %vm93_vm1, %v5836_v2  ;;  %6800 = vmatmul.mubr.msk.f32.vlgmr.msra.gmra.mrb[48].mxu1 %vm93_vm1, %v8345_v30 }
 0x57e   :  { %7368 = vmatpush3.bf16.msra.mxu0 %v7845_v36  ;;  %7374 = vmatpush3.bf16.msra.mxu1 %v7891_v48 }
 0x57f   :  { %7369 = vmatprep.subr.bf16.mxu0 %v7649_v0  ;;  %7375 = vmatprep.subr.bf16.mxu1 %v7649_v0 }
 0x580   :  { %6810 = vmatprep.mubr.msk.f32.mxu0 %vm7650_vm0, %v7651_v8  ;;  %6821 = vmatprep.mubr.msk.f32.mxu1 %vm7650_vm0, %v7651_v8 }
 0x582   :  { %7371 = vmatpush3.bf16.msra.mxu0 %v7870_v43  ;;  %7377 = vmatpush3.bf16.msra.mxu1 %v7915_v55 }
 0x583   :  { %7378 = vmatprep.subr.bf16.mxu0 %v7649_v0  ;;  %7384 = vmatprep.subr.bf16.mxu1 %v7649_v0 }
 0x585   :  { %6811 = vmatmul.mubr.msk.f32.vlgmr.msra.gmra.mrb[50].mxu0 %vm93_vm1, %v5836_v2  ;;  %6822 = vmatmul.mubr.msk.f32.vlgmr.msra.gmra.mrb[50].mxu1 %vm93_vm1, %v8345_v30 }
 0x586   :  { %7380 = vmatpush3.bf16.msra.mxu0 %v7896_v50  ;;  %6832 = vmatprep.mubr.msk.f32.mxu0 %vm7650_vm0, %v7651_v8 }
 0x587   :  { %7381 = vmatprep.subr.bf16.mxu0 %v7649_v0  ;;  %7386 = vmatpush3.bf16.msra.mxu1 %v7947_v59 }
 0x588   :  { %7387 = vmatprep.subr.bf16.mxu1 %v7649_v0  ;;  %6843 = vmatprep.mubr.msk.f32.mxu1 %vm7650_vm0, %v7651_v8 }
 0x58a   :  { %7383 = vmatpush3.bf16.msra.mxu0 %v7919_v56 }
 0x58b   :  { %7390 = vmatprep.subr.bf16.mxu0 %v7649_v0  ;;  %7389 = vmatpush3.bf16.msra.mxu1 %v7957_v62 }
 0x58c   :  { %7396 = vmatprep.subr.bf16.mxu1 %v7649_v0 }
 0x58d   :  { %6833 = vmatmul.mubr.msk.f32.vlgmr.msra.gmra.mrb[52].mxu0 %vm93_vm1, %v5836_v2 }
 0x58e   :  { %7392 = vmatpush3.bf16.msra.mxu0 %v7734_v4  ;;  %6854 = vmatprep.mubr.msk.f32.mxu0 %vm7650_vm0, %v7651_v8 }
 0x58f   :  { %7393 = vmatprep.subr.bf16.mxu0 %v7649_v0 }
 0x592   :  { %7395 = vmatpush3.bf16.msra.mxu0 %v7760_v13 }
 0x593   :  { %7402 = vmatprep.subr.bf16.mxu0 %v7649_v0 }
 0x640   :  { %v3512_v16 = vpop.f32.mrb[44].mxu0  ;;  %v3589_v31 = vpop.f32.mrb[44].mxu1 }
 0x641   :  { %v3513_v27 = vadd.f32 %v8071_v22, %v3512_v16  ;;  %v6746_v32 = vpop.f32.mrb[45].mxu0  ;;  %v6757_v33 = vpop.f32.mrb[45].mxu1 }
 0x643   :  { %5835 = vst.msk [vmem:[%s8679_s11 + $0x8] sm:$0x3] %vm799_vm11, %v3513_v27  ;;  %v4118_v27 = vpop.permute.xlu1 %4117 }
 0x644   :  { %vm4119_vm2 = vcmp.eq.s32.totalorder %v4118_v27, 1 }
 0x648   :  { %v3662_v35 = vpop.f32.mrb[46].mxu0  ;;  %v3739_v37 = vpop.f32.mrb[46].mxu1 }
 0x649   :  { %v3663_v3 = vadd.f32 %v3662_v35, %v3589_v31  ;;  %v6768_v10 = vpop.f32.mrb[47].mxu0  ;;  %v6779_v40 = vpop.f32.mrb[47].mxu1 }
 0x64b   :  { %v3666_v44 = vadd.f32 %v8425_v42, %v3663_v3 }
 0x64d   :  { %v5839_v22 = vmul.f32 -1.442695, %v3666_v44 }
 0x64f   :  { %7596 = vpow2.f32 %v5839_v22 }
 0x650   :  { %v3809_v45 = vpop.f32.mrb[48].mxu0  ;;  %v3886_v46 = vpop.f32.mrb[48].mxu1 }
 0x651   :  { %v3810_v49 = vadd.f32 %v3809_v45, %v3739_v37  ;;  %v6790_v51 = vpop.f32.mrb[49].mxu0  ;;  %v6801_v52 = vpop.f32.mrb[49].mxu1  ;;  %v8526_v45 = vld [vmem:[%s8678_s6] ss:$0 sm:$0xff] }
 0x653   :  { %v3813_v12 = vadd.f32 %v8431_v54, %v3810_v49 }
 0x655   :  { %v5842_v1 = vmul.f32 -1.442695, %v3813_v12 }
 0x657   :  { %7598 = vpow2.f32 %v5842_v1 }
 0x658   :  { %v3956_v38 = vpop.f32.mrb[50].mxu0  ;;  %v4028_v57 = vpop.f32.mrb[50].mxu1 }
 0x659   :  { %v7597_v58 = vpop.eup %7596  ;;  %v3957_v60 = vadd.f32 %v3956_v38, %v3886_v46  ;;  %v6812_v61 = vpop.f32.mrb[51].mxu0 }
 0x65a   :  { %v6823_v15 = vpop.f32.mrb[51].mxu1  ;;  %v3670_v63 = vadd.f32 1.0, %v7597_v58 }
 0x65b   :  { %v3960_v6 = vadd.f32 %v8437_v5, %v3957_v60 }
 0x65c   :  { %7600 = vrcp.f32 %v3670_v63 }
 0x65d   :  { %7602 = vtanh.f32 %v3960_v6 }
 0x660   :  { %v4098_v7 = vpop.f32.mrb[52].mxu0 }
 0x661   :  { %v7599_v11 = vpop.eup %7598  ;;  %v4099_v47 = vadd.f32 %v4098_v7, %v4028_v57  ;;  %v6834_v53 = vpop.f32.mrb[53].mxu0 }
 0x662   :  { %v3817_v25 = vadd.f32 1.0, %v7599_v11 }
 0x663   :  { %v4102_v18 = vadd.f32 %v8443_v17, %v4099_v47 }
 0x664   :  { %7604 = vrcp.f32 %v3817_v25 }
 0x665   :  { %v5847_v39 = vmul.f32 -1.442695, %v4102_v18 }
 0x666   :  { %v7601_v23 = vpop.eup %7600 }
 0x667   :  { %v7603_v24 = vpop.eup %7602  ;;  %7606 = vpow2.f32 %v5847_v39 }
 0x668   :  { %v4110_v29 = vmul.f32 %v7603_v24, %v7601_v23 }
 0x66e   :  { %v7605_v2 = vpop.eup %7604 }
 0x66f   :  { %v4109_v16 = vmul.f32 %v7605_v2, %v8342_v20 }
 0x671   :  { %v7607_v31 = vpop.eup %7606  ;;  %v4111_v32 = vadd.f32 %v4110_v29, %v4109_v16 }
 0x672   :  { %v4106_v33 = vadd.f32 1.0, %v7607_v31 }
 0x673   :  { %7608 = vtanh.f32 %v4111_v32  ;;  %v8448_v35 = vsel %vm4119_vm2, %v4111_v32, %v8342_v20  ;;  %v5850_v20 = vld [vmem:[%s8674_s0 + $0xc] sm:$0x3] }
 0x674   :  { %7610 = vrcp.f32 %v4106_v33 }
 0x67d   :  { %v7609_v37 = vpop.eup %7608 }
 0x67e   :  { %v7611_v3 = vpop.eup %7610 }
 0x67f   :  { %v4113_v10 = vmul.f32 %v7611_v3, %v7609_v37 }
 0x681   :  { %v4122_v40 = vsel %vm4119_vm2, %v4113_v10, 0.0  ;;  %v8451_v44 = vsel %vm4119_vm2, %v4113_v10, %v8345_v30 }
 0x682   :  { %6844 = vmatmul.mubr.msk.f32.vlgmr.msra.gmra.mrb[52].mxu1 %vm93_vm1, %v4122_v40  ;;  %6855 = vmatmul.mubr.msk.f32.vlgmr.msra.gmra.mrb[54].mxu0 %vm93_vm1, %v8451_v44 }
 0x683   :  { %7398 = vmatpush3.bf16.msra.mxu1 %v7749_v9  ;;  %7404 = vmatpush3.bf16.msra.mxu0 %v7780_v19 }
 0x684   :  { %7399 = vmatprep.subr.bf16.mxu1 %v7649_v0  ;;  %7405 = vmatprep.subr.bf16.mxu0 %v7649_v0 }
 0x685   :  { %6865 = vmatprep.mubr.msk.f32.mxu1 %vm7650_vm0, %v7651_v8  ;;  %6876 = vmatprep.mubr.msk.f32.mxu0 %vm7650_vm0, %v7651_v8 }
 0x687   :  { %7401 = vmatpush3.bf16.msra.mxu1 %v7764_v14  ;;  %7407 = vmatpush3.bf16.msra.mxu0 %v7808_v26 }
 0x688   :  { %7408 = vmatprep.subr.bf16.mxu1 %v7649_v0  ;;  %7414 = vmatprep.subr.bf16.mxu0 %v7649_v0 }
 0x68a   :  { %6866 = vmatmul.mubr.msk.f32.vlgmr.msra.gmra.mrb[54].mxu1 %vm93_vm1, %v5850_v20  ;;  %6877 = vmatmul.mubr.msk.f32.vlgmr.msra.gmra.mrb[56].mxu0 %vm93_vm1, %v8451_v44 }
 0x68b   :  { %7410 = vmatpush3.bf16.msra.mxu1 %v7789_v21  ;;  %7416 = vmatpush3.bf16.msra.mxu0 %v7840_v34 }
 0x68c   :  { %7411 = vmatprep.subr.bf16.mxu1 %v7649_v0  ;;  %7417 = vmatprep.subr.bf16.mxu0 %v7649_v0 }
 0x68d   :  { %6887 = vmatprep.mubr.msk.f32.mxu1 %vm7650_vm0, %v7651_v8  ;;  %6898 = vmatprep.mubr.msk.f32.mxu0 %vm7650_vm0, %v7651_v8 }
 0x68f   :  { %7413 = vmatpush3.bf16.msra.mxu1 %v7817_v28  ;;  %7419 = vmatpush3.bf16.msra.mxu0 %v7865_v41 }
 0x690   :  { %7420 = vmatprep.subr.bf16.mxu1 %v7649_v0  ;;  %7426 = vmatprep.subr.bf16.mxu0 %v7649_v0 }
 0x692   :  { %6888 = vmatmul.mubr.msk.f32.vlgmr.msra.gmra.mrb[56].mxu1 %vm93_vm1, %v5850_v20  ;;  %6899 = vmatmul.mubr.msk.f32.vlgmr.msra.gmra.mrb[58].mxu0 %vm93_vm1, %v8451_v44 }
 0x693   :  { %7422 = vmatpush3.bf16.msra.mxu1 %v7845_v36  ;;  %7428 = vmatpush3.bf16.msra.mxu0 %v7891_v48 }
 0x694   :  { %7423 = vmatprep.subr.bf16.mxu1 %v7649_v0  ;;  %7429 = vmatprep.subr.bf16.mxu0 %v7649_v0 }
 0x695   :  { %6909 = vmatprep.mubr.msk.f32.mxu1 %vm7650_vm0, %v7651_v8  ;;  %6920 = vmatprep.mubr.msk.f32.mxu0 %vm7650_vm0, %v7651_v8 }
 0x697   :  { %7425 = vmatpush3.bf16.msra.mxu1 %v7870_v43  ;;  %7431 = vmatpush3.bf16.msra.mxu0 %v7915_v55 }
 0x698   :  { %7432 = vmatprep.subr.bf16.mxu1 %v7649_v0  ;;  %7438 = vmatprep.subr.bf16.mxu0 %v7649_v0 }
 0x69a   :  { %6910 = vmatmul.mubr.msk.f32.vlgmr.msra.gmra.mrb[58].mxu1 %vm93_vm1, %v5850_v20  ;;  %6921 = vmatmul.mubr.msk.f32.vlgmr.msra.gmra.mrb[60].mxu0 %vm93_vm1, %v8451_v44 }
 0x69b   :  { %7434 = vmatpush3.bf16.msra.mxu1 %v7896_v50  ;;  %6931 = vmatprep.mubr.msk.f32.mxu1 %vm7650_vm0, %v7651_v8 }
 0x69c   :  { %7435 = vmatprep.subr.bf16.mxu1 %v7649_v0  ;;  %7440 = vmatpush3.bf16.msra.mxu0 %v7947_v59 }
 0x69d   :  { %7441 = vmatprep.subr.bf16.mxu0 %v7649_v0  ;;  %6942 = vmatprep.mubr.msk.f32.mxu0 %vm7650_vm0, %v7651_v8 }
 0x69f   :  { %7437 = vmatpush3.bf16.msra.mxu1 %v7919_v56 }
 0x6a0   :  { %7444 = vmatprep.subr.bf16.mxu1 %v7649_v0  ;;  %7443 = vmatpush3.bf16.msra.mxu0 %v7957_v62 }
 0x6a1   :  { %7450 = vmatprep.subr.bf16.mxu0 %v7649_v0 }
 0x6a2   :  { %6932 = vmatmul.mubr.msk.f32.vlgmr.msra.gmra.mrb[60].mxu1 %vm93_vm1, %v5850_v20  ;;  %v4798_v20 = vpop.permute.xlu0 %4797 }
 0x6a3   :  { %7446 = vmatpush3.bf16.msra.mxu1 %v7734_v4  ;;  %6953 = vmatprep.mubr.msk.f32.mxu1 %vm7650_vm0, %v7651_v8  ;;  %vm4799_vm3 = vcmp.eq.s32.totalorder %v4798_v20, 1 }
 0x6a4   :  { %7447 = vmatprep.subr.bf16.mxu1 %v7649_v0 }
 0x6a7   :  { %7449 = vmatpush3.bf16.msra.mxu1 %v7760_v13 }
 0x6a8   :  { %7456 = vmatprep.subr.bf16.mxu1 %v7649_v0 }
 0x755   :  { %v4192_v30 = vpop.f32.mrb[52].mxu1  ;;  %v4269_v22 = vpop.f32.mrb[54].mxu0 }
 0x756   :  { %v4193_v46 = vadd.f32 %v8526_v45, %v4192_v30  ;;  %v6845_v49 = vpop.f32.mrb[53].mxu1  ;;  %v6856_v4 = vpop.f32.mrb[55].mxu0 }
 0x758   :  { %5849 = vst.msk [vmem:[%s8679_s11 + $0xa] sm:$0x3] %vm799_vm11, %v4193_v46 }
 0x75d   :  { %v4342_v51 = vpop.f32.mrb[54].mxu1  ;;  %v4419_v13 = vpop.f32.mrb[56].mxu0 }
 0x75e   :  { %v4343_v52 = vadd.f32 %v4342_v51, %v4269_v22  ;;  %v6867_v12 = vpop.f32.mrb[55].mxu1  ;;  %v6878_v1 = vpop.f32.mrb[57].mxu0 }
 0x760   :  { %v4346_v38 = vadd.f32 %v8425_v42, %v4343_v52 }
 0x762   :  { %v5853_v57 = vmul.f32 -1.442695, %v4346_v38 }
 0x764   :  { %7612 = vpow2.f32 %v5853_v57 }
 0x765   :  { %v4489_v58 = vpop.f32.mrb[56].mxu1  ;;  %v4566_v60 = vpop.f32.mrb[58].mxu0 }
 0x766   :  { %v4490_v61 = vadd.f32 %v4489_v58, %v4419_v13  ;;  %v6889_v15 = vpop.f32.mrb[57].mxu1  ;;  %v6900_v63 = vpop.f32.mrb[59].mxu0 }
 0x768   :  { %v4493_v6 = vadd.f32 %v8431_v54, %v4490_v61 }
 0x76a   :  { %v5856_v7 = vmul.f32 -1.442695, %v4493_v6 }
 0x76c   :  { %7614 = vpow2.f32 %v5856_v7 }
 0x76d   :  { %v4636_v11 = vpop.f32.mrb[58].mxu1  ;;  %v4708_v47 = vpop.f32.mrb[60].mxu0 }
 0x76e   :  { %v7613_v53 = vpop.eup %7612  ;;  %v4637_v25 = vadd.f32 %v4636_v11, %v4566_v60  ;;  %v6911_v18 = vpop.f32.mrb[59].mxu1 }
 0x76f   :  { %v6922_v39 = vpop.f32.mrb[61].mxu0  ;;  %v4350_v23 = vadd.f32 1.0, %v7613_v53 }
 0x770   :  { %v4640_v24 = vadd.f32 %v8437_v5, %v4637_v25 }
 0x771   :  { %7616 = vrcp.f32 %v4350_v23 }
 0x772   :  { %7618 = vtanh.f32 %v4640_v24 }
 0x775   :  { %v4778_v29 = vpop.f32.mrb[60].mxu1 }
 0x776   :  { %v7615_v2 = vpop.eup %7614  ;;  %v4779_v16 = vadd.f32 %v4778_v29, %v4708_v47  ;;  %v6933_v31 = vpop.f32.mrb[61].mxu1 }
 0x777   :  { %v4497_v27 = vadd.f32 1.0, %v7615_v2 }
 0x778   :  { %v4782_v32 = vadd.f32 %v8443_v17, %v4779_v16 }
 0x779   :  { %7620 = vrcp.f32 %v4497_v27 }
 0x77a   :  { %v5861_v33 = vmul.f32 -1.442695, %v4782_v32 }
 0x77b   :  { %v7617_v37 = vpop.eup %7616 }
 0x77c   :  { %v7619_v3 = vpop.eup %7618  ;;  %7622 = vpow2.f32 %v5861_v33 }
 0x77d   :  { %v4790_v10 = vmul.f32 %v7619_v3, %v7617_v37  ;;  %v5478_v3 = vpop.permute.xlu1 %5477 }
 0x77e   :  { %vm5479_vm4 = vcmp.eq.s32.totalorder %v5478_v3, 1 }
 0x783   :  { %v7621_v40 = vpop.eup %7620 }
 0x784   :  { %v4789_v30 = vmul.f32 %v7621_v40, %v8448_v35 }
 0x786   :  { %v7623_v22 = vpop.eup %7622  ;;  %v4791_v46 = vadd.f32 %v4790_v10, %v4789_v30 }
 0x787   :  { %v4786_v49 = vadd.f32 1.0, %v7623_v22  ;;  %v5644_v22 = vld [vmem:[%s8681_s9 + $0x8] sm:$0xff] }
 0x788   :  { %7624 = vtanh.f32 %v4791_v46  ;;  %v8539_v4 = vsel %vm4799_vm3, %v4791_v46, %v8448_v35 }
 0x789   :  { %7626 = vrcp.f32 %v4786_v49 }
 0x792   :  { %v7625_v51 = vpop.eup %7624 }
 0x793   :  { %v7627_v13 = vpop.eup %7626 }
 0x794   :  { %v4793_v52 = vmul.f32 %v7627_v13, %v7625_v51 }
 0x796   :  { %v4802_v12 = vsel %vm4799_vm3, %v4793_v52, 0.0  ;;  %v8542_v1 = vsel %vm4799_vm3, %v4793_v52, %v8451_v44  ;;  %v5645_v52 = vld [vmem:[%s8681_s9 + $0x10] sm:$0xff] }
 0x797   :  { %6943 = vmatmul.mubr.msk.f32.vlgmr.msra.gmra.mrb[62].mxu0 %vm93_vm1, %v4802_v12  ;;  %6954 = vmatmul.mubr.msk.f32.vlgmr.msra.gmra.mrb[62].mxu1 %vm93_vm1, %v8542_v1 }
 0x798   :  { %7452 = vmatpush3.bf16.msra.mxu0 %v7749_v9  ;;  %7458 = vmatpush3.bf16.msra.mxu1 %v7780_v19  ;;  %v5864_v9 = vld [vmem:[%s8674_s0 + $0xe] sm:$0x3] }
 0x799   :  { %7453 = vmatprep.subr.bf16.mxu0 %v7649_v0  ;;  %7459 = vmatprep.subr.bf16.mxu1 %v7649_v0  ;;  %v5559_v19 = vld [vmem:[%s8680_s7 + $0x8] sm:$0xff] }
 0x79a   :  { %6964 = vmatprep.mubr.msk.f32.mxu0 %vm7650_vm0, %v7651_v8  ;;  %6975 = vmatprep.mubr.msk.f32.mxu1 %vm7650_vm0, %v7651_v8 }
 0x79c   :  { %7455 = vmatpush3.bf16.msra.mxu0 %v7764_v14  ;;  %7461 = vmatpush3.bf16.msra.mxu1 %v7808_v26  ;;  %v5558_v14 = vld [vmem:[%s8680_s7] sm:$0xff] }
 0x79d   :  { %7462 = vmatprep.subr.bf16.mxu0 %v7649_v0  ;;  %7468 = vmatprep.subr.bf16.mxu1 %v7649_v0  ;;  %v7499_v26 = vpack.c.bf16 %v5559_v19, %v5558_v14  ;;  %v5878_v19 = vld [vmem:[%s8682_s8] ss:$0 sm:$0xff] }
 0x79f   :  { %6965 = vmatmul.mubr.msk.f32.vlgmr.msra.gmra.mrb[64].mxu0 %vm93_vm1, %v5864_v9  ;;  %6976 = vmatmul.mubr.msk.f32.vlgmr.msra.gmra.mrb[64].mxu1 %vm93_vm1, %v8542_v1 }
 0x7a0   :  { %7464 = vmatpush3.bf16.msra.mxu0 %v7789_v21  ;;  %7470 = vmatpush3.bf16.msra.mxu1 %v7840_v34  ;;  %v5560_v21 = vld [vmem:[%s8680_s7 + $0x10] sm:$0xff] }
 0x7a1   :  { %7465 = vmatprep.subr.bf16.mxu0 %v7649_v0  ;;  %7471 = vmatprep.subr.bf16.mxu1 %v7649_v0 }
 0x7a2   :  { %6986 = vmatprep.mubr.msk.f32.mxu0 %vm7650_vm0, %v7651_v8  ;;  %6997 = vmatprep.mubr.msk.f32.mxu1 %vm7650_vm0, %v7651_v8 }
 0x7a4   :  { %7467 = vmatpush3.bf16.msra.mxu0 %v7817_v28  ;;  %7473 = vmatpush3.bf16.msra.mxu1 %v7865_v41  ;;  %v5561_v28 = vld [vmem:[%s8680_s7 + $0x18] sm:$0xff] }
 0x7a5   :  { %7474 = vmatprep.subr.bf16.mxu0 %v7649_v0  ;;  %7480 = vmatprep.subr.bf16.mxu1 %v7649_v0  ;;  %v7502_v34 = vpack.c.bf16 %v5561_v28, %v5560_v21 }
 0x7a7   :  { %6987 = vmatmul.mubr.msk.f32.vlgmr.msra.gmra.mrb[66].mxu0 %vm93_vm1, %v5864_v9  ;;  %6998 = vmatmul.mubr.msk.f32.vlgmr.msra.gmra.mrb[66].mxu1 %vm93_vm1, %v8542_v1 }
 0x7a8   :  { %7476 = vmatpush3.bf16.msra.mxu0 %v7845_v36  ;;  %7482 = vmatpush3.bf16.msra.mxu1 %v7891_v48 }
 0x7a9   :  { %7477 = vmatprep.subr.bf16.mxu0 %v7649_v0  ;;  %7483 = vmatprep.subr.bf16.mxu1 %v7649_v0 }
 0x7aa   :  { %7008 = vmatprep.mubr.msk.f32.mxu0 %vm7650_vm0, %v7651_v8  ;;  %7019 = vmatprep.mubr.msk.f32.mxu1 %vm7650_vm0, %v7651_v8 }
 0x7ac   :  { %7479 = vmatpush3.bf16.msra.mxu0 %v7870_v43  ;;  %7485 = vmatpush3.bf16.msra.mxu1 %v7915_v55 }
 0x7ad   :  { %7486 = vmatprep.subr.bf16.mxu0 %v7649_v0  ;;  %7492 = vmatprep.subr.bf16.mxu1 %v7649_v0 }
 0x7af   :  { %7009 = vmatmul.mubr.msk.f32.vlgmr.msra.gmra.mrb[68].mxu0 %vm93_vm1, %v5864_v9  ;;  %7020 = vmatmul.mubr.msk.f32.vlgmr.msra.gmra.mrb[68].mxu1 %vm93_vm1, %v8542_v1 }
 0x7b0   :  { %7488 = vmatpush3.bf16.msra.mxu0 %v7896_v50  ;;  %7030 = vmatprep.mubr.msk.f32.mxu0 %vm7650_vm0, %v7651_v8 }
 0x7b1   :  { %7489 = vmatprep.subr.bf16.mxu0 %v7649_v0  ;;  %7494 = vmatpush3.bf16.msra.mxu1 %v7947_v59 }
 0x7b2   :  { %7495 = vmatprep.subr.bf16.mxu1 %v7649_v0  ;;  %7041 = vmatprep.mubr.msk.f32.mxu1 %vm7650_vm0, %v7651_v8 }
 0x7b4   :  { %7491 = vmatpush3.bf16.msra.mxu0 %v7919_v56 }
 0x7b5   :  { %7498 = vmatprep.subr.bf16.mxu0 %v7649_v0  ;;  %7497 = vmatpush3.bf16.msra.mxu1 %v7957_v62 }
 0x7b6   :  { %7504 = vmatprep.subr.bf16.mxu1 %v7649_v0 }
 0x7b7   :  { %7031 = vmatmul.mubr.msk.f32.vlgmr.msra.gmra.mrb[70].mxu0 %vm93_vm1, %v5864_v9 }
 0x7b8   :  { %7052 = vmatprep.mubr.msk.f32.mxu0 %vm7650_vm0, %v7651_v8  ;;  %7500 = vmatpush3.bf16.msra.mxu0 %v7499_v26 }
 0x7b9   :  { %7501 = vmatprep.subr.bf16.mxu0 %v7649_v0 }
 0x7bc   :  { %7503 = vmatpush3.bf16.msra.mxu0 %v7502_v34 }
 0x86a   :  { %v4872_v36 = vpop.f32.mrb[62].mxu0  ;;  %v4949_v41 = vpop.f32.mrb[62].mxu1 }
 0x86b   :  { %v4873_v43 = vadd.f32 %v8526_v45, %v4872_v36  ;;  %v6944_v48 = vpop.f32.mrb[63].mxu0  ;;  %v6955_v50 = vpop.f32.mrb[63].mxu1 }
 0x86d   :  { %5863 = vst.msk [vmem:[%s8679_s11 + $0xc] sm:$0x3] %vm799_vm11, %v4873_v43 }
 0x872   :  { %v5022_v55 = vpop.f32.mrb[64].mxu0  ;;  %v5099_v56 = vpop.f32.mrb[64].mxu1 }
 0x873   :  { %v5023_v59 = vadd.f32 %v5022_v55, %v4949_v41  ;;  %v6966_v62 = vpop.f32.mrb[65].mxu0  ;;  %v6977_v35 = vpop.f32.mrb[65].mxu1 }
 0x875   :  { %v5026_v44 = vadd.f32 %v8425_v42, %v5023_v59 }
 0x877   :  { %v5867_v38 = vmul.f32 -1.442695, %v5026_v44 }
 0x879   :  { %7628 = vpow2.f32 %v5867_v38 }
 0x87a   :  { %v5169_v57 = vpop.f32.mrb[66].mxu0  ;;  %v5246_v58 = vpop.f32.mrb[66].mxu1 }
 0x87b   :  { %v5170_v60 = vadd.f32 %v5169_v57, %v5099_v56  ;;  %v6988_v61 = vpop.f32.mrb[67].mxu0  ;;  %v6999_v15 = vpop.f32.mrb[67].mxu1 }
 0x87d   :  { %v5173_v63 = vadd.f32 %v8431_v54, %v5170_v60 }
 0x87f   :  { %v5870_v6 = vmul.f32 -1.442695, %v5173_v63 }
 0x881   :  { %7630 = vpow2.f32 %v5870_v6 }
 0x882   :  { %v5316_v7 = vpop.f32.mrb[68].mxu0  ;;  %v5388_v11 = vpop.f32.mrb[68].mxu1 }
 0x883   :  { %v7629_v47 = vpop.eup %7628  ;;  %v5317_v53 = vadd.f32 %v5316_v7, %v5246_v58  ;;  %v7010_v25 = vpop.f32.mrb[69].mxu0 }
 0x884   :  { %v7021_v18 = vpop.f32.mrb[69].mxu1  ;;  %v5030_v39 = vadd.f32 1.0, %v7629_v47 }
 0x885   :  { %v5320_v42 = vadd.f32 %v8437_v5, %v5317_v53 }
 0x886   :  { %7632 = vrcp.f32 %v5030_v39 }
 0x887   :  { %7634 = vtanh.f32 %v5320_v42 }
 0x88a   :  { %v5458_v23 = vpop.f32.mrb[70].mxu0 }
 0x88b   :  { %v7631_v24 = vpop.eup %7630  ;;  %v5459_v29 = vadd.f32 %v5458_v23, %v5388_v11  ;;  %v7032_v2 = vpop.f32.mrb[71].mxu0 }
 0x88c   :  { %v5177_v16 = vadd.f32 1.0, %v7631_v24 }
 0x88d   :  { %v5462_v54 = vadd.f32 %v8443_v17, %v5459_v29  ;;  %v5643_v17 = vld [vmem:[%s8681_s9] sm:$0xff] }
 0x88e   :  { %7636 = vrcp.f32 %v5177_v16  ;;  %v7505_v13 = vpack.c.bf16 %v5644_v22, %v5643_v17 }
 0x88f   :  { %v5875_v31 = vmul.f32 -1.442695, %v5462_v54 }
 0x890   :  { %v7633_v27 = vpop.eup %7632 }
 0x891   :  { %v7635_v32 = vpop.eup %7634  ;;  %7638 = vpow2.f32 %v5875_v31 }
 0x892   :  { %v5470_v33 = vmul.f32 %v7635_v32, %v7633_v27 }
 0x898   :  { %v7637_v37 = vpop.eup %7636 }
 0x899   :  { %v5469_v10 = vmul.f32 %v7637_v37, %v8539_v4 }
 0x89b   :  { %v7639_v5 = vpop.eup %7638  ;;  %v5471_v40 = vadd.f32 %v5470_v33, %v5469_v10 }
 0x89c   :  { %v5466_v20 = vadd.f32 1.0, %v7639_v5 }
 0x89d   :  { %7640 = vtanh.f32 %v5471_v40  ;;  %v5481_v30 = vsel %vm5479_vm4, %v5471_v40, %v8539_v4  ;;  %v5646_v4 = vld [vmem:[%s8681_s9 + $0x18] sm:$0xff] }
 0x89e   :  { %7642 = vrcp.f32 %v5466_v20  ;;  %v7508_v14 = vpack.c.bf16 %v5646_v4, %v5645_v52 }
 0x8a7   :  { %v7641_v46 = vpop.eup %7640 }
 0x8a8   :  { %v7643_v49 = vpop.eup %7642 }
 0x8a9   :  { %v5473_v51 = vmul.f32 %v7643_v49, %v7641_v46 }
 0x8ab   :  { %v5482_v12 = vsel %vm5479_vm4, %v5473_v51, 0.0  ;;  %v5480_v9 = vsel %vm5479_vm4, %v5473_v51, %v8542_v1 }
 0x8ac   :  { %7042 = vmatmul.mubr.msk.f32.vlgmr.msra.gmra.mrb[70].mxu1 %vm93_vm1, %v5482_v12  ;;  %7053 = vmatmul.mubr.msk.f32.vlgmr.msra.gmra.mrb[72].mxu0 %vm93_vm1, %v5480_v9 }
 0x8ad   :  { %7506 = vmatpush3.bf16.msra.mxu1 %v7505_v13  ;;  %7063 = vmatprep.mubr.msk.f32.mxu1 %vm7650_vm0, %v7651_v8 }
 0x8ae   :  { %7507 = vmatprep.subr.bf16.mxu1 %v7649_v0  ;;  %v5880_v0 = vld [vmem:[%s8684_s10] ss:$0 sm:$0xff] }
 0x8b1   :  { %7509 = vmatpush3.bf16.msra.mxu1 %v7508_v14 }
 0x8b4   :  { %7064 = vmatmul.mubr.msk.f32.vlgmr.msra.gmra.mrb[72].mxu1 %vm93_vm1, %v5481_v30 }
 0x97f   :  { %v5552_v21 = vpop.f32.mrb[70].mxu1  ;;  %v5638_v1 = vpop.f32.mrb[72].mxu0 }
 0x980   :  { %v5553_v26 = vadd.f32 %v8526_v45, %v5552_v21  ;;  %v5639_v28 = vadd.f32 %v5878_v19, %v5638_v1  ;;  %v7043_v34 = vpop.f32.mrb[71].mxu1  ;;  %v7054_v36 = vpop.f32.mrb[73].mxu0 }
 0x982   :  { %5877 = vst.msk [vmem:[%s8679_s11 + $0xe] sm:$0x3] %vm799_vm11, %v5553_v26  ;;  %5642 = vst.msk [vmem:[%s8683_s12] sm:$0x3] %vm799_vm11, %v5639_v28 }
 0x987   :  { %v5723_v8 = vpop.f32.mrb[72].mxu1 }
 0x988   :  { %v5724_v41 = vadd.f32 %v5880_v0, %v5723_v8  ;;  %v7065_v45 = vpop.f32.mrb[73].mxu1 }
 0x98a   :  { %5727 = vst.msk [vmem:[%s8685_s13] sm:$0x3] %vm799_vm11, %v5724_v41 }

// kernel: seq_model_forward.3
= control target key start
LH: loop header
LB: loop body
LE: loop exit
PB: predicated region body
PF: predicated region fallthrough
CT: control target
= control target key end

     0   :  { %v12910_v0 = vmov 0.0|0.0   ;;  %vm12911_vm0 = vmmov 0   ;;  %v12912_v8 = vmov 0.0   ;;  %vm139_vm1 = vcmask 261120   ;;  %s14507_s6 = inlined_call_operand.vmem [shape: f32[4,32,32], index: 6, kind: input, shape index: {}]   ;;  %s14508_s5 = inlined_call_operand.vmem [shape: f32[4,32,32], index: 5, kind: input, shape index: {}]   ;;  %s14509_s3 = inlined_call_operand.vmem [shape: f32[2,32], index: 3, kind: input, shape index: {}]   ;;  %s14510_s0 = inlined_call_operand.vmem [shape: f32[8,2,32], index: 0, kind: input, shape index: {}]   ;;  %s14511_s8 = inlined_call_operand.vmem [shape: f32[32,32], index: 8, kind: input, shape index: {}]   ;;  %s14512_s7 = inlined_call_operand.vmem [shape: f32[4,1,32], index: 7, kind: input, shape index: {}]   ;;  %s14513_s4 = inlined_call_operand.vmem [shape: f32[2,32], index: 4, kind: input, shape index: {}]   ;;  %s14514_s9 = inlined_call_operand.vmem [shape: f32[2,32,32], index: 9, kind: input, shape index: {}]   ;;  %s14515_s1 = inlined_call_operand.vmem [shape: f32[2,8,32], index: 1, kind: input, shape index: {}]   ;;  %s14516_s2 = inlined_call_operand.vmem [shape: f32[2,8], index: 2, kind: input, shape index: {}]   ;;  %s14517_s10 = inlined_call_operand.vmem [shape: f32[32,50], index: 10, kind: input, shape index: {}]   ;;  %s14518_s11 = inlined_call_operand.vmem [shape: f32[1,50], index: 11, kind: input, shape index: {}]   ;;  %s14519_s12 = inlined_call_operand.vmem [shape: f32[8,2,50], index: 12, kind: output, shape index: {0}]   ;;  %s14520_s13 = inlined_call_operand.vmem [shape: f32[8,2,50], index: 13, kind: output, shape index: {1}]  }
   0x1   :  { %12060 = vmatprep.subr.bf16.mxu0 %v12910_v0  ;;  %12066 = vmatprep.subr.bf16.mxu1 %v12910_v0  ;;  %v92_v1 = vld [vmem:[%s14507_s6] sm:$0xff]  ;;  %v93_v2 = vld [vmem:[%s14507_s6 + $0x8] sm:$0xff]  ;;  %v94_v6 = vld [vmem:[%s14507_s6 + $0x10] sm:$0xff]  ;;  %vm1004_vm3 = vcmask 57344   ;;  %vm1027_vm4 = vcmask 64512   ;;  %vm1247_vm5 = vcmask 1041409  }
   0x2   :  { %v73_v3 = vld [vmem:[%s14508_s5] sm:$0xff]  ;;  %v12995_v4 = vpack.c.bf16 %v93_v2, %v92_v1  ;;  %v74_v5 = vld [vmem:[%s14508_s5 + $0x8] sm:$0xff]  ;;  %v95_v7 = vld [vmem:[%s14507_s6 + $0x18] sm:$0xff]  ;;  %10852 = vmatprep.mubr.msk.f32.mxu0 %vm12911_vm0, %v12912_v8  ;;  %10863 = vmatprep.mubr.msk.f32.mxu1 %vm12911_vm0, %v12912_v8  ;;  %vm1401_vm6 = vcmask 402432  }
   0x3   :  { %v13010_v9 = vpack.c.bf16 %v74_v5, %v73_v3  ;;  %v75_v10 = vld [vmem:[%s14508_s5 + $0x10] sm:$0xff]  ;;  %v76_v11 = vld [vmem:[%s14508_s5 + $0x18] sm:$0xff]  ;;  %v13019_v12 = vpack.c.bf16 %v95_v7, %v94_v6  ;;  %v10087_v14 = vld [vmem:[%s14507_s6 + $0x20] sm:$0xff] }
   0x4   :  { %12062 = vmatpush3.bf16.msra.mxu0 %v12995_v4  ;;  %v13023_v13 = vpack.c.bf16 %v76_v11, %v75_v10  ;;  %v10088_v15 = vld [vmem:[%s14507_s6 + $0x28] sm:$0xff]  ;;  %v10075_v16 = vld [vmem:[%s14508_s5 + $0x20] sm:$0xff]  ;;  %v10089_v22 = vld [vmem:[%s14507_s6 + $0x30] sm:$0xff] }
   0x5   :  { %12068 = vmatpush3.bf16.msra.mxu1 %v13010_v9  ;;  %12063 = vmatprep.subr.bf16.mxu0 %v12910_v0  ;;  %v10076_v17 = vld [vmem:[%s14508_s5 + $0x28] sm:$0xff]  ;;  %v13042_v18 = vld [vmem:[%s14509_s3] sm:$0x3]  ;;  %v13044_v19 = vpack.c.bf16 %v10088_v15, %v10087_v14  ;;  %v10090_v23 = vld [vmem:[%s14507_s6 + $0x38] sm:$0xff] }
   0x6   :  { %12069 = vmatprep.subr.bf16.mxu1 %v12910_v0  ;;  %v13050_v20 = vld [vmem:[%s14510_s0] sm:$0x3]  ;;  %v13053_v21 = vpack.c.bf16 %v10076_v17, %v10075_v16  ;;  %v10077_v24 = vld [vmem:[%s14508_s5 + $0x30] sm:$0xff]  ;;  %v10078_v25 = vld [vmem:[%s14508_s5 + $0x38] sm:$0xff]  ;;  %v13073_v26 = vpack.c.bf16 %v10090_v23, %v10089_v22 }
   0x7   :  { %v13077_v27 = vpack.c.bf16 %v10078_v25, %v10077_v24  ;;  %v10091_v28 = vld [vmem:[%s14507_s6 + $0x40] sm:$0xff]  ;;  %v10092_v29 = vld [vmem:[%s14507_s6 + $0x48] sm:$0xff]  ;;  %v10093_v34 = vld [vmem:[%s14507_s6 + $0x50] sm:$0xff] }
   0x8   :  { %12065 = vmatpush3.bf16.msra.mxu0 %v13019_v12  ;;  %v10079_v30 = vld [vmem:[%s14508_s5 + $0x40] sm:$0xff]  ;;  %v10080_v31 = vld [vmem:[%s14508_s5 + $0x48] sm:$0xff]  ;;  %v13097_v32 = vpack.c.bf16 %v10092_v29, %v10091_v28  ;;  %v10094_v35 = vld [vmem:[%s14507_s6 + $0x58] sm:$0xff] }
   0x9   :  { %12071 = vmatpush3.bf16.msra.mxu1 %v13023_v13  ;;  %12072 = vmatprep.subr.bf16.mxu0 %v12910_v0  ;;  %v13101_v33 = vpack.c.bf16 %v10080_v31, %v10079_v30  ;;  %v10081_v36 = vld [vmem:[%s14508_s5 + $0x50] sm:$0xff]  ;;  %v10082_v37 = vld [vmem:[%s14508_s5 + $0x58] sm:$0xff]  ;;  %v13121_v38 = vpack.c.bf16 %v10094_v35, %v10093_v34  ;;  %v10095_v40 = vld [vmem:[%s14507_s6 + $0x60] sm:$0xff] }
   0xa   :  { %12078 = vmatprep.subr.bf16.mxu1 %v12910_v0  ;;  %v13125_v39 = vpack.c.bf16 %v10082_v37, %v10081_v36  ;;  %v10096_v41 = vld [vmem:[%s14507_s6 + $0x68] sm:$0xff]  ;;  %v10083_v42 = vld [vmem:[%s14508_s5 + $0x60] sm:$0xff]  ;;  %v10097_v46 = vld [vmem:[%s14507_s6 + $0x70] sm:$0xff] }
   0xb   :  { %10853 = vmatmul.mubr.msk.f32.vlgmr.msra.gmra.mrb[0].mxu0 %vm139_vm1, %v13042_v18  ;;  %v10084_v43 = vld [vmem:[%s14508_s5 + $0x68] sm:$0xff]  ;;  %v13145_v44 = vpack.c.bf16 %v10096_v41, %v10095_v40  ;;  %v10098_v47 = vld [vmem:[%s14507_s6 + $0x78] sm:$0xff]  ;;  %v10085_v48 = vld [vmem:[%s14508_s5 + $0x70] sm:$0xff] }
   0xc   :  { %10864 = vmatmul.mubr.msk.f32.vlgmr.msra.gmra.mrb[0].mxu1 %vm139_vm1, %v13050_v20  ;;  %12074 = vmatpush3.bf16.msra.mxu0 %v13044_v19  ;;  %v13149_v45 = vpack.c.bf16 %v10084_v43, %v10083_v42  ;;  %v10086_v49 = vld [vmem:[%s14508_s5 + $0x78] sm:$0xff]  ;;  %v13169_v50 = vpack.c.bf16 %v10098_v47, %v10097_v46  ;;  %v118_v52 = vld [vmem:[%s14511_s8] sm:$0xff]  ;;  %v119_v53 = vld [vmem:[%s14511_s8 + $0x8] sm:$0xff] }
   0xd   :  { %12080 = vmatpush3.bf16.msra.mxu1 %v13053_v21  ;;  %12075 = vmatprep.subr.bf16.mxu0 %v12910_v0  ;;  %v13173_v51 = vpack.c.bf16 %v10086_v49, %v10085_v48  ;;  %v120_v54 = vld [vmem:[%s14511_s8 + $0x10] sm:$0xff]  ;;  %v13201_v55 = vpack.c.bf16 %v119_v53, %v118_v52  ;;  %v121_v56 = vld [vmem:[%s14511_s8 + $0x18] sm:$0xff]  ;;  %v13215_v59 = vld [vmem:[%s14512_s7] ss:$0 sm:$0xff] }
   0xe   :  { %12081 = vmatprep.subr.bf16.mxu1 %v12910_v0  ;;  %10874 = vmatprep.mubr.msk.f32.mxu0 %vm12911_vm0, %v12912_v8  ;;  %v13207_v57 = vpack.c.bf16 %v121_v56, %v120_v54  ;;  %v13221_v5 = vld [vmem:[%s14512_s7 + $0x1] ss:$0 sm:$0xff]  ;;  %v13227_v17 = vld [vmem:[%s14512_s7 + $0x2] ss:$0 sm:$0xff]  ;;  %v13233_v30 = vld [vmem:[%s14512_s7 + $0x3] ss:$0 sm:$0xff] }
   0xf   :  { %10885 = vmatprep.mubr.msk.f32.mxu1 %vm12911_vm0, %v12912_v8  ;;  %v137_v48 = vld [vmem:[%s14513_s4] sm:$0x3] }
  0x10   :  { %12077 = vmatpush3.bf16.msra.mxu0 %v13073_v26 }
  0x11   :  { %12083 = vmatpush3.bf16.msra.mxu1 %v13077_v27  ;;  %12084 = vmatprep.subr.bf16.mxu0 %v12910_v0 }
  0x12   :  { %12090 = vmatprep.subr.bf16.mxu1 %v12910_v0 }
  0x13   :  { %10875 = vmatmul.mubr.msk.f32.vlgmr.msra.gmra.mrb[2].mxu0 %vm139_vm1, %v13042_v18 }
  0x14   :  { %10886 = vmatmul.mubr.msk.f32.vlgmr.msra.gmra.mrb[2].mxu1 %vm139_vm1, %v13050_v20  ;;  %12086 = vmatpush3.bf16.msra.mxu0 %v13097_v32 }
  0x15   :  { %12092 = vmatpush3.bf16.msra.mxu1 %v13101_v33  ;;  %12087 = vmatprep.subr.bf16.mxu0 %v12910_v0 }
  0x16   :  { %12093 = vmatprep.subr.bf16.mxu1 %v12910_v0  ;;  %10896 = vmatprep.mubr.msk.f32.mxu0 %vm12911_vm0, %v12912_v8 }
  0x17   :  { %10907 = vmatprep.mubr.msk.f32.mxu1 %vm12911_vm0, %v12912_v8 }
  0x18   :  { %12089 = vmatpush3.bf16.msra.mxu0 %v13121_v38 }
  0x19   :  { %12095 = vmatpush3.bf16.msra.mxu1 %v13125_v39  ;;  %12096 = vmatprep.subr.bf16.mxu0 %v12910_v0 }
  0x1a   :  { %12102 = vmatprep.subr.bf16.mxu1 %v12910_v0 }
  0x1b   :  { %10897 = vmatmul.mubr.msk.f32.vlgmr.msra.gmra.mrb[4].mxu0 %vm139_vm1, %v13042_v18 }
  0x1c   :  { %10908 = vmatmul.mubr.msk.f32.vlgmr.msra.gmra.mrb[4].mxu1 %vm139_vm1, %v13050_v20  ;;  %12098 = vmatpush3.bf16.msra.mxu0 %v13145_v44 }
  0x1d   :  { %12104 = vmatpush3.bf16.msra.mxu1 %v13149_v45  ;;  %12099 = vmatprep.subr.bf16.mxu0 %v12910_v0 }
  0x1e   :  { %12105 = vmatprep.subr.bf16.mxu1 %v12910_v0  ;;  %10918 = vmatprep.mubr.msk.f32.mxu0 %vm12911_vm0, %v12912_v8 }
  0x1f   :  { %10929 = vmatprep.mubr.msk.f32.mxu1 %vm12911_vm0, %v12912_v8 }
  0x20   :  { %12101 = vmatpush3.bf16.msra.mxu0 %v13169_v50 }
  0x21   :  { %12107 = vmatpush3.bf16.msra.mxu1 %v13173_v51  ;;  %12108 = vmatprep.subr.bf16.mxu0 %v12910_v0 }
  0x22   :  { %10943 = vmatprep.subr.mxu1 %v12912_v8 }
  0x23   :  { %10919 = vmatmul.mubr.msk.f32.vlgmr.msra.gmra.mrb[6].mxu0 %vm139_vm1, %v13042_v18 }
  0x24   :  { %10930 = vmatmul.mubr.msk.f32.vlgmr.msra.gmra.mrb[6].mxu1 %vm139_vm1, %v13050_v20  ;;  %10940 = vmatprep.mubr.msk.f32.mxu0 %vm12911_vm0, %v12912_v8 }
  0x25   :  { %10945 = vmatprep.mubr.msk.f32.mxu1 %vm12911_vm0, %v12912_v8  ;;  %12110 = vmatpush3.bf16.msra.mxu0 %v13201_v55 }
  0x26   :  { %12111 = vmatprep.subr.bf16.mxu0 %v12910_v0 }
  0x29   :  { %12113 = vmatpush3.bf16.msra.mxu0 %v13207_v57 }
  0x2a   :  { %12114 = vmatprep.subr.bf16.mxu0 %v12910_v0 }
  0xde   :  { %v209_v58 = vpop.f32.mrb[0].mxu0 }
  0xdf   :  { %v282_v60 = vpop.f32.mrb[0].mxu1  ;;  %v10854_v61 = vpop.f32.mrb[1].mxu0 }
  0xe0   :  { %v283_v62 = vadd.f32 %v282_v60, %v209_v58  ;;  %v10865_v63 = vpop.f32.mrb[1].mxu1  ;;  %v10102_v58 = vld [vmem:[%s14514_s9 + $0x20] sm:$0xff]  ;;  %v10103_v60 = vld [vmem:[%s14514_s9 + $0x28] sm:$0xff] }
  0xe1   :  { %v13248_v63 = vpack.c.bf16 %v10103_v60, %v10102_v58 }
  0xe2   :  { %v292_v1 = vadd.f32 %v13215_v59, %v283_v62 }
  0xe4   :  { %v10109_v2 = vmul.f32 -1.442695, %v292_v1 }
  0xe6   :  { %12656 = vpow2.f32 %v10109_v2  ;;  %v365_v3 = vpop.f32.mrb[2].mxu0  ;;  %v10104_v2 = vld [vmem:[%s14514_s9 + $0x30] sm:$0xff] }
  0xe7   :  { %v435_v6 = vpop.f32.mrb[2].mxu1  ;;  %v10876_v7 = vpop.f32.mrb[3].mxu0 }
  0xe8   :  { %v436_v10 = vadd.f32 %v435_v6, %v365_v3  ;;  %v10887_v11 = vpop.f32.mrb[3].mxu1  ;;  %v10105_v3 = vld [vmem:[%s14514_s9 + $0x38] sm:$0xff]  ;;  %v13275_v7 = vld [vmem:[%s14515_s1] sm:$0xff] }
  0xe9   :  { %v13261_v6 = vpack.c.bf16 %v10105_v3, %v10104_v2  ;;  %10944 = vmatpush3.xpose.msk.msra.mxu1 %vm139_vm1, %v13275_v7 }
  0xea   :  { %v445_v14 = vadd.f32 %v13221_v5, %v436_v10  ;;  %10948 = vmatprep.subr.mxu1 %v12912_v8  ;;  %v12913_v10 = vmov 1966171168  }
  0xeb   :  { %v50_v11 = vunpack.c.l.s4 %v12913_v10 }
  0xec   :  { %v10113_v15 = vmul.f32 -1.442695, %v445_v14  ;;  %v52_v14 = vlaneseq }
  0xee   :  { %12658 = vpow2.f32 %v10113_v15  ;;  %v518_v16 = vpop.f32.mrb[4].mxu0  ;;  %v51_v15 = vunpack.c.0.s8 %v50_v11 }
  0xef   :  { %v588_v18 = vpop.f32.mrb[4].mxu1  ;;  %v10898_v20 = vpop.f32.mrb[5].mxu0 }
  0xf0   :  { %v12657_v22 = vpop.eup %12656  ;;  %v589_v23 = vadd.f32 %v588_v18, %v518_v16  ;;  %v10909_v24 = vpop.f32.mrb[5].mxu1  ;;  %v53_v16 = vshrl.u32 %v52_v14, 7 }
  0xf1   :  { %v296_v25 = vadd.f32 1.0, %v12657_v22 }
  0xf2   :  { %v598_v28 = vadd.f32 %v13227_v17, %v589_v23  ;;  %v13280_v18 = vsub.s32 %v51_v15, %v53_v16 }
  0xf3   :  { %12660 = vrcp.f32 %v296_v25 }
  0xf4   :  { %12662 = vtanh.f32 %v598_v28  ;;  %v13287_v28 = vld [vmem:[%s14515_s1 + $0x8] sm:$0xff] }
  0xf6   :  { %v666_v29 = vpop.f32.mrb[6].mxu0 }
  0xf7   :  { %v736_v31 = vpop.f32.mrb[6].mxu1  ;;  %v10920_v34 = vpop.f32.mrb[7].mxu0 }
  0xf8   :  { %v12659_v35 = vpop.eup %12658  ;;  %v737_v36 = vadd.f32 %v736_v31, %v666_v29  ;;  %v10931_v37 = vpop.f32.mrb[7].mxu1  ;;  %v45_v31 = vld [vmem:[%s14516_s2] sm:$0x3] }
  0xf9   :  { %v449_v40 = vadd.f32 1.0, %v12659_v35  ;;  %vm46_vm2 = vcmp.gt.f32.partialorder %v45_v31, 0.5  ;;  %v124_v31 = vld [vmem:[%s14514_s9 + $0x10] sm:$0xff] }
  0xfa   :  { %v746_v41 = vadd.f32 %v13233_v30, %v737_v36  ;;  %v47_v34 = vsel %vm46_vm2, -1e+30, %v12912_v8 }
  0xfb   :  { %12664 = vrcp.f32 %v449_v40  ;;  %v55_v35 = vrot.slane %v47_v34, %v13280_v18  ;;  %v125_v34 = vld [vmem:[%s14514_s9 + $0x18] sm:$0xff] }
  0xfc   :  { %v10120_v42 = vmul.f32 -1.442695, %v746_v41 }
  0xfd   :  { %v12661_v43 = vpop.eup %12660  ;;  %v13307_v36 = vrot.slane %v55_v35, %v13280_v18  ;;  %v56_v37 = vcombine.high %v55_v35, %v55_v35  ;;  %v13342_v35 = vpack.c.bf16 %v125_v34, %v124_v31 }
  0xfe   :  { %v12663_v46 = vpop.eup %12662  ;;  %12666 = vpow2.f32 %v10120_v42 }
  0xff   :  { %v754_v47 = vmul.f32 %v12663_v46, %v12661_v43  ;;  %v13311_v43 = vrot.slane %v56_v37, %v13280_v18 }
 0x105   :  { %v12665_v49 = vpop.eup %12664 }
 0x106   :  { %v753_v52 = vmul.f32 %v12665_v49, %v137_v48 }
 0x108   :  { %v12667_v53 = vpop.eup %12666  ;;  %v13239_v54 = vadd.f32 %v754_v47, %v753_v52 }
 0x109   :  { %v750_v56 = vadd.f32 1.0, %v12667_v53 }
 0x10a   :  { %12668 = vtanh.f32 %v13239_v54 }
 0x10b   :  { %12670 = vrcp.f32 %v750_v56 }
 0x114   :  { %v12669_v61 = vpop.eup %12668 }
 0x115   :  { %v12671_v62 = vpop.eup %12670 }
 0x116   :  { %v13250_v1 = vmul.f32 %v12671_v62, %v12669_v61 }
 0x118   :  { %10941 = vmatmul.mubr.msk.f32.vlgmr.msra.gmra.mrb[8].mxu0 %vm139_vm1, %v13250_v1 }
 0x119   :  { %12116 = vmatpush3.bf16.msra.mxu0 %v13248_v63  ;;  %10971 = vmatprep.mubr.msk.f32.mxu0 %vm12911_vm0, %v12912_v8 }
 0x11a   :  { %12117 = vmatprep.subr.bf16.mxu0 %v12910_v0 }
 0x11d   :  { %12119 = vmatpush3.bf16.msra.mxu0 %v13261_v6 }
 0x11e   :  { %12120 = vmatprep.subr.bf16.mxu0 %v12910_v0 }
 0x120   :  { %10972 = vmatmul.mubr.msk.f32.vlgmr.msra.gmra.mrb[10].mxu0 %vm139_vm1, %v13250_v1 }
 0x121   :  { %10982 = vmatprep.mubr.msk.f32.mxu0 %vm12911_vm0, %v12912_v8 }
 0x1eb   :  { %v827_v20 = vpop.f32.mrb[8].mxu0 }
 0x1ec   :  { %v838_v22 = vrot.slane %v827_v20, %v13280_v18  ;;  %v10942_v23 = vpop.f32.mrb[9].mxu0 }
 0x1ee   :  { %v839_v24 = vcombine.high %v838_v22, %v838_v22  ;;  %v846_v25 = vrot.slane %v838_v22, %v13280_v18 }
 0x1f0   :  { %10946 = vmatmul.mubr.msk.f32.vlgmr.msra.gmra.mrb[8].mxu1 %vm139_vm1, %v846_v25  ;;  %v853_v29 = vrot.slane %v839_v24, %v13280_v18  ;;  %v122_v24 = vld [vmem:[%s14514_s9] sm:$0xff]  ;;  %v123_v25 = vld [vmem:[%s14514_s9 + $0x8] sm:$0xff] }
 0x1f1   :  { %10949 = vmatpush3.xpose.msk.msra.mxu1 %vm139_vm1, %v13287_v28  ;;  %10950 = vmatprep.mubr.msk.f32.mxu1 %vm12911_vm0, %v12912_v8 }
 0x1f2   :  { %10953 = vmatprep.subr.mxu1 %v12912_v8 }
 0x1f4   :  { %10951 = vmatmul.mubr.msk.f32.vlgmr.msra.gmra.mrb[10].mxu1 %vm139_vm1, %v853_v29  ;;  %v13332_v29 = vpack.c.bf16 %v123_v25, %v122_v24 }
 0x1f5   :  { %10954 = vmatpush3.msra.mxu1 %v13275_v7  ;;  %10955 = vmatprep.mubr.msk.f32.mxu1 %vm12911_vm0, %v12912_v8 }
 0x1f6   :  { %10958 = vmatprep.subr.mxu1 %v12912_v8  ;;  %12122 = vmatpush3.bf16.msra.mxu0 %v13332_v29 }
 0x1f7   :  { %12123 = vmatprep.subr.bf16.mxu0 %v12910_v0 }
 0x1fa   :  { %12125 = vmatpush3.bf16.msra.mxu0 %v13342_v35 }
 0x1fb   :  { %12138 = vmatprep.subr.bf16.mxu0 %v12910_v0 }
 0x2c3   :  { %v925_v40 = vpop.f32.mrb[8].mxu1 }
 0x2c4   :  { %v926_v41 = vadd.f32 %v925_v40, %v13307_v36  ;;  %v10947_v42 = vpop.f32.mrb[9].mxu1 }
 0x2c6   :  { %v1005_v46 = vsel %vm1004_vm3, %v926_v41, -inf }
 0x2c7   :  { %1006 = vmax.xlane.f32.xlu0 %v1005_v46  ;;  %v1000_v47 = vpop.f32.mrb[10].mxu1 }
 0x2c8   :  { %v1001_v48 = vadd.f32 %v1000_v47, %v13311_v43  ;;  %v10952_v49 = vpop.f32.mrb[11].mxu1 }
 0x2c9   :  { %v132_v49 = vld [vmem:[%s14517_s10 + $0x8] sm:$0xff] }
 0x2ca   :  { %v1008_v52 = vsel %vm1004_vm3, %v1001_v48, -inf }
 0x2cb   :  { %1009 = vmax.xlane.f32.xlu0 %v1008_v52  ;;  %v133_v52 = vld [vmem:[%s14517_s10 + $0x10] sm:$0xff] }
 0x354   :  { %v1007_v53 = vpop.xlane.xlu0 %1006 }
 0x355   :  { %v1011_v56 = vsub.f32 %v926_v41, %v1007_v53 }
 0x357   :  { %v1013_v58 = vmul.f32 1.442695, %v1011_v56  ;;  %v134_v56 = vld [vmem:[%s14517_s10 + $0x18] sm:$0xff] }
 0x358   :  { %v1010_v60 = vpop.xlane.xlu0 %1009 }
 0x359   :  { %12672 = vpow2.f32 %v1013_v58  ;;  %v1012_v61 = vsub.f32 %v1001_v48, %v1010_v60  ;;  %v131_v48 = vld [vmem:[%s14517_s10] sm:$0xff]  ;;  %v13369_v58 = vpack.c.bf16 %v134_v56, %v133_v52 }
 0x35a   :  { %v13363_v53 = vpack.c.bf16 %v132_v49, %v131_v48  ;;  %v10132_v60 = vld [vmem:[%s14510_s0 + $0x2] sm:$0x3] }
 0x35b   :  { %v1015_v62 = vmul.f32 1.442695, %v1012_v61 }
 0x35d   :  { %12674 = vpow2.f32 %v1015_v62 }
 0x363   :  { %v12673_v2 = vpop.eup %12672 }
 0x364   :  { %v1017_v3 = vsel %vm1004_vm3, %v12673_v2, 0.0 }
 0x365   :  { %1018 = vadd.xlane.f32.xlu1 %v1017_v3 }
 0x367   :  { %v12675_v10 = vpop.eup %12674 }
 0x368   :  { %v1020_v11 = vsel %vm1004_vm3, %v12675_v10, 0.0 }
 0x369   :  { %1021 = vadd.xlane.f32.xlu1 %v1020_v11 }
 0x3f2   :  { %v1019_v14 = vpop.xlane.xlu1 %1018 }
 0x3f3   :  { %12676 = vrcp.f32 %v1019_v14 }
 0x3f6   :  { %v1022_v15 = vpop.xlane.xlu1 %1021 }
 0x3f7   :  { %12678 = vrcp.f32 %v1022_v15 }
 0x3fd   :  { %v12677_v16 = vpop.eup %12676 }
 0x3fe   :  { %v1025_v20 = vmul.f32 %v12677_v16, %v12673_v2 }
 0x400   :  { %10956 = vmatmul.mubr.msk.f32.vlgmr.msra.gmra.mrb[12].mxu1 %vm1027_vm4, %v1025_v20 }
 0x401   :  { %v12679_v22 = vpop.eup %12678  ;;  %10959 = vmatpush3.msra.mxu1 %v13287_v28  ;;  %10960 = vmatprep.mubr.msk.f32.mxu1 %vm12911_vm0, %v12912_v8 }
 0x402   :  { %v1026_v23 = vmul.f32 %v12679_v22, %v12675_v10  ;;  %12126 = vmatprep.subr.bf16.mxu1 %v12910_v0 }
 0x404   :  { %10961 = vmatmul.mubr.msk.f32.vlgmr.msra.gmra.mrb[14].mxu1 %vm1027_vm4, %v1026_v23 }
 0x405   :  { %10993 = vmatprep.mubr.msk.f32.mxu1 %vm12911_vm0, %v12912_v8  ;;  %12128 = vmatpush3.bf16.msra.mxu1 %v13363_v53 }
 0x406   :  { %12129 = vmatprep.subr.bf16.mxu1 %v12910_v0 }
 0x409   :  { %12131 = vmatpush3.bf16.msra.mxu1 %v13369_v58 }
 0x40a   :  { %12132 = vmatprep.subr.bf16.mxu1 %v12910_v0 }
 0x4d3   :  { %v1097_v37 = vpop.f32.mrb[12].mxu1 }
 0x4d4   :  { %v10957_v40 = vpop.f32.mrb[13].mxu1 }
 0x4d7   :  { %v1170_v41 = vpop.f32.mrb[14].mxu1 }
 0x4d8   :  { %v1246_v42 = vrot.slane %v1170_v41, 7  ;;  %v10962_v46 = vpop.f32.mrb[15].mxu1 }
 0x4da   :  { %v1248_v47 = vsel %vm1247_vm5, %v1246_v42, %v1097_v37 }
 0x4db   :  { %10983 = vmatmul.mubr.msk.f32.vlgmr.msra.gmra.mrb[10].mxu0 %vm139_vm1, %v1248_v47 }
 0x4dc   :  { %12140 = vmatpush3.bf16.msra.mxu0 %v13010_v9  ;;  %11015 = vmatprep.mubr.msk.f32.mxu0 %vm12911_vm0, %v12912_v8 }
 0x4dd   :  { %12141 = vmatprep.subr.bf16.mxu0 %v12910_v0 }
 0x4e0   :  { %12143 = vmatpush3.bf16.msra.mxu0 %v13023_v13 }
 0x4e1   :  { %12150 = vmatprep.subr.bf16.mxu0 %v12910_v0 }
 0x4e3   :  { %11016 = vmatmul.mubr.msk.f32.vlgmr.msra.gmra.mrb[12].mxu0 %vm139_vm1, %v10132_v60 }
 0x4e4   :  { %12152 = vmatpush3.bf16.msra.mxu0 %v13053_v21  ;;  %11037 = vmatprep.mubr.msk.f32.mxu0 %vm12911_vm0, %v12912_v8 }
 0x4e5   :  { %12153 = vmatprep.subr.bf16.mxu0 %v12910_v0 }
 0x4e8   :  { %12155 = vmatpush3.bf16.msra.mxu0 %v13077_v27 }
 0x4e9   :  { %12162 = vmatprep.subr.bf16.mxu0 %v12910_v0 }
 0x4eb   :  { %11038 = vmatmul.mubr.msk.f32.vlgmr.msra.gmra.mrb[14].mxu0 %vm139_vm1, %v10132_v60 }
 0x4ec   :  { %12164 = vmatpush3.bf16.msra.mxu0 %v13101_v33  ;;  %11059 = vmatprep.mubr.msk.f32.mxu0 %vm12911_vm0, %v12912_v8 }
 0x4ed   :  { %12165 = vmatprep.subr.bf16.mxu0 %v12910_v0 }
 0x4f0   :  { %12167 = vmatpush3.bf16.msra.mxu0 %v13125_v39 }
 0x4f1   :  { %12174 = vmatprep.subr.bf16.mxu0 %v12910_v0 }
 0x4f3   :  { %11060 = vmatmul.mubr.msk.f32.vlgmr.msra.gmra.mrb[16].mxu0 %vm139_vm1, %v10132_v60 }
 0x4f4   :  { %12176 = vmatpush3.bf16.msra.mxu0 %v13149_v45  ;;  %11081 = vmatprep.mubr.msk.f32.mxu0 %vm12911_vm0, %v12912_v8 }
 0x4f5   :  { %12177 = vmatprep.subr.bf16.mxu0 %v12910_v0 }
 0x4f8   :  { %12179 = vmatpush3.bf16.msra.mxu0 %v13173_v51 }
 0x4f9   :  { %11095 = vmatprep.subr.mxu0 %v12912_v8 }
 0x4fb   :  { %11082 = vmatmul.mubr.msk.f32.vlgmr.msra.gmra.mrb[18].mxu0 %vm139_vm1, %v10132_v60 }
 0x4fc   :  { %11097 = vmatprep.mubr.msk.f32.mxu0 %vm12911_vm0, %v12912_v8 }
 0x501   :  { %11096 = vmatpush3.xpose.msk.msra.mxu0 %vm139_vm1, %v13275_v7 }
 0x502   :  { %11105 = vmatprep.subr.mxu0 %v12912_v8 }
 0x5ae   :  { %v1317_v61 = vpop.f32.mrb[10].mxu0 }
 0x5af   :  { %12680 = vtanh.f32 %v1317_v61  ;;  %v10984_v62 = vpop.f32.mrb[11].mxu0 }
 0x5b6   :  { %v1556_v3 = vpop.f32.mrb[12].mxu0 }
 0x5b7   :  { %v11017_v10 = vpop.f32.mrb[13].mxu0 }
 0x5b9   :  { %v12681_v2 = vpop.eup %12680 }
 0x5ba   :  { %10994 = vmatmul.mubr.msk.f32.vlgmr.msra.gmra.mrb[16].mxu1 %vm139_vm1, %v12681_v2 }
 0x5bb   :  { %12134 = vmatpush3.bf16.msra.mxu1 %v12995_v4  ;;  %11004 = vmatprep.mubr.msk.f32.mxu1 %vm12911_vm0, %v12912_v8 }
 0x5bc   :  { %12135 = vmatprep.subr.bf16.mxu1 %v12910_v0 }
 0x5be   :  { %v1703_v11 = vpop.f32.mrb[14].mxu0 }
 0x5bf   :  { %12137 = vmatpush3.bf16.msra.mxu1 %v13019_v12  ;;  %v11039_v14 = vpop.f32.mrb[15].mxu0 }
 0x5c0   :  { %12144 = vmatprep.subr.bf16.mxu1 %v12910_v0 }
 0x5c2   :  { %11005 = vmatmul.mubr.msk.f32.vlgmr.msra.gmra.mrb[18].mxu1 %vm139_vm1, %v13250_v1 }
 0x5c3   :  { %12146 = vmatpush3.bf16.msra.mxu1 %v13044_v19  ;;  %11026 = vmatprep.mubr.msk.f32.mxu1 %vm12911_vm0, %v12912_v8 }
 0x5c4   :  { %12147 = vmatprep.subr.bf16.mxu1 %v12910_v0 }
 0x5c6   :  { %v1850_v15 = vpop.f32.mrb[16].mxu0 }
 0x5c7   :  { %12149 = vmatpush3.bf16.msra.mxu1 %v13073_v26  ;;  %v11061_v16 = vpop.f32.mrb[17].mxu0 }
 0x5c8   :  { %12156 = vmatprep.subr.bf16.mxu1 %v12910_v0 }
 0x5ca   :  { %11027 = vmatmul.mubr.msk.f32.vlgmr.msra.gmra.mrb[20].mxu1 %vm139_vm1, %v13250_v1 }
 0x5cb   :  { %12158 = vmatpush3.bf16.msra.mxu1 %v13097_v32  ;;  %11048 = vmatprep.mubr.msk.f32.mxu1 %vm12911_vm0, %v12912_v8 }
 0x5cc   :  { %12159 = vmatprep.subr.bf16.mxu1 %v12910_v0 }
 0x5ce   :  { %v1992_v20 = vpop.f32.mrb[18].mxu0 }
 0x5cf   :  { %12161 = vmatpush3.bf16.msra.mxu1 %v13121_v38  ;;  %v11083_v22 = vpop.f32.mrb[19].mxu0 }
 0x5d0   :  { %12168 = vmatprep.subr.bf16.mxu1 %v12910_v0 }
 0x5d2   :  { %11049 = vmatmul.mubr.msk.f32.vlgmr.msra.gmra.mrb[22].mxu1 %vm139_vm1, %v13250_v1 }
 0x5d3   :  { %12170 = vmatpush3.bf16.msra.mxu1 %v13145_v44  ;;  %11070 = vmatprep.mubr.msk.f32.mxu1 %vm12911_vm0, %v12912_v8 }
 0x5d4   :  { %12171 = vmatprep.subr.bf16.mxu1 %v12910_v0 }
 0x5d7   :  { %12173 = vmatpush3.bf16.msra.mxu1 %v13169_v50 }
 0x5d8   :  { %12180 = vmatprep.subr.bf16.mxu1 %v12910_v0 }
 0x5da   :  { %11071 = vmatmul.mubr.msk.f32.vlgmr.msra.gmra.mrb[24].mxu1 %vm139_vm1, %v13250_v1  ;;  %v13446_v1 = vld [vmem:[%s14518_s11] ss:$0 sm:$0xff] }
 0x5db   :  { %12182 = vmatpush3.bf16.msra.mxu1 %v13201_v55  ;;  %11092 = vmatprep.mubr.msk.f32.mxu1 %vm12911_vm0, %v12912_v8 }
 0x5dc   :  { %12183 = vmatprep.subr.bf16.mxu1 %v12910_v0 }
 0x5df   :  { %12185 = vmatpush3.bf16.msra.mxu1 %v13207_v57 }
 0x5e0   :  { %11100 = vmatprep.subr.mxu1 %v12912_v8 }
 0x68d   :  { %v1397_v23 = vpop.f32.mrb[16].mxu1 }
 0x68e   :  { %v13449_v24 = vadd.f32 %v13446_v1, %v1397_v23  ;;  %v10995_v25 = vpop.f32.mrb[17].mxu1 }
 0x690   :  { %1402 = vst.msk [vmem:[%s14519_s12] sm:$0x3] %vm1401_vm6, %v13449_v24 }
 0x695   :  { %v1483_v31 = vpop.f32.mrb[18].mxu1 }
 0x696   :  { %v1557_v34 = vadd.f32 %v1556_v3, %v1483_v31  ;;  %v11006_v37 = vpop.f32.mrb[19].mxu1 }
 0x698   :  { %v1560_v40 = vadd.f32 %v13215_v59, %v1557_v34 }
 0x69a   :  { %v10135_v41 = vmul.f32 -1.442695, %v1560_v40 }
 0x69c   :  { %12682 = vpow2.f32 %v10135_v41 }
 0x69d   :  { %v1633_v42 = vpop.f32.mrb[20].mxu1 }
 0x69e   :  { %v1704_v46 = vadd.f32 %v1703_v11, %v1633_v42  ;;  %v11028_v47 = vpop.f32.mrb[21].mxu1 }
 0x6a0   :  { %v1707_v48 = vadd.f32 %v13221_v5, %v1704_v46 }
 0x6a2   :  { %v10138_v49 = vmul.f32 -1.442695, %v1707_v48 }
 0x6a4   :  { %12684 = vpow2.f32 %v10138_v49 }
 0x6a5   :  { %v1780_v52 = vpop.f32.mrb[22].mxu1 }
 0x6a6   :  { %v12683_v56 = vpop.eup %12682  ;;  %v1851_v60 = vadd.f32 %v1850_v15, %v1780_v52  ;;  %v11050_v61 = vpop.f32.mrb[23].mxu1 }
 0x6a7   :  { %v1564_v62 = vadd.f32 1.0, %v12683_v56 }
 0x6a8   :  { %v1854_v2 = vadd.f32 %v13227_v17, %v1851_v60 }
 0x6a9   :  { %12686 = vrcp.f32 %v1564_v62 }
 0x6aa   :  { %12688 = vtanh.f32 %v1854_v2 }
 0x6ad   :  { %v1922_v3 = vpop.f32.mrb[24].mxu1 }
 0x6ae   :  { %v12685_v10 = vpop.eup %12684  ;;  %v1993_v14 = vadd.f32 %v1992_v20, %v1922_v3  ;;  %v11072_v16 = vpop.f32.mrb[25].mxu1 }
 0x6af   :  { %v1711_v22 = vadd.f32 1.0, %v12685_v10 }
 0x6b0   :  { %v1996_v11 = vadd.f32 %v13233_v30, %v1993_v14 }
 0x6b1   :  { %12690 = vrcp.f32 %v1711_v22 }
 0x6b2   :  { %v10143_v23 = vmul.f32 -1.442695, %v1996_v11 }
 0x6b3   :  { %v12687_v25 = vpop.eup %12686 }
 0x6b4   :  { %v12689_v31 = vpop.eup %12688  ;;  %12692 = vpow2.f32 %v10143_v23 }
 0x6b5   :  { %v2004_v34 = vmul.f32 %v12689_v31, %v12687_v25 }
 0x6bb   :  { %v12691_v15 = vpop.eup %12690 }
 0x6bc   :  { %v2003_v37 = vmul.f32 %v12691_v15, %v13239_v54 }
 0x6be   :  { %v12693_v40 = vpop.eup %12692  ;;  %v13461_v41 = vadd.f32 %v2004_v34, %v2003_v37 }
 0x6bf   :  { %v2000_v42 = vadd.f32 1.0, %v12693_v40 }
 0x6c0   :  { %12694 = vtanh.f32 %v13461_v41 }
 0x6c1   :  { %12696 = vrcp.f32 %v2000_v42 }
 0x6ca   :  { %v12695_v20 = vpop.eup %12694 }
 0x6cb   :  { %v12697_v46 = vpop.eup %12696 }
 0x6cc   :  { %v13464_v47 = vmul.f32 %v12697_v46, %v12695_v20 }
 0x6ce   :  { %11093 = vmatmul.mubr.msk.f32.vlgmr.msra.gmra.mrb[26].mxu1 %vm139_vm1, %v13464_v47 }
 0x6cf   :  { %11101 = vmatpush3.xpose.msk.msra.mxu1 %vm139_vm1, %v13287_v28  ;;  %11102 = vmatprep.mubr.msk.f32.mxu1 %vm12911_vm0, %v12912_v8 }
 0x6d0   :  { %11110 = vmatprep.subr.mxu1 %v12912_v8 }
 0x7a1   :  { %v2077_v54 = vpop.f32.mrb[26].mxu1 }
 0x7a2   :  { %v2088_v48 = vrot.slane %v2077_v54, %v13280_v18  ;;  %v11094_v49 = vpop.f32.mrb[27].mxu1 }
 0x7a4   :  { %v2089_v52 = vcombine.high %v2088_v48, %v2088_v48  ;;  %v2096_v56 = vrot.slane %v2088_v48, %v13280_v18 }
 0x7a6   :  { %v2103_v60 = vrot.slane %v2089_v52, %v13280_v18  ;;  %11098 = vmatmul.mubr.msk.f32.vlgmr.msra.gmra.mrb[20].mxu0 %vm139_vm1, %v2096_v56 }
 0x7a7   :  { %11106 = vmatpush3.msra.mxu0 %v13275_v7  ;;  %11107 = vmatprep.mubr.msk.f32.mxu0 %vm12911_vm0, %v12912_v8 }
 0x7a8   :  { %11103 = vmatmul.mubr.msk.f32.vlgmr.msra.gmra.mrb[28].mxu1 %vm139_vm1, %v2103_v60  ;;  %12186 = vmatprep.subr.bf16.mxu0 %v12910_v0 }
 0x7a9   :  { %11111 = vmatpush3.msra.mxu1 %v13287_v28  ;;  %11112 = vmatprep.mubr.msk.f32.mxu1 %vm12911_vm0, %v12912_v8 }
 0x7aa   :  { %12198 = vmatprep.subr.bf16.mxu1 %v12910_v0 }
 0x879   :  { %v2172_v61 = vpop.f32.mrb[20].mxu0 }
 0x87a   :  { %v2173_v62 = vadd.f32 %v2172_v61, %v13307_v36  ;;  %v11099_v2 = vpop.f32.mrb[21].mxu0 }
 0x87b   :  { %v2244_v3 = vpop.f32.mrb[28].mxu1 }
 0x87c   :  { %v2245_v10 = vadd.f32 %v2244_v3, %v13311_v43  ;;  %v11104_v14 = vpop.f32.mrb[29].mxu1  ;;  %v2248_v16 = vsel %vm1004_vm3, %v2173_v62, -inf }
 0x87d   :  { %2249 = vmax.xlane.f32.xlu1 %v2248_v16  ;;  %v10156_v14 = vld [vmem:[%s14510_s0 + $0x4] sm:$0x3] }
 0x87e   :  { %v2251_v22 = vsel %vm1004_vm3, %v2245_v10, -inf }
 0x87f   :  { %2252 = vmax.xlane.f32.xlu0 %v2251_v22 }
 0x90a   :  { %v2250_v11 = vpop.xlane.xlu1 %2249 }
 0x90b   :  { %v2254_v23 = vsub.f32 %v2173_v62, %v2250_v11 }
 0x90c   :  { %v2253_v25 = vpop.xlane.xlu0 %2252 }
 0x90d   :  { %v2256_v31 = vmul.f32 1.442695, %v2254_v23  ;;  %v2255_v34 = vsub.f32 %v2245_v10, %v2253_v25 }
 0x90f   :  { %12698 = vpow2.f32 %v2256_v31  ;;  %v2258_v15 = vmul.f32 1.442695, %v2255_v34 }
 0x911   :  { %12700 = vpow2.f32 %v2258_v15 }
 0x919   :  { %v12699_v37 = vpop.eup %12698 }
 0x91a   :  { %v2260_v40 = vsel %vm1004_vm3, %v12699_v37, 0.0 }
 0x91b   :  { %v12701_v42 = vpop.eup %12700  ;;  %2261 = vadd.xlane.f32.xlu1 %v2260_v40 }
 0x91c   :  { %v2263_v20 = vsel %vm1004_vm3, %v12701_v42, 0.0 }
 0x91d   :  { %2264 = vadd.xlane.f32.xlu0 %v2263_v20 }
 0x9a8   :  { %v2262_v46 = vpop.xlane.xlu1 %2261 }
 0x9a9   :  { %12702 = vrcp.f32 %v2262_v46 }
 0x9aa   :  { %v2265_v54 = vpop.xlane.xlu0 %2264 }
 0x9ab   :  { %12704 = vrcp.f32 %v2265_v54 }
 0x9b3   :  { %v12703_v48 = vpop.eup %12702 }
 0x9b4   :  { %v2268_v49 = vmul.f32 %v12703_v48, %v12699_v37 }
 0x9b5   :  { %v12705_v52 = vpop.eup %12704 }
 0x9b6   :  { %v2269_v56 = vmul.f32 %v12705_v52, %v12701_v42  ;;  %11108 = vmatmul.mubr.msk.f32.vlgmr.msra.gmra.mrb[22].mxu0 %vm1027_vm4, %v2268_v49 }
 0x9b7   :  { %12188 = vmatpush3.bf16.msra.mxu0 %v13248_v63  ;;  %11123 = vmatprep.mubr.msk.f32.mxu0 %vm12911_vm0, %v12912_v8 }
 0x9b8   :  { %11113 = vmatmul.mubr.msk.f32.vlgmr.msra.gmra.mrb[30].mxu1 %vm1027_vm4, %v2269_v56  ;;  %12189 = vmatprep.subr.bf16.mxu0 %v12910_v0 }
 0x9b9   :  { %12200 = vmatpush3.bf16.msra.mxu1 %v13363_v53  ;;  %11145 = vmatprep.mubr.msk.f32.mxu1 %vm12911_vm0, %v12912_v8 }
 0x9ba   :  { %12201 = vmatprep.subr.bf16.mxu1 %v12910_v0 }
 0x9bb   :  { %12191 = vmatpush3.bf16.msra.mxu0 %v13261_v6 }
 0x9bc   :  { %12192 = vmatprep.subr.bf16.mxu0 %v12910_v0 }
 0x9bd   :  { %12203 = vmatpush3.bf16.msra.mxu1 %v13369_v58 }
 0x9be   :  { %11124 = vmatmul.mubr.msk.f32.vlgmr.msra.gmra.mrb[24].mxu0 %vm139_vm1, %v13464_v47  ;;  %12204 = vmatprep.subr.bf16.mxu1 %v12910_v0 }
 0x9bf   :  { %12194 = vmatpush3.bf16.msra.mxu0 %v13332_v29  ;;  %11134 = vmatprep.mubr.msk.f32.mxu0 %vm12911_vm0, %v12912_v8 }
 0x9c0   :  { %12195 = vmatprep.subr.bf16.mxu0 %v12910_v0 }
 0x9c3   :  { %12197 = vmatpush3.bf16.msra.mxu0 %v13342_v35 }
 0x9c4   :  { %12210 = vmatprep.subr.bf16.mxu0 %v12910_v0 }
 0xa89   :  { %v2339_v60 = vpop.f32.mrb[22].mxu0 }
 0xa8a   :  { %v11109_v61 = vpop.f32.mrb[23].mxu0 }
 0xa8b   :  { %v2412_v62 = vpop.f32.mrb[30].mxu1 }
 0xa8c   :  { %v2488_v2 = vrot.slane %v2412_v62, 7  ;;  %v11114_v3 = vpop.f32.mrb[31].mxu1 }
 0xa8e   :  { %v2489_v10 = vsel %vm1247_vm5, %v2488_v2, %v2339_v60 }
 0xa8f   :  { %11135 = vmatmul.mubr.msk.f32.vlgmr.msra.gmra.mrb[24].mxu0 %vm139_vm1, %v2489_v10 }
 0xa90   :  { %12212 = vmatpush3.bf16.msra.mxu0 %v13010_v9  ;;  %11167 = vmatprep.mubr.msk.f32.mxu0 %vm12911_vm0, %v12912_v8 }
 0xa91   :  { %12213 = vmatprep.subr.bf16.mxu0 %v12910_v0 }
 0xa94   :  { %12215 = vmatpush3.bf16.msra.mxu0 %v13023_v13 }
 0xa95   :  { %12222 = vmatprep.subr.bf16.mxu0 %v12910_v0 }
 0xa97   :  { %11168 = vmatmul.mubr.msk.f32.vlgmr.msra.gmra.mrb[26].mxu0 %vm139_vm1, %v10156_v14 }
 0xa98   :  { %12224 = vmatpush3.bf16.msra.mxu0 %v13053_v21  ;;  %11189 = vmatprep.mubr.msk.f32.mxu0 %vm12911_vm0, %v12912_v8 }
 0xa99   :  { %12225 = vmatprep.subr.bf16.mxu0 %v12910_v0 }
 0xa9c   :  { %12227 = vmatpush3.bf16.msra.mxu0 %v13077_v27 }
 0xa9d   :  { %12234 = vmatprep.subr.bf16.mxu0 %v12910_v0 }
 0xa9f   :  { %11190 = vmatmul.mubr.msk.f32.vlgmr.msra.gmra.mrb[28].mxu0 %vm139_vm1, %v10156_v14 }
 0xaa0   :  { %12236 = vmatpush3.bf16.msra.mxu0 %v13101_v33  ;;  %11211 = vmatprep.mubr.msk.f32.mxu0 %vm12911_vm0, %v12912_v8 }
 0xaa1   :  { %12237 = vmatprep.subr.bf16.mxu0 %v12910_v0 }
 0xaa4   :  { %12239 = vmatpush3.bf16.msra.mxu0 %v13125_v39 }
 0xaa5   :  { %12246 = vmatprep.subr.bf16.mxu0 %v12910_v0 }
 0xaa7   :  { %11212 = vmatmul.mubr.msk.f32.vlgmr.msra.gmra.mrb[30].mxu0 %vm139_vm1, %v10156_v14 }
 0xaa8   :  { %12248 = vmatpush3.bf16.msra.mxu0 %v13149_v45  ;;  %11233 = vmatprep.mubr.msk.f32.mxu0 %vm12911_vm0, %v12912_v8 }
 0xaa9   :  { %12249 = vmatprep.subr.bf16.mxu0 %v12910_v0 }
 0xaac   :  { %12251 = vmatpush3.bf16.msra.mxu0 %v13173_v51 }
 0xaad   :  { %11247 = vmatprep.subr.mxu0 %v12912_v8 }
 0xaaf   :  { %11234 = vmatmul.mubr.msk.f32.vlgmr.msra.gmra.mrb[32].mxu0 %vm139_vm1, %v10156_v14 }
 0xab0   :  { %11249 = vmatprep.mubr.msk.f32.mxu0 %vm12911_vm0, %v12912_v8 }
 0xab5   :  { %11248 = vmatpush3.xpose.msk.msra.mxu0 %vm139_vm1, %v13275_v7 }
 0xab6   :  { %11257 = vmatprep.subr.mxu0 %v12912_v8 }
 0xb62   :  { %v2558_v16 = vpop.f32.mrb[24].mxu0 }
 0xb63   :  { %12706 = vtanh.f32 %v2558_v16  ;;  %v11136_v22 = vpop.f32.mrb[25].mxu0 }
 0xb6a   :  { %v2792_v23 = vpop.f32.mrb[26].mxu0 }
 0xb6b   :  { %v11169_v25 = vpop.f32.mrb[27].mxu0 }
 0xb6d   :  { %v12707_v11 = vpop.eup %12706 }
 0xb6e   :  { %11146 = vmatmul.mubr.msk.f32.vlgmr.msra.gmra.mrb[32].mxu1 %vm139_vm1, %v12707_v11 }
 0xb6f   :  { %12206 = vmatpush3.bf16.msra.mxu1 %v12995_v4  ;;  %11156 = vmatprep.mubr.msk.f32.mxu1 %vm12911_vm0, %v12912_v8 }
 0xb70   :  { %12207 = vmatprep.subr.bf16.mxu1 %v12910_v0 }
 0xb72   :  { %v2939_v31 = vpop.f32.mrb[28].mxu0 }
 0xb73   :  { %12209 = vmatpush3.bf16.msra.mxu1 %v13019_v12  ;;  %v11191_v34 = vpop.f32.mrb[29].mxu0 }
 0xb74   :  { %12216 = vmatprep.subr.bf16.mxu1 %v12910_v0 }
 0xb76   :  { %11157 = vmatmul.mubr.msk.f32.vlgmr.msra.gmra.mrb[34].mxu1 %vm139_vm1, %v13464_v47 }
 0xb77   :  { %12218 = vmatpush3.bf16.msra.mxu1 %v13044_v19  ;;  %11178 = vmatprep.mubr.msk.f32.mxu1 %vm12911_vm0, %v12912_v8 }
 0xb78   :  { %12219 = vmatprep.subr.bf16.mxu1 %v12910_v0 }
 0xb7a   :  { %v3086_v15 = vpop.f32.mrb[30].mxu0 }
 0xb7b   :  { %12221 = vmatpush3.bf16.msra.mxu1 %v13073_v26  ;;  %v11213_v37 = vpop.f32.mrb[31].mxu0 }
 0xb7c   :  { %12228 = vmatprep.subr.bf16.mxu1 %v12910_v0 }
 0xb7e   :  { %11179 = vmatmul.mubr.msk.f32.vlgmr.msra.gmra.mrb[36].mxu1 %vm139_vm1, %v13464_v47 }
 0xb7f   :  { %12230 = vmatpush3.bf16.msra.mxu1 %v13097_v32  ;;  %11200 = vmatprep.mubr.msk.f32.mxu1 %vm12911_vm0, %v12912_v8 }
 0xb80   :  { %12231 = vmatprep.subr.bf16.mxu1 %v12910_v0 }
 0xb82   :  { %v3228_v40 = vpop.f32.mrb[32].mxu0 }
 0xb83   :  { %12233 = vmatpush3.bf16.msra.mxu1 %v13121_v38  ;;  %v11235_v42 = vpop.f32.mrb[33].mxu0 }
 0xb84   :  { %12240 = vmatprep.subr.bf16.mxu1 %v12910_v0 }
 0xb86   :  { %11201 = vmatmul.mubr.msk.f32.vlgmr.msra.gmra.mrb[38].mxu1 %vm139_vm1, %v13464_v47 }
 0xb87   :  { %12242 = vmatpush3.bf16.msra.mxu1 %v13145_v44  ;;  %11222 = vmatprep.mubr.msk.f32.mxu1 %vm12911_vm0, %v12912_v8 }
 0xb88   :  { %12243 = vmatprep.subr.bf16.mxu1 %v12910_v0 }
 0xb8b   :  { %12245 = vmatpush3.bf16.msra.mxu1 %v13169_v50 }
 0xb8c   :  { %12252 = vmatprep.subr.bf16.mxu1 %v12910_v0 }
 0xb8e   :  { %11223 = vmatmul.mubr.msk.f32.vlgmr.msra.gmra.mrb[40].mxu1 %vm139_vm1, %v13464_v47 }
 0xb8f   :  { %12254 = vmatpush3.bf16.msra.mxu1 %v13201_v55  ;;  %11244 = vmatprep.mubr.msk.f32.mxu1 %vm12911_vm0, %v12912_v8 }
 0xb90   :  { %12255 = vmatprep.subr.bf16.mxu1 %v12910_v0 }
 0xb93   :  { %12257 = vmatpush3.bf16.msra.mxu1 %v13207_v57 }
 0xb94   :  { %11252 = vmatprep.subr.mxu1 %v12912_v8 }
 0xc41   :  { %v2632_v47 = vpop.f32.mrb[32].mxu1 }
 0xc42   :  { %v13592_v20 = vadd.f32 %v13446_v1, %v2632_v47  ;;  %v11147_v46 = vpop.f32.mrb[33].mxu1 }
 0xc44   :  { %10154 = vst.msk [vmem:[%s14519_s12 + $0x2] sm:$0x3] %vm1401_vm6, %v13592_v20 }
 0xc49   :  { %v2719_v54 = vpop.f32.mrb[34].mxu1 }
 0xc4a   :  { %v2793_v48 = vadd.f32 %v2792_v23, %v2719_v54  ;;  %v11158_v49 = vpop.f32.mrb[35].mxu1 }
 0xc4c   :  { %v2796_v52 = vadd.f32 %v13215_v59, %v2793_v48 }
 0xc4e   :  { %v10159_v56 = vmul.f32 -1.442695, %v2796_v52 }
 0xc50   :  { %12708 = vpow2.f32 %v10159_v56 }
 0xc51   :  { %v2869_v60 = vpop.f32.mrb[36].mxu1 }
 0xc52   :  { %v2940_v61 = vadd.f32 %v2939_v31, %v2869_v60  ;;  %v11180_v62 = vpop.f32.mrb[37].mxu1 }
 0xc54   :  { %v2943_v2 = vadd.f32 %v13221_v5, %v2940_v61 }
 0xc56   :  { %v10162_v3 = vmul.f32 -1.442695, %v2943_v2 }
 0xc58   :  { %12710 = vpow2.f32 %v10162_v3 }
 0xc59   :  { %v3016_v10 = vpop.f32.mrb[38].mxu1 }
 0xc5a   :  { %v12709_v14 = vpop.eup %12708  ;;  %v3087_v16 = vadd.f32 %v3086_v15, %v3016_v10  ;;  %v11202_v22 = vpop.f32.mrb[39].mxu1 }
 0xc5b   :  { %v2800_v11 = vadd.f32 1.0, %v12709_v14 }
 0xc5c   :  { %v3090_v25 = vadd.f32 %v13227_v17, %v3087_v16 }
 0xc5d   :  { %12712 = vrcp.f32 %v2800_v11 }
 0xc5e   :  { %12714 = vtanh.f32 %v3090_v25 }
 0xc61   :  { %v3158_v23 = vpop.f32.mrb[40].mxu1 }
 0xc62   :  { %v12711_v59 = vpop.eup %12710  ;;  %v3229_v34 = vadd.f32 %v3228_v40, %v3158_v23  ;;  %v11224_v37 = vpop.f32.mrb[41].mxu1 }
 0xc63   :  { %v2947_v42 = vadd.f32 1.0, %v12711_v59 }
 0xc64   :  { %v3232_v31 = vadd.f32 %v13233_v30, %v3229_v34 }
 0xc65   :  { %12716 = vrcp.f32 %v2947_v42 }
 0xc66   :  { %v10167_v5 = vmul.f32 -1.442695, %v3232_v31 }
 0xc67   :  { %v12713_v47 = vpop.eup %12712 }
 0xc68   :  { %v12715_v46 = vpop.eup %12714  ;;  %12718 = vpow2.f32 %v10167_v5 }
 0xc69   :  { %v3240_v54 = vmul.f32 %v12715_v46, %v12713_v47 }
 0xc6f   :  { %v12717_v15 = vpop.eup %12716 }
 0xc70   :  { %v3239_v48 = vmul.f32 %v12717_v15, %v13461_v41 }
 0xc72   :  { %v12719_v49 = vpop.eup %12718  ;;  %v13604_v17 = vadd.f32 %v3240_v54, %v3239_v48 }
 0xc73   :  { %v3236_v52 = vadd.f32 1.0, %v12719_v49 }
 0xc74   :  { %12720 = vtanh.f32 %v13604_v17 }
 0xc75   :  { %12722 = vrcp.f32 %v3236_v52 }
 0xc7e   :  { %v12721_v40 = vpop.eup %12720 }
 0xc7f   :  { %v12723_v56 = vpop.eup %12722 }
 0xc80   :  { %v13607_v60 = vmul.f32 %v12723_v56, %v12721_v40 }
 0xc82   :  { %11245 = vmatmul.mubr.msk.f32.vlgmr.msra.gmra.mrb[42].mxu1 %vm139_vm1, %v13607_v60 }
 0xc83   :  { %11253 = vmatpush3.xpose.msk.msra.mxu1 %vm139_vm1, %v13287_v28  ;;  %11254 = vmatprep.mubr.msk.f32.mxu1 %vm12911_vm0, %v12912_v8 }
 0xc84   :  { %11262 = vmatprep.subr.mxu1 %v12912_v8 }
 0xd55   :  { %v3313_v30 = vpop.f32.mrb[42].mxu1 }
 0xd56   :  { %v3324_v41 = vrot.slane %v3313_v30, %v13280_v18  ;;  %v11246_v61 = vpop.f32.mrb[43].mxu1 }
 0xd58   :  { %v3325_v62 = vcombine.high %v3324_v41, %v3324_v41  ;;  %v3332_v2 = vrot.slane %v3324_v41, %v13280_v18 }
 0xd5a   :  { %v3339_v3 = vrot.slane %v3325_v62, %v13280_v18  ;;  %11250 = vmatmul.mubr.msk.f32.vlgmr.msra.gmra.mrb[34].mxu0 %vm139_vm1, %v3332_v2 }
 0xd5b   :  { %11258 = vmatpush3.msra.mxu0 %v13275_v7  ;;  %11259 = vmatprep.mubr.msk.f32.mxu0 %vm12911_vm0, %v12912_v8 }
 0xd5c   :  { %11255 = vmatmul.mubr.msk.f32.vlgmr.msra.gmra.mrb[44].mxu1 %vm139_vm1, %v3339_v3  ;;  %12258 = vmatprep.subr.bf16.mxu0 %v12910_v0 }
 0xd5d   :  { %11263 = vmatpush3.msra.mxu1 %v13287_v28  ;;  %11264 = vmatprep.mubr.msk.f32.mxu1 %vm12911_vm0, %v12912_v8 }
 0xd5e   :  { %12270 = vmatprep.subr.bf16.mxu1 %v12910_v0 }
 0xe2d   :  { %v3408_v10 = vpop.f32.mrb[34].mxu0 }
 0xe2e   :  { %v3409_v14 = vadd.f32 %v3408_v10, %v13307_v36  ;;  %v11251_v16 = vpop.f32.mrb[35].mxu0  ;;  %v10180_v10 = vld [vmem:[%s14510_s0 + $0x6] sm:$0x3] }
 0xe2f   :  { %v3480_v22 = vpop.f32.mrb[44].mxu1 }
 0xe30   :  { %v3481_v7 = vadd.f32 %v3480_v22, %v13311_v43  ;;  %v11256_v11 = vpop.f32.mrb[45].mxu1  ;;  %v3484_v25 = vsel %vm1004_vm3, %v3409_v14, -inf }
 0xe31   :  { %3485 = vmax.xlane.f32.xlu1 %v3484_v25 }
 0xe32   :  { %v3487_v23 = vsel %vm1004_vm3, %v3481_v7, -inf }
 0xe33   :  { %3488 = vmax.xlane.f32.xlu0 %v3487_v23 }
 0xebe   :  { %v3486_v28 = vpop.xlane.xlu1 %3485 }
 0xebf   :  { %v3490_v59 = vsub.f32 %v3409_v14, %v3486_v28  ;;  %v13695_v14 = vld [vmem:[%s14515_s1] sm:$0xff] }
 0xec0   :  { %v3489_v34 = vpop.xlane.xlu0 %3488 }
 0xec1   :  { %v3492_v37 = vmul.f32 1.442695, %v3490_v59  ;;  %v3491_v42 = vsub.f32 %v3481_v7, %v3489_v34 }
 0xec3   :  { %12724 = vpow2.f32 %v3492_v37  ;;  %v3494_v31 = vmul.f32 1.442695, %v3491_v42 }
 0xec5   :  { %12726 = vpow2.f32 %v3494_v31 }
 0xecd   :  { %v12725_v5 = vpop.eup %12724 }
 0xece   :  { %v3496_v47 = vsel %vm1004_vm3, %v12725_v5, 0.0 }
 0xecf   :  { %v12727_v46 = vpop.eup %12726  ;;  %3497 = vadd.xlane.f32.xlu1 %v3496_v47 }
 0xed0   :  { %v3499_v54 = vsel %vm1004_vm3, %v12727_v46, 0.0 }
 0xed1   :  { %3500 = vadd.xlane.f32.xlu0 %v3499_v54 }
 0xf5c   :  { %v3498_v15 = vpop.xlane.xlu1 %3497 }
 0xf5d   :  { %12728 = vrcp.f32 %v3498_v15  ;;  %v13750_v15 = vld [vmem:[%s14512_s7] ss:$0 sm:$0xff] }
 0xf5e   :  { %v3501_v48 = vpop.xlane.xlu0 %3500 }
 0xf5f   :  { %12730 = vrcp.f32 %v3501_v48 }
 0xf67   :  { %v12729_v49 = vpop.eup %12728 }
 0xf68   :  { %v3504_v52 = vmul.f32 %v12729_v49, %v12725_v5 }
 0xf69   :  { %v12731_v40 = vpop.eup %12730 }
 0xf6a   :  { %v3505_v56 = vmul.f32 %v12731_v40, %v12727_v46  ;;  %11260 = vmatmul.mubr.msk.f32.vlgmr.msra.gmra.mrb[36].mxu0 %vm1027_vm4, %v3504_v52 }
 0xf6b   :  { %12260 = vmatpush3.bf16.msra.mxu0 %v13248_v63  ;;  %11275 = vmatprep.mubr.msk.f32.mxu0 %vm12911_vm0, %v12912_v8 }
 0xf6c   :  { %11265 = vmatmul.mubr.msk.f32.vlgmr.msra.gmra.mrb[46].mxu1 %vm1027_vm4, %v3505_v56  ;;  %12261 = vmatprep.subr.bf16.mxu0 %v12910_v0  ;;  %v13756_v56 = vld [vmem:[%s14512_s7 + $0x1] ss:$0 sm:$0xff] }
 0xf6d   :  { %12272 = vmatpush3.bf16.msra.mxu1 %v13363_v53  ;;  %11297 = vmatprep.mubr.msk.f32.mxu1 %vm12911_vm0, %v12912_v8 }
 0xf6e   :  { %12273 = vmatprep.subr.bf16.mxu1 %v12910_v0 }
 0xf6f   :  { %12263 = vmatpush3.bf16.msra.mxu0 %v13261_v6 }
 0xf70   :  { %12264 = vmatprep.subr.bf16.mxu0 %v12910_v0 }
 0xf71   :  { %12275 = vmatpush3.bf16.msra.mxu1 %v13369_v58 }
 0xf72   :  { %11276 = vmatmul.mubr.msk.f32.vlgmr.msra.gmra.mrb[38].mxu0 %vm139_vm1, %v13607_v60  ;;  %12276 = vmatprep.subr.bf16.mxu1 %v12910_v0 }
 0xf73   :  { %12266 = vmatpush3.bf16.msra.mxu0 %v13332_v29  ;;  %11286 = vmatprep.mubr.msk.f32.mxu0 %vm12911_vm0, %v12912_v8 }
 0xf74   :  { %12267 = vmatprep.subr.bf16.mxu0 %v12910_v0 }
 0xf77   :  { %12269 = vmatpush3.bf16.msra.mxu0 %v13342_v35 }
 0xf78   :  { %12282 = vmatprep.subr.bf16.mxu0 %v12910_v0 }
0x103d   :  { %v3575_v30 = vpop.f32.mrb[36].mxu0 }
0x103e   :  { %v11261_v41 = vpop.f32.mrb[37].mxu0 }
0x103f   :  { %v3648_v61 = vpop.f32.mrb[46].mxu1 }
0x1040   :  { %v3724_v62 = vrot.slane %v3648_v61, 7  ;;  %v11266_v2 = vpop.f32.mrb[47].mxu1 }
0x1042   :  { %v3725_v3 = vsel %vm1247_vm5, %v3724_v62, %v3575_v30 }
0x1043   :  { %11287 = vmatmul.mubr.msk.f32.vlgmr.msra.gmra.mrb[38].mxu0 %vm139_vm1, %v3725_v3 }
0x1044   :  { %12284 = vmatpush3.bf16.msra.mxu0 %v13010_v9  ;;  %11319 = vmatprep.mubr.msk.f32.mxu0 %vm12911_vm0, %v12912_v8 }
0x1045   :  { %12285 = vmatprep.subr.bf16.mxu0 %v12910_v0 }
0x1048   :  { %12287 = vmatpush3.bf16.msra.mxu0 %v13023_v13 }
0x1049   :  { %12294 = vmatprep.subr.bf16.mxu0 %v12910_v0 }
0x104b   :  { %11320 = vmatmul.mubr.msk.f32.vlgmr.msra.gmra.mrb[40].mxu0 %vm139_vm1, %v10180_v10 }
0x104c   :  { %12296 = vmatpush3.bf16.msra.mxu0 %v13053_v21  ;;  %11341 = vmatprep.mubr.msk.f32.mxu0 %vm12911_vm0, %v12912_v8 }
0x104d   :  { %12297 = vmatprep.subr.bf16.mxu0 %v12910_v0 }
0x1050   :  { %12299 = vmatpush3.bf16.msra.mxu0 %v13077_v27 }
0x1051   :  { %12306 = vmatprep.subr.bf16.mxu0 %v12910_v0 }
0x1053   :  { %11342 = vmatmul.mubr.msk.f32.vlgmr.msra.gmra.mrb[42].mxu0 %vm139_vm1, %v10180_v10 }
0x1054   :  { %12308 = vmatpush3.bf16.msra.mxu0 %v13101_v33  ;;  %11363 = vmatprep.mubr.msk.f32.mxu0 %vm12911_vm0, %v12912_v8 }
0x1055   :  { %12309 = vmatprep.subr.bf16.mxu0 %v12910_v0 }
0x1058   :  { %12311 = vmatpush3.bf16.msra.mxu0 %v13125_v39 }
0x1059   :  { %12318 = vmatprep.subr.bf16.mxu0 %v12910_v0 }
0x105b   :  { %11364 = vmatmul.mubr.msk.f32.vlgmr.msra.gmra.mrb[44].mxu0 %vm139_vm1, %v10180_v10 }
0x105c   :  { %12320 = vmatpush3.bf16.msra.mxu0 %v13149_v45  ;;  %11385 = vmatprep.mubr.msk.f32.mxu0 %vm12911_vm0, %v12912_v8 }
0x105d   :  { %12321 = vmatprep.subr.bf16.mxu0 %v12910_v0 }
0x1060   :  { %12323 = vmatpush3.bf16.msra.mxu0 %v13173_v51 }
0x1061   :  { %11399 = vmatprep.subr.mxu0 %v12912_v8 }
0x1063   :  { %11386 = vmatmul.mubr.msk.f32.vlgmr.msra.gmra.mrb[46].mxu0 %vm139_vm1, %v10180_v10 }
0x1064   :  { %11401 = vmatprep.mubr.msk.f32.mxu0 %vm12911_vm0, %v12912_v8 }
0x1069   :  { %11400 = vmatpush3.xpose.msk.msra.mxu0 %vm139_vm1, %v13695_v14 }
0x106a   :  { %11409 = vmatprep.subr.mxu0 %v12912_v8 }
0x1116   :  { %v3794_v16 = vpop.f32.mrb[38].mxu0 }
0x1117   :  { %12732 = vtanh.f32 %v3794_v16  ;;  %v11288_v22 = vpop.f32.mrb[39].mxu0  ;;  %v13762_v16 = vld [vmem:[%s14512_s7 + $0x2] ss:$0 sm:$0xff] }
0x111e   :  { %v4028_v11 = vpop.f32.mrb[40].mxu0 }
0x111f   :  { %v11321_v25 = vpop.f32.mrb[41].mxu0 }
0x1121   :  { %v12733_v7 = vpop.eup %12732 }
0x1122   :  { %11298 = vmatmul.mubr.msk.f32.vlgmr.msra.gmra.mrb[48].mxu1 %vm139_vm1, %v12733_v7 }
0x1123   :  { %12278 = vmatpush3.bf16.msra.mxu1 %v12995_v4  ;;  %11308 = vmatprep.mubr.msk.f32.mxu1 %vm12911_vm0, %v12912_v8 }
0x1124   :  { %12279 = vmatprep.subr.bf16.mxu1 %v12910_v0 }
0x1126   :  { %v4175_v23 = vpop.f32.mrb[42].mxu0 }
0x1127   :  { %12281 = vmatpush3.bf16.msra.mxu1 %v13019_v12  ;;  %v11343_v28 = vpop.f32.mrb[43].mxu0 }
0x1128   :  { %12288 = vmatprep.subr.bf16.mxu1 %v12910_v0 }
0x112a   :  { %11309 = vmatmul.mubr.msk.f32.vlgmr.msra.gmra.mrb[50].mxu1 %vm139_vm1, %v13607_v60 }
0x112b   :  { %12290 = vmatpush3.bf16.msra.mxu1 %v13044_v19  ;;  %11330 = vmatprep.mubr.msk.f32.mxu1 %vm12911_vm0, %v12912_v8 }
0x112c   :  { %12291 = vmatprep.subr.bf16.mxu1 %v12910_v0 }
0x112e   :  { %v4322_v59 = vpop.f32.mrb[44].mxu0 }
0x112f   :  { %12293 = vmatpush3.bf16.msra.mxu1 %v13073_v26  ;;  %v11365_v34 = vpop.f32.mrb[45].mxu0 }
0x1130   :  { %12300 = vmatprep.subr.bf16.mxu1 %v12910_v0 }
0x1132   :  { %11331 = vmatmul.mubr.msk.f32.vlgmr.msra.gmra.mrb[52].mxu1 %vm139_vm1, %v13607_v60 }
0x1133   :  { %12302 = vmatpush3.bf16.msra.mxu1 %v13097_v32  ;;  %11352 = vmatprep.mubr.msk.f32.mxu1 %vm12911_vm0, %v12912_v8 }
0x1134   :  { %12303 = vmatprep.subr.bf16.mxu1 %v12910_v0 }
0x1136   :  { %v4464_v37 = vpop.f32.mrb[46].mxu0 }
0x1137   :  { %12305 = vmatpush3.bf16.msra.mxu1 %v13121_v38  ;;  %v11387_v42 = vpop.f32.mrb[47].mxu0 }
0x1138   :  { %12312 = vmatprep.subr.bf16.mxu1 %v12910_v0 }
0x113a   :  { %11353 = vmatmul.mubr.msk.f32.vlgmr.msra.gmra.mrb[54].mxu1 %vm139_vm1, %v13607_v60 }
0x113b   :  { %12314 = vmatpush3.bf16.msra.mxu1 %v13145_v44  ;;  %11374 = vmatprep.mubr.msk.f32.mxu1 %vm12911_vm0, %v12912_v8 }
0x113c   :  { %12315 = vmatprep.subr.bf16.mxu1 %v12910_v0 }
0x113f   :  { %12317 = vmatpush3.bf16.msra.mxu1 %v13169_v50 }
0x1140   :  { %12324 = vmatprep.subr.bf16.mxu1 %v12910_v0 }
0x1142   :  { %11375 = vmatmul.mubr.msk.f32.vlgmr.msra.gmra.mrb[56].mxu1 %vm139_vm1, %v13607_v60 }
0x1143   :  { %12326 = vmatpush3.bf16.msra.mxu1 %v13201_v55  ;;  %11396 = vmatprep.mubr.msk.f32.mxu1 %vm12911_vm0, %v12912_v8 }
0x1144   :  { %12327 = vmatprep.subr.bf16.mxu1 %v12910_v0 }
0x1147   :  { %12329 = vmatpush3.bf16.msra.mxu1 %v13207_v57 }
0x1148   :  { %11404 = vmatprep.subr.mxu1 %v12912_v8 }
0x11f5   :  { %v3868_v60 = vpop.f32.mrb[48].mxu1 }
0x11f6   :  { %v13740_v31 = vadd.f32 %v13446_v1, %v3868_v60  ;;  %v11299_v5 = vpop.f32.mrb[49].mxu1 }
0x11f8   :  { %10178 = vst.msk [vmem:[%s14519_s12 + $0x4] sm:$0x3] %vm1401_vm6, %v13740_v31 }
0x11fd   :  { %v3955_v47 = vpop.f32.mrb[50].mxu1 }
0x11fe   :  { %v4029_v46 = vadd.f32 %v4028_v11, %v3955_v47  ;;  %v11310_v54 = vpop.f32.mrb[51].mxu1 }
0x1200   :  { %v4032_v48 = vadd.f32 %v13750_v15, %v4029_v46 }
0x1202   :  { %v10183_v49 = vmul.f32 -1.442695, %v4032_v48 }
0x1204   :  { %12734 = vpow2.f32 %v10183_v49 }
0x1205   :  { %v4105_v1 = vpop.f32.mrb[52].mxu1 }
0x1206   :  { %v4176_v52 = vadd.f32 %v4175_v23, %v4105_v1  ;;  %v11332_v40 = vpop.f32.mrb[53].mxu1 }
0x1208   :  { %v4179_v30 = vadd.f32 %v13756_v56, %v4176_v52 }
0x120a   :  { %v10186_v41 = vmul.f32 -1.442695, %v4179_v30  ;;  %v13782_v30 = vld [vmem:[%s14515_s1 + $0x8] sm:$0xff] }
0x120c   :  { %12736 = vpow2.f32 %v10186_v41 }
0x120d   :  { %v4252_v61 = vpop.f32.mrb[54].mxu1 }
0x120e   :  { %v12735_v62 = vpop.eup %12734  ;;  %v4323_v2 = vadd.f32 %v4322_v59, %v4252_v61  ;;  %v11354_v3 = vpop.f32.mrb[55].mxu1  ;;  %v13768_v59 = vld [vmem:[%s14512_s7 + $0x3] ss:$0 sm:$0xff] }
0x120f   :  { %v4036_v10 = vadd.f32 1.0, %v12735_v62 }
0x1210   :  { %v4326_v22 = vadd.f32 %v13762_v16, %v4323_v2 }
0x1211   :  { %12738 = vrcp.f32 %v4036_v10 }
0x1212   :  { %12740 = vtanh.f32 %v4326_v22 }
0x1215   :  { %v4394_v7 = vpop.f32.mrb[56].mxu1 }
0x1216   :  { %v12737_v11 = vpop.eup %12736  ;;  %v4465_v25 = vadd.f32 %v4464_v37, %v4394_v7  ;;  %v11376_v23 = vpop.f32.mrb[57].mxu1 }
0x1217   :  { %v4183_v28 = vadd.f32 1.0, %v12737_v11 }
0x1218   :  { %v4468_v34 = vadd.f32 %v13768_v59, %v4465_v25 }
0x1219   :  { %12742 = vrcp.f32 %v4183_v28 }
0x121a   :  { %v10191_v42 = vmul.f32 -1.442695, %v4468_v34 }
0x121b   :  { %v12739_v60 = vpop.eup %12738 }
0x121c   :  { %v12741_v5 = vpop.eup %12740  ;;  %12744 = vpow2.f32 %v10191_v42 }
0x121d   :  { %v4476_v47 = vmul.f32 %v12741_v5, %v12739_v60 }
0x1223   :  { %v12743_v46 = vpop.eup %12742 }
0x1224   :  { %v4475_v54 = vmul.f32 %v12743_v46, %v13604_v17 }
0x1226   :  { %v12745_v48 = vpop.eup %12744  ;;  %v13772_v37 = vadd.f32 %v4476_v47, %v4475_v54 }
0x1227   :  { %v4472_v49 = vadd.f32 1.0, %v12745_v48 }
0x1228   :  { %12746 = vtanh.f32 %v13772_v37 }
0x1229   :  { %12748 = vrcp.f32 %v4472_v49 }
0x1232   :  { %v12747_v1 = vpop.eup %12746 }
0x1233   :  { %v12749_v52 = vpop.eup %12748 }
0x1234   :  { %v13775_v40 = vmul.f32 %v12749_v52, %v12747_v1 }
0x1236   :  { %11397 = vmatmul.mubr.msk.f32.vlgmr.msra.gmra.mrb[58].mxu1 %vm139_vm1, %v13775_v40 }
0x1237   :  { %11405 = vmatpush3.xpose.msk.msra.mxu1 %vm139_vm1, %v13782_v30  ;;  %11406 = vmatprep.mubr.msk.f32.mxu1 %vm12911_vm0, %v12912_v8 }
0x1238   :  { %11414 = vmatprep.subr.mxu1 %v12912_v8 }
0x1309   :  { %v4549_v17 = vpop.f32.mrb[58].mxu1 }
0x130a   :  { %v4560_v41 = vrot.slane %v4549_v17, %v13280_v18  ;;  %v11398_v61 = vpop.f32.mrb[59].mxu1 }
0x130c   :  { %v4561_v62 = vcombine.high %v4560_v41, %v4560_v41  ;;  %v4568_v2 = vrot.slane %v4560_v41, %v13280_v18 }
0x130e   :  { %v4575_v3 = vrot.slane %v4561_v62, %v13280_v18  ;;  %11402 = vmatmul.mubr.msk.f32.vlgmr.msra.gmra.mrb[48].mxu0 %vm139_vm1, %v4568_v2 }
0x130f   :  { %11410 = vmatpush3.msra.mxu0 %v13695_v14  ;;  %11411 = vmatprep.mubr.msk.f32.mxu0 %vm12911_vm0, %v12912_v8 }
0x1310   :  { %11407 = vmatmul.mubr.msk.f32.vlgmr.msra.gmra.mrb[60].mxu1 %vm139_vm1, %v4575_v3  ;;  %12330 = vmatprep.subr.bf16.mxu0 %v12910_v0 }
0x1311   :  { %11415 = vmatpush3.msra.mxu1 %v13782_v30  ;;  %11416 = vmatprep.mubr.msk.f32.mxu1 %vm12911_vm0, %v12912_v8 }
0x1312   :  { %12342 = vmatprep.subr.bf16.mxu1 %v12910_v0 }
0x13e1   :  { %v4644_v10 = vpop.f32.mrb[48].mxu0 }
0x13e2   :  { %v4645_v22 = vadd.f32 %v4644_v10, %v13307_v36  ;;  %v11403_v7 = vpop.f32.mrb[49].mxu0 }
0x13e3   :  { %v4716_v11 = vpop.f32.mrb[60].mxu1 }
0x13e4   :  { %v4717_v25 = vadd.f32 %v4716_v11, %v13311_v43  ;;  %v11408_v23 = vpop.f32.mrb[61].mxu1  ;;  %v4720_v28 = vsel %vm1004_vm3, %v4645_v22, -inf }
0x13e5   :  { %4721 = vmax.xlane.f32.xlu1 %v4720_v28  ;;  %v10204_v28 = vld [vmem:[%s14510_s0 + $0x8] sm:$0x3] }
0x13e6   :  { %v4723_v34 = vsel %vm1004_vm3, %v4717_v25, -inf }
0x13e7   :  { %4724 = vmax.xlane.f32.xlu0 %v4723_v34 }
0x1472   :  { %v4722_v42 = vpop.xlane.xlu1 %4721 }
0x1473   :  { %v4726_v60 = vsub.f32 %v4645_v22, %v4722_v42 }
0x1474   :  { %v4725_v5 = vpop.xlane.xlu0 %4724 }
0x1475   :  { %v4728_v47 = vmul.f32 1.442695, %v4726_v60  ;;  %v4727_v46 = vsub.f32 %v4717_v25, %v4725_v5 }
0x1477   :  { %12750 = vpow2.f32 %v4728_v47  ;;  %v4730_v54 = vmul.f32 1.442695, %v4727_v46 }
0x1479   :  { %12752 = vpow2.f32 %v4730_v54 }
0x1481   :  { %v12751_v48 = vpop.eup %12750 }
0x1482   :  { %v4732_v49 = vsel %vm1004_vm3, %v12751_v48, 0.0 }
0x1483   :  { %v12753_v1 = vpop.eup %12752  ;;  %4733 = vadd.xlane.f32.xlu1 %v4732_v49 }
0x1484   :  { %v4735_v52 = vsel %vm1004_vm3, %v12753_v1, 0.0 }
0x1485   :  { %4736 = vadd.xlane.f32.xlu0 %v4735_v52 }
0x1510   :  { %v4734_v17 = vpop.xlane.xlu1 %4733 }
0x1511   :  { %12754 = vrcp.f32 %v4734_v17  ;;  %v13910_v17 = vld [vmem:[%s14518_s11] ss:$0 sm:$0xff] }
0x1512   :  { %v4737_v41 = vpop.xlane.xlu0 %4736 }
0x1513   :  { %12756 = vrcp.f32 %v4737_v41 }
0x151b   :  { %v12755_v61 = vpop.eup %12754 }
0x151c   :  { %v4740_v62 = vmul.f32 %v12755_v61, %v12751_v48 }
0x151d   :  { %v12757_v2 = vpop.eup %12756 }
0x151e   :  { %v4741_v3 = vmul.f32 %v12757_v2, %v12753_v1  ;;  %11412 = vmatmul.mubr.msk.f32.vlgmr.msra.gmra.mrb[50].mxu0 %vm1027_vm4, %v4740_v62 }
0x151f   :  { %12332 = vmatpush3.bf16.msra.mxu0 %v13248_v63  ;;  %11427 = vmatprep.mubr.msk.f32.mxu0 %vm12911_vm0, %v12912_v8 }
0x1520   :  { %11417 = vmatmul.mubr.msk.f32.vlgmr.msra.gmra.mrb[62].mxu1 %vm1027_vm4, %v4741_v3  ;;  %12333 = vmatprep.subr.bf16.mxu0 %v12910_v0 }
0x1521   :  { %12344 = vmatpush3.bf16.msra.mxu1 %v13363_v53  ;;  %11449 = vmatprep.mubr.msk.f32.mxu1 %vm12911_vm0, %v12912_v8 }
0x1522   :  { %12345 = vmatprep.subr.bf16.mxu1 %v12910_v0 }
0x1523   :  { %12335 = vmatpush3.bf16.msra.mxu0 %v13261_v6 }
0x1524   :  { %12336 = vmatprep.subr.bf16.mxu0 %v12910_v0 }
0x1525   :  { %12347 = vmatpush3.bf16.msra.mxu1 %v13369_v58 }
0x1526   :  { %11428 = vmatmul.mubr.msk.f32.vlgmr.msra.gmra.mrb[52].mxu0 %vm139_vm1, %v13775_v40  ;;  %12348 = vmatprep.subr.bf16.mxu1 %v12910_v0 }
0x1527   :  { %12338 = vmatpush3.bf16.msra.mxu0 %v13332_v29  ;;  %11438 = vmatprep.mubr.msk.f32.mxu0 %vm12911_vm0, %v12912_v8 }
0x1528   :  { %12339 = vmatprep.subr.bf16.mxu0 %v12910_v0 }
0x152b   :  { %12341 = vmatpush3.bf16.msra.mxu0 %v13342_v35 }
0x152c   :  { %12354 = vmatprep.subr.bf16.mxu0 %v12910_v0 }
0x15f1   :  { %v4811_v10 = vpop.f32.mrb[50].mxu0 }
0x15f2   :  { %v11413_v22 = vpop.f32.mrb[51].mxu0 }
0x15f3   :  { %v4884_v7 = vpop.f32.mrb[62].mxu1 }
0x15f4   :  { %v4960_v11 = vrot.slane %v4884_v7, 7  ;;  %v11418_v25 = vpop.f32.mrb[63].mxu1 }
0x15f6   :  { %v4961_v23 = vsel %vm1247_vm5, %v4960_v11, %v4811_v10 }
0x15f7   :  { %11439 = vmatmul.mubr.msk.f32.vlgmr.msra.gmra.mrb[52].mxu0 %vm139_vm1, %v4961_v23 }
0x15f8   :  { %12356 = vmatpush3.bf16.msra.mxu0 %v13010_v9  ;;  %11471 = vmatprep.mubr.msk.f32.mxu0 %vm12911_vm0, %v12912_v8 }
0x15f9   :  { %12357 = vmatprep.subr.bf16.mxu0 %v12910_v0 }
0x15fc   :  { %12359 = vmatpush3.bf16.msra.mxu0 %v13023_v13 }
0x15fd   :  { %12366 = vmatprep.subr.bf16.mxu0 %v12910_v0 }
0x15ff   :  { %11472 = vmatmul.mubr.msk.f32.vlgmr.msra.gmra.mrb[54].mxu0 %vm139_vm1, %v10204_v28 }
0x1600   :  { %12368 = vmatpush3.bf16.msra.mxu0 %v13053_v21  ;;  %11493 = vmatprep.mubr.msk.f32.mxu0 %vm12911_vm0, %v12912_v8 }
0x1601   :  { %12369 = vmatprep.subr.bf16.mxu0 %v12910_v0 }
0x1604   :  { %12371 = vmatpush3.bf16.msra.mxu0 %v13077_v27 }
0x1605   :  { %12378 = vmatprep.subr.bf16.mxu0 %v12910_v0 }
0x1607   :  { %11494 = vmatmul.mubr.msk.f32.vlgmr.msra.gmra.mrb[56].mxu0 %vm139_vm1, %v10204_v28 }
0x1608   :  { %12380 = vmatpush3.bf16.msra.mxu0 %v13101_v33  ;;  %11515 = vmatprep.mubr.msk.f32.mxu0 %vm12911_vm0, %v12912_v8 }
0x1609   :  { %12381 = vmatprep.subr.bf16.mxu0 %v12910_v0 }
0x160c   :  { %12383 = vmatpush3.bf16.msra.mxu0 %v13125_v39 }
0x160d   :  { %12390 = vmatprep.subr.bf16.mxu0 %v12910_v0 }
0x160f   :  { %11516 = vmatmul.mubr.msk.f32.vlgmr.msra.gmra.mrb[58].mxu0 %vm139_vm1, %v10204_v28 }
0x1610   :  { %12392 = vmatpush3.bf16.msra.mxu0 %v13149_v45  ;;  %11537 = vmatprep.mubr.msk.f32.mxu0 %vm12911_vm0, %v12912_v8 }
0x1611   :  { %12393 = vmatprep.subr.bf16.mxu0 %v12910_v0 }
0x1614   :  { %12395 = vmatpush3.bf16.msra.mxu0 %v13173_v51 }
0x1615   :  { %11551 = vmatprep.subr.mxu0 %v12912_v8 }
0x1617   :  { %11538 = vmatmul.mubr.msk.f32.vlgmr.msra.gmra.mrb[60].mxu0 %vm139_vm1, %v10204_v28 }
0x1618   :  { %11553 = vmatprep.mubr.msk.f32.mxu0 %vm12911_vm0, %v12912_v8 }
0x161d   :  { %11552 = vmatpush3.xpose.msk.msra.mxu0 %vm139_vm1, %v13695_v14 }
0x161e   :  { %11561 = vmatprep.subr.mxu0 %v12912_v8 }
0x16ca   :  { %v5030_v34 = vpop.f32.mrb[52].mxu0 }
0x16cb   :  { %12758 = vtanh.f32 %v5030_v34  ;;  %v11440_v42 = vpop.f32.mrb[53].mxu0 }
0x16d2   :  { %v5264_v5 = vpop.f32.mrb[54].mxu0 }
0x16d3   :  { %v11473_v47 = vpop.f32.mrb[55].mxu0 }
0x16d5   :  { %v12759_v60 = vpop.eup %12758 }
0x16d6   :  { %11450 = vmatmul.mubr.msk.f32.vlgmr.msra.gmra.mrb[64].mxu1 %vm139_vm1, %v12759_v60 }
0x16d7   :  { %12350 = vmatpush3.bf16.msra.mxu1 %v12995_v4  ;;  %11460 = vmatprep.mubr.msk.f32.mxu1 %vm12911_vm0, %v12912_v8 }
0x16d8   :  { %12351 = vmatprep.subr.bf16.mxu1 %v12910_v0 }
0x16da   :  { %v5411_v46 = vpop.f32.mrb[56].mxu0 }
0x16db   :  { %12353 = vmatpush3.bf16.msra.mxu1 %v13019_v12  ;;  %v11495_v54 = vpop.f32.mrb[57].mxu0 }
0x16dc   :  { %12360 = vmatprep.subr.bf16.mxu1 %v12910_v0 }
0x16de   :  { %11461 = vmatmul.mubr.msk.f32.vlgmr.msra.gmra.mrb[66].mxu1 %vm139_vm1, %v13775_v40 }
0x16df   :  { %12362 = vmatpush3.bf16.msra.mxu1 %v13044_v19  ;;  %11482 = vmatprep.mubr.msk.f32.mxu1 %vm12911_vm0, %v12912_v8 }
0x16e0   :  { %12363 = vmatprep.subr.bf16.mxu1 %v12910_v0 }
0x16e2   :  { %v5558_v48 = vpop.f32.mrb[58].mxu0 }
0x16e3   :  { %12365 = vmatpush3.bf16.msra.mxu1 %v13073_v26  ;;  %v11517_v49 = vpop.f32.mrb[59].mxu0 }
0x16e4   :  { %12372 = vmatprep.subr.bf16.mxu1 %v12910_v0 }
0x16e6   :  { %11483 = vmatmul.mubr.msk.f32.vlgmr.msra.gmra.mrb[68].mxu1 %vm139_vm1, %v13775_v40 }
0x16e7   :  { %12374 = vmatpush3.bf16.msra.mxu1 %v13097_v32  ;;  %11504 = vmatprep.mubr.msk.f32.mxu1 %vm12911_vm0, %v12912_v8 }
0x16e8   :  { %12375 = vmatprep.subr.bf16.mxu1 %v12910_v0 }
0x16ea   :  { %v5700_v1 = vpop.f32.mrb[60].mxu0 }
0x16eb   :  { %12377 = vmatpush3.bf16.msra.mxu1 %v13121_v38  ;;  %v11539_v52 = vpop.f32.mrb[61].mxu0 }
0x16ec   :  { %12384 = vmatprep.subr.bf16.mxu1 %v12910_v0 }
0x16ee   :  { %11505 = vmatmul.mubr.msk.f32.vlgmr.msra.gmra.mrb[70].mxu1 %vm139_vm1, %v13775_v40 }
0x16ef   :  { %12386 = vmatpush3.bf16.msra.mxu1 %v13145_v44  ;;  %11526 = vmatprep.mubr.msk.f32.mxu1 %vm12911_vm0, %v12912_v8 }
0x16f0   :  { %12387 = vmatprep.subr.bf16.mxu1 %v12910_v0 }
0x16f3   :  { %12389 = vmatpush3.bf16.msra.mxu1 %v13169_v50 }
0x16f4   :  { %12396 = vmatprep.subr.bf16.mxu1 %v12910_v0 }
0x16f6   :  { %11527 = vmatmul.mubr.msk.f32.vlgmr.msra.gmra.mrb[72].mxu1 %vm139_vm1, %v13775_v40 }
0x16f7   :  { %12398 = vmatpush3.bf16.msra.mxu1 %v13201_v55  ;;  %11548 = vmatprep.mubr.msk.f32.mxu1 %vm12911_vm0, %v12912_v8 }
0x16f8   :  { %12399 = vmatprep.subr.bf16.mxu1 %v12910_v0 }
0x16fb   :  { %12401 = vmatpush3.bf16.msra.mxu1 %v13207_v57 }
0x16fc   :  { %11556 = vmatprep.subr.mxu1 %v12912_v8 }
0x17a9   :  { %v5104_v40 = vpop.f32.mrb[64].mxu1 }
0x17aa   :  { %v13913_v41 = vadd.f32 %v13910_v17, %v5104_v40  ;;  %v11451_v61 = vpop.f32.mrb[65].mxu1 }
0x17ac   :  { %10202 = vst.msk [vmem:[%s14519_s12 + $0x6] sm:$0x3] %vm1401_vm6, %v13913_v41 }
0x17b1   :  { %v5191_v62 = vpop.f32.mrb[66].mxu1 }
0x17b2   :  { %v5265_v2 = vadd.f32 %v5264_v5, %v5191_v62  ;;  %v11462_v3 = vpop.f32.mrb[67].mxu1 }
0x17b4   :  { %v5268_v10 = vadd.f32 %v13750_v15, %v5265_v2 }
0x17b6   :  { %v10207_v22 = vmul.f32 -1.442695, %v5268_v10 }
0x17b8   :  { %12760 = vpow2.f32 %v10207_v22 }
0x17b9   :  { %v5341_v7 = vpop.f32.mrb[68].mxu1 }
0x17ba   :  { %v5412_v11 = vadd.f32 %v5411_v46, %v5341_v7  ;;  %v11484_v25 = vpop.f32.mrb[69].mxu1 }
0x17bc   :  { %v5415_v23 = vadd.f32 %v13756_v56, %v5412_v11 }
0x17be   :  { %v10210_v28 = vmul.f32 -1.442695, %v5415_v23 }
0x17c0   :  { %12762 = vpow2.f32 %v10210_v28 }
0x17c1   :  { %v5488_v34 = vpop.f32.mrb[70].mxu1 }
0x17c2   :  { %v12761_v42 = vpop.eup %12760  ;;  %v5559_v60 = vadd.f32 %v5558_v48, %v5488_v34  ;;  %v11506_v47 = vpop.f32.mrb[71].mxu1 }
0x17c3   :  { %v5272_v54 = vadd.f32 1.0, %v12761_v42 }
0x17c4   :  { %v5562_v49 = vadd.f32 %v13762_v16, %v5559_v60 }
0x17c5   :  { %12764 = vrcp.f32 %v5272_v54 }
0x17c6   :  { %12766 = vtanh.f32 %v5562_v49 }
0x17c9   :  { %v5630_v5 = vpop.f32.mrb[72].mxu1 }
0x17ca   :  { %v12763_v52 = vpop.eup %12762  ;;  %v5701_v40 = vadd.f32 %v5700_v1, %v5630_v5  ;;  %v11528_v61 = vpop.f32.mrb[73].mxu1 }
0x17cb   :  { %v5419_v62 = vadd.f32 1.0, %v12763_v52 }
0x17cc   :  { %v5704_v46 = vadd.f32 %v13768_v59, %v5701_v40 }
0x17cd   :  { %12768 = vrcp.f32 %v5419_v62 }
0x17ce   :  { %v10215_v2 = vmul.f32 -1.442695, %v5704_v46 }
0x17cf   :  { %v12765_v3 = vpop.eup %12764 }
0x17d0   :  { %v12767_v10 = vpop.eup %12766  ;;  %12770 = vpow2.f32 %v10215_v2 }
0x17d1   :  { %v5712_v22 = vmul.f32 %v12767_v10, %v12765_v3 }
0x17d7   :  { %v12769_v48 = vpop.eup %12768 }
0x17d8   :  { %v5711_v7 = vmul.f32 %v12769_v48, %v13772_v37 }
0x17da   :  { %v12771_v11 = vpop.eup %12770  ;;  %v13925_v25 = vadd.f32 %v5712_v22, %v5711_v7 }
0x17db   :  { %v5708_v23 = vadd.f32 1.0, %v12771_v11 }
0x17dc   :  { %12772 = vtanh.f32 %v13925_v25 }
0x17dd   :  { %12774 = vrcp.f32 %v5708_v23 }
0x17e6   :  { %v12773_v1 = vpop.eup %12772 }
0x17e7   :  { %v12775_v28 = vpop.eup %12774 }
0x17e8   :  { %v13928_v34 = vmul.f32 %v12775_v28, %v12773_v1 }
0x17ea   :  { %11549 = vmatmul.mubr.msk.f32.vlgmr.msra.gmra.mrb[74].mxu1 %vm139_vm1, %v13928_v34 }
0x17eb   :  { %11557 = vmatpush3.xpose.msk.msra.mxu1 %vm139_vm1, %v13782_v30  ;;  %11558 = vmatprep.mubr.msk.f32.mxu1 %vm12911_vm0, %v12912_v8 }
0x17ec   :  { %11566 = vmatprep.subr.mxu1 %v12912_v8 }
0x18bd   :  { %v5785_v37 = vpop.f32.mrb[74].mxu1 }
0x18be   :  { %v5796_v42 = vrot.slane %v5785_v37, %v13280_v18  ;;  %v11550_v60 = vpop.f32.mrb[75].mxu1 }
0x18c0   :  { %v5797_v47 = vcombine.high %v5796_v42, %v5796_v42  ;;  %v5804_v54 = vrot.slane %v5796_v42, %v13280_v18 }
0x18c2   :  { %v5811_v49 = vrot.slane %v5797_v47, %v13280_v18  ;;  %11554 = vmatmul.mubr.msk.f32.vlgmr.msra.gmra.mrb[62].mxu0 %vm139_vm1, %v5804_v54 }
0x18c3   :  { %11562 = vmatpush3.msra.mxu0 %v13695_v14  ;;  %11563 = vmatprep.mubr.msk.f32.mxu0 %vm12911_vm0, %v12912_v8 }
0x18c4   :  { %11559 = vmatmul.mubr.msk.f32.vlgmr.msra.gmra.mrb[76].mxu1 %vm139_vm1, %v5811_v49  ;;  %12402 = vmatprep.subr.bf16.mxu0 %v12910_v0 }
0x18c5   :  { %11567 = vmatpush3.msra.mxu1 %v13782_v30  ;;  %11568 = vmatprep.mubr.msk.f32.mxu1 %vm12911_vm0, %v12912_v8 }
0x18c6   :  { %12414 = vmatprep.subr.bf16.mxu1 %v12910_v0 }
0x1995   :  { %v5880_v5 = vpop.f32.mrb[62].mxu0 }
0x1996   :  { %v5881_v52 = vadd.f32 %v5880_v5, %v13307_v36  ;;  %v11555_v40 = vpop.f32.mrb[63].mxu0 }
0x1997   :  { %v5952_v61 = vpop.f32.mrb[76].mxu1 }
0x1998   :  { %v5953_v62 = vadd.f32 %v5952_v61, %v13311_v43  ;;  %v11560_v46 = vpop.f32.mrb[77].mxu1  ;;  %v5956_v2 = vsel %vm1004_vm3, %v5881_v52, -inf }
0x1999   :  { %5957 = vmax.xlane.f32.xlu1 %v5956_v2 }
0x199a   :  { %v5959_v3 = vsel %vm1004_vm3, %v5953_v62, -inf }
0x199b   :  { %5960 = vmax.xlane.f32.xlu0 %v5959_v3 }
0x1a26   :  { %v5958_v10 = vpop.xlane.xlu1 %5957 }
0x1a27   :  { %v5962_v22 = vsub.f32 %v5881_v52, %v5958_v10  ;;  %v10228_v10 = vld [vmem:[%s14510_s0 + $0xa] sm:$0x3] }
0x1a28   :  { %v5961_v48 = vpop.xlane.xlu0 %5960 }
0x1a29   :  { %v5964_v7 = vmul.f32 1.442695, %v5962_v22  ;;  %v5963_v11 = vsub.f32 %v5953_v62, %v5961_v48 }
0x1a2b   :  { %12776 = vpow2.f32 %v5964_v7  ;;  %v5966_v23 = vmul.f32 1.442695, %v5963_v11 }
0x1a2d   :  { %12778 = vpow2.f32 %v5966_v23 }
0x1a35   :  { %v12777_v1 = vpop.eup %12776 }
0x1a36   :  { %v5968_v28 = vsel %vm1004_vm3, %v12777_v1, 0.0 }
0x1a37   :  { %v12779_v37 = vpop.eup %12778  ;;  %5969 = vadd.xlane.f32.xlu1 %v5968_v28 }
0x1a38   :  { %v5971_v42 = vsel %vm1004_vm3, %v12779_v37, 0.0 }
0x1a39   :  { %5972 = vadd.xlane.f32.xlu0 %v5971_v42 }
0x1ac4   :  { %v5970_v60 = vpop.xlane.xlu1 %5969 }
0x1ac5   :  { %12780 = vrcp.f32 %v5970_v60 }
0x1ac6   :  { %v5973_v47 = vpop.xlane.xlu0 %5972 }
0x1ac7   :  { %12782 = vrcp.f32 %v5973_v47 }
0x1acf   :  { %v12781_v54 = vpop.eup %12780 }
0x1ad0   :  { %v5976_v49 = vmul.f32 %v12781_v54, %v12777_v1 }
0x1ad1   :  { %v12783_v5 = vpop.eup %12782 }
0x1ad2   :  { %v5977_v52 = vmul.f32 %v12783_v5, %v12779_v37  ;;  %11564 = vmatmul.mubr.msk.f32.vlgmr.msra.gmra.mrb[64].mxu0 %vm1027_vm4, %v5976_v49 }
0x1ad3   :  { %12404 = vmatpush3.bf16.msra.mxu0 %v13248_v63  ;;  %11579 = vmatprep.mubr.msk.f32.mxu0 %vm12911_vm0, %v12912_v8 }
0x1ad4   :  { %11569 = vmatmul.mubr.msk.f32.vlgmr.msra.gmra.mrb[78].mxu1 %vm1027_vm4, %v5977_v52  ;;  %12405 = vmatprep.subr.bf16.mxu0 %v12910_v0 }
0x1ad5   :  { %12416 = vmatpush3.bf16.msra.mxu1 %v13363_v53  ;;  %11601 = vmatprep.mubr.msk.f32.mxu1 %vm12911_vm0, %v12912_v8 }
0x1ad6   :  { %12417 = vmatprep.subr.bf16.mxu1 %v12910_v0 }
0x1ad7   :  { %12407 = vmatpush3.bf16.msra.mxu0 %v13261_v6 }
0x1ad8   :  { %12408 = vmatprep.subr.bf16.mxu0 %v12910_v0 }
0x1ad9   :  { %12419 = vmatpush3.bf16.msra.mxu1 %v13369_v58 }
0x1ada   :  { %11580 = vmatmul.mubr.msk.f32.vlgmr.msra.gmra.mrb[66].mxu0 %vm139_vm1, %v13928_v34  ;;  %12420 = vmatprep.subr.bf16.mxu1 %v12910_v0 }
0x1adb   :  { %12410 = vmatpush3.bf16.msra.mxu0 %v13332_v29  ;;  %11590 = vmatprep.mubr.msk.f32.mxu0 %vm12911_vm0, %v12912_v8 }
0x1adc   :  { %12411 = vmatprep.subr.bf16.mxu0 %v12910_v0 }
0x1adf   :  { %12413 = vmatpush3.bf16.msra.mxu0 %v13342_v35 }
0x1ae0   :  { %12426 = vmatprep.subr.bf16.mxu0 %v12910_v0 }
0x1ba5   :  { %v6047_v40 = vpop.f32.mrb[64].mxu0 }
0x1ba6   :  { %v11565_v61 = vpop.f32.mrb[65].mxu0 }
0x1ba7   :  { %v6120_v62 = vpop.f32.mrb[78].mxu1 }
0x1ba8   :  { %v6196_v46 = vrot.slane %v6120_v62, 7  ;;  %v11570_v2 = vpop.f32.mrb[79].mxu1 }
0x1baa   :  { %v6197_v3 = vsel %vm1247_vm5, %v6196_v46, %v6047_v40 }
0x1bab   :  { %11591 = vmatmul.mubr.msk.f32.vlgmr.msra.gmra.mrb[66].mxu0 %vm139_vm1, %v6197_v3 }
0x1bac   :  { %12428 = vmatpush3.bf16.msra.mxu0 %v13010_v9  ;;  %11623 = vmatprep.mubr.msk.f32.mxu0 %vm12911_vm0, %v12912_v8 }
0x1bad   :  { %12429 = vmatprep.subr.bf16.mxu0 %v12910_v0 }
0x1bb0   :  { %12431 = vmatpush3.bf16.msra.mxu0 %v13023_v13 }
0x1bb1   :  { %12438 = vmatprep.subr.bf16.mxu0 %v12910_v0 }
0x1bb3   :  { %11624 = vmatmul.mubr.msk.f32.vlgmr.msra.gmra.mrb[68].mxu0 %vm139_vm1, %v10228_v10 }
0x1bb4   :  { %12440 = vmatpush3.bf16.msra.mxu0 %v13053_v21  ;;  %11645 = vmatprep.mubr.msk.f32.mxu0 %vm12911_vm0, %v12912_v8 }
0x1bb5   :  { %12441 = vmatprep.subr.bf16.mxu0 %v12910_v0 }
0x1bb8   :  { %12443 = vmatpush3.bf16.msra.mxu0 %v13077_v27 }
0x1bb9   :  { %12450 = vmatprep.subr.bf16.mxu0 %v12910_v0 }
0x1bbb   :  { %11646 = vmatmul.mubr.msk.f32.vlgmr.msra.gmra.mrb[70].mxu0 %vm139_vm1, %v10228_v10 }
0x1bbc   :  { %12452 = vmatpush3.bf16.msra.mxu0 %v13101_v33  ;;  %11667 = vmatprep.mubr.msk.f32.mxu0 %vm12911_vm0, %v12912_v8 }
0x1bbd   :  { %12453 = vmatprep.subr.bf16.mxu0 %v12910_v0 }
0x1bc0   :  { %12455 = vmatpush3.bf16.msra.mxu0 %v13125_v39 }
0x1bc1   :  { %12462 = vmatprep.subr.bf16.mxu0 %v12910_v0 }
0x1bc3   :  { %11668 = vmatmul.mubr.msk.f32.vlgmr.msra.gmra.mrb[72].mxu0 %vm139_vm1, %v10228_v10 }
0x1bc4   :  { %12464 = vmatpush3.bf16.msra.mxu0 %v13149_v45  ;;  %11689 = vmatprep.mubr.msk.f32.mxu0 %vm12911_vm0, %v12912_v8 }
0x1bc5   :  { %12465 = vmatprep.subr.bf16.mxu0 %v12910_v0 }
0x1bc8   :  { %12467 = vmatpush3.bf16.msra.mxu0 %v13173_v51 }
0x1bc9   :  { %11703 = vmatprep.subr.mxu0 %v12912_v8 }
0x1bcb   :  { %11690 = vmatmul.mubr.msk.f32.vlgmr.msra.gmra.mrb[74].mxu0 %vm139_vm1, %v10228_v10 }
0x1bcc   :  { %11705 = vmatprep.mubr.msk.f32.mxu0 %vm12911_vm0, %v12912_v8 }
0x1bd1   :  { %11704 = vmatpush3.xpose.msk.msra.mxu0 %vm139_vm1, %v13695_v14 }
0x1bd2   :  { %11713 = vmatprep.subr.mxu0 %v12912_v8 }
0x1c7e   :  { %v6266_v22 = vpop.f32.mrb[66].mxu0 }
0x1c7f   :  { %12784 = vtanh.f32 %v6266_v22  ;;  %v11592_v48 = vpop.f32.mrb[67].mxu0 }
0x1c86   :  { %v6500_v11 = vpop.f32.mrb[68].mxu0 }
0x1c87   :  { %v11625_v23 = vpop.f32.mrb[69].mxu0 }
0x1c89   :  { %v12785_v7 = vpop.eup %12784 }
0x1c8a   :  { %11602 = vmatmul.mubr.msk.f32.vlgmr.msra.gmra.mrb[80].mxu1 %vm139_vm1, %v12785_v7 }
0x1c8b   :  { %12422 = vmatpush3.bf16.msra.mxu1 %v12995_v4  ;;  %11612 = vmatprep.mubr.msk.f32.mxu1 %vm12911_vm0, %v12912_v8 }
0x1c8c   :  { %12423 = vmatprep.subr.bf16.mxu1 %v12910_v0 }
0x1c8e   :  { %v6647_v1 = vpop.f32.mrb[70].mxu0 }
0x1c8f   :  { %12425 = vmatpush3.bf16.msra.mxu1 %v13019_v12  ;;  %v11647_v28 = vpop.f32.mrb[71].mxu0 }
0x1c90   :  { %12432 = vmatprep.subr.bf16.mxu1 %v12910_v0 }
0x1c92   :  { %11613 = vmatmul.mubr.msk.f32.vlgmr.msra.gmra.mrb[82].mxu1 %vm139_vm1, %v13928_v34 }
0x1c93   :  { %12434 = vmatpush3.bf16.msra.mxu1 %v13044_v19  ;;  %11634 = vmatprep.mubr.msk.f32.mxu1 %vm12911_vm0, %v12912_v8 }
0x1c94   :  { %12435 = vmatprep.subr.bf16.mxu1 %v12910_v0 }
0x1c96   :  { %v6794_v37 = vpop.f32.mrb[72].mxu0 }
0x1c97   :  { %12437 = vmatpush3.bf16.msra.mxu1 %v13073_v26  ;;  %v11669_v42 = vpop.f32.mrb[73].mxu0 }
0x1c98   :  { %12444 = vmatprep.subr.bf16.mxu1 %v12910_v0 }
0x1c9a   :  { %11635 = vmatmul.mubr.msk.f32.vlgmr.msra.gmra.mrb[84].mxu1 %vm139_vm1, %v13928_v34 }
0x1c9b   :  { %12446 = vmatpush3.bf16.msra.mxu1 %v13097_v32  ;;  %11656 = vmatprep.mubr.msk.f32.mxu1 %vm12911_vm0, %v12912_v8 }
0x1c9c   :  { %12447 = vmatprep.subr.bf16.mxu1 %v12910_v0 }
0x1c9e   :  { %v6936_v60 = vpop.f32.mrb[74].mxu0 }
0x1c9f   :  { %12449 = vmatpush3.bf16.msra.mxu1 %v13121_v38  ;;  %v11691_v47 = vpop.f32.mrb[75].mxu0 }
0x1ca0   :  { %12456 = vmatprep.subr.bf16.mxu1 %v12910_v0 }
0x1ca2   :  { %11657 = vmatmul.mubr.msk.f32.vlgmr.msra.gmra.mrb[86].mxu1 %vm139_vm1, %v13928_v34 }
0x1ca3   :  { %12458 = vmatpush3.bf16.msra.mxu1 %v13145_v44  ;;  %11678 = vmatprep.mubr.msk.f32.mxu1 %vm12911_vm0, %v12912_v8 }
0x1ca4   :  { %12459 = vmatprep.subr.bf16.mxu1 %v12910_v0 }
0x1ca7   :  { %12461 = vmatpush3.bf16.msra.mxu1 %v13169_v50 }
0x1ca8   :  { %12468 = vmatprep.subr.bf16.mxu1 %v12910_v0 }
0x1caa   :  { %11679 = vmatmul.mubr.msk.f32.vlgmr.msra.gmra.mrb[88].mxu1 %vm139_vm1, %v13928_v34 }
0x1cab   :  { %12470 = vmatpush3.bf16.msra.mxu1 %v13201_v55  ;;  %11700 = vmatprep.mubr.msk.f32.mxu1 %vm12911_vm0, %v12912_v8 }
0x1cac   :  { %12471 = vmatprep.subr.bf16.mxu1 %v12910_v0 }
0x1caf   :  { %12473 = vmatpush3.bf16.msra.mxu1 %v13207_v57 }
0x1cb0   :  { %11708 = vmatprep.subr.mxu1 %v12912_v8 }
0x1d5d   :  { %v6340_v34 = vpop.f32.mrb[80].mxu1 }
0x1d5e   :  { %v14056_v54 = vadd.f32 %v13910_v17, %v6340_v34  ;;  %v11603_v49 = vpop.f32.mrb[81].mxu1 }
0x1d60   :  { %10226 = vst.msk [vmem:[%s14519_s12 + $0x8] sm:$0x3] %vm1401_vm6, %v14056_v54 }
0x1d65   :  { %v6427_v5 = vpop.f32.mrb[82].mxu1 }
0x1d66   :  { %v6501_v52 = vadd.f32 %v6500_v11, %v6427_v5  ;;  %v11614_v40 = vpop.f32.mrb[83].mxu1 }
0x1d68   :  { %v6504_v61 = vadd.f32 %v13750_v15, %v6501_v52 }
0x1d6a   :  { %v10231_v62 = vmul.f32 -1.442695, %v6504_v61 }
0x1d6c   :  { %12786 = vpow2.f32 %v10231_v62 }
0x1d6d   :  { %v6577_v46 = vpop.f32.mrb[84].mxu1 }
0x1d6e   :  { %v6648_v2 = vadd.f32 %v6647_v1, %v6577_v46  ;;  %v11636_v3 = vpop.f32.mrb[85].mxu1 }
0x1d70   :  { %v6651_v10 = vadd.f32 %v13756_v56, %v6648_v2 }
0x1d72   :  { %v10234_v22 = vmul.f32 -1.442695, %v6651_v10 }
0x1d74   :  { %12788 = vpow2.f32 %v10234_v22 }
0x1d75   :  { %v6724_v48 = vpop.f32.mrb[86].mxu1 }
0x1d76   :  { %v12787_v7 = vpop.eup %12786  ;;  %v6795_v23 = vadd.f32 %v6794_v37, %v6724_v48  ;;  %v11658_v28 = vpop.f32.mrb[87].mxu1 }
0x1d77   :  { %v6508_v42 = vadd.f32 1.0, %v12787_v7 }
0x1d78   :  { %v6798_v47 = vadd.f32 %v13762_v16, %v6795_v23 }
0x1d79   :  { %12790 = vrcp.f32 %v6508_v42 }
0x1d7a   :  { %12792 = vtanh.f32 %v6798_v47 }
0x1d7d   :  { %v6866_v11 = vpop.f32.mrb[88].mxu1 }
0x1d7e   :  { %v12789_v15 = vpop.eup %12788  ;;  %v6937_v34 = vadd.f32 %v6936_v60, %v6866_v11  ;;  %v11680_v49 = vpop.f32.mrb[89].mxu1 }
0x1d7f   :  { %v6655_v5 = vadd.f32 1.0, %v12789_v15 }
0x1d80   :  { %v6940_v1 = vadd.f32 %v13768_v59, %v6937_v34 }
0x1d81   :  { %12794 = vrcp.f32 %v6655_v5 }
0x1d82   :  { %v10239_v56 = vmul.f32 -1.442695, %v6940_v1 }
0x1d83   :  { %v12791_v52 = vpop.eup %12790 }
0x1d84   :  { %v12793_v40 = vpop.eup %12792  ;;  %12796 = vpow2.f32 %v10239_v56 }
0x1d85   :  { %v6948_v61 = vmul.f32 %v12793_v40, %v12791_v52 }
0x1d8b   :  { %v12795_v37 = vpop.eup %12794 }
0x1d8c   :  { %v6947_v62 = vmul.f32 %v12795_v37, %v13925_v25 }
0x1d8e   :  { %v12797_v46 = vpop.eup %12796  ;;  %v14068_v16 = vadd.f32 %v6948_v61, %v6947_v62 }
0x1d8f   :  { %v6944_v2 = vadd.f32 1.0, %v12797_v46 }
0x1d90   :  { %12798 = vtanh.f32 %v14068_v16 }
0x1d91   :  { %12800 = vrcp.f32 %v6944_v2 }
0x1d9a   :  { %v12799_v60 = vpop.eup %12798 }
0x1d9b   :  { %v12801_v3 = vpop.eup %12800 }
0x1d9c   :  { %v14071_v10 = vmul.f32 %v12801_v3, %v12799_v60 }
0x1d9e   :  { %11701 = vmatmul.mubr.msk.f32.vlgmr.msra.gmra.mrb[90].mxu1 %vm139_vm1, %v14071_v10 }
0x1d9f   :  { %11709 = vmatpush3.xpose.msk.msra.mxu1 %vm139_vm1, %v13782_v30  ;;  %11710 = vmatprep.mubr.msk.f32.mxu1 %vm12911_vm0, %v12912_v8 }
0x1da0   :  { %11718 = vmatprep.subr.mxu1 %v12912_v8 }
0x1e71   :  { %v7021_v59 = vpop.f32.mrb[90].mxu1 }
0x1e72   :  { %v7032_v25 = vrot.slane %v7021_v59, %v13280_v18  ;;  %v11702_v22 = vpop.f32.mrb[91].mxu1 }
0x1e74   :  { %v7033_v48 = vcombine.high %v7032_v25, %v7032_v25  ;;  %v7040_v7 = vrot.slane %v7032_v25, %v13280_v18 }
0x1e76   :  { %v7047_v23 = vrot.slane %v7033_v48, %v13280_v18  ;;  %11706 = vmatmul.mubr.msk.f32.vlgmr.msra.gmra.mrb[76].mxu0 %vm139_vm1, %v7040_v7 }
0x1e77   :  { %11714 = vmatpush3.msra.mxu0 %v13695_v14  ;;  %11715 = vmatprep.mubr.msk.f32.mxu0 %vm12911_vm0, %v12912_v8 }
0x1e78   :  { %11711 = vmatmul.mubr.msk.f32.vlgmr.msra.gmra.mrb[92].mxu1 %vm139_vm1, %v7047_v23  ;;  %12474 = vmatprep.subr.bf16.mxu0 %v12910_v0 }
0x1e79   :  { %11719 = vmatpush3.msra.mxu1 %v13782_v30  ;;  %11720 = vmatprep.mubr.msk.f32.mxu1 %vm12911_vm0, %v12912_v8 }
0x1e7a   :  { %12486 = vmatprep.subr.bf16.mxu1 %v12910_v0 }
0x1f49   :  { %v7116_v28 = vpop.f32.mrb[76].mxu0 }
0x1f4a   :  { %v7117_v42 = vadd.f32 %v7116_v28, %v13307_v36  ;;  %v11707_v47 = vpop.f32.mrb[77].mxu0 }
0x1f4b   :  { %v7188_v11 = vpop.f32.mrb[92].mxu1 }
0x1f4c   :  { %v7189_v14 = vadd.f32 %v7188_v11, %v13311_v43  ;;  %v11712_v15 = vpop.f32.mrb[93].mxu1  ;;  %v7192_v34 = vsel %vm1004_vm3, %v7117_v42, -inf  ;;  %v10252_v11 = vld [vmem:[%s14510_s0 + $0xc] sm:$0x3] }
0x1f4d   :  { %7193 = vmax.xlane.f32.xlu1 %v7192_v34 }
0x1f4e   :  { %v7195_v49 = vsel %vm1004_vm3, %v7189_v14, -inf }
0x1f4f   :  { %7196 = vmax.xlane.f32.xlu0 %v7195_v49 }
0x1fda   :  { %v7194_v30 = vpop.xlane.xlu1 %7193 }
0x1fdb   :  { %v7198_v5 = vsub.f32 %v7117_v42, %v7194_v30 }
0x1fdc   :  { %v7197_v1 = vpop.xlane.xlu0 %7196 }
0x1fdd   :  { %v7200_v56 = vmul.f32 1.442695, %v7198_v5  ;;  %v7199_v52 = vsub.f32 %v7189_v14, %v7197_v1  ;;  %v14159_v14 = vld [vmem:[%s14515_s1] sm:$0xff] }
0x1fdf   :  { %12802 = vpow2.f32 %v7200_v56  ;;  %v7202_v40 = vmul.f32 1.442695, %v7199_v52 }
0x1fe1   :  { %12804 = vpow2.f32 %v7202_v40 }
0x1fe9   :  { %v12803_v61 = vpop.eup %12802 }
0x1fea   :  { %v7204_v37 = vsel %vm1004_vm3, %v12803_v61, 0.0 }
0x1feb   :  { %v12805_v62 = vpop.eup %12804  ;;  %7205 = vadd.xlane.f32.xlu1 %v7204_v37 }
0x1fec   :  { %v7207_v46 = vsel %vm1004_vm3, %v12805_v62, 0.0 }
0x1fed   :  { %7208 = vadd.xlane.f32.xlu0 %v7207_v46 }
0x2078   :  { %v7206_v2 = vpop.xlane.xlu1 %7205 }
0x2079   :  { %12806 = vrcp.f32 %v7206_v2 }
0x207a   :  { %v7209_v60 = vpop.xlane.xlu0 %7208 }
0x207b   :  { %12808 = vrcp.f32 %v7209_v60 }
0x2083   :  { %v12807_v3 = vpop.eup %12806 }
0x2084   :  { %v7212_v59 = vmul.f32 %v12807_v3, %v12803_v61 }
0x2085   :  { %v12809_v25 = vpop.eup %12808 }
0x2086   :  { %v7213_v22 = vmul.f32 %v12809_v25, %v12805_v62  ;;  %11716 = vmatmul.mubr.msk.f32.vlgmr.msra.gmra.mrb[78].mxu0 %vm1027_vm4, %v7212_v59  ;;  %v14214_v59 = vld [vmem:[%s14512_s7] ss:$0 sm:$0xff] }
0x2087   :  { %12476 = vmatpush3.bf16.msra.mxu0 %v13248_v63  ;;  %11731 = vmatprep.mubr.msk.f32.mxu0 %vm12911_vm0, %v12912_v8 }
0x2088   :  { %11721 = vmatmul.mubr.msk.f32.vlgmr.msra.gmra.mrb[94].mxu1 %vm1027_vm4, %v7213_v22  ;;  %12477 = vmatprep.subr.bf16.mxu0 %v12910_v0 }
0x2089   :  { %12488 = vmatpush3.bf16.msra.mxu1 %v13363_v53  ;;  %11753 = vmatprep.mubr.msk.f32.mxu1 %vm12911_vm0, %v12912_v8 }
0x208a   :  { %12489 = vmatprep.subr.bf16.mxu1 %v12910_v0 }
0x208b   :  { %12479 = vmatpush3.bf16.msra.mxu0 %v13261_v6 }
0x208c   :  { %12480 = vmatprep.subr.bf16.mxu0 %v12910_v0 }
0x208d   :  { %12491 = vmatpush3.bf16.msra.mxu1 %v13369_v58 }
0x208e   :  { %11732 = vmatmul.mubr.msk.f32.vlgmr.msra.gmra.mrb[80].mxu0 %vm139_vm1, %v14071_v10  ;;  %12492 = vmatprep.subr.bf16.mxu1 %v12910_v0 }
0x208f   :  { %12482 = vmatpush3.bf16.msra.mxu0 %v13332_v29  ;;  %11742 = vmatprep.mubr.msk.f32.mxu0 %vm12911_vm0, %v12912_v8 }
0x2090   :  { %12483 = vmatprep.subr.bf16.mxu0 %v12910_v0 }
0x2093   :  { %12485 = vmatpush3.bf16.msra.mxu0 %v13342_v35 }
0x2094   :  { %12498 = vmatprep.subr.bf16.mxu0 %v12910_v0 }
0x2159   :  { %v7283_v48 = vpop.f32.mrb[78].mxu0 }
0x215a   :  { %v11717_v7 = vpop.f32.mrb[79].mxu0 }
0x215b   :  { %v7356_v23 = vpop.f32.mrb[94].mxu1 }
0x215c   :  { %v7432_v28 = vrot.slane %v7356_v23, 7  ;;  %v11722_v42 = vpop.f32.mrb[95].mxu1  ;;  %v14220_v23 = vld [vmem:[%s14512_s7 + $0x1] ss:$0 sm:$0xff] }
0x215e   :  { %v7433_v47 = vsel %vm1247_vm5, %v7432_v28, %v7283_v48 }
0x215f   :  { %11743 = vmatmul.mubr.msk.f32.vlgmr.msra.gmra.mrb[80].mxu0 %vm139_vm1, %v7433_v47 }
0x2160   :  { %12500 = vmatpush3.bf16.msra.mxu0 %v13010_v9  ;;  %11775 = vmatprep.mubr.msk.f32.mxu0 %vm12911_vm0, %v12912_v8 }
0x2161   :  { %12501 = vmatprep.subr.bf16.mxu0 %v12910_v0 }
0x2164   :  { %12503 = vmatpush3.bf16.msra.mxu0 %v13023_v13 }
0x2165   :  { %12510 = vmatprep.subr.bf16.mxu0 %v12910_v0 }
0x2167   :  { %11776 = vmatmul.mubr.msk.f32.vlgmr.msra.gmra.mrb[82].mxu0 %vm139_vm1, %v10252_v11 }
0x2168   :  { %12512 = vmatpush3.bf16.msra.mxu0 %v13053_v21  ;;  %11797 = vmatprep.mubr.msk.f32.mxu0 %vm12911_vm0, %v12912_v8 }
0x2169   :  { %12513 = vmatprep.subr.bf16.mxu0 %v12910_v0 }
0x216c   :  { %12515 = vmatpush3.bf16.msra.mxu0 %v13077_v27 }
0x216d   :  { %12522 = vmatprep.subr.bf16.mxu0 %v12910_v0 }
0x216f   :  { %11798 = vmatmul.mubr.msk.f32.vlgmr.msra.gmra.mrb[84].mxu0 %vm139_vm1, %v10252_v11 }
0x2170   :  { %12524 = vmatpush3.bf16.msra.mxu0 %v13101_v33  ;;  %11819 = vmatprep.mubr.msk.f32.mxu0 %vm12911_vm0, %v12912_v8 }
0x2171   :  { %12525 = vmatprep.subr.bf16.mxu0 %v12910_v0 }
0x2174   :  { %12527 = vmatpush3.bf16.msra.mxu0 %v13125_v39 }
0x2175   :  { %12534 = vmatprep.subr.bf16.mxu0 %v12910_v0 }
0x2177   :  { %11820 = vmatmul.mubr.msk.f32.vlgmr.msra.gmra.mrb[86].mxu0 %vm139_vm1, %v10252_v11 }
0x2178   :  { %12536 = vmatpush3.bf16.msra.mxu0 %v13149_v45  ;;  %11841 = vmatprep.mubr.msk.f32.mxu0 %vm12911_vm0, %v12912_v8 }
0x2179   :  { %12537 = vmatprep.subr.bf16.mxu0 %v12910_v0 }
0x217c   :  { %12539 = vmatpush3.bf16.msra.mxu0 %v13173_v51 }
0x217d   :  { %11855 = vmatprep.subr.mxu0 %v12912_v8 }
0x217f   :  { %11842 = vmatmul.mubr.msk.f32.vlgmr.msra.gmra.mrb[88].mxu0 %vm139_vm1, %v10252_v11 }
0x2180   :  { %11857 = vmatprep.mubr.msk.f32.mxu0 %vm12911_vm0, %v12912_v8 }
0x2185   :  { %11856 = vmatpush3.xpose.msk.msra.mxu0 %vm139_vm1, %v14159_v14 }
0x2186   :  { %11865 = vmatprep.subr.mxu0 %v12912_v8 }
0x2232   :  { %v7502_v15 = vpop.f32.mrb[80].mxu0 }
0x2233   :  { %12810 = vtanh.f32 %v7502_v15  ;;  %v11744_v34 = vpop.f32.mrb[81].mxu0 }
0x223a   :  { %v7736_v30 = vpop.f32.mrb[82].mxu0 }
0x223b   :  { %v11777_v5 = vpop.f32.mrb[83].mxu0 }
0x223d   :  { %v12811_v49 = vpop.eup %12810 }
0x223e   :  { %11754 = vmatmul.mubr.msk.f32.vlgmr.msra.gmra.mrb[96].mxu1 %vm139_vm1, %v12811_v49 }
0x223f   :  { %12494 = vmatpush3.bf16.msra.mxu1 %v12995_v4  ;;  %11764 = vmatprep.mubr.msk.f32.mxu1 %vm12911_vm0, %v12912_v8 }
0x2240   :  { %12495 = vmatprep.subr.bf16.mxu1 %v12910_v0 }
0x2242   :  { %v7883_v1 = vpop.f32.mrb[84].mxu0 }
0x2243   :  { %12497 = vmatpush3.bf16.msra.mxu1 %v13019_v12  ;;  %v11799_v56 = vpop.f32.mrb[85].mxu0 }
0x2244   :  { %12504 = vmatprep.subr.bf16.mxu1 %v12910_v0 }
0x2246   :  { %11765 = vmatmul.mubr.msk.f32.vlgmr.msra.gmra.mrb[98].mxu1 %vm139_vm1, %v14071_v10 }
0x2247   :  { %12506 = vmatpush3.bf16.msra.mxu1 %v13044_v19  ;;  %11786 = vmatprep.mubr.msk.f32.mxu1 %vm12911_vm0, %v12912_v8 }
0x2248   :  { %12507 = vmatprep.subr.bf16.mxu1 %v12910_v0 }
0x224a   :  { %v8030_v52 = vpop.f32.mrb[86].mxu0 }
0x224b   :  { %12509 = vmatpush3.bf16.msra.mxu1 %v13073_v26  ;;  %v11821_v40 = vpop.f32.mrb[87].mxu0 }
0x224c   :  { %12516 = vmatprep.subr.bf16.mxu1 %v12910_v0 }
0x224e   :  { %11787 = vmatmul.mubr.msk.f32.vlgmr.msra.gmra.mrb[100].mxu1 %vm139_vm1, %v14071_v10 }
0x224f   :  { %12518 = vmatpush3.bf16.msra.mxu1 %v13097_v32  ;;  %11808 = vmatprep.mubr.msk.f32.mxu1 %vm12911_vm0, %v12912_v8 }
0x2250   :  { %12519 = vmatprep.subr.bf16.mxu1 %v12910_v0 }
0x2252   :  { %v8172_v61 = vpop.f32.mrb[88].mxu0 }
0x2253   :  { %12521 = vmatpush3.bf16.msra.mxu1 %v13121_v38  ;;  %v11843_v37 = vpop.f32.mrb[89].mxu0 }
0x2254   :  { %12528 = vmatprep.subr.bf16.mxu1 %v12910_v0 }
0x2256   :  { %11809 = vmatmul.mubr.msk.f32.vlgmr.msra.gmra.mrb[102].mxu1 %vm139_vm1, %v14071_v10 }
0x2257   :  { %12530 = vmatpush3.bf16.msra.mxu1 %v13145_v44  ;;  %11830 = vmatprep.mubr.msk.f32.mxu1 %vm12911_vm0, %v12912_v8 }
0x2258   :  { %12531 = vmatprep.subr.bf16.mxu1 %v12910_v0 }
0x225b   :  { %12533 = vmatpush3.bf16.msra.mxu1 %v13169_v50 }
0x225c   :  { %12540 = vmatprep.subr.bf16.mxu1 %v12910_v0 }
0x225e   :  { %11831 = vmatmul.mubr.msk.f32.vlgmr.msra.gmra.mrb[104].mxu1 %vm139_vm1, %v14071_v10 }
0x225f   :  { %12542 = vmatpush3.bf16.msra.mxu1 %v13201_v55  ;;  %11852 = vmatprep.mubr.msk.f32.mxu1 %vm12911_vm0, %v12912_v8 }
0x2260   :  { %12543 = vmatprep.subr.bf16.mxu1 %v12910_v0 }
0x2263   :  { %12545 = vmatpush3.bf16.msra.mxu1 %v13207_v57 }
0x2264   :  { %11860 = vmatprep.subr.mxu1 %v12912_v8 }
0x2311   :  { %v7576_v10 = vpop.f32.mrb[96].mxu1 }
0x2312   :  { %v14204_v62 = vadd.f32 %v13910_v17, %v7576_v10  ;;  %v11755_v46 = vpop.f32.mrb[97].mxu1 }
0x2314   :  { %10250 = vst.msk [vmem:[%s14519_s12 + $0xa] sm:$0x3] %vm1401_vm6, %v14204_v62 }
0x2319   :  { %v7663_v2 = vpop.f32.mrb[98].mxu1 }
0x231a   :  { %v7737_v60 = vadd.f32 %v7736_v30, %v7663_v2  ;;  %v11766_v3 = vpop.f32.mrb[99].mxu1  ;;  %v14226_v30 = vld [vmem:[%s14512_s7 + $0x2] ss:$0 sm:$0xff] }
0x231c   :  { %v7740_v25 = vadd.f32 %v14214_v59, %v7737_v60 }
0x231e   :  { %v10255_v22 = vmul.f32 -1.442695, %v7740_v25 }
0x2320   :  { %12812 = vpow2.f32 %v10255_v22 }
0x2321   :  { %v7813_v17 = vpop.f32.mrb[100].mxu1 }
0x2322   :  { %v7884_v48 = vadd.f32 %v7883_v1, %v7813_v17  ;;  %v11788_v7 = vpop.f32.mrb[101].mxu1 }
0x2324   :  { %v7887_v28 = vadd.f32 %v14220_v23, %v7884_v48 }
0x2326   :  { %v10258_v42 = vmul.f32 -1.442695, %v7887_v28 }
0x2328   :  { %12814 = vpow2.f32 %v10258_v42 }
0x2329   :  { %v7960_v47 = vpop.f32.mrb[102].mxu1 }
0x232a   :  { %v12813_v11 = vpop.eup %12812  ;;  %v8031_v15 = vadd.f32 %v8030_v52, %v7960_v47  ;;  %v11810_v34 = vpop.f32.mrb[103].mxu1  ;;  %v14232_v52 = vld [vmem:[%s14512_s7 + $0x3] ss:$0 sm:$0xff] }
0x232b   :  { %v7744_v49 = vadd.f32 1.0, %v12813_v11  ;;  %v14246_v11 = vld [vmem:[%s14515_s1 + $0x8] sm:$0xff] }
0x232c   :  { %v8034_v5 = vadd.f32 %v14226_v30, %v8031_v15 }
0x232d   :  { %12816 = vrcp.f32 %v7744_v49 }
0x232e   :  { %12818 = vtanh.f32 %v8034_v5 }
0x2331   :  { %v8102_v1 = vpop.f32.mrb[104].mxu1 }
0x2332   :  { %v12815_v56 = vpop.eup %12814  ;;  %v8173_v40 = vadd.f32 %v8172_v61, %v8102_v1  ;;  %v11832_v37 = vpop.f32.mrb[105].mxu1 }
0x2333   :  { %v7891_v10 = vadd.f32 1.0, %v12815_v56 }
0x2334   :  { %v8176_v46 = vadd.f32 %v14232_v52, %v8173_v40 }
0x2335   :  { %12820 = vrcp.f32 %v7891_v10 }
0x2336   :  { %v10263_v2 = vmul.f32 -1.442695, %v8176_v46 }
0x2337   :  { %v12817_v60 = vpop.eup %12816 }
0x2338   :  { %v12819_v3 = vpop.eup %12818  ;;  %12822 = vpow2.f32 %v10263_v2 }
0x2339   :  { %v8184_v25 = vmul.f32 %v12819_v3, %v12817_v60 }
0x233f   :  { %v12821_v22 = vpop.eup %12820 }
0x2340   :  { %v8183_v17 = vmul.f32 %v12821_v22, %v14068_v16 }
0x2342   :  { %v12823_v48 = vpop.eup %12822  ;;  %v14236_v61 = vadd.f32 %v8184_v25, %v8183_v17 }
0x2343   :  { %v8180_v7 = vadd.f32 1.0, %v12823_v48 }
0x2344   :  { %12824 = vtanh.f32 %v14236_v61 }
0x2345   :  { %12826 = vrcp.f32 %v8180_v7 }
0x234e   :  { %v12825_v28 = vpop.eup %12824 }
0x234f   :  { %v12827_v42 = vpop.eup %12826 }
0x2350   :  { %v14239_v47 = vmul.f32 %v12827_v42, %v12825_v28 }
0x2352   :  { %11853 = vmatmul.mubr.msk.f32.vlgmr.msra.gmra.mrb[106].mxu1 %vm139_vm1, %v14239_v47 }
0x2353   :  { %11861 = vmatpush3.xpose.msk.msra.mxu1 %vm139_vm1, %v14246_v11  ;;  %11862 = vmatprep.mubr.msk.f32.mxu1 %vm12911_vm0, %v12912_v8 }
0x2354   :  { %11870 = vmatprep.subr.mxu1 %v12912_v8 }
0x2425   :  { %v8257_v16 = vpop.f32.mrb[106].mxu1 }
0x2426   :  { %v8268_v15 = vrot.slane %v8257_v16, %v13280_v18  ;;  %v11854_v34 = vpop.f32.mrb[107].mxu1 }
0x2428   :  { %v8269_v49 = vcombine.high %v8268_v15, %v8268_v15  ;;  %v8276_v5 = vrot.slane %v8268_v15, %v13280_v18 }
0x242a   :  { %v8283_v1 = vrot.slane %v8269_v49, %v13280_v18  ;;  %11858 = vmatmul.mubr.msk.f32.vlgmr.msra.gmra.mrb[90].mxu0 %vm139_vm1, %v8276_v5 }
0x242b   :  { %11866 = vmatpush3.msra.mxu0 %v14159_v14  ;;  %11867 = vmatprep.mubr.msk.f32.mxu0 %vm12911_vm0, %v12912_v8 }
0x242c   :  { %11863 = vmatmul.mubr.msk.f32.vlgmr.msra.gmra.mrb[108].mxu1 %vm139_vm1, %v8283_v1  ;;  %12546 = vmatprep.subr.bf16.mxu0 %v12910_v0 }
0x242d   :  { %11871 = vmatpush3.msra.mxu1 %v14246_v11  ;;  %11872 = vmatprep.mubr.msk.f32.mxu1 %vm12911_vm0, %v12912_v8 }
0x242e   :  { %12558 = vmatprep.subr.bf16.mxu1 %v12910_v0 }
0x24fd   :  { %v8352_v56 = vpop.f32.mrb[90].mxu0 }
0x24fe   :  { %v8353_v40 = vadd.f32 %v8352_v56, %v13307_v36  ;;  %v11859_v37 = vpop.f32.mrb[91].mxu0 }
0x24ff   :  { %v8424_v10 = vpop.f32.mrb[108].mxu1 }
0x2500   :  { %v8425_v46 = vadd.f32 %v8424_v10, %v13311_v43  ;;  %v11864_v2 = vpop.f32.mrb[109].mxu1  ;;  %v8428_v60 = vsel %vm1004_vm3, %v8353_v40, -inf }
0x2501   :  { %8429 = vmax.xlane.f32.xlu1 %v8428_v60 }
0x2502   :  { %v8431_v3 = vsel %vm1004_vm3, %v8425_v46, -inf }
0x2503   :  { %8432 = vmax.xlane.f32.xlu0 %v8431_v3 }
0x258e   :  { %v8430_v25 = vpop.xlane.xlu1 %8429 }
0x258f   :  { %v8434_v22 = vsub.f32 %v8353_v40, %v8430_v25 }
0x2590   :  { %v8433_v17 = vpop.xlane.xlu0 %8432 }
0x2591   :  { %v8436_v48 = vmul.f32 1.442695, %v8434_v22  ;;  %v8435_v7 = vsub.f32 %v8425_v46, %v8433_v17  ;;  %v10276_v22 = vld [vmem:[%s14510_s0 + $0xe] sm:$0x3] }
0x2593   :  { %12828 = vpow2.f32 %v8436_v48  ;;  %v8438_v28 = vmul.f32 1.442695, %v8435_v7 }
0x2595   :  { %12830 = vpow2.f32 %v8438_v28 }
0x259d   :  { %v12829_v42 = vpop.eup %12828 }
0x259e   :  { %v8440_v16 = vsel %vm1004_vm3, %v12829_v42, 0.0 }
0x259f   :  { %v12831_v15 = vpop.eup %12830  ;;  %8441 = vadd.xlane.f32.xlu1 %v8440_v16 }
0x25a0   :  { %v8443_v34 = vsel %vm1004_vm3, %v12831_v15, 0.0 }
0x25a1   :  { %8444 = vadd.xlane.f32.xlu0 %v8443_v34 }
0x262c   :  { %v8442_v49 = vpop.xlane.xlu1 %8441 }
0x262d   :  { %12832 = vrcp.f32 %v8442_v49 }
0x262e   :  { %v8445_v5 = vpop.xlane.xlu0 %8444 }
0x262f   :  { %12834 = vrcp.f32 %v8445_v5 }
0x2637   :  { %v12833_v1 = vpop.eup %12832 }
0x2638   :  { %v8448_v56 = vmul.f32 %v12833_v1, %v12829_v42 }
0x2639   :  { %v12835_v40 = vpop.eup %12834 }
0x263a   :  { %v8449_v37 = vmul.f32 %v12835_v40, %v12831_v15  ;;  %11868 = vmatmul.mubr.msk.f32.vlgmr.msra.gmra.mrb[92].mxu0 %vm1027_vm4, %v8448_v56 }
0x263b   :  { %12548 = vmatpush3.bf16.msra.mxu0 %v13248_v63  ;;  %11883 = vmatprep.mubr.msk.f32.mxu0 %vm12911_vm0, %v12912_v8 }
0x263c   :  { %11873 = vmatmul.mubr.msk.f32.vlgmr.msra.gmra.mrb[110].mxu1 %vm1027_vm4, %v8449_v37  ;;  %12549 = vmatprep.subr.bf16.mxu0 %v12910_v0 }
0x263d   :  { %12560 = vmatpush3.bf16.msra.mxu1 %v13363_v53  ;;  %11905 = vmatprep.mubr.msk.f32.mxu1 %vm12911_vm0, %v12912_v8 }
0x263e   :  { %12561 = vmatprep.subr.bf16.mxu1 %v12910_v0 }
0x263f   :  { %12551 = vmatpush3.bf16.msra.mxu0 %v13261_v6 }
0x2640   :  { %12552 = vmatprep.subr.bf16.mxu0 %v12910_v0 }
0x2641   :  { %12563 = vmatpush3.bf16.msra.mxu1 %v13369_v58 }
0x2642   :  { %11884 = vmatmul.mubr.msk.f32.vlgmr.msra.gmra.mrb[94].mxu0 %vm139_vm1, %v14239_v47  ;;  %12564 = vmatprep.subr.bf16.mxu1 %v12910_v0 }
0x2643   :  { %12554 = vmatpush3.bf16.msra.mxu0 %v13332_v29  ;;  %11894 = vmatprep.mubr.msk.f32.mxu0 %vm12911_vm0, %v12912_v8 }
0x2644   :  { %12555 = vmatprep.subr.bf16.mxu0 %v12910_v0 }
0x2647   :  { %12557 = vmatpush3.bf16.msra.mxu0 %v13342_v35 }
0x2648   :  { %12570 = vmatprep.subr.bf16.mxu0 %v12910_v0 }
0x270d   :  { %v8519_v10 = vpop.f32.mrb[92].mxu0 }
0x270e   :  { %v11869_v46 = vpop.f32.mrb[93].mxu0 }
0x270f   :  { %v8592_v2 = vpop.f32.mrb[110].mxu1 }
0x2710   :  { %v8668_v60 = vrot.slane %v8592_v2, 7  ;;  %v11874_v3 = vpop.f32.mrb[111].mxu1 }
0x2712   :  { %v8669_v25 = vsel %vm1247_vm5, %v8668_v60, %v8519_v10 }
0x2713   :  { %11895 = vmatmul.mubr.msk.f32.vlgmr.msra.gmra.mrb[94].mxu0 %vm139_vm1, %v8669_v25 }
0x2714   :  { %12572 = vmatpush3.bf16.msra.mxu0 %v13010_v9  ;;  %11927 = vmatprep.mubr.msk.f32.mxu0 %vm12911_vm0, %v12912_v8 }
0x2715   :  { %12573 = vmatprep.subr.bf16.mxu0 %v12910_v0 }
0x2718   :  { %12575 = vmatpush3.bf16.msra.mxu0 %v13023_v13 }
0x2719   :  { %12582 = vmatprep.subr.bf16.mxu0 %v12910_v0 }
0x271b   :  { %11928 = vmatmul.mubr.msk.f32.vlgmr.msra.gmra.mrb[96].mxu0 %vm139_vm1, %v10276_v22 }
0x271c   :  { %12584 = vmatpush3.bf16.msra.mxu0 %v13053_v21  ;;  %11949 = vmatprep.mubr.msk.f32.mxu0 %vm12911_vm0, %v12912_v8 }
0x271d   :  { %12585 = vmatprep.subr.bf16.mxu0 %v12910_v0 }
0x2720   :  { %12587 = vmatpush3.bf16.msra.mxu0 %v13077_v27 }
0x2721   :  { %12594 = vmatprep.subr.bf16.mxu0 %v12910_v0 }
0x2723   :  { %11950 = vmatmul.mubr.msk.f32.vlgmr.msra.gmra.mrb[98].mxu0 %vm139_vm1, %v10276_v22 }
0x2724   :  { %12596 = vmatpush3.bf16.msra.mxu0 %v13101_v33  ;;  %11971 = vmatprep.mubr.msk.f32.mxu0 %vm12911_vm0, %v12912_v8 }
0x2725   :  { %12597 = vmatprep.subr.bf16.mxu0 %v12910_v0 }
0x2728   :  { %12599 = vmatpush3.bf16.msra.mxu0 %v13125_v39 }
0x2729   :  { %12606 = vmatprep.subr.bf16.mxu0 %v12910_v0 }
0x272b   :  { %11972 = vmatmul.mubr.msk.f32.vlgmr.msra.gmra.mrb[100].mxu0 %vm139_vm1, %v10276_v22 }
0x272c   :  { %12608 = vmatpush3.bf16.msra.mxu0 %v13149_v45  ;;  %11993 = vmatprep.mubr.msk.f32.mxu0 %vm12911_vm0, %v12912_v8 }
0x272d   :  { %12609 = vmatprep.subr.bf16.mxu0 %v12910_v0 }
0x2730   :  { %12611 = vmatpush3.bf16.msra.mxu0 %v13173_v51 }
0x2731   :  { %12007 = vmatprep.subr.mxu0 %v12912_v8 }
0x2733   :  { %11994 = vmatmul.mubr.msk.f32.vlgmr.msra.gmra.mrb[102].mxu0 %vm139_vm1, %v10276_v22 }
0x2734   :  { %12009 = vmatprep.mubr.msk.f32.mxu0 %vm12911_vm0, %v12912_v8 }
0x2739   :  { %12008 = vmatpush3.xpose.msk.msra.mxu0 %vm139_vm1, %v14159_v14 }
0x273a   :  { %12017 = vmatprep.subr.mxu0 %v12912_v8 }
0x27e6   :  { %v8738_v9 = vpop.f32.mrb[94].mxu0 }
0x27e7   :  { %12836 = vtanh.f32 %v8738_v9  ;;  %v11896_v13 = vpop.f32.mrb[95].mxu0 }
0x27f1   :  { %v12837_v21 = vpop.eup %12836 }
0x27f2   :  { %11906 = vmatmul.mubr.msk.f32.vlgmr.msra.gmra.mrb[112].mxu1 %vm139_vm1, %v12837_v21 }
0x27f3   :  { %12566 = vmatpush3.bf16.msra.mxu1 %v12995_v4  ;;  %11916 = vmatprep.mubr.msk.f32.mxu1 %vm12911_vm0, %v12912_v8  ;;  %v8972_v4 = vpop.f32.mrb[96].mxu0 }
0x27f4   :  { %12567 = vmatprep.subr.bf16.mxu1 %v12910_v0 }
0x27f7   :  { %12569 = vmatpush3.bf16.msra.mxu1 %v13019_v12  ;;  %v11929_v12 = vpop.f32.mrb[97].mxu0 }
0x27f8   :  { %12576 = vmatprep.subr.bf16.mxu1 %v12910_v0 }
0x27fa   :  { %11917 = vmatmul.mubr.msk.f32.vlgmr.msra.gmra.mrb[114].mxu1 %vm139_vm1, %v14239_v47 }
0x27fb   :  { %12578 = vmatpush3.bf16.msra.mxu1 %v13044_v19  ;;  %11938 = vmatprep.mubr.msk.f32.mxu1 %vm12911_vm0, %v12912_v8  ;;  %v9119_v19 = vpop.f32.mrb[98].mxu0 }
0x27fc   :  { %12579 = vmatprep.subr.bf16.mxu1 %v12910_v0 }
0x27ff   :  { %12581 = vmatpush3.bf16.msra.mxu1 %v13073_v26  ;;  %v11951_v26 = vpop.f32.mrb[99].mxu0 }
0x2800   :  { %12588 = vmatprep.subr.bf16.mxu1 %v12910_v0  ;;  %v9266_v27 = vpop.f32.mrb[100].mxu0 }
0x2802   :  { %11939 = vmatmul.mubr.msk.f32.vlgmr.msra.gmra.mrb[116].mxu1 %vm139_vm1, %v14239_v47 }
0x2803   :  { %12590 = vmatpush3.bf16.msra.mxu1 %v13097_v32  ;;  %11960 = vmatprep.mubr.msk.f32.mxu1 %vm12911_vm0, %v12912_v8  ;;  %v11973_v32 = vpop.f32.mrb[101].mxu0 }
0x2804   :  { %12591 = vmatprep.subr.bf16.mxu1 %v12910_v0 }
0x2806   :  { %v9408_v33 = vpop.f32.mrb[102].mxu0 }
0x2807   :  { %12593 = vmatpush3.bf16.msra.mxu1 %v13121_v38  ;;  %v11995_v38 = vpop.f32.mrb[103].mxu0 }
0x2808   :  { %12600 = vmatprep.subr.bf16.mxu1 %v12910_v0 }
0x280a   :  { %11961 = vmatmul.mubr.msk.f32.vlgmr.msra.gmra.mrb[118].mxu1 %vm139_vm1, %v14239_v47 }
0x280b   :  { %12602 = vmatpush3.bf16.msra.mxu1 %v13145_v44  ;;  %11982 = vmatprep.mubr.msk.f32.mxu1 %vm12911_vm0, %v12912_v8  ;;  %v14374_v44 = vld [vmem:[%s14518_s11] ss:$0 sm:$0xff] }
0x280c   :  { %12603 = vmatprep.subr.bf16.mxu1 %v12910_v0 }
0x280f   :  { %12605 = vmatpush3.bf16.msra.mxu1 %v13169_v50 }
0x2810   :  { %12612 = vmatprep.subr.bf16.mxu1 %v12910_v0 }
0x2812   :  { %11983 = vmatmul.mubr.msk.f32.vlgmr.msra.gmra.mrb[120].mxu1 %vm139_vm1, %v14239_v47 }
0x2813   :  { %12614 = vmatpush3.bf16.msra.mxu1 %v13201_v55  ;;  %12004 = vmatprep.mubr.msk.f32.mxu1 %vm12911_vm0, %v12912_v8 }
0x2814   :  { %12615 = vmatprep.subr.bf16.mxu1 %v12910_v0 }
0x2817   :  { %12617 = vmatpush3.bf16.msra.mxu1 %v13207_v57 }
0x2818   :  { %12012 = vmatprep.subr.mxu1 %v12912_v8 }
0x28c5   :  { %v8812_v39 = vpop.f32.mrb[112].mxu1 }
0x28c6   :  { %v14377_v45 = vadd.f32 %v14374_v44, %v8812_v39  ;;  %v11907_v50 = vpop.f32.mrb[113].mxu1 }
0x28c8   :  { %10274 = vst.msk [vmem:[%s14519_s12 + $0xc] sm:$0x3] %vm1401_vm6, %v14377_v45 }
0x28cd   :  { %v8899_v51 = vpop.f32.mrb[114].mxu1 }
0x28ce   :  { %v8973_v55 = vadd.f32 %v8972_v4, %v8899_v51  ;;  %v11918_v57 = vpop.f32.mrb[115].mxu1 }
0x28d0   :  { %v8976_v47 = vadd.f32 %v14214_v59, %v8973_v55 }
0x28d2   :  { %v10279_v17 = vmul.f32 -1.442695, %v8976_v47 }
0x28d4   :  { %12838 = vpow2.f32 %v10279_v17 }
0x28d5   :  { %v9049_v48 = vpop.f32.mrb[116].mxu1 }
0x28d6   :  { %v9120_v7 = vadd.f32 %v9119_v19, %v9049_v48  ;;  %v11940_v28 = vpop.f32.mrb[117].mxu1 }
0x28d8   :  { %v9123_v42 = vadd.f32 %v14220_v23, %v9120_v7 }
0x28da   :  { %v10282_v16 = vmul.f32 -1.442695, %v9123_v42 }
0x28dc   :  { %12840 = vpow2.f32 %v10282_v16 }
0x28dd   :  { %v9196_v15 = vpop.f32.mrb[118].mxu1 }
0x28de   :  { %v12839_v34 = vpop.eup %12838  ;;  %v9267_v49 = vadd.f32 %v9266_v27, %v9196_v15  ;;  %v11962_v5 = vpop.f32.mrb[119].mxu1  ;;  %v2638_v15 = vsel %vm1401_vm6, %v13592_v20, -inf }
0x28df   :  { %v8980_v1 = vadd.f32 1.0, %v12839_v34  ;;  %v1403_v34 = vsel %vm1401_vm6, %v13449_v24, -inf  ;;  %v3874_v5 = vsel %vm1401_vm6, %v13740_v31, -inf }
0x28e0   :  { %v9270_v56 = vadd.f32 %v14226_v30, %v9267_v49  ;;  %v5110_v49 = vsel %vm1401_vm6, %v13913_v41, -inf }
0x28e1   :  { %12842 = vrcp.f32 %v8980_v1  ;;  %v7582_v1 = vsel %vm1401_vm6, %v14204_v62, -inf }
0x28e2   :  { %12844 = vtanh.f32 %v9270_v56  ;;  %v6346_v56 = vsel %vm1401_vm6, %v14056_v54, -inf }
0x28e5   :  { %v9338_v40 = vpop.f32.mrb[120].mxu1 }
0x28e6   :  { %v12841_v59 = vpop.eup %12840  ;;  %v9409_v37 = vadd.f32 %v9408_v33, %v9338_v40  ;;  %v11984_v10 = vpop.f32.mrb[121].mxu1  ;;  %v8818_v40 = vsel %vm1401_vm6, %v14377_v45, -inf }
0x28e7   :  { %v9127_v46 = vadd.f32 1.0, %v12841_v59 }
0x28e8   :  { %v9412_v2 = vadd.f32 %v14232_v52, %v9409_v37 }
0x28e9   :  { %12846 = vrcp.f32 %v9127_v46 }
0x28ea   :  { %v10287_v23 = vmul.f32 -1.442695, %v9412_v2 }
0x28eb   :  { %v12843_v60 = vpop.eup %12842 }
0x28ec   :  { %v12845_v3 = vpop.eup %12844  ;;  %12848 = vpow2.f32 %v10287_v23 }
0x28ed   :  { %v9420_v25 = vmul.f32 %v12845_v3, %v12843_v60 }
0x28f3   :  { %v12847_v22 = vpop.eup %12846 }
0x28f4   :  { %v9419_v9 = vmul.f32 %v12847_v22, %v14236_v61 }
0x28f6   :  { %v12849_v13 = vpop.eup %12848  ;;  %v9421_v30 = vadd.f32 %v9420_v25, %v9419_v9 }
0x28f7   :  { %v9416_v21 = vadd.f32 1.0, %v12849_v13 }
0x28f8   :  { %12850 = vtanh.f32 %v9421_v30 }
0x28f9   :  { %12852 = vrcp.f32 %v9416_v21 }
0x2902   :  { %v12851_v4 = vpop.eup %12850 }
0x2903   :  { %v12853_v12 = vpop.eup %12852 }
0x2904   :  { %v14389_v19 = vmul.f32 %v12853_v12, %v12851_v4 }
0x2906   :  { %12005 = vmatmul.mubr.msk.f32.vlgmr.msra.gmra.mrb[122].mxu1 %vm139_vm1, %v14389_v19 }
0x2907   :  { %12013 = vmatpush3.xpose.msk.msra.mxu1 %vm139_vm1, %v14246_v11  ;;  %12014 = vmatprep.mubr.msk.f32.mxu1 %vm12911_vm0, %v12912_v8 }
0x2908   :  { %12022 = vmatprep.subr.mxu1 %v12912_v8 }
0x29d9   :  { %v9493_v52 = vpop.f32.mrb[122].mxu1 }
0x29da   :  { %v9504_v61 = vrot.slane %v9493_v52, %v13280_v18  ;;  %v12006_v26 = vpop.f32.mrb[123].mxu1 }
0x29dc   :  { %v9505_v27 = vcombine.high %v9504_v61, %v9504_v61  ;;  %v9512_v32 = vrot.slane %v9504_v61, %v13280_v18 }
0x29de   :  { %v9519_v33 = vrot.slane %v9505_v27, %v13280_v18  ;;  %12010 = vmatmul.mubr.msk.f32.vlgmr.msra.gmra.mrb[104].mxu0 %vm139_vm1, %v9512_v32 }
0x29df   :  { %12018 = vmatpush3.msra.mxu0 %v14159_v14  ;;  %12019 = vmatprep.mubr.msk.f32.mxu0 %vm12911_vm0, %v12912_v8 }
0x29e0   :  { %12015 = vmatmul.mubr.msk.f32.vlgmr.msra.gmra.mrb[124].mxu1 %vm139_vm1, %v9519_v33  ;;  %12618 = vmatprep.subr.bf16.mxu0 %v12910_v0 }
0x29e1   :  { %12023 = vmatpush3.msra.mxu1 %v14246_v11  ;;  %12024 = vmatprep.mubr.msk.f32.mxu1 %vm12911_vm0, %v12912_v8 }
0x29e2   :  { %12630 = vmatprep.subr.bf16.mxu1 %v12910_v0 }
0x2ab1   :  { %v9588_v38 = vpop.f32.mrb[104].mxu0 }
0x2ab2   :  { %v9589_v18 = vadd.f32 %v9588_v38, %v13307_v36  ;;  %v12011_v39 = vpop.f32.mrb[105].mxu0 }
0x2ab3   :  { %v9660_v50 = vpop.f32.mrb[124].mxu1 }
0x2ab4   :  { %v9661_v14 = vadd.f32 %v9660_v50, %v13311_v43  ;;  %v12016_v51 = vpop.f32.mrb[125].mxu1  ;;  %v9664_v55 = vsel %vm1004_vm3, %v9589_v18, -inf }
0x2ab5   :  { %9665 = vmax.xlane.f32.xlu1 %v9664_v55 }
0x2ab6   :  { %v9667_v57 = vsel %vm1004_vm3, %v9661_v14, -inf }
0x2ab7   :  { %9668 = vmax.xlane.f32.xlu0 %v9667_v57 }
0x2b42   :  { %v9666_v11 = vpop.xlane.xlu1 %9665 }
0x2b43   :  { %v9670_v47 = vsub.f32 %v9589_v18, %v9666_v11 }
0x2b44   :  { %v9669_v17 = vpop.xlane.xlu0 %9668 }
0x2b45   :  { %v9672_v48 = vmul.f32 1.442695, %v9670_v47  ;;  %v9671_v7 = vsub.f32 %v9661_v14, %v9669_v17 }
0x2b47   :  { %12854 = vpow2.f32 %v9672_v48  ;;  %v9674_v28 = vmul.f32 1.442695, %v9671_v7 }
0x2b49   :  { %12856 = vpow2.f32 %v9674_v28 }
0x2b51   :  { %v12855_v36 = vpop.eup %12854 }
0x2b52   :  { %v9676_v42 = vsel %vm1004_vm3, %v12855_v36, 0.0 }
0x2b53   :  { %v12857_v16 = vpop.eup %12856  ;;  %9677 = vadd.xlane.f32.xlu1 %v9676_v42 }
0x2b54   :  { %v9679_v43 = vsel %vm1004_vm3, %v12857_v16, 0.0 }
0x2b55   :  { %9680 = vadd.xlane.f32.xlu0 %v9679_v43 }
0x2b57   :  { %2639 = vmax.xlane.f32.xlu1 %v2638_v15 }
0x2b59   :  { %1404 = vmax.xlane.f32.xlu0 %v1403_v34 }
0x2b5b   :  { %5111 = vmax.xlane.f32.xlu1 %v5110_v49 }
0x2b5d   :  { %3875 = vmax.xlane.f32.xlu0 %v3874_v5 }
0x2b5f   :  { %7583 = vmax.xlane.f32.xlu1 %v7582_v1 }
0x2b61   :  { %6347 = vmax.xlane.f32.xlu0 %v6346_v56 }
0x2b65   :  { %8819 = vmax.xlane.f32.xlu0 %v8818_v40 }
0x2be0   :  { %v9678_v59 = vpop.xlane.xlu1 %9677 }
0x2be1   :  { %12858 = vrcp.f32 %v9678_v59 }
0x2be2   :  { %v9681_v37 = vpop.xlane.xlu0 %9680 }
0x2be3   :  { %12860 = vrcp.f32 %v9681_v37 }
0x2be4   :  { %v2640_v7 = vpop.xlane.xlu1 %2639 }
0x2be6   :  { %v1405_v10 = vpop.xlane.xlu0 %1404 }
0x2be7   :  { %v1406_v46 = vsub.f32 %v13449_v24, %v1405_v10 }
0x2be8   :  { %v5112_v28 = vpop.xlane.xlu1 %5111 }
0x2be9   :  { %v1407_v2 = vmul.f32 1.442695, %v1406_v46 }
0x2bea   :  { %v3876_v23 = vpop.xlane.xlu0 %3875 }
0x2beb   :  { %v12859_v60 = vpop.eup %12858  ;;  %12862 = vpow2.f32 %v1407_v2  ;;  %v3877_v3 = vsub.f32 %v13740_v31, %v3876_v23 }
0x2bec   :  { %v9684_v25 = vmul.f32 %v12859_v60, %v12855_v36  ;;  %v2641_v36 = vsub.f32 %v13592_v20, %v2640_v7  ;;  %v7584_v43 = vpop.xlane.xlu1 %7583 }
0x2bed   :  { %v12861_v22 = vpop.eup %12860  ;;  %v3878_v9 = vmul.f32 1.442695, %v3877_v3  ;;  %v7585_v34 = vsub.f32 %v14204_v62, %v7584_v43 }
0x2bee   :  { %v9685_v13 = vmul.f32 %v12861_v22, %v12857_v16  ;;  %12020 = vmatmul.mubr.msk.f32.vlgmr.msra.gmra.mrb[106].mxu0 %vm1027_vm4, %v9684_v25  ;;  %v6348_v30 = vpop.xlane.xlu0 %6347  ;;  %v2642_v42 = vmul.f32 1.442695, %v2641_v36  ;;  %v5113_v16 = vsub.f32 %v13913_v41, %v5112_v28 }
0x2bef   :  { %12864 = vpow2.f32 %v3878_v9  ;;  %12620 = vmatpush3.bf16.msra.mxu0 %v13248_v63  ;;  %v6349_v21 = vsub.f32 %v14056_v54, %v6348_v30  ;;  %12035 = vmatprep.mubr.msk.f32.mxu0 %vm12911_vm0, %v12912_v8  ;;  %v7586_v49 = vmul.f32 1.442695, %v7585_v34 }
0x2bf0   :  { %12025 = vmatmul.mubr.msk.f32.vlgmr.msra.gmra.mrb[126].mxu1 %vm1027_vm4, %v9685_v13  ;;  %12621 = vmatprep.subr.bf16.mxu0 %v12910_v0  ;;  %v5114_v15 = vmul.f32 1.442695, %v5113_v16 }
0x2bf1   :  { %v6350_v24 = vmul.f32 1.442695, %v6349_v21  ;;  %12632 = vmatpush3.bf16.msra.mxu1 %v13363_v53  ;;  %12057 = vmatprep.mubr.msk.f32.mxu1 %vm12911_vm0, %v12912_v8 }
0x2bf2   :  { %v8820_v31 = vpop.xlane.xlu0 %8819  ;;  %12633 = vmatprep.subr.bf16.mxu1 %v12910_v0 }
0x2bf3   :  { %12866 = vpow2.f32 %v6350_v24  ;;  %12623 = vmatpush3.bf16.msra.mxu0 %v13261_v6  ;;  %v8821_v63 = vsub.f32 %v14377_v45, %v8820_v31 }
0x2bf4   :  { %12624 = vmatprep.subr.bf16.mxu0 %v12910_v0 }
0x2bf5   :  { %v12863_v54 = vpop.eup %12862  ;;  %v8822_v4 = vmul.f32 1.442695, %v8821_v63  ;;  %12635 = vmatpush3.bf16.msra.mxu1 %v13369_v58 }
0x2bf6   :  { %12036 = vmatmul.mubr.msk.f32.vlgmr.msra.gmra.mrb[108].mxu0 %vm139_vm1, %v14389_v19  ;;  %v1409_v53 = vsel %vm1401_vm6, %v12863_v54, 0.0 }
0x2bf7   :  { %12868 = vpow2.f32 %v8822_v4  ;;  %1410 = vadd.xlane.f32.xlu0 %v1409_v53  ;;  %12626 = vmatpush3.bf16.msra.mxu0 %v13332_v29 }
0x2bf8   :  { %12627 = vmatprep.subr.bf16.mxu0 %v12910_v0  ;;  %12046 = vmatprep.mubr.msk.f32.mxu0 %vm12911_vm0, %v12912_v8 }
0x2bf9   :  { %v12865_v6 = vpop.eup %12864 }
0x2bfa   :  { %v3880_v45 = vsel %vm1401_vm6, %v12865_v6, 0.0 }
0x2bfb   :  { %3881 = vadd.xlane.f32.xlu0 %v3880_v45  ;;  %12629 = vmatpush3.bf16.msra.mxu0 %v13342_v35 }
0x2bfd   :  { %v12867_v58 = vpop.eup %12866 }
0x2bfe   :  { %v6352_v12 = vsel %vm1401_vm6, %v12867_v58, 0.0 }
0x2bff   :  { %6353 = vadd.xlane.f32.xlu0 %v6352_v12 }
0x2c01   :  { %v12869_v19 = vpop.eup %12868 }
0x2c02   :  { %v8824_v52 = vsel %vm1401_vm6, %v12869_v19, 0.0 }
0x2c03   :  { %8825 = vadd.xlane.f32.xlu0 %v8824_v52 }
0x2c84   :  { %v1411_v29 = vpop.xlane.xlu0 %1410 }
0x2c85   :  { %12870 = vrcp.f32 %v1411_v29 }
0x2c88   :  { %v3882_v0 = vpop.xlane.xlu0 %3881 }
0x2c89   :  { %12872 = vrcp.f32 %v3882_v0 }
0x2c8c   :  { %v6354_v61 = vpop.xlane.xlu0 %6353 }
0x2c8d   :  { %12874 = vrcp.f32 %v6354_v61 }
0x2c8f   :  { %v12871_v8 = vpop.eup %12870 }
0x2c90   :  { %v1413_v26 = vmul.f32 %v12871_v8, %v12863_v54  ;;  %v8826_v27 = vpop.xlane.xlu0 %8825 }
0x2c91   :  { %12876 = vrcp.f32 %v8826_v27 }
0x2c92   :  { %1414 = vst.msk [vmem:[%s14520_s13] sm:$0x3] %vm1401_vm6, %v1413_v26 }
0x2c93   :  { %v12873_v35 = vpop.eup %12872 }
0x2c94   :  { %v3884_v32 = vmul.f32 %v12873_v35, %v12865_v6 }
0x2c96   :  { %10179 = vst.msk [vmem:[%s14520_s13 + $0x4] sm:$0x3] %vm1401_vm6, %v3884_v32 }
0x2c97   :  { %v12875_v33 = vpop.eup %12874 }
0x2c98   :  { %v6356_v38 = vmul.f32 %v12875_v33, %v12867_v58 }
0x2c9a   :  { %10227 = vst.msk [vmem:[%s14520_s13 + $0x8] sm:$0x3] %vm1401_vm6, %v6356_v38 }
0x2c9b   :  { %v12877_v18 = vpop.eup %12876 }
0x2c9c   :  { %v8828_v39 = vmul.f32 %v12877_v18, %v12869_v19 }
0x2c9e   :  { %10275 = vst.msk [vmem:[%s14520_s13 + $0xc] sm:$0x3] %vm1401_vm6, %v8828_v39 }
0x2cc1   :  { %v9755_v50 = vpop.f32.mrb[106].mxu0 }
0x2cc2   :  { %v12021_v14 = vpop.f32.mrb[107].mxu0 }
0x2cc3   :  { %v9828_v51 = vpop.f32.mrb[126].mxu1 }
0x2cc4   :  { %v9904_v55 = vrot.slane %v9828_v51, 7  ;;  %v12026_v57 = vpop.f32.mrb[127].mxu1 }
0x2cc6   :  { %v9905_v11 = vsel %vm1247_vm5, %v9904_v55, %v9755_v50 }
0x2cc7   :  { %12047 = vmatmul.mubr.msk.f32.vlgmr.msra.gmra.mrb[108].mxu0 %vm139_vm1, %v9905_v11 }
0x2d9a   :  { %v9974_v47 = vpop.f32.mrb[108].mxu0 }
0x2d9b   :  { %12878 = vtanh.f32 %v9974_v47  ;;  %v12048_v17 = vpop.f32.mrb[109].mxu0 }
0x2d9c   :  { %12880 = vpow2.f32 %v2642_v42 }
0x2d9d   :  { %12882 = vpow2.f32 %v5114_v15 }
0x2d9e   :  { %12884 = vpow2.f32 %v7586_v49 }
0x2da5   :  { %v12879_v48 = vpop.eup %12878 }
0x2da6   :  { %12058 = vmatmul.mubr.msk.f32.vlgmr.msra.gmra.mrb[128].mxu1 %vm139_vm1, %v12879_v48  ;;  %v12881_v41 = vpop.eup %12880 }
0x2da7   :  { %v2644_v40 = vsel %vm1401_vm6, %v12881_v41, 0.0  ;;  %v12883_v59 = vpop.eup %12882 }
0x2da8   :  { %v5116_v62 = vsel %vm1401_vm6, %v12883_v59, 0.0  ;;  %v12885_v37 = vpop.eup %12884 }
0x2e79   :  { %v10048_v5 = vpop.f32.mrb[128].mxu1 }
0x2e7a   :  { %v10049_v1 = vadd.f32 %v14374_v44, %v10048_v5  ;;  %v12059_v56 = vpop.f32.mrb[129].mxu1  ;;  %v7588_v44 = vsel %vm1401_vm6, %v12885_v37, 0.0 }
0x2e7c   :  { %10298 = vst.msk [vmem:[%s14519_s12 + $0xe] sm:$0x3] %vm1401_vm6, %v10049_v1  ;;  %v10054_v20 = vsel %vm1401_vm6, %v10049_v1, -inf }
0x2e7d   :  { %10055 = vmax.xlane.f32.xlu1 %v10054_v20 }
0x2e81   :  { %2645 = vadd.xlane.f32.xlu1 %v2644_v40 }
0x2e85   :  { %5117 = vadd.xlane.f32.xlu1 %v5116_v62 }
0x2e89   :  { %7589 = vadd.xlane.f32.xlu1 %v7588_v44 }
0x2f0a   :  { %v10056_v10 = vpop.xlane.xlu1 %10055 }
0x2f0b   :  { %v10057_v46 = vsub.f32 %v10049_v1, %v10056_v10 }
0x2f0d   :  { %v10058_v2 = vmul.f32 1.442695, %v10057_v46 }
0x2f0e   :  { %v2646_v23 = vpop.xlane.xlu1 %2645 }
0x2f0f   :  { %12886 = vpow2.f32 %v10058_v2 }
0x2f10   :  { %12888 = vrcp.f32 %v2646_v23 }
0x2f12   :  { %v5118_v60 = vpop.xlane.xlu1 %5117 }
0x2f13   :  { %12890 = vrcp.f32 %v5118_v60 }
0x2f16   :  { %v7590_v3 = vpop.xlane.xlu1 %7589 }
0x2f17   :  { %12892 = vrcp.f32 %v7590_v3 }
0x2f19   :  { %v12887_v25 = vpop.eup %12886 }
0x2f1a   :  { %v12889_v22 = vpop.eup %12888  ;;  %v10060_v9 = vsel %vm1401_vm6, %v12887_v25, 0.0 }
0x2f1b   :  { %v2648_v13 = vmul.f32 %v12889_v22, %v12881_v41  ;;  %10061 = vadd.xlane.f32.xlu1 %v10060_v9 }
0x2f1d   :  { %v12891_v30 = vpop.eup %12890  ;;  %10155 = vst.msk [vmem:[%s14520_s13 + $0x2] sm:$0x3] %vm1401_vm6, %v2648_v13 }
0x2f1e   :  { %v5120_v21 = vmul.f32 %v12891_v30, %v12883_v59 }
0x2f20   :  { %10203 = vst.msk [vmem:[%s14520_s13 + $0x6] sm:$0x3] %vm1401_vm6, %v5120_v21 }
0x2f21   :  { %v12893_v24 = vpop.eup %12892 }
0x2f22   :  { %v7592_v31 = vmul.f32 %v12893_v24, %v12885_v37 }
0x2f24   :  { %10251 = vst.msk [vmem:[%s14520_s13 + $0xa] sm:$0x3] %vm1401_vm6, %v7592_v31 }
0x2fa8   :  { %v10062_v63 = vpop.xlane.xlu1 %10061 }
0x2fa9   :  { %12894 = vrcp.f32 %v10062_v63 }
0x2fb3   :  { %v12895_v54 = vpop.eup %12894 }
0x2fb4   :  { %v10064_v4 = vmul.f32 %v12895_v54, %v12887_v25 }
0x2fb6   :  { %10299 = vst.msk [vmem:[%s14520_s13 + $0xe] sm:$0x3] %vm1401_vm6, %v10064_v4 }

</bundles_post_ra>
